<compile_context>
chip_gen: v7x
topology: tpu7x:2x2x1
jax: 0.10.0
libtpu: 0.0.40
codegen_flags: <defaults>
</compile_context>

<pallas_src>
import jax
import jax.numpy as jnp
from jax import lax
from jax.experimental import pallas as pl
from jax.experimental.pallas import tpu as pltpu


# ----------------------------- hardware-aware knobs -------------------------

def _vmem_capacity_bytes():
    try:
        cap = getattr(pltpu.get_tpu_info(), "vmem_capacity_bytes", None)
        if cap:
            return int(cap)
    except Exception:
        pass
    return 64 * 1024 * 1024          # conservative default (v7x per-TensorCore)


def _vmem_limit_bytes():
    # ~half of physical VMEM, never below the 32 MiB default scoped limit.
    return int(min(96 << 20, max(32 << 20, _vmem_capacity_bytes() // 2)))


def _row_tile_base():
    # bigger row tiles on 128 MiB-VMEM parts (v5e/v6e), smaller on 64 MiB v7x.
    return 1024 if _vmem_capacity_bytes() >= (96 << 20) else 512


def _round_up(x, m):
    return (x + m - 1) // m * m


def _pick_row_tile(rows):
    base = _row_tile_base()
    if rows <= base:
        return rows                  # single full-extent block (exempt from 8-row rule)
    return base                      # base is a multiple of 8


# ----------------------------- Pallas kernels -------------------------------

def _matmul_bias_kernel(x_ref, w_ref, b_ref, o_ref):
    # x: (TM, K) bf16 tile, w: (K, N) bf16 (resident), b: (1, N) f32 -> o bf16
    o_ref[...] = (
        jnp.dot(x_ref[...], w_ref[...], preferred_element_type=jnp.float32)
        + b_ref[...]
    ).astype(o_ref.dtype)


def _bn_relu_kernel(y_ref, scale_ref, shift_ref, o_ref):
    # Element-wise BN affine + ReLU on a lane-dense (pixel-packed) tile.
    o_ref[...] = jnp.maximum(
        y_ref[...].astype(jnp.float32) * scale_ref[...] + shift_ref[...], 0.0)


def _make_conv5x5_kernel(H, W, cins, cout, fuse_affine):
    """Fused 5x5 'same' conv over one image per grid step.

    Ref order (inputs):  x_0..x_{S-1}, [scale_0.., shift_0..], w_0..w_{S-1}, bias
      x_s   : (Hp, Wp, cin_s)  zero-padded bf16 NHWC image (batch dim squeezed)
      scale/shift_s : (1, cin_s) f32 resident  (only when fuse_affine: apply the
                      previous layer's BN affine + ReLU to the loaded window)
      w_s   : (5, 5*cin_s, Cout) bf16 taps, resident; w_s[kh] row = kw*cin + c
      bias  : (1, Cout) f32, resident
    Outputs: y (HW, Cout) bf16 pre-BN conv output, sum/sumsq (1, Cout) f32
             per-image partial BN statistics (reduced outside the kernel, so the
             batch grid axis can be "parallel" -> v7x megacore sharding).
    Scratch: acc (HW, Cout) f32 accumulator.
    """
    HW = H * W
    Hp, Wp = H + 4, W + 4
    n = len(cins)

    def kernel(*refs):
        i = 0
        x_refs = refs[i:i + n]; i += n
        if fuse_affine:
            sc_refs = refs[i:i + n]; i += n
            sh_refs = refs[i:i + n]; i += n
        w_refs = refs[i:i + n]; i += n
        b_ref = refs[i]; i += 1
        y_ref, s_ref, q_ref = refs[i:i + 3]; i += 3
        acc_ref = refs[i]

        # init the accumulator with the conv bias (f32, lives in VMEM scratch)
        acc_ref[...] = jnp.broadcast_to(b_ref[...], (HW, cout))

        for si in range(n):
            cin = cins[si]
            xp = x_refs[si][...]                                 # (Hp, Wp, cin) bf16
            if fuse_affine:
                # Fused BN(prev layer) + ReLU on the loaded window; the zero halo
                # must stay zero after the affine, so re-zero it with an iota mask.
                r = lax.broadcasted_iota(jnp.int32, (Hp, Wp, cin), 0)
                c = lax.broadcasted_iota(jnp.int32, (Hp, Wp, cin), 1)
                interior = (r >= 2) & (r < 2 + H) & (c >= 2) & (c < 2 + W)
                xf = xp.astype(jnp.float32)
                xf = (xf * sc_refs[si][...].reshape(1, 1, cin)
                      + sh_refs[si][...].reshape(1, 1, cin))
                xp = jnp.where(interior, jnp.maximum(xf, 0.0), 0.0).astype(jnp.bfloat16)

            # Tap grouping: one dot per kh with K = 5*cin (kw taps concatenated
            # along channels in VMEM) instead of 25 dots with K = cin.
            for kh in range(5):
                patch = jnp.concatenate(
                    [xp[kh:kh + H, kw:kw + W, :] for kw in range(5)], axis=-1)
                patch = patch.reshape(HW, 5 * cin)               # row-major, free
                acc_ref[...] += jnp.dot(patch, w_refs[si][kh],
                                        preferred_element_type=jnp.float32)

        acc = acc_ref[...]
        # TODO(synk): for Cout < 128 this store is lane-masked; packing pixels into
        # lanes here needs an in-kernel sublane->lane relayout (left for later).
        y_ref[...] = acc.astype(y_ref.dtype)
        s_ref[...] = jnp.sum(acc, axis=0, keepdims=True)
        q_ref[...] = jnp.sum(acc * acc, axis=0, keepdims=True)

    return kernel


# ----------------------------- op wrappers ----------------------------------

def conv_transpose_2x2_s2(x_nchw, w, b):
    """nn.ConvTranspose2d(Cin, Cout, kernel_size=2, stride=2).
    w: (Cin, Cout, 2, 2), b: (Cout,).  Returns NHWC bf16 with H, W doubled."""
    N, Cin, Hin, Win = x_nchw.shape
    Cout = w.shape[1]
    M = N * Hin * Win

    x_flat = jnp.transpose(x_nchw, (0, 2, 3, 1)).reshape(M, Cin).astype(jnp.bfloat16)
    # (Cin, Cout, 2, 2) -> (Cin, 2, 2, Cout) -> (Cin, 4*Cout); col = (di*2+dj)*Cout + co
    w2 = jnp.transpose(w, (0, 2, 3, 1)).reshape(Cin, 4 * Cout).astype(jnp.bfloat16)
    b2 = jnp.tile(b, 4).reshape(1, 4 * Cout).astype(jnp.float32)

    tm = _pick_row_tile(M)
    Mp = _round_up(M, tm)
    if Mp != M:
        x_flat = jnp.pad(x_flat, ((0, Mp - M), (0, 0)))

    y = pl.pallas_call(
        _matmul_bias_kernel,
        grid=(Mp // tm,),
        in_specs=[pl.BlockSpec((tm, Cin), lambda i: (i, 0)),
                  pl.BlockSpec((Cin, 4 * Cout), lambda i: (0, 0)),
                  pl.BlockSpec((1, 4 * Cout), lambda i: (0, 0))],
        out_specs=pl.BlockSpec((tm, 4 * Cout), lambda i: (i, 0)),
        out_shape=jax.ShapeDtypeStruct((Mp, 4 * Cout), jnp.bfloat16),
        compiler_params=pltpu.CompilerParams(
            dimension_semantics=("parallel",),
            vmem_limit_bytes=_vmem_limit_bytes()),
        cost_estimate=pl.CostEstimate(
            flops=int(2 * Mp * Cin * 4 * Cout),
            transcendentals=0,
            bytes_accessed=int(2 * Mp * (Cin + 4 * Cout) + 2 * Cin * 4 * Cout)),
    )(x_flat, w2, b2)

    y = y[:M].reshape(N, Hin, Win, 2, 2, Cout)
    # TODO(synk): fold this 2x2 subpixel interleave into the consumer's read path
    # (index it in conv1) instead of an XLA transpose round trip through HBM.
    y = jnp.transpose(y, (0, 1, 3, 2, 4, 5)).reshape(N, 2 * Hin, 2 * Win, Cout)
    return y


def conv5x5_stats(x_streams, w_torch, bias, affines=None):
    """Conv2d(k=5, padding=2) over the channel-concatenation of `x_streams`
    (concat done virtually via split-K accumulation).  Returns the *pre-BN*
    output (N, H*W, Cout) bf16 plus per-image (sum, sumsq) over pixels.

    x_streams: list of NHWC arrays sharing (N, H, W) (cast to bf16 here).
    affines:   None, or per-stream (scale, shift) of shape (cin,) to fuse the
               previous layer's BatchNorm + ReLU into this conv's input path.
    w_torch:   (Cout, sum(cin), 5, 5) PyTorch conv weight; in-channel order
               matches the stream order (torch.cat(streams, dim=1)).
    """
    N, H, W, _ = x_streams[0].shape
    Cout = w_torch.shape[0]
    cins = [int(a.shape[-1]) for a in x_streams]
    HW = H * W
    Hp, Wp = H + 4, W + 4
    fuse = affines is not None

    # Zero-pad spatially (padding=2), single up-front bf16 cast.
    # TODO(synk): drop this host-side pad (DMA the interior into a pre-zeroed
    # VMEM scratch) and row-tile H with a halo for large images / v7x VMEM.
    x_pads = [jnp.pad(a.astype(jnp.bfloat16), ((0, 0), (2, 2), (2, 2), (0, 0)))
              for a in x_streams]

    # Per-stream weights as (5, 5*cin, Cout) bf16: row of w[kh] = kw*cin + c.
    w_splits = []
    off = 0
    for cin in cins:
        wp = jnp.transpose(w_torch[:, off:off + cin], (2, 3, 1, 0))   # (5,5,cin,Cout)
        w_splits.append(wp.reshape(5, 5 * cin, Cout).astype(jnp.bfloat16))
        off += cin
    b2 = bias.reshape(1, Cout).astype(jnp.float32)

    in_arrays = list(x_pads)
    in_specs = [pl.BlockSpec((None, Hp, Wp, cin), lambda n: (n, 0, 0, 0))
                for cin in cins]
    if fuse:
        in_arrays += [sc.reshape(1, cin).astype(jnp.float32)
                      for (sc, _), cin in zip(affines, cins)]
        in_specs += [pl.BlockSpec((1, cin), lambda n: (0, 0)) for cin in cins]
        in_arrays += [sh.reshape(1, cin).astype(jnp.float32)
                      for (_, sh), cin in zip(affines, cins)]
        in_specs += [pl.BlockSpec((1, cin), lambda n: (0, 0)) for cin in cins]
    in_arrays += w_splits
    in_specs += [pl.BlockSpec((5, 5 * cin, Cout), lambda n: (0, 0, 0)) for cin in cins]
    in_arrays.append(b2)
    in_specs.append(pl.BlockSpec((1, Cout), lambda n: (0, 0)))

    out_specs = (pl.BlockSpec((None, HW, Cout), lambda n: (n, 0, 0)),
                 pl.BlockSpec((None, 1, Cout), lambda n: (n, 0, 0)),
                 pl.BlockSpec((None, 1, Cout), lambda n: (n, 0, 0)))
    out_shape = (jax.ShapeDtypeStruct((N, HW, Cout), jnp.bfloat16),
                 jax.ShapeDtypeStruct((N, 1, Cout), jnp.float32),
                 jax.ShapeDtypeStruct((N, 1, Cout), jnp.float32))

    kernel = _make_conv5x5_kernel(H, W, tuple(cins), Cout, fuse)

    flops = 2 * N * HW * 25 * sum(cins) * Cout
    bytes_acc = int(2 * sum(N * Hp * Wp * c for c in cins) + 2 * N * HW * Cout
                    + 2 * 25 * sum(cins) * Cout + 8 * N * Cout)

    y, s, q = pl.pallas_call(
        kernel,
        grid=(N,),
        in_specs=in_specs,
        out_specs=out_specs,
        out_shape=out_shape,
        scratch_shapes=[pltpu.VMEM((HW, Cout), jnp.float32)],
        compiler_params=pltpu.CompilerParams(
            # per-image stats rows -> no cross-step accumulation -> parallel-safe
            dimension_semantics=("parallel",),
            vmem_limit_bytes=_vmem_limit_bytes()),
        cost_estimate=pl.CostEstimate(flops=int(flops), transcendentals=0,
                                      bytes_accessed=bytes_acc),
    )(*in_arrays)
    return y, s, q


def _bn_affine(sum_rows, sq_rows, count, gamma, beta, eps=1e-5):
    """Reduce per-image stats rows -> BatchNorm (training mode) scale/shift."""
    s = jnp.sum(sum_rows, axis=(0, 1))
    q = jnp.sum(sq_rows, axis=(0, 1))
    mean = s / count
    # TODO(synk): switch to centered/Welford accumulation if channel means drift
    # far from zero (sumsq/M - mean^2 cancellation in f32).
    var = jnp.maximum(q / count - mean * mean, 0.0)
    scale = gamma * lax.rsqrt(var + eps)
    shift = beta - mean * scale
    return scale, shift


def _bn_relu_pass(y2d, scale, shift):
    """y2d: (M, C) pre-BN conv output (bf16); scale/shift: (C,).
    Packs `pack` pixels per 128-lane row so loads/stores stay lane-dense."""
    M, C = y2d.shape
    pack = 1
    if C < 128:
        p = max(1, 128 // C)
        while p > 1 and (M % p) != 0:
            p -= 1
        pack = p
    rows = M // pack
    lanes = pack * C

    y_p = y2d.reshape(rows, lanes)                       # free row-major reshape
    scale_p = jnp.tile(scale.reshape(1, C), (1, pack)).astype(jnp.float32)
    shift_p = jnp.tile(shift.reshape(1, C), (1, pack)).astype(jnp.float32)

    tm = _pick_row_tile(rows)
    rows_pad = _round_up(rows, tm)
    if rows_pad != rows:
        y_p = jnp.pad(y_p, ((0, rows_pad - rows), (0, 0)))

    out = pl.pallas_call(
        _bn_relu_kernel,
        grid=(rows_pad // tm,),
        in_specs=[pl.BlockSpec((tm, lanes), lambda i: (i, 0)),
                  pl.BlockSpec((1, lanes), lambda i: (0, 0)),
                  pl.BlockSpec((1, lanes), lambda i: (0, 0))],
        out_specs=pl.BlockSpec((tm, lanes), lambda i: (i, 0)),
        out_shape=jax.ShapeDtypeStruct((rows_pad, lanes), jnp.float32),
        compiler_params=pltpu.CompilerParams(
            dimension_semantics=("parallel",),
            vmem_limit_bytes=_vmem_limit_bytes()),
        cost_estimate=pl.CostEstimate(
            flops=int(2 * rows_pad * lanes), transcendentals=0,
            bytes_accessed=int(6 * rows_pad * lanes)),
    )(y_p, scale_p, shift_p)

    return out[:rows].reshape(M, C)


def _pad_or_crop_to(x, diffY, diffX):
    """F.pad([dx//2, dx-dx//2, dy//2, dy-dy//2]) semantics on NHWC (negative pads crop)."""
    def _one(a, before, after, axis):
        if before > 0 or after > 0:
            pads = [(0, 0)] * a.ndim
            pads[axis] = (max(before, 0), max(after, 0))
            a = jnp.pad(a, pads)
        if before < 0 or after < 0:
            start = max(-before, 0)
            stop = a.shape[axis] - max(-after, 0)
            a = lax.slice_in_dim(a, start, stop, axis=axis)
        return a

    x = _one(x, diffY // 2, diffY - diffY // 2, axis=1)
    x = _one(x, diffX // 2, diffX - diffX // 2, axis=2)
    return x


# ----------------------------- DecoderBlock forward -------------------------

def decoder_block_forward(x_nchw, skip_nchw, params):
    """Reproduces DecoderBlock.forward (training-mode BatchNorm)."""
    # 1) upsample (ConvTranspose2d 2x2 stride 2), NHWC bf16 out
    xu = conv_transpose_2x2_s2(x_nchw, params["up_w"], params["up_b"])
    skip = jnp.transpose(skip_nchw, (0, 2, 3, 1)).astype(jnp.bfloat16)   # NHWC

    # 2) match skip's spatial size (pad or crop, F.pad semantics)
    diffY = skip.shape[1] - xu.shape[1]
    diffX = skip.shape[2] - xu.shape[2]
    if diffY != 0 or diffX != 0:
        xu = _pad_or_crop_to(xu, diffY, diffX)

    N, H, W, _ = skip.shape
    C = params["c1_w"].shape[0]
    count = N * H * W

    # 3) torch.cat([skip, x], dim=1) -> conv1, done as split-K two-stream conv
    #    (no HBM concat / im2col); emits pre-BN output + per-image BN stats.
    y1, s1, q1 = conv5x5_stats([skip, xu], params["c1_w"], params["c1_b"])
    scale1, shift1 = _bn_affine(s1, q1, count, params["bn1_g"], params["bn1_b"])

    # 4) conv2 with BN1 + ReLU fused into its input path (no elementwise HBM
    #    pass for the bn1/relu activation).
    y1_nhwc = y1.reshape(N, H, W, C)                    # free row-major reshape
    y2, s2, q2 = conv5x5_stats([y1_nhwc], params["c2_w"], params["c2_b"],
                               affines=[(scale1, shift1)])
    scale2, shift2 = _bn_affine(s2, q2, count, params["bn2_g"], params["bn2_b"])

    # 5) final BN2 + ReLU (lane-dense pixel-packed elementwise pass), back to NCHW
    out = _bn_relu_pass(y2.reshape(N * H * W, C), scale2, shift2)
    out = out.reshape(N, H, W, C)
    return jnp.transpose(out, (0, 3, 1, 2))


def init_params(key, in_channels, out_channels):
    ks = jax.random.split(key, 6)
    s = 0.05
    return {
        # ConvTranspose2d(in_channels, out_channels, 2, 2): weight (Cin, Cout, 2, 2)
        "up_w": s * jax.random.normal(ks[0], (in_channels, out_channels, 2, 2), jnp.float32),
        "up_b": s * jax.random.normal(ks[1], (out_channels,), jnp.float32),
        # ConvBlock(out_channels*2, out_channels)
        "c1_w": s * jax.random.normal(ks[2], (out_channels, out_channels * 2, 5, 5), jnp.float32),
        "c1_b": s * jax.random.normal(ks[3], (out_channels,), jnp.float32),
        "bn1_g": jnp.ones((out_channels,), jnp.float32),
        "bn1_b": jnp.zeros((out_channels,), jnp.float32),
        "c2_w": s * jax.random.normal(ks[4], (out_channels, out_channels, 5, 5), jnp.float32),
        "c2_b": s * jax.random.normal(ks[5], (out_channels,), jnp.float32),
        "bn2_g": jnp.ones((out_channels,), jnp.float32),
        "bn2_b": jnp.zeros((out_channels,), jnp.float32),
    }


if __name__ == "__main__":
    key = jax.random.PRNGKey(0)
    k_x, k_s, k_p = jax.random.split(key, 3)

    in_channels, out_channels = 8, 4
    batch, h_in, w_in = 2, 8, 8              # upsampled to 16x16, matches skip

    x = jax.random.normal(k_x, (batch, in_channels, h_in, w_in), jnp.float32)
    skip = jax.random.normal(k_s, (batch, out_channels, 2 * h_in, 2 * w_in), jnp.float32)
    params = init_params(k_p, in_channels, out_channels)

    out = jax.jit(decoder_block_forward)(x, skip, params)
    out = jax.block_until_ready(out)
    assert out.shape == (batch, out_channels, 2 * h_in, 2 * w_in)
    assert bool(jnp.all(jnp.isfinite(out)))
    print("KERNEL_OK")
</pallas_src>

<mosaic_0001>
module attributes {stable_mosaic.version = 11 : i64} {
  func.func @_matmul_bias_kernel(%arg0: i32, %arg1: memref<128x8xbf16, #tpu.memory_space<vmem>>, %arg2: memref<8x16xbf16, #tpu.memory_space<vmem>>, %arg3: memref<1x16xf32, #tpu.memory_space<vmem>>, %arg4: memref<128x16xbf16, #tpu.memory_space<vmem>>) attributes {dimension_semantics = [#tpu.dimension_semantics<parallel>], iteration_bounds = array<i64: 1>, scalar_prefetch = 0 : i64, scratch_operands = 0 : i64, tpu.core_type = #tpu.core_type<tc>, window_params = [{transform_indices = @transform_0, window_bounds = array<i64: 128, 8>}, {pipeline_mode = #tpu.pipeline_mode<synchronous>, transform_indices = @transform_1, window_bounds = array<i64: 8, 16>}, {pipeline_mode = #tpu.pipeline_mode<synchronous>, transform_indices = @transform_2, window_bounds = array<i64: 1, 16>}, {transform_indices = @transform_3, window_bounds = array<i64: 128, 16>}]} {
    %c0 = arith.constant 0 : index
    %c0_0 = arith.constant 0 : index
    %0 = vector.load %arg1[%c0, %c0_0] : memref<128x8xbf16, #tpu.memory_space<vmem>>, vector<128x8xbf16>
    %c0_1 = arith.constant 0 : index
    %c0_2 = arith.constant 0 : index
    %1 = vector.load %arg2[%c0_1, %c0_2] : memref<8x16xbf16, #tpu.memory_space<vmem>>, vector<8x16xbf16>
    %cst = arith.constant dense<0.000000e+00> : vector<128x16xf32>
    %2 = tpu.matmul %0, %1, %cst {dimension_numbers = #tpu.dot_dimension_numbers<[1], [0], [0], [1], [0, 0, 1, 1], [], []>} : vector<128x8xbf16>, vector<8x16xbf16>, vector<128x16xf32> -> vector<128x16xf32>
    %c0_3 = arith.constant 0 : index
    %c0_4 = arith.constant 0 : index
    %3 = vector.load %arg3[%c0_3, %c0_4] : memref<1x16xf32, #tpu.memory_space<vmem>>, vector<1x16xf32>
    %4 = vector.broadcast %3 : vector<1x16xf32> to vector<128x16xf32>
    %5 = arith.addf %2, %4 : vector<128x16xf32>
    %6 = arith.truncf %5 : vector<128x16xf32> to vector<128x16xbf16>
    %c0_5 = arith.constant 0 : index
    %c0_6 = arith.constant 0 : index
    %7 = vector.load %arg4[%c0_5, %c0_6] : memref<128x16xbf16, #tpu.memory_space<vmem>>, vector<128x16xbf16>
    tpu.vector_store %arg4[%c0_5, %c0_6], %6 {strides = array<i32>} : memref<128x16xbf16, #tpu.memory_space<vmem>>, vector<128x16xbf16>,
    return
  }
  func.func @transform_0(%arg0: i32) -> (i32, i32) {
    %c0_i32 = arith.constant 0 : i32
    %c0_i32_0 = arith.constant 0 : i32
    return %arg0, %c0_i32 : i32, i32
  }
  func.func @transform_1(%arg0: i32) -> (i32, i32) {
    %c0_i32 = arith.constant 0 : i32
    %c0_i32_0 = arith.constant 0 : i32
    %c0_i32_1 = arith.constant 0 : i32
    return %c0_i32, %c0_i32_0 : i32, i32
  }
  func.func @transform_2(%arg0: i32) -> (i32, i32) {
    %c0_i32 = arith.constant 0 : i32
    %c0_i32_0 = arith.constant 0 : i32
    %c0_i32_1 = arith.constant 0 : i32
    return %c0_i32, %c0_i32_0 : i32, i32
  }
  func.func @transform_3(%arg0: i32) -> (i32, i32) {
    %c0_i32 = arith.constant 0 : i32
    %c0_i32_0 = arith.constant 0 : i32
    return %arg0, %c0_i32 : i32, i32
  }
}

module attributes {stable_mosaic.version = 11 : i64} {
  func.func @kernel(%arg0: i32, %arg1: memref<1x20x20x4xbf16, #tpu.memory_space<vmem>>, %arg2: memref<1x20x20x4xbf16, #tpu.memory_space<vmem>>, %arg3: memref<5x20x4xbf16, #tpu.memory_space<vmem>>, %arg4: memref<5x20x4xbf16, #tpu.memory_space<vmem>>, %arg5: memref<1x4xf32, #tpu.memory_space<vmem>>, %arg6: memref<1x256x4xbf16, #tpu.memory_space<vmem>>, %arg7: memref<1x1x4xf32, #tpu.memory_space<vmem>>, %arg8: memref<1x1x4xf32, #tpu.memory_space<vmem>>, %arg9: memref<256x4xf32, #tpu.memory_space<vmem>>) attributes {dimension_semantics = [#tpu.dimension_semantics<parallel>], iteration_bounds = array<i64: 2>, scalar_prefetch = 0 : i64, scratch_operands = 1 : i64, tpu.core_type = #tpu.core_type<tc>, window_params = [{transform_indices = @transform_0, window_bounds = array<i64: 1, 20, 20, 4>}, {transform_indices = @transform_1, window_bounds = array<i64: 1, 20, 20, 4>}, {pipeline_mode = #tpu.pipeline_mode<synchronous>, transform_indices = @transform_2, window_bounds = array<i64: 5, 20, 4>}, {pipeline_mode = #tpu.pipeline_mode<synchronous>, transform_indices = @transform_3, window_bounds = array<i64: 5, 20, 4>}, {pipeline_mode = #tpu.pipeline_mode<synchronous>, transform_indices = @transform_4, window_bounds = array<i64: 1, 4>}, {transform_indices = @transform_5, window_bounds = array<i64: 1, 256, 4>}, {transform_indices = @transform_6, window_bounds = array<i64: 1, 1, 4>}, {transform_indices = @transform_7, window_bounds = array<i64: 1, 1, 4>}]} {
    %c0 = arith.constant 0 : index
    %c0_0 = arith.constant 0 : index
    %0 = vector.load %arg5[%c0, %c0_0] : memref<1x4xf32, #tpu.memory_space<vmem>>, vector<1x4xf32>
    %1 = vector.shape_cast %0 : vector<1x4xf32> to vector<1x4xf32>
    %2 = vector.broadcast %1 : vector<1x4xf32> to vector<256x4xf32>
    %c0_1 = arith.constant 0 : index
    %c0_2 = arith.constant 0 : index
    %3 = vector.load %arg9[%c0_1, %c0_2] : memref<256x4xf32, #tpu.memory_space<vmem>>, vector<256x4xf32>
    tpu.vector_store %arg9[%c0_1, %c0_2], %2 {strides = array<i32>} : memref<256x4xf32, #tpu.memory_space<vmem>>, vector<256x4xf32>,
    %c0_3 = arith.constant 0 : index
    %c0_4 = arith.constant 0 : index
    %c0_5 = arith.constant 0 : index
    %c0_6 = arith.constant 0 : index
    %4 = vector.load %arg1[%c0_3, %c0_4, %c0_5, %c0_6] : memref<1x20x20x4xbf16, #tpu.memory_space<vmem>>, vector<1x20x20x4xbf16>
    %5 = vector.shape_cast %4 : vector<1x20x20x4xbf16> to vector<20x20x4xbf16>
    %6 = vector.extract_strided_slice %5 {offsets = [0, 0, 0], sizes = [16, 16, 4], strides = [1, 1, 1]} : vector<20x20x4xbf16> to vector<16x16x4xbf16>
    %7 = vector.extract_strided_slice %5 {offsets = [0, 1, 0], sizes = [16, 16, 4], strides = [1, 1, 1]} : vector<20x20x4xbf16> to vector<16x16x4xbf16>
    %8 = vector.extract_strided_slice %5 {offsets = [0, 2, 0], sizes = [16, 16, 4], strides = [1, 1, 1]} : vector<20x20x4xbf16> to vector<16x16x4xbf16>
    %9 = vector.extract_strided_slice %5 {offsets = [0, 3, 0], sizes = [16, 16, 4], strides = [1, 1, 1]} : vector<20x20x4xbf16> to vector<16x16x4xbf16>
    %10 = vector.extract_strided_slice %5 {offsets = [0, 4, 0], sizes = [16, 16, 4], strides = [1, 1, 1]} : vector<20x20x4xbf16> to vector<16x16x4xbf16>
    %11 = tpu.concatenate %6, %7, %8, %9, %10 in 2 : vector<16x16x4xbf16>, vector<16x16x4xbf16>, vector<16x16x4xbf16>, vector<16x16x4xbf16>, vector<16x16x4xbf16> -> vector<16x16x20xbf16>
    %12 = vector.shape_cast %11 : vector<16x16x20xbf16> to vector<256x20xbf16>
    %c0_7 = arith.constant 0 : index
    %c0_8 = arith.constant 0 : index
    %13 = vector.load %arg9[%c0_7, %c0_8] : memref<256x4xf32, #tpu.memory_space<vmem>>, vector<256x4xf32>
    %c0_9 = arith.constant 0 : index
    %c0_10 = arith.constant 0 : index
    %c0_11 = arith.constant 0 : index
    %14 = vector.load %arg3[%c0_9, %c0_10, %c0_11] : memref<5x20x4xbf16, #tpu.memory_space<vmem>>, vector<1x20x4xbf16>
    %15 = vector.shape_cast %14 : vector<1x20x4xbf16> to vector<20x4xbf16>
    %cst = arith.constant dense<0.000000e+00> : vector<256x4xf32>
    %16 = tpu.matmul %12, %15, %cst {dimension_numbers = #tpu.dot_dimension_numbers<[1], [0], [0], [1], [0, 0, 1, 1], [], []>} : vector<256x20xbf16>, vector<20x4xbf16>, vector<256x4xf32> -> vector<256x4xf32>
    %17 = arith.addf %13, %16 : vector<256x4xf32>
    %c0_12 = arith.constant 0 : index
    %c0_13 = arith.constant 0 : index
    %18 = vector.load %arg9[%c0_12, %c0_13] : memref<256x4xf32, #tpu.memory_space<vmem>>, vector<256x4xf32>
    tpu.vector_store %arg9[%c0_12, %c0_13], %17 {strides = array<i32>} : memref<256x4xf32, #tpu.memory_space<vmem>>, vector<256x4xf32>,
    %19 = vector.extract_strided_slice %5 {offsets = [1, 0, 0], sizes = [16, 16, 4], strides = [1, 1, 1]} : vector<20x20x4xbf16> to vector<16x16x4xbf16>
    %20 = vector.extract_strided_slice %5 {offsets = [1, 1, 0], sizes = [16, 16, 4], strides = [1, 1, 1]} : vector<20x20x4xbf16> to vector<16x16x4xbf16>
    %21 = vector.extract_strided_slice %5 {offsets = [1, 2, 0], sizes = [16, 16, 4], strides = [1, 1, 1]} : vector<20x20x4xbf16> to vector<16x16x4xbf16>
    %22 = vector.extract_strided_slice %5 {offsets = [1, 3, 0], sizes = [16, 16, 4], strides = [1, 1, 1]} : vector<20x20x4xbf16> to vector<16x16x4xbf16>
    %23 = vector.extract_strided_slice %5 {offsets = [1, 4, 0], sizes = [16, 16, 4], strides = [1, 1, 1]} : vector<20x20x4xbf16> to vector<16x16x4xbf16>
    %24 = tpu.concatenate %19, %20, %21, %22, %23 in 2 : vector<16x16x4xbf16>, vector<16x16x4xbf16>, vector<16x16x4xbf16>, vector<16x16x4xbf16>, vector<16x16x4xbf16> -> vector<16x16x20xbf16>
    %25 = vector.shape_cast %24 : vector<16x16x20xbf16> to vector<256x20xbf16>
    %c0_14 = arith.constant 0 : index
    %c0_15 = arith.constant 0 : index
    %26 = vector.load %arg9[%c0_14, %c0_15] : memref<256x4xf32, #tpu.memory_space<vmem>>, vector<256x4xf32>
    %c1 = arith.constant 1 : index
    %c0_16 = arith.constant 0 : index
    %c0_17 = arith.constant 0 : index
    %27 = vector.load %arg3[%c1, %c0_16, %c0_17] : memref<5x20x4xbf16, #tpu.memory_space<vmem>>, vector<1x20x4xbf16>
    %28 = vector.shape_cast %27 : vector<1x20x4xbf16> to vector<20x4xbf16>
    %cst_18 = arith.constant dense<0.000000e+00> : vector<256x4xf32>
    %29 = tpu.matmul %25, %28, %cst_18 {dimension_numbers = #tpu.dot_dimension_numbers<[1], [0], [0], [1], [0, 0, 1, 1], [], []>} : vector<256x20xbf16>, vector<20x4xbf16>, vector<256x4xf32> -> vector<256x4xf32>
    %30 = arith.addf %26, %29 : vector<256x4xf32>
    %c0_19 = arith.constant 0 : index
    %c0_20 = arith.constant 0 : index
    %31 = vector.load %arg9[%c0_19, %c0_20] : memref<256x4xf32, #tpu.memory_space<vmem>>, vector<256x4xf32>
    tpu.vector_store %arg9[%c0_19, %c0_20], %30 {strides = array<i32>} : memref<256x4xf32, #tpu.memory_space<vmem>>, vector<256x4xf32>,
    %32 = vector.extract_strided_slice %5 {offsets = [2, 0, 0], sizes = [16, 16, 4], strides = [1, 1, 1]} : vector<20x20x4xbf16> to vector<16x16x4xbf16>
    %33 = vector.extract_strided_slice %5 {offsets = [2, 1, 0], sizes = [16, 16, 4], strides = [1, 1, 1]} : vector<20x20x4xbf16> to vector<16x16x4xbf16>
    %34 = vector.extract_strided_slice %5 {offsets = [2, 2, 0], sizes = [16, 16, 4], strides = [1, 1, 1]} : vector<20x20x4xbf16> to vector<16x16x4xbf16>
    %35 = vector.extract_strided_slice %5 {offsets = [2, 3, 0], sizes = [16, 16, 4], strides = [1, 1, 1]} : vector<20x20x4xbf16> to vector<16x16x4xbf16>
    %36 = vector.extract_strided_slice %5 {offsets = [2, 4, 0], sizes = [16, 16, 4], strides = [1, 1, 1]} : vector<20x20x4xbf16> to vector<16x16x4xbf16>
    %37 = tpu.concatenate %32, %33, %34, %35, %36 in 2 : vector<16x16x4xbf16>, vector<16x16x4xbf16>, vector<16x16x4xbf16>, vector<16x16x4xbf16>, vector<16x16x4xbf16> -> vector<16x16x20xbf16>
    %38 = vector.shape_cast %37 : vector<16x16x20xbf16> to vector<256x20xbf16>
    %c0_21 = arith.constant 0 : index
    %c0_22 = arith.constant 0 : index
    %39 = vector.load %arg9[%c0_21, %c0_22] : memref<256x4xf32, #tpu.memory_space<vmem>>, vector<256x4xf32>
    %c2 = arith.constant 2 : index
    %c0_23 = arith.constant 0 : index
    %c0_24 = arith.constant 0 : index
    %40 = vector.load %arg3[%c2, %c0_23, %c0_24] : memref<5x20x4xbf16, #tpu.memory_space<vmem>>, vector<1x20x4xbf16>
    %41 = vector.shape_cast %40 : vector<1x20x4xbf16> to vector<20x4xbf16>
    %cst_25 = arith.constant dense<0.000000e+00> : vector<256x4xf32>
    %42 = tpu.matmul %38, %41, %cst_25 {dimension_numbers = #tpu.dot_dimension_numbers<[1], [0], [0], [1], [0, 0, 1, 1], [], []>} : vector<256x20xbf16>, vector<20x4xbf16>, vector<256x4xf32> -> vector<256x4xf32>
    %43 = arith.addf %39, %42 : vector<256x4xf32>
    %c0_26 = arith.constant 0 : index
    %c0_27 = arith.constant 0 : index
    %44 = vector.load %arg9[%c0_26, %c0_27] : memref<256x4xf32, #tpu.memory_space<vmem>>, vector<256x4xf32>
    tpu.vector_store %arg9[%c0_26, %c0_27], %43 {strides = array<i32>} : memref<256x4xf32, #tpu.memory_space<vmem>>, vector<256x4xf32>,
    %45 = vector.extract_strided_slice %5 {offsets = [3, 0, 0], sizes = [16, 16, 4], strides = [1, 1, 1]} : vector<20x20x4xbf16> to vector<16x16x4xbf16>
    %46 = vector.extract_strided_slice %5 {offsets = [3, 1, 0], sizes = [16, 16, 4], strides = [1, 1, 1]} : vector<20x20x4xbf16> to vector<16x16x4xbf16>
    %47 = vector.extract_strided_slice %5 {offsets = [3, 2, 0], sizes = [16, 16, 4], strides = [1, 1, 1]} : vector<20x20x4xbf16> to vector<16x16x4xbf16>
    %48 = vector.extract_strided_slice %5 {offsets = [3, 3, 0], sizes = [16, 16, 4], strides = [1, 1, 1]} : vector<20x20x4xbf16> to vector<16x16x4xbf16>
    %49 = vector.extract_strided_slice %5 {offsets = [3, 4, 0], sizes = [16, 16, 4], strides = [1, 1, 1]} : vector<20x20x4xbf16> to vector<16x16x4xbf16>
    %50 = tpu.concatenate %45, %46, %47, %48, %49 in 2 : vector<16x16x4xbf16>, vector<16x16x4xbf16>, vector<16x16x4xbf16>, vector<16x16x4xbf16>, vector<16x16x4xbf16> -> vector<16x16x20xbf16>
    %51 = vector.shape_cast %50 : vector<16x16x20xbf16> to vector<256x20xbf16>
    %c0_28 = arith.constant 0 : index
    %c0_29 = arith.constant 0 : index
    %52 = vector.load %arg9[%c0_28, %c0_29] : memref<256x4xf32, #tpu.memory_space<vmem>>, vector<256x4xf32>
    %c3 = arith.constant 3 : index
    %c0_30 = arith.constant 0 : index
    %c0_31 = arith.constant 0 : index
    %53 = vector.load %arg3[%c3, %c0_30, %c0_31] : memref<5x20x4xbf16, #tpu.memory_space<vmem>>, vector<1x20x4xbf16>
    %54 = vector.shape_cast %53 : vector<1x20x4xbf16> to vector<20x4xbf16>
    %cst_32 = arith.constant dense<0.000000e+00> : vector<256x4xf32>
    %55 = tpu.matmul %51, %54, %cst_32 {dimension_numbers = #tpu.dot_dimension_numbers<[1], [0], [0], [1], [0, 0, 1, 1], [], []>} : vector<256x20xbf16>, vector<20x4xbf16>, vector<256x4xf32> -> vector<256x4xf32>
    %56 = arith.addf %52, %55 : vector<256x4xf32>
    %c0_33 = arith.constant 0 : index
    %c0_34 = arith.constant 0 : index
    %57 = vector.load %arg9[%c0_33, %c0_34] : memref<256x4xf32, #tpu.memory_space<vmem>>, vector<256x4xf32>
    tpu.vector_store %arg9[%c0_33, %c0_34], %56 {strides = array<i32>} : memref<256x4xf32, #tpu.memory_space<vmem>>, vector<256x4xf32>,
    %58 = vector.extract_strided_slice %5 {offsets = [4, 0, 0], sizes = [16, 16, 4], strides = [1, 1, 1]} : vector<20x20x4xbf16> to vector<16x16x4xbf16>
    %59 = vector.extract_strided_slice %5 {offsets = [4, 1, 0], sizes = [16, 16, 4], strides = [1, 1, 1]} : vector<20x20x4xbf16> to vector<16x16x4xbf16>
    %60 = vector.extract_strided_slice %5 {offsets = [4, 2, 0], sizes = [16, 16, 4], strides = [1, 1, 1]} : vector<20x20x4xbf16> to vector<16x16x4xbf16>
    %61 = vector.extract_strided_slice %5 {offsets = [4, 3, 0], sizes = [16, 16, 4], strides = [1, 1, 1]} : vector<20x20x4xbf16> to vector<16x16x4xbf16>
    %62 = vector.extract_strided_slice %5 {offsets = [4, 4, 0], sizes = [16, 16, 4], strides = [1, 1, 1]} : vector<20x20x4xbf16> to vector<16x16x4xbf16>
    %63 = tpu.concatenate %58, %59, %60, %61, %62 in 2 : vector<16x16x4xbf16>, vector<16x16x4xbf16>, vector<16x16x4xbf16>, vector<16x16x4xbf16>, vector<16x16x4xbf16> -> vector<16x16x20xbf16>
    %64 = vector.shape_cast %63 : vector<16x16x20xbf16> to vector<256x20xbf16>
    %c0_35 = arith.constant 0 : index
    %c0_36 = arith.constant 0 : index
    %65 = vector.load %arg9[%c0_35, %c0_36] : memref<256x4xf32, #tpu.memory_space<vmem>>, vector<256x4xf32>
    %c4 = arith.constant 4 : index
    %c0_37 = arith.constant 0 : index
    %c0_38 = arith.constant 0 : index
    %66 = vector.load %arg3[%c4, %c0_37, %c0_38] : memref<5x20x4xbf16, #tpu.memory_space<vmem>>, vector<1x20x4xbf16>
    %67 = vector.shape_cast %66 : vector<1x20x4xbf16> to vector<20x4xbf16>
    %cst_39 = arith.constant dense<0.000000e+00> : vector<256x4xf32>
    %68 = tpu.matmul %64, %67, %cst_39 {dimension_numbers = #tpu.dot_dimension_numbers<[1], [0], [0], [1], [0, 0, 1, 1], [], []>} : vector<256x20xbf16>, vector<20x4xbf16>, vector<256x4xf32> -> vector<256x4xf32>
    %69 = arith.addf %65, %68 : vector<256x4xf32>
    %c0_40 = arith.constant 0 : index
    %c0_41 = arith.constant 0 : index
    %70 = vector.load %arg9[%c0_40, %c0_41] : memref<256x4xf32, #tpu.memory_space<vmem>>, vector<256x4xf32>
    tpu.vector_store %arg9[%c0_40, %c0_41], %69 {strides = array<i32>} : memref<256x4xf32, #tpu.memory_space<vmem>>, vector<256x4xf32>,
    %c0_42 = arith.constant 0 : index
    %c0_43 = arith.constant 0 : index
    %c0_44 = arith.constant 0 : index
    %c0_45 = arith.constant 0 : index
    %71 = vector.load %arg2[%c0_42, %c0_43, %c0_44, %c0_45] : memref<1x20x20x4xbf16, #tpu.memory_space<vmem>>, vector<1x20x20x4xbf16>
    %72 = vector.shape_cast %71 : vector<1x20x20x4xbf16> to vector<20x20x4xbf16>
    %73 = vector.extract_strided_slice %72 {offsets = [0, 0, 0], sizes = [16, 16, 4], strides = [1, 1, 1]} : vector<20x20x4xbf16> to vector<16x16x4xbf16>
    %74 = vector.extract_strided_slice %72 {offsets = [0, 1, 0], sizes = [16, 16, 4], strides = [1, 1, 1]} : vector<20x20x4xbf16> to vector<16x16x4xbf16>
    %75 = vector.extract_strided_slice %72 {offsets = [0, 2, 0], sizes = [16, 16, 4], strides = [1, 1, 1]} : vector<20x20x4xbf16> to vector<16x16x4xbf16>
    %76 = vector.extract_strided_slice %72 {offsets = [0, 3, 0], sizes = [16, 16, 4], strides = [1, 1, 1]} : vector<20x20x4xbf16> to vector<16x16x4xbf16>
    %77 = vector.extract_strided_slice %72 {offsets = [0, 4, 0], sizes = [16, 16, 4], strides = [1, 1, 1]} : vector<20x20x4xbf16> to vector<16x16x4xbf16>
    %78 = tpu.concatenate %73, %74, %75, %76, %77 in 2 : vector<16x16x4xbf16>, vector<16x16x4xbf16>, vector<16x16x4xbf16>, vector<16x16x4xbf16>, vector<16x16x4xbf16> -> vector<16x16x20xbf16>
    %79 = vector.shape_cast %78 : vector<16x16x20xbf16> to vector<256x20xbf16>
    %c0_46 = arith.constant 0 : index
    %c0_47 = arith.constant 0 : index
    %80 = vector.load %arg9[%c0_46, %c0_47] : memref<256x4xf32, #tpu.memory_space<vmem>>, vector<256x4xf32>
    %c0_48 = arith.constant 0 : index
    %c0_49 = arith.constant 0 : index
    %c0_50 = arith.constant 0 : index
    %81 = vector.load %arg4[%c0_48, %c0_49, %c0_50] : memref<5x20x4xbf16, #tpu.memory_space<vmem>>, vector<1x20x4xbf16>
    %82 = vector.shape_cast %81 : vector<1x20x4xbf16> to vector<20x4xbf16>
    %cst_51 = arith.constant dense<0.000000e+00> : vector<256x4xf32>
    %83 = tpu.matmul %79, %82, %cst_51 {dimension_numbers = #tpu.dot_dimension_numbers<[1], [0], [0], [1], [0, 0, 1, 1], [], []>} : vector<256x20xbf16>, vector<20x4xbf16>, vector<256x4xf32> -> vector<256x4xf32>
    %84 = arith.addf %80, %83 : vector<256x4xf32>
    %c0_52 = arith.constant 0 : index
    %c0_53 = arith.constant 0 : index
    %85 = vector.load %arg9[%c0_52, %c0_53] : memref<256x4xf32, #tpu.memory_space<vmem>>, vector<256x4xf32>
    tpu.vector_store %arg9[%c0_52, %c0_53], %84 {strides = array<i32>} : memref<256x4xf32, #tpu.memory_space<vmem>>, vector<256x4xf32>,
    %86 = vector.extract_strided_slice %72 {offsets = [1, 0, 0], sizes = [16, 16, 4], strides = [1, 1, 1]} : vector<20x20x4xbf16> to vector<16x16x4xbf16>
    %87 = vector.extract_strided_slice %72 {offsets = [1, 1, 0], sizes = [16, 16, 4], strides = [1, 1, 1]} : vector<20x20x4xbf16> to vector<16x16x4xbf16>
    %88 = vector.extract_strided_slice %72 {offsets = [1, 2, 0], sizes = [16, 16, 4], strides = [1, 1, 1]} : vector<20x20x4xbf16> to vector<16x16x4xbf16>
    %89 = vector.extract_strided_slice %72 {offsets = [1, 3, 0], sizes = [16, 16, 4], strides = [1, 1, 1]} : vector<20x20x4xbf16> to vector<16x16x4xbf16>
    %90 = vector.extract_strided_slice %72 {offsets = [1, 4, 0], sizes = [16, 16, 4], strides = [1, 1, 1]} : vector<20x20x4xbf16> to vector<16x16x4xbf16>
    %91 = tpu.concatenate %86, %87, %88, %89, %90 in 2 : vector<16x16x4xbf16>, vector<16x16x4xbf16>, vector<16x16x4xbf16>, vector<16x16x4xbf16>, vector<16x16x4xbf16> -> vector<16x16x20xbf16>
    %92 = vector.shape_cast %91 : vector<16x16x20xbf16> to vector<256x20xbf16>
    %c0_54 = arith.constant 0 : index
    %c0_55 = arith.constant 0 : index
    %93 = vector.load %arg9[%c0_54, %c0_55] : memref<256x4xf32, #tpu.memory_space<vmem>>, vector<256x4xf32>
    %c1_56 = arith.constant 1 : index
    %c0_57 = arith.constant 0 : index
    %c0_58 = arith.constant 0 : index
    %94 = vector.load %arg4[%c1_56, %c0_57, %c0_58] : memref<5x20x4xbf16, #tpu.memory_space<vmem>>, vector<1x20x4xbf16>
    %95 = vector.shape_cast %94 : vector<1x20x4xbf16> to vector<20x4xbf16>
    %cst_59 = arith.constant dense<0.000000e+00> : vector<256x4xf32>
    %96 = tpu.matmul %92, %95, %cst_59 {dimension_numbers = #tpu.dot_dimension_numbers<[1], [0], [0], [1], [0, 0, 1, 1], [], []>} : vector<256x20xbf16>, vector<20x4xbf16>, vector<256x4xf32> -> vector<256x4xf32>
    %97 = arith.addf %93, %96 : vector<256x4xf32>
    %c0_60 = arith.constant 0 : index
    %c0_61 = arith.constant 0 : index
    %98 = vector.load %arg9[%c0_60, %c0_61] : memref<256x4xf32, #tpu.memory_space<vmem>>, vector<256x4xf32>
    tpu.vector_store %arg9[%c0_60, %c0_61], %97 {strides = array<i32>} : memref<256x4xf32, #tpu.memory_space<vmem>>, vector<256x4xf32>,
    %99 = vector.extract_strided_slice %72 {offsets = [2, 0, 0], sizes = [16, 16, 4], strides = [1, 1, 1]} : vector<20x20x4xbf16> to vector<16x16x4xbf16>
    %100 = vector.extract_strided_slice %72 {offsets = [2, 1, 0], sizes = [16, 16, 4], strides = [1, 1, 1]} : vector<20x20x4xbf16> to vector<16x16x4xbf16>
    %101 = vector.extract_strided_slice %72 {offsets = [2, 2, 0], sizes = [16, 16, 4], strides = [1, 1, 1]} : vector<20x20x4xbf16> to vector<16x16x4xbf16>
    %102 = vector.extract_strided_slice %72 {offsets = [2, 3, 0], sizes = [16, 16, 4], strides = [1, 1, 1]} : vector<20x20x4xbf16> to vector<16x16x4xbf16>
    %103 = vector.extract_strided_slice %72 {offsets = [2, 4, 0], sizes = [16, 16, 4], strides = [1, 1, 1]} : vector<20x20x4xbf16> to vector<16x16x4xbf16>
    %104 = tpu.concatenate %99, %100, %101, %102, %103 in 2 : vector<16x16x4xbf16>, vector<16x16x4xbf16>, vector<16x16x4xbf16>, vector<16x16x4xbf16>, vector<16x16x4xbf16> -> vector<16x16x20xbf16>
    %105 = vector.shape_cast %104 : vector<16x16x20xbf16> to vector<256x20xbf16>
    %c0_62 = arith.constant 0 : index
    %c0_63 = arith.constant 0 : index
    %106 = vector.load %arg9[%c0_62, %c0_63] : memref<256x4xf32, #tpu.memory_space<vmem>>, vector<256x4xf32>
    %c2_64 = arith.constant 2 : index
    %c0_65 = arith.constant 0 : index
    %c0_66 = arith.constant 0 : index
    %107 = vector.load %arg4[%c2_64, %c0_65, %c0_66] : memref<5x20x4xbf16, #tpu.memory_space<vmem>>, vector<1x20x4xbf16>
    %108 = vector.shape_cast %107 : vector<1x20x4xbf16> to vector<20x4xbf16>
    %cst_67 = arith.constant dense<0.000000e+00> : vector<256x4xf32>
    %109 = tpu.matmul %105, %108, %cst_67 {dimension_numbers = #tpu.dot_dimension_numbers<[1], [0], [0], [1], [0, 0, 1, 1], [], []>} : vector<256x20xbf16>, vector<20x4xbf16>, vector<256x4xf32> -> vector<256x4xf32>
    %110 = arith.addf %106, %109 : vector<256x4xf32>
    %c0_68 = arith.constant 0 : index
    %c0_69 = arith.constant 0 : index
    %111 = vector.load %arg9[%c0_68, %c0_69] : memref<256x4xf32, #tpu.memory_space<vmem>>, vector<256x4xf32>
    tpu.vector_store %arg9[%c0_68, %c0_69], %110 {strides = array<i32>} : memref<256x4xf32, #tpu.memory_space<vmem>>, vector<256x4xf32>,
    %112 = vector.extract_strided_slice %72 {offsets = [3, 0, 0], sizes = [16, 16, 4], strides = [1, 1, 1]} : vector<20x20x4xbf16> to vector<16x16x4xbf16>
    %113 = vector.extract_strided_slice %72 {offsets = [3, 1, 0], sizes = [16, 16, 4], strides = [1, 1, 1]} : vector<20x20x4xbf16> to vector<16x16x4xbf16>
    %114 = vector.extract_strided_slice %72 {offsets = [3, 2, 0], sizes = [16, 16, 4], strides = [1, 1, 1]} : vector<20x20x4xbf16> to vector<16x16x4xbf16>
    %115 = vector.extract_strided_slice %72 {offsets = [3, 3, 0], sizes = [16, 16, 4], strides = [1, 1, 1]} : vector<20x20x4xbf16> to vector<16x16x4xbf16>
    %116 = vector.extract_strided_slice %72 {offsets = [3, 4, 0], sizes = [16, 16, 4], strides = [1, 1, 1]} : vector<20x20x4xbf16> to vector<16x16x4xbf16>
    %117 = tpu.concatenate %112, %113, %114, %115, %116 in 2 : vector<16x16x4xbf16>, vector<16x16x4xbf16>, vector<16x16x4xbf16>, vector<16x16x4xbf16>, vector<16x16x4xbf16> -> vector<16x16x20xbf16>
    %118 = vector.shape_cast %117 : vector<16x16x20xbf16> to vector<256x20xbf16>
    %c0_70 = arith.constant 0 : index
    %c0_71 = arith.constant 0 : index
    %119 = vector.load %arg9[%c0_70, %c0_71] : memref<256x4xf32, #tpu.memory_space<vmem>>, vector<256x4xf32>
    %c3_72 = arith.constant 3 : index
    %c0_73 = arith.constant 0 : index
    %c0_74 = arith.constant 0 : index
    %120 = vector.load %arg4[%c3_72, %c0_73, %c0_74] : memref<5x20x4xbf16, #tpu.memory_space<vmem>>, vector<1x20x4xbf16>
    %121 = vector.shape_cast %120 : vector<1x20x4xbf16> to vector<20x4xbf16>
    %cst_75 = arith.constant dense<0.000000e+00> : vector<256x4xf32>
    %122 = tpu.matmul %118, %121, %cst_75 {dimension_numbers = #tpu.dot_dimension_numbers<[1], [0], [0], [1], [0, 0, 1, 1], [], []>} : vector<256x20xbf16>, vector<20x4xbf16>, vector<256x4xf32> -> vector<256x4xf32>
    %123 = arith.addf %119, %122 : vector<256x4xf32>
    %c0_76 = arith.constant 0 : index
    %c0_77 = arith.constant 0 : index
    %124 = vector.load %arg9[%c0_76, %c0_77] : memref<256x4xf32, #tpu.memory_space<vmem>>, vector<256x4xf32>
    tpu.vector_store %arg9[%c0_76, %c0_77], %123 {strides = array<i32>} : memref<256x4xf32, #tpu.memory_space<vmem>>, vector<256x4xf32>,
    %125 = vector.extract_strided_slice %72 {offsets = [4, 0, 0], sizes = [16, 16, 4], strides = [1, 1, 1]} : vector<20x20x4xbf16> to vector<16x16x4xbf16>
    %126 = vector.extract_strided_slice %72 {offsets = [4, 1, 0], sizes = [16, 16, 4], strides = [1, 1, 1]} : vector<20x20x4xbf16> to vector<16x16x4xbf16>
    %127 = vector.extract_strided_slice %72 {offsets = [4, 2, 0], sizes = [16, 16, 4], strides = [1, 1, 1]} : vector<20x20x4xbf16> to vector<16x16x4xbf16>
    %128 = vector.extract_strided_slice %72 {offsets = [4, 3, 0], sizes = [16, 16, 4], strides = [1, 1, 1]} : vector<20x20x4xbf16> to vector<16x16x4xbf16>
    %129 = vector.extract_strided_slice %72 {offsets = [4, 4, 0], sizes = [16, 16, 4], strides = [1, 1, 1]} : vector<20x20x4xbf16> to vector<16x16x4xbf16>
    %130 = tpu.concatenate %125, %126, %127, %128, %129 in 2 : vector<16x16x4xbf16>, vector<16x16x4xbf16>, vector<16x16x4xbf16>, vector<16x16x4xbf16>, vector<16x16x4xbf16> -> vector<16x16x20xbf16>
    %131 = vector.shape_cast %130 : vector<16x16x20xbf16> to vector<256x20xbf16>
    %c0_78 = arith.constant 0 : index
    %c0_79 = arith.constant 0 : index
    %132 = vector.load %arg9[%c0_78, %c0_79] : memref<256x4xf32, #tpu.memory_space<vmem>>, vector<256x4xf32>
    %c4_80 = arith.constant 4 : index
    %c0_81 = arith.constant 0 : index
    %c0_82 = arith.constant 0 : index
    %133 = vector.load %arg4[%c4_80, %c0_81, %c0_82] : memref<5x20x4xbf16, #tpu.memory_space<vmem>>, vector<1x20x4xbf16>
    %134 = vector.shape_cast %133 : vector<1x20x4xbf16> to vector<20x4xbf16>
    %cst_83 = arith.constant dense<0.000000e+00> : vector<256x4xf32>
    %135 = tpu.matmul %131, %134, %cst_83 {dimension_numbers = #tpu.dot_dimension_numbers<[1], [0], [0], [1], [0, 0, 1, 1], [], []>} : vector<256x20xbf16>, vector<20x4xbf16>, vector<256x4xf32> -> vector<256x4xf32>
    %136 = arith.addf %132, %135 : vector<256x4xf32>
    %c0_84 = arith.constant 0 : index
    %c0_85 = arith.constant 0 : index
    %137 = vector.load %arg9[%c0_84, %c0_85] : memref<256x4xf32, #tpu.memory_space<vmem>>, vector<256x4xf32>
    tpu.vector_store %arg9[%c0_84, %c0_85], %136 {strides = array<i32>} : memref<256x4xf32, #tpu.memory_space<vmem>>, vector<256x4xf32>,
    %c0_86 = arith.constant 0 : index
    %c0_87 = arith.constant 0 : index
    %138 = vector.load %arg9[%c0_86, %c0_87] : memref<256x4xf32, #tpu.memory_space<vmem>>, vector<256x4xf32>
    %139 = arith.truncf %138 : vector<256x4xf32> to vector<256x4xbf16>
    %c0_88 = arith.constant 0 : index
    %c0_89 = arith.constant 0 : index
    %c0_90 = arith.constant 0 : index
    %140 = vector.load %arg6[%c0_88, %c0_89, %c0_90] : memref<1x256x4xbf16, #tpu.memory_space<vmem>>, vector<1x256x4xbf16>
    %141 = vector.shape_cast %140 : vector<1x256x4xbf16> to vector<256x4xbf16>
    %142 = vector.shape_cast %139 : vector<256x4xbf16> to vector<1x256x4xbf16>
    tpu.vector_store %arg6[%c0_88, %c0_89, %c0_90], %142 {strides = array<i32>} : memref<1x256x4xbf16, #tpu.memory_space<vmem>>, vector<1x256x4xbf16>,
    %cst_91 = arith.constant dense<0.000000e+00> : vector<4xf32>
    %143 = vector.multi_reduction <add>, %138, %cst_91 [0] : vector<256x4xf32> to vector<4xf32>
    %144 = vector.shape_cast %143 : vector<4xf32> to vector<1x4xf32>
    %c0_92 = arith.constant 0 : index
    %c0_93 = arith.constant 0 : index
    %c0_94 = arith.constant 0 : index
    %145 = vector.load %arg7[%c0_92, %c0_93, %c0_94] : memref<1x1x4xf32, #tpu.memory_space<vmem>>, vector<1x1x4xf32>
    %146 = vector.shape_cast %145 : vector<1x1x4xf32> to vector<1x4xf32>
    %147 = vector.shape_cast %144 : vector<1x4xf32> to vector<1x1x4xf32>
    tpu.vector_store %arg7[%c0_92, %c0_93, %c0_94], %147 {strides = array<i32>} : memref<1x1x4xf32, #tpu.memory_space<vmem>>, vector<1x1x4xf32>,
    %148 = arith.mulf %138, %138 : vector<256x4xf32>
    %cst_95 = arith.constant dense<0.000000e+00> : vector<4xf32>
    %149 = vector.multi_reduction <add>, %148, %cst_95 [0] : vector<256x4xf32> to vector<4xf32>
    %150 = vector.shape_cast %149 : vector<4xf32> to vector<1x4xf32>
    %c0_96 = arith.constant 0 : index
    %c0_97 = arith.constant 0 : index
    %c0_98 = arith.constant 0 : index
    %151 = vector.load %arg8[%c0_96, %c0_97, %c0_98] : memref<1x1x4xf32, #tpu.memory_space<vmem>>, vector<1x1x4xf32>
    %152 = vector.shape_cast %151 : vector<1x1x4xf32> to vector<1x4xf32>
    %153 = vector.shape_cast %150 : vector<1x4xf32> to vector<1x1x4xf32>
    tpu.vector_store %arg8[%c0_96, %c0_97, %c0_98], %153 {strides = array<i32>} : memref<1x1x4xf32, #tpu.memory_space<vmem>>, vector<1x1x4xf32>,
    return
  }
  func.func @transform_0(%arg0: i32) -> (i32, i32, i32, i32) {
    %c0_i32 = arith.constant 0 : i32
    %c0_i32_0 = arith.constant 0 : i32
    %c0_i32_1 = arith.constant 0 : i32
    %c0_i32_2 = arith.constant 0 : i32
    return %arg0, %c0_i32, %c0_i32_0, %c0_i32_1 : i32, i32, i32, i32
  }
  func.func @transform_1(%arg0: i32) -> (i32, i32, i32, i32) {
    %c0_i32 = arith.constant 0 : i32
    %c0_i32_0 = arith.constant 0 : i32
    %c0_i32_1 = arith.constant 0 : i32
    %c0_i32_2 = arith.constant 0 : i32
    return %arg0, %c0_i32, %c0_i32_0, %c0_i32_1 : i32, i32, i32, i32
  }
  func.func @transform_2(%arg0: i32) -> (i32, i32, i32) {
    %c0_i32 = arith.constant 0 : i32
    %c0_i32_0 = arith.constant 0 : i32
    %c0_i32_1 = arith.constant 0 : i32
    %c0_i32_2 = arith.constant 0 : i32
    return %c0_i32, %c0_i32_0, %c0_i32_1 : i32, i32, i32
  }
  func.func @transform_3(%arg0: i32) -> (i32, i32, i32) {
    %c0_i32 = arith.constant 0 : i32
    %c0_i32_0 = arith.constant 0 : i32
    %c0_i32_1 = arith.constant 0 : i32
    %c0_i32_2 = arith.constant 0 : i32
    return %c0_i32, %c0_i32_0, %c0_i32_1 : i32, i32, i32
  }
  func.func @transform_4(%arg0: i32) -> (i32, i32) {
    %c0_i32 = arith.constant 0 : i32
    %c0_i32_0 = arith.constant 0 : i32
    %c0_i32_1 = arith.constant 0 : i32
    return %c0_i32, %c0_i32_0 : i32, i32
  }
  func.func @transform_5(%arg0: i32) -> (i32, i32, i32) {
    %c0_i32 = arith.constant 0 : i32
    %c0_i32_0 = arith.constant 0 : i32
    %c0_i32_1 = arith.constant 0 : i32
    return %arg0, %c0_i32, %c0_i32_0 : i32, i32, i32
  }
  func.func @transform_6(%arg0: i32) -> (i32, i32, i32) {
    %c0_i32 = arith.constant 0 : i32
    %c0_i32_0 = arith.constant 0 : i32
    %c0_i32_1 = arith.constant 0 : i32
    return %arg0, %c0_i32, %c0_i32_0 : i32, i32, i32
  }
  func.func @transform_7(%arg0: i32) -> (i32, i32, i32) {
    %c0_i32 = arith.constant 0 : i32
    %c0_i32_0 = arith.constant 0 : i32
    %c0_i32_1 = arith.constant 0 : i32
    return %arg0, %c0_i32, %c0_i32_0 : i32, i32, i32
  }
}

module attributes {stable_mosaic.version = 11 : i64} {
  func.func @kernel(%arg0: i32, %arg1: memref<1x20x20x4xbf16, #tpu.memory_space<vmem>>, %arg2: memref<1x4xf32, #tpu.memory_space<vmem>>, %arg3: memref<1x4xf32, #tpu.memory_space<vmem>>, %arg4: memref<5x20x4xbf16, #tpu.memory_space<vmem>>, %arg5: memref<1x4xf32, #tpu.memory_space<vmem>>, %arg6: memref<1x256x4xbf16, #tpu.memory_space<vmem>>, %arg7: memref<1x1x4xf32, #tpu.memory_space<vmem>>, %arg8: memref<1x1x4xf32, #tpu.memory_space<vmem>>, %arg9: memref<256x4xf32, #tpu.memory_space<vmem>>) attributes {dimension_semantics = [#tpu.dimension_semantics<parallel>], iteration_bounds = array<i64: 2>, scalar_prefetch = 0 : i64, scratch_operands = 1 : i64, tpu.core_type = #tpu.core_type<tc>, window_params = [{transform_indices = @transform_0, window_bounds = array<i64: 1, 20, 20, 4>}, {pipeline_mode = #tpu.pipeline_mode<synchronous>, transform_indices = @transform_1, window_bounds = array<i64: 1, 4>}, {pipeline_mode = #tpu.pipeline_mode<synchronous>, transform_indices = @transform_2, window_bounds = array<i64: 1, 4>}, {pipeline_mode = #tpu.pipeline_mode<synchronous>, transform_indices = @transform_3, window_bounds = array<i64: 5, 20, 4>}, {pipeline_mode = #tpu.pipeline_mode<synchronous>, transform_indices = @transform_4, window_bounds = array<i64: 1, 4>}, {transform_indices = @transform_5, window_bounds = array<i64: 1, 256, 4>}, {transform_indices = @transform_6, window_bounds = array<i64: 1, 1, 4>}, {transform_indices = @transform_7, window_bounds = array<i64: 1, 1, 4>}]} {
    %c0 = arith.constant 0 : index
    %c0_0 = arith.constant 0 : index
    %0 = vector.load %arg5[%c0, %c0_0] : memref<1x4xf32, #tpu.memory_space<vmem>>, vector<1x4xf32>
    %1 = vector.shape_cast %0 : vector<1x4xf32> to vector<1x4xf32>
    %2 = vector.broadcast %1 : vector<1x4xf32> to vector<256x4xf32>
    %c0_1 = arith.constant 0 : index
    %c0_2 = arith.constant 0 : index
    %3 = vector.load %arg9[%c0_1, %c0_2] : memref<256x4xf32, #tpu.memory_space<vmem>>, vector<256x4xf32>
    tpu.vector_store %arg9[%c0_1, %c0_2], %2 {strides = array<i32>} : memref<256x4xf32, #tpu.memory_space<vmem>>, vector<256x4xf32>,
    %c0_3 = arith.constant 0 : index
    %c0_4 = arith.constant 0 : index
    %c0_5 = arith.constant 0 : index
    %c0_6 = arith.constant 0 : index
    %4 = vector.load %arg1[%c0_3, %c0_4, %c0_5, %c0_6] : memref<1x20x20x4xbf16, #tpu.memory_space<vmem>>, vector<1x20x20x4xbf16>
    %5 = vector.shape_cast %4 : vector<1x20x20x4xbf16> to vector<20x20x4xbf16>
    %6 = tpu.iota {dimensions = array<i32: 0>} : vector<20x20x4xi32>
    %7 = tpu.iota {dimensions = array<i32: 1>} : vector<20x20x4xi32>
    %c2_i32 = arith.constant 2 : i32
    %8 = vector.broadcast %c2_i32 : i32 to vector<20x20x4xi32>
    %9 = arith.cmpi sge, %6, %8 : vector<20x20x4xi32>
    %c18_i32 = arith.constant 18 : i32
    %10 = vector.broadcast %c18_i32 : i32 to vector<20x20x4xi32>
    %11 = arith.cmpi slt, %6, %10 : vector<20x20x4xi32>
    %12 = arith.andi %9, %11 : vector<20x20x4xi1>
    %c2_i32_7 = arith.constant 2 : i32
    %13 = vector.broadcast %c2_i32_7 : i32 to vector<20x20x4xi32>
    %14 = arith.cmpi sge, %7, %13 : vector<20x20x4xi32>
    %15 = arith.andi %12, %14 : vector<20x20x4xi1>
    %c18_i32_8 = arith.constant 18 : i32
    %16 = vector.broadcast %c18_i32_8 : i32 to vector<20x20x4xi32>
    %17 = arith.cmpi slt, %7, %16 : vector<20x20x4xi32>
    %18 = arith.andi %15, %17 : vector<20x20x4xi1>
    %19 = arith.extf %5 : vector<20x20x4xbf16> to vector<20x20x4xf32>
    %c0_9 = arith.constant 0 : index
    %c0_10 = arith.constant 0 : index
    %20 = vector.load %arg2[%c0_9, %c0_10] : memref<1x4xf32, #tpu.memory_space<vmem>>, vector<1x4xf32>
    %21 = vector.shape_cast %20 : vector<1x4xf32> to vector<1x1x4xf32>
    %22 = vector.broadcast %21 : vector<1x1x4xf32> to vector<20x20x4xf32>
    %23 = arith.mulf %19, %22 : vector<20x20x4xf32>
    %c0_11 = arith.constant 0 : index
    %c0_12 = arith.constant 0 : index
    %24 = vector.load %arg3[%c0_11, %c0_12] : memref<1x4xf32, #tpu.memory_space<vmem>>, vector<1x4xf32>
    %25 = vector.shape_cast %24 : vector<1x4xf32> to vector<1x1x4xf32>
    %26 = vector.broadcast %25 : vector<1x1x4xf32> to vector<20x20x4xf32>
    %27 = arith.addf %23, %26 : vector<20x20x4xf32>
    %cst = arith.constant 0.000000e+00 : f32
    %28 = vector.broadcast %cst : f32 to vector<20x20x4xf32>
    %29 = arith.maximumf %27, %28 : vector<20x20x4xf32>
    %cst_13 = arith.constant 0.000000e+00 : f32
    %30 = vector.broadcast %cst_13 : f32 to vector<20x20x4xf32>
    %31 = arith.select %18, %29, %30 : vector<20x20x4xi1>, vector<20x20x4xf32>
    %32 = arith.truncf %31 : vector<20x20x4xf32> to vector<20x20x4xbf16>
    %33 = vector.extract_strided_slice %32 {offsets = [0, 0, 0], sizes = [16, 16, 4], strides = [1, 1, 1]} : vector<20x20x4xbf16> to vector<16x16x4xbf16>
    %34 = vector.extract_strided_slice %32 {offsets = [0, 1, 0], sizes = [16, 16, 4], strides = [1, 1, 1]} : vector<20x20x4xbf16> to vector<16x16x4xbf16>
    %35 = vector.extract_strided_slice %32 {offsets = [0, 2, 0], sizes = [16, 16, 4], strides = [1, 1, 1]} : vector<20x20x4xbf16> to vector<16x16x4xbf16>
    %36 = vector.extract_strided_slice %32 {offsets = [0, 3, 0], sizes = [16, 16, 4], strides = [1, 1, 1]} : vector<20x20x4xbf16> to vector<16x16x4xbf16>
    %37 = vector.extract_strided_slice %32 {offsets = [0, 4, 0], sizes = [16, 16, 4], strides = [1, 1, 1]} : vector<20x20x4xbf16> to vector<16x16x4xbf16>
    %38 = tpu.concatenate %33, %34, %35, %36, %37 in 2 : vector<16x16x4xbf16>, vector<16x16x4xbf16>, vector<16x16x4xbf16>, vector<16x16x4xbf16>, vector<16x16x4xbf16> -> vector<16x16x20xbf16>
    %39 = vector.shape_cast %38 : vector<16x16x20xbf16> to vector<256x20xbf16>
    %c0_14 = arith.constant 0 : index
    %c0_15 = arith.constant 0 : index
    %40 = vector.load %arg9[%c0_14, %c0_15] : memref<256x4xf32, #tpu.memory_space<vmem>>, vector<256x4xf32>
    %c0_16 = arith.constant 0 : index
    %c0_17 = arith.constant 0 : index
    %c0_18 = arith.constant 0 : index
    %41 = vector.load %arg4[%c0_16, %c0_17, %c0_18] : memref<5x20x4xbf16, #tpu.memory_space<vmem>>, vector<1x20x4xbf16>
    %42 = vector.shape_cast %41 : vector<1x20x4xbf16> to vector<20x4xbf16>
    %cst_19 = arith.constant dense<0.000000e+00> : vector<256x4xf32>
    %43 = tpu.matmul %39, %42, %cst_19 {dimension_numbers = #tpu.dot_dimension_numbers<[1], [0], [0], [1], [0, 0, 1, 1], [], []>} : vector<256x20xbf16>, vector<20x4xbf16>, vector<256x4xf32> -> vector<256x4xf32>
    %44 = arith.addf %40, %43 : vector<256x4xf32>
    %c0_20 = arith.constant 0 : index
    %c0_21 = arith.constant 0 : index
    %45 = vector.load %arg9[%c0_20, %c0_21] : memref<256x4xf32, #tpu.memory_space<vmem>>, vector<256x4xf32>
    tpu.vector_store %arg9[%c0_20, %c0_21], %44 {strides = array<i32>} : memref<256x4xf32, #tpu.memory_space<vmem>>, vector<256x4xf32>,
    %46 = vector.extract_strided_slice %32 {offsets = [1, 0, 0], sizes = [16, 16, 4], strides = [1, 1, 1]} : vector<20x20x4xbf16> to vector<16x16x4xbf16>
    %47 = vector.extract_strided_slice %32 {offsets = [1, 1, 0], sizes = [16, 16, 4], strides = [1, 1, 1]} : vector<20x20x4xbf16> to vector<16x16x4xbf16>
    %48 = vector.extract_strided_slice %32 {offsets = [1, 2, 0], sizes = [16, 16, 4], strides = [1, 1, 1]} : vector<20x20x4xbf16> to vector<16x16x4xbf16>
    %49 = vector.extract_strided_slice %32 {offsets = [1, 3, 0], sizes = [16, 16, 4], strides = [1, 1, 1]} : vector<20x20x4xbf16> to vector<16x16x4xbf16>
    %50 = vector.extract_strided_slice %32 {offsets = [1, 4, 0], sizes = [16, 16, 4], strides = [1, 1, 1]} : vector<20x20x4xbf16> to vector<16x16x4xbf16>
    %51 = tpu.concatenate %46, %47, %48, %49, %50 in 2 : vector<16x16x4xbf16>, vector<16x16x4xbf16>, vector<16x16x4xbf16>, vector<16x16x4xbf16>, vector<16x16x4xbf16> -> vector<16x16x20xbf16>
    %52 = vector.shape_cast %51 : vector<16x16x20xbf16> to vector<256x20xbf16>
    %c0_22 = arith.constant 0 : index
    %c0_23 = arith.constant 0 : index
    %53 = vector.load %arg9[%c0_22, %c0_23] : memref<256x4xf32, #tpu.memory_space<vmem>>, vector<256x4xf32>
    %c1 = arith.constant 1 : index
    %c0_24 = arith.constant 0 : index
    %c0_25 = arith.constant 0 : index
    %54 = vector.load %arg4[%c1, %c0_24, %c0_25] : memref<5x20x4xbf16, #tpu.memory_space<vmem>>, vector<1x20x4xbf16>
    %55 = vector.shape_cast %54 : vector<1x20x4xbf16> to vector<20x4xbf16>
    %cst_26 = arith.constant dense<0.000000e+00> : vector<256x4xf32>
    %56 = tpu.matmul %52, %55, %cst_26 {dimension_numbers = #tpu.dot_dimension_numbers<[1], [0], [0], [1], [0, 0, 1, 1], [], []>} : vector<256x20xbf16>, vector<20x4xbf16>, vector<256x4xf32> -> vector<256x4xf32>
    %57 = arith.addf %53, %56 : vector<256x4xf32>
    %c0_27 = arith.constant 0 : index
    %c0_28 = arith.constant 0 : index
    %58 = vector.load %arg9[%c0_27, %c0_28] : memref<256x4xf32, #tpu.memory_space<vmem>>, vector<256x4xf32>
    tpu.vector_store %arg9[%c0_27, %c0_28], %57 {strides = array<i32>} : memref<256x4xf32, #tpu.memory_space<vmem>>, vector<256x4xf32>,
    %59 = vector.extract_strided_slice %32 {offsets = [2, 0, 0], sizes = [16, 16, 4], strides = [1, 1, 1]} : vector<20x20x4xbf16> to vector<16x16x4xbf16>
    %60 = vector.extract_strided_slice %32 {offsets = [2, 1, 0], sizes = [16, 16, 4], strides = [1, 1, 1]} : vector<20x20x4xbf16> to vector<16x16x4xbf16>
    %61 = vector.extract_strided_slice %32 {offsets = [2, 2, 0], sizes = [16, 16, 4], strides = [1, 1, 1]} : vector<20x20x4xbf16> to vector<16x16x4xbf16>
    %62 = vector.extract_strided_slice %32 {offsets = [2, 3, 0], sizes = [16, 16, 4], strides = [1, 1, 1]} : vector<20x20x4xbf16> to vector<16x16x4xbf16>
    %63 = vector.extract_strided_slice %32 {offsets = [2, 4, 0], sizes = [16, 16, 4], strides = [1, 1, 1]} : vector<20x20x4xbf16> to vector<16x16x4xbf16>
    %64 = tpu.concatenate %59, %60, %61, %62, %63 in 2 : vector<16x16x4xbf16>, vector<16x16x4xbf16>, vector<16x16x4xbf16>, vector<16x16x4xbf16>, vector<16x16x4xbf16> -> vector<16x16x20xbf16>
    %65 = vector.shape_cast %64 : vector<16x16x20xbf16> to vector<256x20xbf16>
    %c0_29 = arith.constant 0 : index
    %c0_30 = arith.constant 0 : index
    %66 = vector.load %arg9[%c0_29, %c0_30] : memref<256x4xf32, #tpu.memory_space<vmem>>, vector<256x4xf32>
    %c2 = arith.constant 2 : index
    %c0_31 = arith.constant 0 : index
    %c0_32 = arith.constant 0 : index
    %67 = vector.load %arg4[%c2, %c0_31, %c0_32] : memref<5x20x4xbf16, #tpu.memory_space<vmem>>, vector<1x20x4xbf16>
    %68 = vector.shape_cast %67 : vector<1x20x4xbf16> to vector<20x4xbf16>
    %cst_33 = arith.constant dense<0.000000e+00> : vector<256x4xf32>
    %69 = tpu.matmul %65, %68, %cst_33 {dimension_numbers = #tpu.dot_dimension_numbers<[1], [0], [0], [1], [0, 0, 1, 1], [], []>} : vector<256x20xbf16>, vector<20x4xbf16>, vector<256x4xf32> -> vector<256x4xf32>
    %70 = arith.addf %66, %69 : vector<256x4xf32>
    %c0_34 = arith.constant 0 : index
    %c0_35 = arith.constant 0 : index
    %71 = vector.load %arg9[%c0_34, %c0_35] : memref<256x4xf32, #tpu.memory_space<vmem>>, vector<256x4xf32>
    tpu.vector_store %arg9[%c0_34, %c0_35], %70 {strides = array<i32>} : memref<256x4xf32, #tpu.memory_space<vmem>>, vector<256x4xf32>,
    %72 = vector.extract_strided_slice %32 {offsets = [3, 0, 0], sizes = [16, 16, 4], strides = [1, 1, 1]} : vector<20x20x4xbf16> to vector<16x16x4xbf16>
    %73 = vector.extract_strided_slice %32 {offsets = [3, 1, 0], sizes = [16, 16, 4], strides = [1, 1, 1]} : vector<20x20x4xbf16> to vector<16x16x4xbf16>
    %74 = vector.extract_strided_slice %32 {offsets = [3, 2, 0], sizes = [16, 16, 4], strides = [1, 1, 1]} : vector<20x20x4xbf16> to vector<16x16x4xbf16>
    %75 = vector.extract_strided_slice %32 {offsets = [3, 3, 0], sizes = [16, 16, 4], strides = [1, 1, 1]} : vector<20x20x4xbf16> to vector<16x16x4xbf16>
    %76 = vector.extract_strided_slice %32 {offsets = [3, 4, 0], sizes = [16, 16, 4], strides = [1, 1, 1]} : vector<20x20x4xbf16> to vector<16x16x4xbf16>
    %77 = tpu.concatenate %72, %73, %74, %75, %76 in 2 : vector<16x16x4xbf16>, vector<16x16x4xbf16>, vector<16x16x4xbf16>, vector<16x16x4xbf16>, vector<16x16x4xbf16> -> vector<16x16x20xbf16>
    %78 = vector.shape_cast %77 : vector<16x16x20xbf16> to vector<256x20xbf16>
    %c0_36 = arith.constant 0 : index
    %c0_37 = arith.constant 0 : index
    %79 = vector.load %arg9[%c0_36, %c0_37] : memref<256x4xf32, #tpu.memory_space<vmem>>, vector<256x4xf32>
    %c3 = arith.constant 3 : index
    %c0_38 = arith.constant 0 : index
    %c0_39 = arith.constant 0 : index
    %80 = vector.load %arg4[%c3, %c0_38, %c0_39] : memref<5x20x4xbf16, #tpu.memory_space<vmem>>, vector<1x20x4xbf16>
    %81 = vector.shape_cast %80 : vector<1x20x4xbf16> to vector<20x4xbf16>
    %cst_40 = arith.constant dense<0.000000e+00> : vector<256x4xf32>
    %82 = tpu.matmul %78, %81, %cst_40 {dimension_numbers = #tpu.dot_dimension_numbers<[1], [0], [0], [1], [0, 0, 1, 1], [], []>} : vector<256x20xbf16>, vector<20x4xbf16>, vector<256x4xf32> -> vector<256x4xf32>
    %83 = arith.addf %79, %82 : vector<256x4xf32>
    %c0_41 = arith.constant 0 : index
    %c0_42 = arith.constant 0 : index
    %84 = vector.load %arg9[%c0_41, %c0_42] : memref<256x4xf32, #tpu.memory_space<vmem>>, vector<256x4xf32>
    tpu.vector_store %arg9[%c0_41, %c0_42], %83 {strides = array<i32>} : memref<256x4xf32, #tpu.memory_space<vmem>>, vector<256x4xf32>,
    %85 = vector.extract_strided_slice %32 {offsets = [4, 0, 0], sizes = [16, 16, 4], strides = [1, 1, 1]} : vector<20x20x4xbf16> to vector<16x16x4xbf16>
    %86 = vector.extract_strided_slice %32 {offsets = [4, 1, 0], sizes = [16, 16, 4], strides = [1, 1, 1]} : vector<20x20x4xbf16> to vector<16x16x4xbf16>
    %87 = vector.extract_strided_slice %32 {offsets = [4, 2, 0], sizes = [16, 16, 4], strides = [1, 1, 1]} : vector<20x20x4xbf16> to vector<16x16x4xbf16>
    %88 = vector.extract_strided_slice %32 {offsets = [4, 3, 0], sizes = [16, 16, 4], strides = [1, 1, 1]} : vector<20x20x4xbf16> to vector<16x16x4xbf16>
    %89 = vector.extract_strided_slice %32 {offsets = [4, 4, 0], sizes = [16, 16, 4], strides = [1, 1, 1]} : vector<20x20x4xbf16> to vector<16x16x4xbf16>
    %90 = tpu.concatenate %85, %86, %87, %88, %89 in 2 : vector<16x16x4xbf16>, vector<16x16x4xbf16>, vector<16x16x4xbf16>, vector<16x16x4xbf16>, vector<16x16x4xbf16> -> vector<16x16x20xbf16>
    %91 = vector.shape_cast %90 : vector<16x16x20xbf16> to vector<256x20xbf16>
    %c0_43 = arith.constant 0 : index
    %c0_44 = arith.constant 0 : index
    %92 = vector.load %arg9[%c0_43, %c0_44] : memref<256x4xf32, #tpu.memory_space<vmem>>, vector<256x4xf32>
    %c4 = arith.constant 4 : index
    %c0_45 = arith.constant 0 : index
    %c0_46 = arith.constant 0 : index
    %93 = vector.load %arg4[%c4, %c0_45, %c0_46] : memref<5x20x4xbf16, #tpu.memory_space<vmem>>, vector<1x20x4xbf16>
    %94 = vector.shape_cast %93 : vector<1x20x4xbf16> to vector<20x4xbf16>
    %cst_47 = arith.constant dense<0.000000e+00> : vector<256x4xf32>
    %95 = tpu.matmul %91, %94, %cst_47 {dimension_numbers = #tpu.dot_dimension_numbers<[1], [0], [0], [1], [0, 0, 1, 1], [], []>} : vector<256x20xbf16>, vector<20x4xbf16>, vector<256x4xf32> -> vector<256x4xf32>
    %96 = arith.addf %92, %95 : vector<256x4xf32>
    %c0_48 = arith.constant 0 : index
    %c0_49 = arith.constant 0 : index
    %97 = vector.load %arg9[%c0_48, %c0_49] : memref<256x4xf32, #tpu.memory_space<vmem>>, vector<256x4xf32>
    tpu.vector_store %arg9[%c0_48, %c0_49], %96 {strides = array<i32>} : memref<256x4xf32, #tpu.memory_space<vmem>>, vector<256x4xf32>,
    %c0_50 = arith.constant 0 : index
    %c0_51 = arith.constant 0 : index
    %98 = vector.load %arg9[%c0_50, %c0_51] : memref<256x4xf32, #tpu.memory_space<vmem>>, vector<256x4xf32>
    %99 = arith.truncf %98 : vector<256x4xf32> to vector<256x4xbf16>
    %c0_52 = arith.constant 0 : index
    %c0_53 = arith.constant 0 : index
    %c0_54 = arith.constant 0 : index
    %100 = vector.load %arg6[%c0_52, %c0_53, %c0_54] : memref<1x256x4xbf16, #tpu.memory_space<vmem>>, vector<1x256x4xbf16>
    %101 = vector.shape_cast %100 : vector<1x256x4xbf16> to vector<256x4xbf16>
    %102 = vector.shape_cast %99 : vector<256x4xbf16> to vector<1x256x4xbf16>
    tpu.vector_store %arg6[%c0_52, %c0_53, %c0_54], %102 {strides = array<i32>} : memref<1x256x4xbf16, #tpu.memory_space<vmem>>, vector<1x256x4xbf16>,
    %cst_55 = arith.constant dense<0.000000e+00> : vector<4xf32>
    %103 = vector.multi_reduction <add>, %98, %cst_55 [0] : vector<256x4xf32> to vector<4xf32>
    %104 = vector.shape_cast %103 : vector<4xf32> to vector<1x4xf32>
    %c0_56 = arith.constant 0 : index
    %c0_57 = arith.constant 0 : index
    %c0_58 = arith.constant 0 : index
    %105 = vector.load %arg7[%c0_56, %c0_57, %c0_58] : memref<1x1x4xf32, #tpu.memory_space<vmem>>, vector<1x1x4xf32>
    %106 = vector.shape_cast %105 : vector<1x1x4xf32> to vector<1x4xf32>
    %107 = vector.shape_cast %104 : vector<1x4xf32> to vector<1x1x4xf32>
    tpu.vector_store %arg7[%c0_56, %c0_57, %c0_58], %107 {strides = array<i32>} : memref<1x1x4xf32, #tpu.memory_space<vmem>>, vector<1x1x4xf32>,
    %108 = arith.mulf %98, %98 : vector<256x4xf32>
    %cst_59 = arith.constant dense<0.000000e+00> : vector<4xf32>
    %109 = vector.multi_reduction <add>, %108, %cst_59 [0] : vector<256x4xf32> to vector<4xf32>
    %110 = vector.shape_cast %109 : vector<4xf32> to vector<1x4xf32>
    %c0_60 = arith.constant 0 : index
    %c0_61 = arith.constant 0 : index
    %c0_62 = arith.constant 0 : index
    %111 = vector.load %arg8[%c0_60, %c0_61, %c0_62] : memref<1x1x4xf32, #tpu.memory_space<vmem>>, vector<1x1x4xf32>
    %112 = vector.shape_cast %111 : vector<1x1x4xf32> to vector<1x4xf32>
    %113 = vector.shape_cast %110 : vector<1x4xf32> to vector<1x1x4xf32>
    tpu.vector_store %arg8[%c0_60, %c0_61, %c0_62], %113 {strides = array<i32>} : memref<1x1x4xf32, #tpu.memory_space<vmem>>, vector<1x1x4xf32>,
    return
  }
  func.func @transform_0(%arg0: i32) -> (i32, i32, i32, i32) {
    %c0_i32 = arith.constant 0 : i32
    %c0_i32_0 = arith.constant 0 : i32
    %c0_i32_1 = arith.constant 0 : i32
    %c0_i32_2 = arith.constant 0 : i32
    return %arg0, %c0_i32, %c0_i32_0, %c0_i32_1 : i32, i32, i32, i32
  }
  func.func @transform_1(%arg0: i32) -> (i32, i32) {
    %c0_i32 = arith.constant 0 : i32
    %c0_i32_0 = arith.constant 0 : i32
    %c0_i32_1 = arith.constant 0 : i32
    return %c0_i32, %c0_i32_0 : i32, i32
  }
  func.func @transform_2(%arg0: i32) -> (i32, i32) {
    %c0_i32 = arith.constant 0 : i32
    %c0_i32_0 = arith.constant 0 : i32
    %c0_i32_1 = arith.constant 0 : i32
    return %c0_i32, %c0_i32_0 : i32, i32
  }
  func.func @transform_3(%arg0: i32) -> (i32, i32, i32) {
    %c0_i32 = arith.constant 0 : i32
    %c0_i32_0 = arith.constant 0 : i32
    %c0_i32_1 = arith.constant 0 : i32
    %c0_i32_2 = arith.constant 0 : i32
    return %c0_i32, %c0_i32_0, %c0_i32_1 : i32, i32, i32
  }
  func.func @transform_4(%arg0: i32) -> (i32, i32) {
    %c0_i32 = arith.constant 0 : i32
    %c0_i32_0 = arith.constant 0 : i32
    %c0_i32_1 = arith.constant 0 : i32
    return %c0_i32, %c0_i32_0 : i32, i32
  }
  func.func @transform_5(%arg0: i32) -> (i32, i32, i32) {
    %c0_i32 = arith.constant 0 : i32
    %c0_i32_0 = arith.constant 0 : i32
    %c0_i32_1 = arith.constant 0 : i32
    return %arg0, %c0_i32, %c0_i32_0 : i32, i32, i32
  }
  func.func @transform_6(%arg0: i32) -> (i32, i32, i32) {
    %c0_i32 = arith.constant 0 : i32
    %c0_i32_0 = arith.constant 0 : i32
    %c0_i32_1 = arith.constant 0 : i32
    return %arg0, %c0_i32, %c0_i32_0 : i32, i32, i32
  }
  func.func @transform_7(%arg0: i32) -> (i32, i32, i32) {
    %c0_i32 = arith.constant 0 : i32
    %c0_i32_0 = arith.constant 0 : i32
    %c0_i32_1 = arith.constant 0 : i32
    return %arg0, %c0_i32, %c0_i32_0 : i32, i32, i32
  }
}

module attributes {stable_mosaic.version = 11 : i64} {
  func.func @_bn_relu_kernel(%arg0: i32, %arg1: memref<16x128xbf16, #tpu.memory_space<vmem>>, %arg2: memref<1x128xf32, #tpu.memory_space<vmem>>, %arg3: memref<1x128xf32, #tpu.memory_space<vmem>>, %arg4: memref<16x128xf32, #tpu.memory_space<vmem>>) attributes {dimension_semantics = [#tpu.dimension_semantics<parallel>], iteration_bounds = array<i64: 1>, scalar_prefetch = 0 : i64, scratch_operands = 0 : i64, tpu.core_type = #tpu.core_type<tc>, window_params = [{transform_indices = @transform_0, window_bounds = array<i64: 16, 128>}, {pipeline_mode = #tpu.pipeline_mode<synchronous>, transform_indices = @transform_1, window_bounds = array<i64: 1, 128>}, {pipeline_mode = #tpu.pipeline_mode<synchronous>, transform_indices = @transform_2, window_bounds = array<i64: 1, 128>}, {transform_indices = @transform_3, window_bounds = array<i64: 16, 128>}]} {
    %c0 = arith.constant 0 : index
    %c0_0 = arith.constant 0 : index
    %0 = vector.load %arg1[%c0, %c0_0] : memref<16x128xbf16, #tpu.memory_space<vmem>>, vector<16x128xbf16>
    %1 = arith.extf %0 : vector<16x128xbf16> to vector<16x128xf32>
    %c0_1 = arith.constant 0 : index
    %c0_2 = arith.constant 0 : index
    %2 = vector.load %arg2[%c0_1, %c0_2] : memref<1x128xf32, #tpu.memory_space<vmem>>, vector<1x128xf32>
    %3 = vector.broadcast %2 : vector<1x128xf32> to vector<16x128xf32>
    %4 = arith.mulf %1, %3 : vector<16x128xf32>
    %c0_3 = arith.constant 0 : index
    %c0_4 = arith.constant 0 : index
    %5 = vector.load %arg3[%c0_3, %c0_4] : memref<1x128xf32, #tpu.memory_space<vmem>>, vector<1x128xf32>
    %6 = vector.broadcast %5 : vector<1x128xf32> to vector<16x128xf32>
    %7 = arith.addf %4, %6 : vector<16x128xf32>
    %cst = arith.constant 0.000000e+00 : f32
    %8 = vector.broadcast %cst : f32 to vector<16x128xf32>
    %9 = arith.maximumf %7, %8 : vector<16x128xf32>
    %c0_5 = arith.constant 0 : index
    %c0_6 = arith.constant 0 : index
    %10 = vector.load %arg4[%c0_5, %c0_6] : memref<16x128xf32, #tpu.memory_space<vmem>>, vector<16x128xf32>
    tpu.vector_store %arg4[%c0_5, %c0_6], %9 {strides = array<i32>} : memref<16x128xf32, #tpu.memory_space<vmem>>, vector<16x128xf32>,
    return
  }
  func.func @transform_0(%arg0: i32) -> (i32, i32) {
    %c0_i32 = arith.constant 0 : i32
    %c0_i32_0 = arith.constant 0 : i32
    return %arg0, %c0_i32 : i32, i32
  }
  func.func @transform_1(%arg0: i32) -> (i32, i32) {
    %c0_i32 = arith.constant 0 : i32
    %c0_i32_0 = arith.constant 0 : i32
    %c0_i32_1 = arith.constant 0 : i32
    return %c0_i32, %c0_i32_0 : i32, i32
  }
  func.func @transform_2(%arg0: i32) -> (i32, i32) {
    %c0_i32 = arith.constant 0 : i32
    %c0_i32_0 = arith.constant 0 : i32
    %c0_i32_1 = arith.constant 0 : i32
    return %c0_i32, %c0_i32_0 : i32, i32
  }
  func.func @transform_3(%arg0: i32) -> (i32, i32) {
    %c0_i32 = arith.constant 0 : i32
    %c0_i32_0 = arith.constant 0 : i32
    return %arg0, %c0_i32 : i32, i32
  }
}

</mosaic_0001>

<bundles_post_ra>
// kernel: tile.16
= control target key start
LH: loop header
LB: loop body
LE: loop exit
PB: predicated region body
PF: predicated region fallthrough
CT: control target
= control target key end

     0   :  { %s22_s0 = inlined_call_operand.vmem [shape: f32[4], index: 0, kind: input, shape index: {}]   ;;  %s23_s1 = inlined_call_operand.vmem [shape: f32[4,4], index: 1, kind: output, shape index: {}]  }
   0x1   :  { %v4_v0 = vld [vmem:[%s22_s0] ss:$0 sm:$0xff] }
   0x2   :  { %5 = vst [vmem:[%s23_s1] sm:$0xf] %v4_v0 }

// kernel: tile.17
= control target key start
LH: loop header
LB: loop body
LE: loop exit
PB: predicated region body
PF: predicated region fallthrough
CT: control target
= control target key end

     0   :  { %vm7_vm0 = vcmask 31744   ;;  %s37_s8 = smov 4   ;;  %s38_s9 = smov 8   ;;  %vm13_vm1 = vcmask 130144   ;;  %vm19_vm2 = vcmask 97344   ;;  %vm25_vm3 = vcmask 64544   ;;  %s55_s0 = inlined_call_operand.vmem [shape: f32[4,4], index: 0, kind: input, shape index: {}]   ;;  %s56_s1 = inlined_call_operand.vmem [shape: f32[1,16], index: 1, kind: output, shape index: {}]  }
   0x1   :  { %v4_v0 = vld [vmem:[%s55_s0] sm:$0xf]  ;;  %s36_s0 = smov 12  }
   0x2   :  { %5 = vst [vmem:[#allocation1] sm:$0xf] %v4_v0 }
   0x9   :  { %v10_v1 = vld [vmem:[#allocation1 + $0x3] sm:$0x1]   ;;  %v22_v2 = vld [vmem:[#allocation1 + $0x1] sm:$0x1]   ;;  %v6_v3 = vld [vmem:[#allocation1] sm:$0x1]  }
   0xa   :  { %11 = vrot.lane.b32.xlu0 %v10_v1, %s36_s0  ;;  %23 = vrot.lane.b32.xlu1 %v22_v2, %s37_s8  ;;  %v16_v4 = vld [vmem:[#allocation1 + $0x2] sm:$0x1]   ;;  %8 = vst.msk [vmem:[#allocation0] sm:$0x1] %vm7_vm0, %v6_v3  }
   0xe   :  { %17 = vrot.lane.b32.xlu0 %v16_v4, %s38_s9 }
  0x7c   :  { %v12_v5 = vpop.permute.xlu0 %11   ;;  %v24_v6 = vpop.permute.xlu1 %23  }
  0x7d   :  { %14 = vst.msk [vmem:[#allocation0] sm:$0x1] %vm13_vm1, %v12_v5  }
  0x80   :  { %v18_v7 = vpop.permute.xlu0 %17  }
  0x81   :  { %20 = vst.msk [vmem:[#allocation0] sm:$0x1] %vm19_vm2, %v18_v7  }
  0x82   :  { %26 = vst.msk [vmem:[#allocation0] sm:$0x1] %vm25_vm3, %v24_v6  }
  0x89   :  { %v30_v8 = vld [vmem:[#allocation0] sm:$0x1] }
  0x8a   :  { %32 = vst [vmem:[%s56_s1] sm:$0x1] %v30_v8 }

// kernel: decoder_block_forward.4
= control target key start
LH: loop header
LB: loop body
LE: loop exit
PB: predicated region body
PF: predicated region fallthrough
CT: control target
= control target key end

     0   :  { %vm104_vm0 = vcmask 1043456   ;;  %vm79_vm1 = vcmask 64512   ;;  %vm269_vm2 = vcmask 125952   ;;  %s500_s1 = inlined_call_operand.vmem [shape: bf16[8,16], index: 1, kind: input, shape index: {}]   ;;  %s501_s0 = inlined_call_operand.vmem [shape: bf16[128,8], index: 0, kind: input, shape index: {}]   ;;  %s502_s2 = inlined_call_operand.vmem [shape: f32[1,16], index: 2, kind: input, shape index: {}]   ;;  %s503_s3 = inlined_call_operand.vmem [shape: bf16[128,16], index: 3, kind: output, shape index: {}]  }
   0x1   :  { %v31_v0 = vld [vmem:[%s500_s1] sm:$0xf]  ;;  %v372_v4 = vld [vmem:[%s501_s0 + $0x8] sm:$0xff]   ;;  %v374_v6 = vld [vmem:[%s501_s0 + $0x10] sm:$0xff]  }
   0x2   :  { %368 = vmatprep.subr.msk.bf16.mxu0 %vm104_vm0, %v31_v0  ;;  %369 = vmatprep.subr.msk.bf16.mxu1 %vm104_vm0, %v31_v0  ;;  %v106_v1 = vsel %vm104_vm0, %v31_v0, 0  ;;  %v370_v2 = vld [vmem:[%s501_s0] sm:$0xff]   ;;  %v373_v5 = vld [vmem:[%s501_s0 + $0x28] sm:$0xff]   ;;  %v375_v7 = vld [vmem:[%s501_s0 + $0x30] sm:$0xff]  }
   0x3   :  { %349 = vmatpush3.bf16.msra.mxu0 %v106_v1  ;;  %367 = vmatpush3.bf16.msra.mxu1 %v106_v1  ;;  %v371_v3 = vld [vmem:[%s501_s0 + $0x20] sm:$0xff]   ;;  %v376_v8 = vld [vmem:[%s501_s0 + $0x18] sm:$0xff]  }
   0x4   :  { %350 = vmatprep.mubr.msk.bf16.mxu0 %vm79_vm1, %v370_v2  ;;  %358 = vmatprep.mubr.msk.bf16.mxu1 %vm79_vm1, %v371_v3  ;;  %v377_v9 = vld [vmem:[%s501_s0 + $0x38] sm:$0xff]   ;;  %v290_v10 = vld [vmem:[%s502_s2] ss:$0 sm:$0xff] }
   0x6   :  { %351 = vmatmul.mubr.msk.bf16.vlgmr.msra.gmra.mrb[0].mxu0 %vm79_vm1, %v372_v4  ;;  %359 = vmatmul.mubr.msk.bf16.vlgmr.msra.gmra.mrb[0].mxu1 %vm79_vm1, %v373_v5 }
   0x7   :  { %354 = vmatprep.mubr.msk.bf16.mxu0 %vm79_vm1, %v374_v6  ;;  %362 = vmatprep.mubr.msk.bf16.mxu1 %vm79_vm1, %v375_v7 }
   0xe   :  { %355 = vmatmul.mubr.msk.bf16.gmra.mrb[4].mxu0 %vm79_vm1, %v376_v8  ;;  %363 = vmatmul.mubr.msk.bf16.gmra.mrb[4].mxu1 %vm79_vm1, %v377_v9 }
  0xd9   :  { %v352_v11 = vpop.f32.mrb[0].mxu0  ;;  %v360_v13 = vpop.f32.mrb[0].mxu1 }
  0xda   :  { %v151_v12 = vadd.f32 %v352_v11, %v290_v10  ;;  %v142_v14 = vpop.f32.mrb[1].mxu0  ;;  %v183_v15 = vadd.f32 %v360_v13, %v290_v10  ;;  %v174_v17 = vpop.f32.mrb[1].mxu1 }
  0xdb   :  { %v143_v16 = vadd.f32 %v290_v10, %v142_v14  ;;  %v353_v18 = vpop.f32.mrb[2].mxu0  ;;  %v175_v20 = vadd.f32 %v290_v10, %v174_v17  ;;  %v361_v22 = vpop.f32.mrb[2].mxu1 }
  0xdc   :  { %v325_v19 = vpack.c.bf16 %v151_v12, %v151_v12  ;;  %v154_v21 = vadd.f32 %v353_v18, %v290_v10  ;;  %v145_v23 = vpop.f32.mrb[3].mxu0  ;;  %v333_v24 = vpack.c.bf16 %v183_v15, %v183_v15  ;;  %v186_v26 = vadd.f32 %v361_v22, %v290_v10  ;;  %v177_v28 = vpop.f32.mrb[3].mxu1 }
  0xdd   :  { %v323_v25 = vpack.c.bf16 %v143_v16, %v143_v16  ;;  %v146_v27 = vadd.f32 %v290_v10, %v145_v23  ;;  %v331_v29 = vpack.c.bf16 %v175_v20, %v175_v20  ;;  %v178_v31 = vadd.f32 %v290_v10, %v177_v28 }
  0xde   :  { %272 = vst.msk [vmem:[%s503_s3 + $0x8] sm:$0xf] %vm269_vm2, %v325_v19  ;;  %v326_v30 = vpack.c.bf16 %v154_v21, %v154_v21  ;;  %280 = vst.msk [vmem:[%s503_s3 + $0x28] sm:$0xf] %vm269_vm2, %v333_v24  ;;  %v334_v32 = vpack.c.bf16 %v186_v26, %v186_v26 }
  0xdf   :  { %270 = vst.msk [vmem:[%s503_s3] sm:$0xf] %vm269_vm2, %v323_v25  ;;  %v324_v33 = vpack.c.bf16 %v146_v27, %v146_v27  ;;  %278 = vst.msk [vmem:[%s503_s3 + $0x20] sm:$0xf] %vm269_vm2, %v331_v29  ;;  %v332_v34 = vpack.c.bf16 %v178_v31, %v178_v31 }
  0xe0   :  { %273 = vst.msk [vmem:[%s503_s3 + $0xc] sm:$0xf] %vm269_vm2, %v326_v30  ;;  %281 = vst.msk [vmem:[%s503_s3 + $0x2c] sm:$0xf] %vm269_vm2, %v334_v32 }
  0xe1   :  { %271 = vst.msk [vmem:[%s503_s3 + $0x4] sm:$0xf] %vm269_vm2, %v324_v33  ;;  %v356_v35 = vpop.f32.mrb[4].mxu0  ;;  %279 = vst.msk [vmem:[%s503_s3 + $0x24] sm:$0xf] %vm269_vm2, %v332_v34  ;;  %v364_v37 = vpop.f32.mrb[4].mxu1 }
  0xe2   :  { %v167_v36 = vadd.f32 %v356_v35, %v290_v10  ;;  %v158_v38 = vpop.f32.mrb[5].mxu0  ;;  %v199_v39 = vadd.f32 %v364_v37, %v290_v10  ;;  %v190_v41 = vpop.f32.mrb[5].mxu1 }
  0xe3   :  { %v159_v40 = vadd.f32 %v290_v10, %v158_v38  ;;  %v357_v42 = vpop.f32.mrb[6].mxu0  ;;  %v191_v44 = vadd.f32 %v290_v10, %v190_v41  ;;  %v365_v46 = vpop.f32.mrb[6].mxu1 }
  0xe4   :  { %v329_v43 = vpack.c.bf16 %v167_v36, %v167_v36  ;;  %v170_v45 = vadd.f32 %v357_v42, %v290_v10  ;;  %v161_v47 = vpop.f32.mrb[7].mxu0  ;;  %v337_v48 = vpack.c.bf16 %v199_v39, %v199_v39  ;;  %v202_v50 = vadd.f32 %v365_v46, %v290_v10  ;;  %v193_v52 = vpop.f32.mrb[7].mxu1 }
  0xe5   :  { %v327_v49 = vpack.c.bf16 %v159_v40, %v159_v40  ;;  %v162_v51 = vadd.f32 %v290_v10, %v161_v47  ;;  %v335_v53 = vpack.c.bf16 %v191_v44, %v191_v44  ;;  %v194_v55 = vadd.f32 %v290_v10, %v193_v52 }
  0xe6   :  { %276 = vst.msk [vmem:[%s503_s3 + $0x18] sm:$0xf] %vm269_vm2, %v329_v43  ;;  %v330_v54 = vpack.c.bf16 %v170_v45, %v170_v45  ;;  %284 = vst.msk [vmem:[%s503_s3 + $0x38] sm:$0xf] %vm269_vm2, %v337_v48  ;;  %v338_v56 = vpack.c.bf16 %v202_v50, %v202_v50 }
  0xe7   :  { %274 = vst.msk [vmem:[%s503_s3 + $0x10] sm:$0xf] %vm269_vm2, %v327_v49  ;;  %v328_v57 = vpack.c.bf16 %v162_v51, %v162_v51  ;;  %282 = vst.msk [vmem:[%s503_s3 + $0x30] sm:$0xf] %vm269_vm2, %v335_v53  ;;  %v336_v58 = vpack.c.bf16 %v194_v55, %v194_v55 }
  0xe8   :  { %277 = vst.msk [vmem:[%s503_s3 + $0x1c] sm:$0xf] %vm269_vm2, %v330_v54  ;;  %285 = vst.msk [vmem:[%s503_s3 + $0x3c] sm:$0xf] %vm269_vm2, %v338_v56 }
  0xe9   :  { %275 = vst.msk [vmem:[%s503_s3 + $0x14] sm:$0xf] %vm269_vm2, %v328_v57  ;;  %283 = vst.msk [vmem:[%s503_s3 + $0x34] sm:$0xf] %vm269_vm2, %v336_v58 }

// kernel: decoder_block_forward.7
= control target key start
LH: loop header
LB: loop body
LE: loop exit
PB: predicated region body
PF: predicated region fallthrough
CT: control target
= control target key end

     0   :  { %s85_s0 = inlined_call_operand.vmem [shape: bf16[16,128], index: 0, kind: input, shape index: {}]   ;;  %s86_s1 = inlined_call_operand.vmem [shape: f32[1,128], index: 1, kind: input, shape index: {}]   ;;  %s87_s2 = inlined_call_operand.vmem [shape: f32[1,128], index: 2, kind: input, shape index: {}]   ;;  %s88_s3 = inlined_call_operand.vmem [shape: f32[16,128], index: 3, kind: output, shape index: {}]  }
   0x1   :  { %v47_v0 = vld [vmem:[%s85_s0] sm:$0xff]  }
   0x2   :  { %v44_v1 = vld [vmem:[%s86_s1] ss:$0 sm:$0xff]  ;;  %v48_v2 = vunpack.c.l.bf16 %v47_v0  ;;  %v49_v3 = vunpack.c.h.bf16 %v47_v0 }
   0x3   :  { %v45_v4 = vld [vmem:[%s87_s2] ss:$0 sm:$0xff] }
   0x4   :  { %v25_v5 = vmul.f32 %v48_v2, %v44_v1  ;;  %v26_v6 = vmul.f32 %v49_v3, %v44_v1 }
   0x6   :  { %v34_v7 = vadd.f32 %v45_v4, %v25_v5  ;;  %v35_v8 = vadd.f32 %v45_v4, %v26_v6 }
   0x8   :  { %v36_v9 = vmax.f32 %v34_v7, 0.0  ;;  %v37_v10 = vmax.f32 %v35_v8, 0.0 }
   0xa   :  { %38 = vst [vmem:[%s88_s3] sm:$0xff] %v36_v9  ;;  %39 = vst [vmem:[%s88_s3 + $0x8] sm:$0xff] %v37_v10 }

// kernel: decoder_block_forward.6
= control target key start
LH: loop header
LB: loop body
LE: loop exit
PB: predicated region body
PF: predicated region fallthrough
CT: control target
= control target key end

     0   :  { %s4143_s24 = smov 0   ;;  %s5470_s0 = inlined_call_operand.vmem [shape: bf16[2,20,20,4], index: 0, kind: input, shape index: {}]   ;;  %s5471_s1 = inlined_call_operand.vmem [shape: f32[1,4], index: 1, kind: input, shape index: {}]   ;;  %s5472_s2 = inlined_call_operand.vmem [shape: f32[1,4], index: 2, kind: input, shape index: {}]   ;;  %s5473_s3 = inlined_call_operand.vmem [shape: bf16[5,20,4], index: 3, kind: input, shape index: {}]   ;;  %s5474_s4 = inlined_call_operand.vmem [shape: f32[1,4], index: 4, kind: input, shape index: {}]   ;;  %s5475_s5 = inlined_call_operand.vmem [shape: bf16[2,256,4], index: 5, kind: output, shape index: {0}]   ;;  %s5476_s6 = inlined_call_operand.vmem [shape: f32[2,1,4], index: 6, kind: output, shape index: {1}]   ;;  %s5477_s7 = inlined_call_operand.vmem [shape: f32[2,1,4], index: 7, kind: output, shape index: {2}]  }
   0x1 LB: > { %s3557_s25 = sadd.s32 4294967295, %s4095_s24   ;;  %p3561_p0 = scmp.ge.s32.totalorder %s4095_s24, 1  ;;  %s4095_s24 = sphi %s4143_s24, %s18_s24  }
   0x2   : > { %p242_p1 = scmp.lt.s32.totalorder %s4095_s24, 3 }
   0x4   : > { %p243_p2 = pnand %p3561_p0, %p242_p1 }
   0x5   : > { %p280_p3 = scmp.lt.s32.totalorder (!%p243_p2), %s3557_s25, 1  ;;  %v397_v0 = vlaneseq (!%p243_p2)  ;;  %v4097_v1 = vmov (!%p243_p2), 0   ;;  %s4098_s27 = smov (!%p243_p2), 4   ;;  %v4167_v7 = vld [vmem:[%s5471_s1] ss:$0 sm:$0xff] (!%p243_p2)  ;;  %v4099_v8 = vmov (!%p243_p2), 0.0|0.0  }
   0x6   : > { %246 = sbr.rel (%p243_p2) target bundleno = 659 (0x293), region = 40  ;;  %v4151_v2 = vrot.slane (!%p243_p2), %v4097_v1, 1  ;;  %v1113_v5 = vrot.slane (!%p243_p2), %v4097_v1, 2  ;;  %v4175_v9 = vrot.slane (!%p243_p2), %v4099_v8, 1  ;;  %v4181_v13 = vrot.slane (!%p243_p2), %v4099_v8, 2  ;;  %s4100_s12 = smov (!%p243_p2), 16  }
   0x7   : > { %v4155_v3 = vshrl.u32 (!%p243_p2), %v397_v0, 7  ;;  %v4192_v22 = vld [vmem:[%s5472_s2] ss:$0 sm:$0xff] (!%p243_p2)  ;;  %vm1288_vm2 = vcmask (!%p243_p2), 1045504   ;;  %vm1030_vm3 = vcmask (!%p243_p2), 1046528   ;;  %s4101_s13 = smov (!%p243_p2), 8  }
   0x8   : > { %v4072_v4 = vpack.i.bf16 (!%p243_p2), %v4151_v2, %v4151_v2  ;;  %v4184_v14 = vor.u32 (!%p243_p2), %v1113_v5, %v4151_v2  ;;  %vm1111_vm4 = vsmask.f32 (!%p243_p2), 6400  ;;  %vm773_vm5 = vsmask.f32 (!%p243_p2), 7424  ;;  %s4102_s16 = smov (!%p243_p2), 12  }
   0x9   : > { %v4161_v6 = vadd.s32 (!%p243_p2), 16, %v4155_v3  ;;  %vm401_vm0 = vcmp.ge.s32.totalorder (!%p243_p2), %v4155_v3, 2  ;;  %vm1577_vm6 = vcmask (!%p243_p2), 1041408   ;;  %vm304_vm7 = vcmask (!%p243_p2), 31744  }
   0xa   : > { %4073 = vrot.lane.b32.xlu1 (!%p243_p2), %v4072_v4, %s4098_s27  ;;  %vm1401_vm8 = vcmask (!%p243_p2), 64512   ;;  %vm1434_vm9 = vcmask (!%p243_p2), 97280   ;;  %vm1467_vm10 = vcmask (!%p243_p2), 130048   ;;  %vm1544_vm11 = vcmask (!%p243_p2), 162816  }
   0xb   : > { %vm412_vm1 = vcmp.lt.s32.totalorder (!%p243_p2), %v4161_v6, 18  ;;  %vm3246_vm12 = vcmask (!%p243_p2), 27648   ;;  %vm3348_vm13 = vcmask (!%p243_p2), 24576  }
   0xd   : > { %s5479_s25 = smov (!%p280_p3, %s3557_s25), 1 }
   0xe   : > { %s4057_s26 = smul.u32 240, %s5479_s25  ;;  %s3704_s20 = sshll.u32 %s5479_s25, 7 }
   0xf   : > { %s5280_s23 = scalar_lea.vmem %s5475_s5, %s3704_s20  ;;  %s292_s29 = scalar_lea.vmem %s5476_s6, %s5479_s25 }
  0x10   : > { %s4172_s9 = scalar_lea.vmem %s5470_s0, %s4057_s26 }
  0x11   : > { %v3772_v10 = vld [vmem:[%s4172_s9 + $0x60] sm:$0xff]   ;;  %v363_v11 = vld [vmem:[%s4172_s9 + $0x68] sm:$0x3]  ;;  %v3773_v12 = vld [vmem:[%s4172_s9 + $0x78] sm:$0xff]  }
  0x12   : > { %v3751_v15 = vunpack.c.l.bf16 %v3772_v10  ;;  %v3752_v16 = vunpack.c.h.bf16 %v3772_v10  ;;  %v445_v17 = vunpack.c.l.bf16 %v363_v11  ;;  %v3755_v18 = vunpack.c.l.bf16 %v3773_v12  ;;  %v369_v19 = vld [vmem:[%s4172_s9 + $0x80] sm:$0x3]  ;;  %v364_v20 = vld [vmem:[%s4172_s9 + $0x6c] sm:$0xff]   ;;  %v366_v21 = vld [vmem:[%s4172_s9 + $0x74] sm:$0x3] }
  0x13   : > { %v3756_v23 = vunpack.c.h.bf16 %v3773_v12  ;;  %v451_v24 = vunpack.c.l.bf16 %v369_v19  ;;  %v446_v25 = vunpack.c.l.bf16 %v364_v20  ;;  %v447_v26 = vunpack.c.h.bf16 %v364_v20  ;;  %v372_v59 = vld [vmem:[%s4172_s9 + $0x8c] sm:$0x3]  ;;  %v370_v0 = vld [vmem:[%s4172_s9 + $0x84] sm:$0xff]  }
  0x14   : > { %v510_v27 = vmul.f32 %v3751_v15, %v4167_v7  ;;  %v511_v28 = vmul.f32 %v3752_v16, %v4167_v7  ;;  %v512_v29 = vmul.f32 %v4167_v7, %v445_v17  ;;  %v516_v30 = vmul.f32 %v3755_v18, %v4167_v7 }
  0x15   : > { %v517_v31 = vmul.f32 %v3756_v23, %v4167_v7  ;;  %v518_v32 = vmul.f32 %v4167_v7, %v451_v24  ;;  %v448_v33 = vunpack.c.l.bf16 %v366_v21  ;;  %v513_v34 = vmul.f32 %v4167_v7, %v446_v25 }
  0x16   : > { %v577_v35 = vadd.f32 %v4192_v22, %v510_v27  ;;  %v578_v36 = vadd.f32 %v4192_v22, %v511_v28  ;;  %v579_v37 = vadd.f32 %v4192_v22, %v512_v29  ;;  %v583_v38 = vadd.f32 %v4192_v22, %v516_v30 }
  0x17   : > { %v584_v39 = vadd.f32 %v4192_v22, %v517_v31  ;;  %v585_v40 = vadd.f32 %v4192_v22, %v518_v32  ;;  %v514_v41 = vmul.f32 %v4167_v7, %v447_v26  ;;  %v515_v42 = vmul.f32 %v4167_v7, %v448_v33 }
  0x18   : > { %v637_v43 = vmax.f32 %v577_v35, 0.0  ;;  %v638_v44 = vmax.f32 %v578_v36, 0.0  ;;  %v639_v45 = vmax.f32 %v579_v37, 0.0  ;;  %v643_v46 = vmax.f32 %v583_v38, 0.0 }
  0x19   : > { %v644_v47 = vmax.f32 %v584_v39, 0.0  ;;  %v645_v48 = vmax.f32 %v585_v40, 0.0  ;;  %v580_v49 = vadd.f32 %v4192_v22, %v513_v34  ;;  %v581_v50 = vadd.f32 %v4192_v22, %v514_v41 }
  0x1a   : > { %v697_v51 = vsel %vm401_vm0, %v637_v43, 0.0  ;;  %v699_v52 = vsel %vm412_vm1, %v639_v45, 0.0  ;;  %v703_v53 = vsel %vm401_vm0, %v643_v46, 0.0  ;;  %v582_v54 = vadd.f32 %v4192_v22, %v515_v42  ;;  %v4077_v45 = vld [vmem:[%s5473_s3] sm:$0xff]  }
  0x1b   : > { %v4218_v55 = vpack.c.bf16 %v638_v44, %v697_v51  ;;  %v4220_v56 = vpack.c.bf16 %v699_v52, %v699_v52  ;;  %v705_v57 = vsel %vm412_vm1, %v645_v48, 0.0  ;;  %v4224_v58 = vpack.c.bf16 %v644_v47, %v703_v53  ;;  %4047 = vmatprep.subr.bf16.mxu1 %v4077_v45  ;;  %3867 = vmatprep.subr.bf16.mxu0 %v4077_v45 }
  0x1c   : > { %v4227_v60 = vpack.c.bf16 %v705_v57, %v705_v57  ;;  %v640_v61 = vmax.f32 %v580_v49, 0.0  ;;  %v641_v62 = vmax.f32 %v581_v50, 0.0  ;;  %v642_v63 = vmax.f32 %v582_v54, 0.0  ;;  %4049 = vmatpush3.bf16.msra.mxu1 %v4077_v45  ;;  %3868 = vmatpush3.bf16.msra.mxu0 %v4077_v45 }
  0x1d   : > { %v1313_v1 = vrot.slane %v4218_v55, 2  ;;  %v1314_v4 = vrot.slane %v4220_v56, 2  ;;  %v1055_v5 = vrot.slane %v4218_v55, 1  ;;  %v1056_v8 = vrot.slane %v4220_v56, 1 }
  0x1e   : > { %v1061_v10 = vrot.slane %v4224_v58, 1  ;;  %v1062_v11 = vrot.slane %v4227_v60, 1  ;;  %v700_v12 = vsel %vm401_vm0, %v640_v61, 0.0  ;;  %v702_v15 = vsel %vm412_vm1, %v642_v63, 0.0 }
  0x1f   : > { %v1315_v16 = vsel %vm1288_vm2, %v1313_v1, %v1314_v4  ;;  %v1057_v17 = vsel %vm1030_vm3, %v1055_v5, %v1056_v8  ;;  %v4242_v18 = vpack.c.bf16 %v641_v62, %v700_v12  ;;  %v752_v19 = vpack.c.bf16 %v702_v15, %v702_v15 }
  0x20   : > { %1353 = vrot.lane.b32.xlu0 %v1315_v16, %s4100_s12  ;;  %1095 = vrot.lane.b32.xlu1 %v1057_v17, %s4101_s13  ;;  %v1063_v20 = vsel %vm1030_vm3, %v1061_v10, %v1062_v11  ;;  %v452_v21 = vunpack.c.l.bf16 %v370_v0  ;;  %v453_v23 = vunpack.c.h.bf16 %v370_v0  ;;  %v454_v24 = vunpack.c.l.bf16 %v372_v59 }
  0x21   : > { %v1058_v25 = vrot.slane %v4242_v18, 1  ;;  %v1059_v26 = vrot.slane %v752_v19, 1  ;;  %v1316_v27 = vrot.slane %v4242_v18, 2  ;;  %v1317_v28 = vrot.slane %v752_v19, 2 }
  0x22   : > { %v519_v29 = vmul.f32 %v4167_v7, %v452_v21  ;;  %v520_v30 = vmul.f32 %v4167_v7, %v453_v23  ;;  %v521_v31 = vmul.f32 %v4167_v7, %v454_v24  ;;  %v883_v32 = vshrl.u32 %v4242_v18, 16 }
  0x23   : > { %v1060_v33 = vsel %vm1030_vm3, %v1058_v25, %v1059_v26  ;;  %v1318_v34 = vsel %vm1288_vm2, %v1316_v27, %v1317_v28  ;;  %v885_v35 = vshll.u32 %v4242_v18, 16  ;;  %v890_v36 = vshll.u32 %v752_v19, 16 }
  0x24   : > { %1099 = vrot.lane.b32.xlu0 %v1063_v20, %s4101_s13  ;;  %1097 = vrot.lane.b32.xlu1 %v1060_v33, %s4101_s13  ;;  %v586_v37 = vadd.f32 %v4192_v22, %v519_v29  ;;  %v587_v38 = vadd.f32 %v4192_v22, %v520_v30  ;;  %v588_v39 = vadd.f32 %v4192_v22, %v521_v31  ;;  %v1193_v40 = vrot.slane %v883_v32, 1 }
  0x25   : > { %v1194_v41 = vrot.slane %v885_v35, 2  ;;  %v1196_v42 = vshrl.u32 %v752_v19, 16  ;;  %v1199_v43 = vrot.slane %v890_v36, 2  ;;  %v871_v44 = vshrl.u32 %v4218_v55, 16 }
  0x26   : > { %v646_v46 = vmax.f32 %v586_v37, 0.0  ;;  %v647_v47 = vmax.f32 %v587_v38, 0.0  ;;  %v648_v48 = vmax.f32 %v588_v39, 0.0  ;;  %v873_v49 = vshll.u32 %v4218_v55, 16 }
  0x27   : > { %v1195_v50 = vor.u32 %v1194_v41, %v1193_v40  ;;  %v1198_v51 = vrot.slane %v1196_v42, 1  ;;  %v878_v52 = vshll.u32 %v4220_v56, 16  ;;  %v887_v53 = vrot.slane %v885_v35, 1 }
  0x28   : > { %v706_v54 = vsel %vm401_vm0, %v646_v46, 0.0  ;;  %v708_v57 = vsel %vm412_vm1, %v648_v48, 0.0  ;;  %1355 = vrot.lane.b32.xlu1 %v1318_v34, %s4100_s12  ;;  %v875_v59 = vrot.slane %v873_v49, 1  ;;  %v892_v61 = vrot.slane %v890_v36, 1 }
  0x29   : > { %v4272_v62 = vpack.c.bf16 %v647_v47, %v706_v54  ;;  %v4274_v63 = vpack.c.bf16 %v708_v57, %v708_v57  ;;  %v1200_v0 = vor.u32 %v1199_v43, %v1198_v51  ;;  %v880_v1 = vrot.slane %v878_v52, 1  ;;  %v375_v57 = vld [vmem:[%s4172_s9 + $0x98] sm:$0x3] }
  0x2a   : > { %v876_v4 = vor.u32 %v875_v59, %v871_v44  ;;  %v888_v5 = vor.u32 %v887_v53, %v883_v32  ;;  %v895_v8 = vshrl.u32 %v4224_v58, 16  ;;  %v897_v10 = vshll.u32 %v4224_v58, 16  ;;  %v376_v59 = vld [vmem:[%s4172_s9 + $0x9c] sm:$0xff]  }
  0x2b   : > { %v1064_v11 = vrot.slane %v4272_v62, 1  ;;  %v1065_v12 = vrot.slane %v4274_v63, 1  ;;  %v1201_v15 = vsel %vm1111_vm4, %v1195_v50, %v1200_v0  ;;  %v907_v16 = vshrl.u32 %v4272_v62, 16  ;;  %v3774_v50 = vld [vmem:[%s4172_s9 + $0x90] sm:$0xff]  }
  0x2c   : > { %1274 = vrot.lane.b32.xlu1 %v1201_v15, %s4102_s16  ;;  %v881_v17 = vsel %vm773_vm5, %v876_v4, %v880_v1  ;;  %v909_v19 = vshll.u32 %v4272_v62, 16  ;;  %v914_v20 = vshll.u32 %v4274_v63, 16  ;;  %v893_v21 = vsel %vm773_vm5, %v888_v5, %v892_v61  ;;  %v378_v5 = vld [vmem:[%s4172_s9 + $0xa4] sm:$0x3] }
  0x2d   : > { %v1066_v23 = vsel %vm1030_vm3, %v1064_v11, %v1065_v12  ;;  %v902_v24 = vshll.u32 %v4227_v60, 16  ;;  %v1202_v25 = vrot.slane %v895_v8, 1  ;;  %v1203_v26 = vrot.slane %v897_v10, 2 }
  0x2e   : > { %1101 = vrot.lane.b32.xlu0 %v1066_v23, %s4101_s13  ;;  %v911_v27 = vrot.slane %v909_v19, 1  ;;  %v916_v28 = vrot.slane %v914_v20, 1  ;;  %v1205_v29 = vshrl.u32 %v4227_v60, 16  ;;  %v1184_v30 = vrot.slane %v871_v44, 1 }
  0x2f   : > { %v1204_v31 = vor.u32 %v1203_v26, %v1202_v25  ;;  %v1208_v32 = vrot.slane %v902_v24, 2  ;;  %v1185_v33 = vrot.slane %v873_v49, 2  ;;  %v1187_v34 = vshrl.u32 %v4220_v56, 16 }
  0x30   : > { %v912_v35 = vor.u32 %v911_v27, %v907_v16  ;;  %v1207_v36 = vrot.slane %v1205_v29, 1  ;;  %v1190_v37 = vrot.slane %v878_v52, 2  ;;  %v1211_v38 = vrot.slane %v907_v16, 1 }
  0x31   : > { %v1186_v39 = vor.u32 %v1185_v33, %v1184_v30  ;;  %v1189_v40 = vrot.slane %v1187_v34, 1  ;;  %v1212_v41 = vrot.slane %v909_v19, 2  ;;  %v1214_v42 = vshrl.u32 %v4274_v63, 16 }
  0x32   : > { %982 = vrot.lane.b32.xlu0 %v881_v17, %s4098_s27  ;;  %v917_v43 = vsel %vm773_vm5, %v912_v35, %v916_v28  ;;  %v1209_v44 = vor.u32 %v1208_v32, %v1207_v36  ;;  %v1217_v45 = vrot.slane %v914_v20, 2  ;;  %v899_v46 = vrot.slane %v897_v10, 1 }
  0x33   : > { %988 = vrot.lane.b32.xlu1 %v917_v43, %s4098_s27  ;;  %v1191_v56 = vor.u32 %v1190_v37, %v1189_v40  ;;  %v1213_v47 = vor.u32 %v1212_v41, %v1211_v38  ;;  %v1216_v48 = vrot.slane %v1214_v42, 1  ;;  %v904_v49 = vrot.slane %v902_v24, 1  ;;  %v348_v24 = vld [vmem:[%s4172_s9 + $0x2c] sm:$0x3] }
  0x34   : > { %v1210_v51 = vsel %vm1111_vm4, %v1204_v31, %v1209_v44  ;;  %v900_v52 = vor.u32 %v899_v46, %v895_v8  ;;  %v1322_v53 = vrot.slane %v4272_v62, 2  ;;  %v1323_v54 = vrot.slane %v4274_v63, 2  ;;  %v346_v63 = vld [vmem:[%s4172_s9 + $0x24] sm:$0xff]  }
  0x35   : > { %v1192_v61 = vsel %vm1111_vm4, %v1186_v39, %v1191_v56  ;;  %v1218_v0 = vor.u32 %v1217_v45, %v1216_v48  ;;  %v1319_v1 = vrot.slane %v4224_v58, 2  ;;  %v1320_v4 = vrot.slane %v4227_v60, 2 }
  0x36   : > { %984 = vrot.lane.b32.xlu0 %v893_v21, %s4098_s27  ;;  %v905_v10 = vsel %vm773_vm5, %v900_v52, %v904_v49  ;;  %v1324_v8 = vsel %vm1288_vm2, %v1322_v53, %v1323_v54  ;;  %v3759_v11 = vunpack.c.l.bf16 %v3774_v50  ;;  %v3760_v12 = vunpack.c.h.bf16 %v3774_v50 }
  0x37   : > { %1276 = vrot.lane.b32.xlu1 %v1210_v51, %s4102_s16  ;;  %v1219_v15 = vsel %vm1111_vm4, %v1213_v47, %v1218_v0  ;;  %v4313_v16 = vsel %vm1288_vm2, %v1319_v1, %v1320_v4  ;;  %v457_v17 = vunpack.c.l.bf16 %v375_v57  ;;  %v458_v60 = vunpack.c.l.bf16 %v376_v59 }
  0x38   : > { %v522_v19 = vmul.f32 %v3759_v11, %v4167_v7  ;;  %v523_v20 = vmul.f32 %v3760_v12, %v4167_v7  ;;  %v459_v21 = vunpack.c.h.bf16 %v376_v59  ;;  %v460_v23 = vunpack.c.l.bf16 %v378_v5 }
  0x39   : > { %v524_v25 = vmul.f32 %v4167_v7, %v457_v17  ;;  %v525_v26 = vmul.f32 %v4167_v7, %v458_v60  ;;  %v428_v27 = vunpack.c.l.bf16 %v346_v63  ;;  %v429_v28 = vunpack.c.h.bf16 %v346_v63  ;;  %v3769_v60 = vld [vmem:[%s4172_s9 + $0x18] sm:$0xff]  }
  0x3a   : > { %1272 = vrot.lane.b32.xlu0 %v1192_v61, %s4102_s16  ;;  %v589_v29 = vadd.f32 %v4192_v22, %v522_v19  ;;  %v590_v30 = vadd.f32 %v4192_v22, %v523_v20  ;;  %v526_v31 = vmul.f32 %v4167_v7, %v459_v21  ;;  %v527_v32 = vmul.f32 %v4167_v7, %v460_v23 }
  0x3b   : > { %1278 = vrot.lane.b32.xlu1 %v1219_v15, %s4102_s16  ;;  %v591_v33 = vadd.f32 %v4192_v22, %v524_v25  ;;  %v592_v34 = vadd.f32 %v4192_v22, %v525_v26  ;;  %v430_v35 = vunpack.c.l.bf16 %v348_v24  ;;  %v495_v36 = vmul.f32 %v4167_v7, %v428_v27  ;;  %v345_v24 = vld [vmem:[%s4172_s9 + $0x20] sm:$0x3] }
  0x3c   : > { %v649_v37 = vmax.f32 %v589_v29, 0.0  ;;  %v650_v38 = vmax.f32 %v590_v30, 0.0  ;;  %v593_v39 = vadd.f32 %v4192_v22, %v526_v31  ;;  %v594_v40 = vadd.f32 %v4192_v22, %v527_v32 }
  0x3d   : > { %v651_v41 = vmax.f32 %v591_v33, 0.0  ;;  %v652_v42 = vmax.f32 %v592_v34, 0.0  ;;  %v496_v43 = vmul.f32 %v4167_v7, %v429_v28  ;;  %v497_v44 = vmul.f32 %v4167_v7, %v430_v35 }
  0x3e   : > { %986 = vrot.lane.b32.xlu0 %v905_v10, %s4098_s27  ;;  %v709_v45 = vsel %vm401_vm0, %v649_v37, 0.0  ;;  %v653_v46 = vmax.f32 %v593_v39, 0.0  ;;  %v654_v56 = vmax.f32 %v594_v40, 0.0  ;;  %v562_v47 = vadd.f32 %v4192_v22, %v495_v36 }
  0x3f   : > { %1081 = vrot.lane.b32.xlu1 %v4175_v9, %s4101_s13  ;;  %v711_v48 = vsel %vm412_vm1, %v651_v41, 0.0  ;;  %v4341_v49 = vpack.c.bf16 %v650_v38, %v709_v45  ;;  %v712_v50 = vsel %vm401_vm0, %v652_v42, 0.0  ;;  %v563_v51 = vadd.f32 %v4192_v22, %v496_v43 }
  0x40   : > { %v4346_v52 = vpack.c.bf16 %v711_v48, %v711_v48  ;;  %v714_v53 = vsel %vm412_vm1, %v654_v56, 0.0  ;;  %v4350_v54 = vpack.c.bf16 %v653_v46, %v712_v50  ;;  %v564_v57 = vadd.f32 %v4192_v22, %v497_v44 }
  0x41   : > { %v919_v59 = vshrl.u32 %v4341_v49, 16  ;;  %v921_v61 = vshll.u32 %v4341_v49, 16  ;;  %v1067_v0 = vrot.slane %v4341_v49, 1  ;;  %v4356_v1 = vpack.c.bf16 %v714_v53, %v714_v53 }
  0x42   : > { %1079 = vrot.lane.b32.xlu0 %v4175_v9, %s4101_s13  ;;  %v926_v4 = vshll.u32 %v4346_v52, 16  ;;  %v1068_v5 = vrot.slane %v4346_v52, 1  ;;  %v1070_v10 = vrot.slane %v4350_v54, 1  ;;  %v931_v11 = vshrl.u32 %v4350_v54, 16 }
  0x43   : > { %1359 = vrot.lane.b32.xlu1 %v1324_v8, %s4100_s12  ;;  %v923_v12 = vrot.slane %v921_v61, 1  ;;  %v1071_v63 = vrot.slane %v4356_v1, 1  ;;  %v933_v15 = vshll.u32 %v4350_v54, 16  ;;  %v938_v17 = vshll.u32 %v4356_v1, 16 }
  0x44   : > { %v928_v19 = vrot.slane %v926_v4, 1  ;;  %v1069_v20 = vsel %vm1030_vm3, %v1067_v0, %v1068_v5  ;;  %v622_v21 = vmax.f32 %v562_v47, 0.0  ;;  %v623_v23 = vmax.f32 %v563_v51, 0.0 }
  0x45   : > { %v924_v25 = vor.u32 %v923_v12, %v919_v59  ;;  %v1072_v26 = vsel %vm1030_vm3, %v1070_v10, %v1071_v63  ;;  %v935_v8 = vrot.slane %v933_v15, 1  ;;  %v940_v27 = vrot.slane %v938_v17, 1 }
  0x46   : > { %1357 = vrot.lane.b32.xlu0 %v4313_v16, %s4100_s12  ;;  %v624_v28 = vmax.f32 %v564_v57, 0.0  ;;  %v682_v29 = vsel %vm401_vm0, %v622_v21, 0.0  ;;  %v3739_v30 = vunpack.c.l.bf16 %v3769_v60  ;;  %v3740_v31 = vunpack.c.h.bf16 %v3769_v60 }
  0x47   : > { %1337 = vrot.lane.b32.xlu1 %v4181_v13, %s4100_s12  ;;  %v929_v32 = vsel %vm773_vm5, %v924_v25, %v928_v19  ;;  %v936_v33 = vor.u32 %v935_v8, %v931_v11  ;;  %v4381_v34 = vpack.c.bf16 %v623_v23, %v682_v29  ;;  %v427_v35 = vunpack.c.l.bf16 %v345_v24 }
  0x48   : > { %v684_v36 = vsel %vm412_vm1, %v624_v28, 0.0  ;;  %v492_v16 = vmul.f32 %v3739_v30, %v4167_v7  ;;  %v493_v37 = vmul.f32 %v3740_v31, %v4167_v7  ;;  %v1229_v38 = vrot.slane %v931_v11, 1 }
  0x49   : > { %v941_v39 = vsel %vm773_vm5, %v936_v33, %v940_v27  ;;  %v4388_v40 = vpack.c.bf16 %v684_v36, %v684_v36  ;;  %v811_v41 = vshrl.u32 %v4381_v34, 16  ;;  %v813_v42 = vshll.u32 %v4381_v34, 16 }
  0x4a   : > { %1256 = vrot.lane.b32.xlu0 %v4184_v14, %s4102_s16  ;;  %v494_v43 = vmul.f32 %v4167_v7, %v427_v35  ;;  %v559_v44 = vadd.f32 %v4192_v22, %v492_v16  ;;  %v560_v45 = vadd.f32 %v4192_v22, %v493_v37  ;;  %v1230_v46 = vrot.slane %v933_v15, 2 }
  0x4b   : > { %990 = vrot.lane.b32.xlu1 %v929_v32, %s4098_s27  ;;  %v815_v56 = vrot.slane %v813_v42, 1  ;;  %v818_v47 = vshll.u32 %v4388_v40, 16  ;;  %v1232_v48 = vshrl.u32 %v4356_v1, 16  ;;  %v1235_v50 = vrot.slane %v938_v17, 2 }
  0x4c   : > { %v561_v51 = vadd.f32 %v4192_v22, %v494_v43  ;;  %v619_v53 = vmax.f32 %v559_v44, 0.0  ;;  %v620_v57 = vmax.f32 %v560_v45, 0.0  ;;  %v1231_v0 = vor.u32 %v1230_v46, %v1229_v38 }
  0x4d   : > { %v816_v5 = vor.u32 %v815_v56, %v811_v41  ;;  %v820_v10 = vrot.slane %v818_v47, 1  ;;  %v1234_v11 = vrot.slane %v1232_v48, 1  ;;  %v1220_v12 = vrot.slane %v919_v59, 1 }
  0x4e   : > { %1258 = vrot.lane.b32.xlu0 %v4184_v14, %s4102_s16  ;;  %v621_v63 = vmax.f32 %v561_v51, 0.0  ;;  %v679_v15 = vsel %vm401_vm0, %v619_v53, 0.0  ;;  %v1221_v17 = vrot.slane %v921_v61, 2  ;;  %v1223_v60 = vshrl.u32 %v4346_v52, 16 }
  0x4f   : > { %1103 = vrot.lane.b32.xlu1 %v1069_v20, %s4101_s13  ;;  %v821_v19 = vsel %vm773_vm5, %v816_v5, %v820_v10  ;;  %v4414_v21 = vpack.c.bf16 %v620_v57, %v679_v15  ;;  %v1236_v23 = vor.u32 %v1235_v50, %v1234_v11  ;;  %v1226_v59 = vrot.slane %v926_v4, 2  ;;  %v381_v50 = vld [vmem:[%s4172_s9 + $0xb0] sm:$0x3] }
  0x50   : > { %v681_v24 = vsel %vm412_vm1, %v621_v63, 0.0  ;;  %v1222_v25 = vor.u32 %v1221_v17, %v1220_v12  ;;  %v1225_v8 = vrot.slane %v1223_v60, 1  ;;  %v1040_v27 = vrot.slane %v4381_v34, 1 }
  0x51   : > { %v738_v61 = vpack.c.bf16 %v681_v24, %v681_v24  ;;  %v799_v28 = vshrl.u32 %v4414_v21, 16  ;;  %v801_v20 = vshll.u32 %v4414_v21, 16  ;;  %v1237_v29 = vsel %vm1111_vm4, %v1231_v0, %v1236_v23 }
  0x52   : > { %1339 = vrot.lane.b32.xlu0 %v4181_v13, %s4100_s12  ;;  %v1227_v30 = vor.u32 %v1226_v59, %v1225_v8  ;;  %v1041_v4 = vrot.slane %v4388_v40, 1  ;;  %v1037_v31 = vrot.slane %v4414_v21, 1  ;;  %v1328_v32 = vrot.slane %v4350_v54, 2  ;;  %v382_v8 = vld [vmem:[%s4172_s9 + $0xb4] sm:$0xff]  }
  0x53   : > { %1105 = vrot.lane.b32.xlu1 %v1072_v26, %s4101_s13  ;;  %v803_v33 = vrot.slane %v801_v20, 1  ;;  %v806_v35 = vshll.u32 %v738_v61, 16  ;;  %v1038_v36 = vrot.slane %v738_v61, 1  ;;  %v1329_v16 = vrot.slane %v4356_v1, 2  ;;  %v3775_v26 = vld [vmem:[%s4172_s9 + $0xa8] sm:$0xff]  }
  0x54   : > { %v1228_v37 = vsel %vm1111_vm4, %v1222_v25, %v1227_v30  ;;  %v1042_v38 = vsel %vm1030_vm3, %v1040_v27, %v1041_v4  ;;  %v1325_v43 = vrot.slane %v4341_v49, 2  ;;  %v1326_v44 = vrot.slane %v4346_v52, 2 }
  0x55   : > { %v804_v45 = vor.u32 %v803_v33, %v799_v28  ;;  %v808_v46 = vrot.slane %v806_v35, 1  ;;  %v1039_v56 = vsel %vm1030_vm3, %v1037_v31, %v1038_v36  ;;  %v4437_v48 = vsel %vm1288_vm2, %v1328_v32, %v1329_v16  ;;  %v384_v31 = vld [vmem:[%s4172_s9 + $0xbc] sm:$0x3] }
  0x56   : > { %992 = vrot.lane.b32.xlu0 %v941_v39, %s4098_s27  ;;  %v4443_v1 = vsel %vm1288_vm2, %v1325_v43, %v1326_v44  ;;  %v1295_v51 = vrot.slane %v4414_v21, 2  ;;  %v1296_v53 = vrot.slane %v738_v61, 2  ;;  %v1130_v57 = vrot.slane %v799_v28, 1  ;;  %v352_v36 = vld [vmem:[%s4172_s9 + $0x3c] sm:$0xff]  }
  0x57   : > { %972 = vrot.lane.b32.xlu1 %v821_v19, %s4098_s27  ;;  %v809_v52 = vsel %vm773_vm5, %v804_v45, %v808_v46  ;;  %v1131_v0 = vrot.slane %v801_v20, 2  ;;  %v1133_v5 = vshrl.u32 %v738_v61, 16  ;;  %v1136_v10 = vrot.slane %v806_v35, 2 }
  0x58   : > { %v4449_v11 = vsel %vm1288_vm2, %v1295_v51, %v1296_v53  ;;  %v3763_v12 = vunpack.c.l.bf16 %v3775_v26  ;;  %v3764_v39 = vunpack.c.h.bf16 %v3775_v26  ;;  %v463_v63 = vunpack.c.l.bf16 %v381_v50 }
  0x59   : > { %v1132_v15 = vor.u32 %v1131_v0, %v1130_v57  ;;  %v1135_v17 = vrot.slane %v1133_v5, 1  ;;  %v1139_v60 = vrot.slane %v811_v41, 1  ;;  %v1140_v19 = vrot.slane %v813_v42, 2 }
  0x5a   : > { %970 = vrot.lane.b32.xlu0 %v809_v52, %s4098_s27  ;;  %v528_v23 = vmul.f32 %v3763_v12, %v4167_v7  ;;  %v529_v59 = vmul.f32 %v3764_v39, %v4167_v7  ;;  %v530_v24 = vmul.f32 %v4167_v7, %v463_v63  ;;  %v1142_v25 = vshrl.u32 %v4388_v40, 16 }
  0x5b   : > { %1282 = vrot.lane.b32.xlu1 %v1237_v29, %s4102_s16  ;;  %v1137_v27 = vor.u32 %v1136_v10, %v1135_v17  ;;  %v1141_v41 = vor.u32 %v1140_v19, %v1139_v60  ;;  %v1145_v42 = vrot.slane %v818_v47, 2  ;;  %v1298_v61 = vrot.slane %v4381_v34, 2 }
  0x5c   : > { %v595_v28 = vadd.f32 %v4192_v22, %v528_v23  ;;  %v596_v20 = vadd.f32 %v4192_v22, %v529_v59  ;;  %v597_v30 = vadd.f32 %v4192_v22, %v530_v24  ;;  %v1144_v4 = vrot.slane %v1142_v25, 1 }
  0x5d   : > { %v1138_v32 = vsel %vm1111_vm4, %v1132_v15, %v1137_v27  ;;  %v1299_v29 = vrot.slane %v4388_v40, 2  ;;  %v464_v33 = vunpack.c.l.bf16 %v382_v8  ;;  %v465_v35 = vunpack.c.h.bf16 %v382_v8  ;;  %v354_v40 = vld [vmem:[%s4172_s9 + $0x44] sm:$0x3] }
  0x5e   : > { %1280 = vrot.lane.b32.xlu0 %v1228_v37, %s4102_s16  ;;  %v655_v47 = vmax.f32 %v595_v28, 0.0  ;;  %v656_v16 = vmax.f32 %v596_v20, 0.0  ;;  %v657_v43 = vmax.f32 %v597_v30, 0.0  ;;  %v1146_v44 = vor.u32 %v1145_v42, %v1144_v4 }
  0x5f   : > { %1085 = vrot.lane.b32.xlu1 %v1042_v38, %s4101_s13  ;;  %v4475_v45 = vsel %vm1288_vm2, %v1298_v61, %v1299_v29  ;;  %v466_v46 = vunpack.c.l.bf16 %v384_v31  ;;  %v531_v26 = vmul.f32 %v4167_v7, %v464_v33  ;;  %v532_v50 = vmul.f32 %v4167_v7, %v465_v35 }
  0x60   : > { %v715_v51 = vsel %vm401_vm0, %v655_v47, 0.0  ;;  %v717_v37 = vsel %vm412_vm1, %v657_v43, 0.0  ;;  %v1147_v53 = vsel %vm1111_vm4, %v1141_v41, %v1146_v44  ;;  %v434_v57 = vunpack.c.l.bf16 %v352_v36  ;;  %v3770_v41 = vld [vmem:[%s4172_s9 + $0x30] sm:$0xff]   ;;  %v351_v47 = vld [vmem:[%s4172_s9 + $0x38] sm:$0x3] }
  0x61   : > { %v4485_v52 = vpack.c.bf16 %v656_v16, %v715_v51  ;;  %v4487_v38 = vpack.c.bf16 %v717_v37, %v717_v37  ;;  %v533_v0 = vmul.f32 %v4167_v7, %v466_v46  ;;  %v598_v5 = vadd.f32 %v4192_v22, %v531_v26 }
  0x62   : > { %1083 = vrot.lane.b32.xlu0 %v1039_v56, %s4101_s13  ;;  %v599_v10 = vadd.f32 %v4192_v22, %v532_v50  ;;  %v435_v12 = vunpack.c.h.bf16 %v352_v36  ;;  %v436_v39 = vunpack.c.l.bf16 %v354_v40  ;;  %v501_v63 = vmul.f32 %v4167_v7, %v434_v57 }
  0x63   : > { %1363 = vrot.lane.b32.xlu1 %v4437_v48, %s4100_s12  ;;  %v943_v15 = vshrl.u32 %v4485_v52, 16  ;;  %v945_v17 = vshll.u32 %v4485_v52, 16  ;;  %v950_v60 = vshll.u32 %v4487_v38, 16  ;;  %v1073_v19 = vrot.slane %v4485_v52, 1 }
  0x64   : > { %v1074_v56 = vrot.slane %v4487_v38, 1  ;;  %v600_v23 = vadd.f32 %v4192_v22, %v533_v0  ;;  %v658_v59 = vmax.f32 %v598_v5, 0.0  ;;  %v659_v24 = vmax.f32 %v599_v10, 0.0 }
  0x65   : > { %v947_v25 = vrot.slane %v945_v17, 1  ;;  %v952_v48 = vrot.slane %v950_v60, 1  ;;  %v502_v8 = vmul.f32 %v4167_v7, %v435_v12  ;;  %v503_v27 = vmul.f32 %v4167_v7, %v436_v39 }
  0x66   : > { %1361 = vrot.lane.b32.xlu0 %v4443_v1, %s4100_s12  ;;  %v1075_v42 = vsel %vm1030_vm3, %v1073_v19, %v1074_v56  ;;  %v660_v61 = vmax.f32 %v600_v23, 0.0  ;;  %v718_v28 = vsel %vm401_vm0, %v658_v59, 0.0  ;;  %v568_v20 = vadd.f32 %v4192_v22, %v501_v63 }
  0x67   : > { %1341 = vrot.lane.b32.xlu1 %v4449_v11, %s4100_s12  ;;  %v948_v30 = vor.u32 %v947_v25, %v943_v15  ;;  %v4519_v4 = vpack.c.bf16 %v659_v24, %v718_v28  ;;  %v569_v31 = vadd.f32 %v4192_v22, %v502_v8  ;;  %v570_v1 = vadd.f32 %v4192_v22, %v503_v27 }
  0x68   : > { %v720_v29 = vsel %vm412_vm1, %v660_v61, 0.0  ;;  %v628_v33 = vmax.f32 %v568_v20, 0.0  ;;  %v3743_v35 = vunpack.c.l.bf16 %v3770_v41  ;;  %v3744_v36 = vunpack.c.h.bf16 %v3770_v41 }
  0x69   : > { %v953_v16 = vsel %vm773_vm5, %v948_v30, %v952_v48  ;;  %v4527_v43 = vpack.c.bf16 %v720_v29, %v720_v29  ;;  %v1076_v11 = vrot.slane %v4519_v4, 1  ;;  %v955_v44 = vshrl.u32 %v4519_v4, 16 }
  0x6a   : > { %1260 = vrot.lane.b32.xlu0 %v1138_v32, %s4102_s16  ;;  %v957_v46 = vshll.u32 %v4519_v4, 16  ;;  %v629_v26 = vmax.f32 %v569_v31, 0.0  ;;  %v630_v50 = vmax.f32 %v570_v1, 0.0  ;;  %v688_v40 = vsel %vm401_vm0, %v628_v33, 0.0 }
  0x6b   : > { %994 = vrot.lane.b32.xlu1 %v953_v16, %s4098_s27  ;;  %v1077_v51 = vrot.slane %v4527_v43, 1  ;;  %v962_v37 = vshll.u32 %v4527_v43, 16  ;;  %v433_v57 = vunpack.c.l.bf16 %v351_v47  ;;  %v498_v0 = vmul.f32 %v3743_v35, %v4167_v7 }
  0x6c   : > { %v959_v5 = vrot.slane %v957_v46, 1  ;;  %v690_v32 = vsel %vm412_vm1, %v630_v50, 0.0  ;;  %v4541_v10 = vpack.c.bf16 %v629_v26, %v688_v40  ;;  %v499_v12 = vmul.f32 %v3744_v36, %v4167_v7 }
  0x6d   : > { %v1078_v39 = vsel %vm1030_vm3, %v1076_v11, %v1077_v51  ;;  %v964_v63 = vrot.slane %v962_v37, 1  ;;  %v4545_v19 = vpack.c.bf16 %v690_v32, %v690_v32  ;;  %v500_v56 = vmul.f32 %v4167_v7, %v433_v57 }
  0x6e   : > { %1262 = vrot.lane.b32.xlu0 %v1147_v53, %s4102_s16  ;;  %v960_v23 = vor.u32 %v959_v5, %v955_v44  ;;  %v835_v59 = vshrl.u32 %v4541_v10, 16  ;;  %v837_v24 = vshll.u32 %v4541_v10, 16  ;;  %v565_v25 = vadd.f32 %v4192_v22, %v498_v0 }
  0x6f   : > { %1107 = vrot.lane.b32.xlu1 %v1075_v42, %s4101_s13  ;;  %v842_v48 = vshll.u32 %v4545_v19, 16  ;;  %v566_v8 = vadd.f32 %v4192_v22, %v499_v12  ;;  %v567_v27 = vadd.f32 %v4192_v22, %v500_v56  ;;  %v1247_v41 = vrot.slane %v955_v44, 1 }
  0x70   : > { %v965_v7 = vsel %vm773_vm5, %v960_v23, %v964_v63  ;;  %v839_v53 = vrot.slane %v837_v24, 1  ;;  %v625_v61 = vmax.f32 %v565_v25, 0.0  ;;  %v1248_v28 = vrot.slane %v957_v46, 2  ;;  %v3771_v23 = vld [vmem:[%s4172_s9 + $0x48] sm:$0xff]   ;;  %v357_v25 = vld [vmem:[%s4172_s9 + $0x50] sm:$0x3] }
  0x71   : > { %v844_v20 = vrot.slane %v842_v48, 1  ;;  %v626_v30 = vmax.f32 %v566_v8, 0.0  ;;  %v627_v31 = vmax.f32 %v567_v27, 0.0  ;;  %v1250_v42 = vshrl.u32 %v4527_v43, 16 }
  0x72   : > { %1343 = vrot.lane.b32.xlu0 %v4475_v45, %s4100_s12  ;;  %v840_v22 = vor.u32 %v839_v53, %v835_v59  ;;  %v685_v1 = vsel %vm401_vm0, %v625_v61, 0.0  ;;  %v1249_v29 = vor.u32 %v1248_v28, %v1247_v41  ;;  %v1253_v33 = vrot.slane %v962_v37, 2 }
  0x73   : > { %1109 = vrot.lane.b32.xlu1 %v1078_v39, %s4101_s13  ;;  %v687_v35 = vsel %vm412_vm1, %v627_v31, 0.0  ;;  %v4571_v36 = vpack.c.bf16 %v626_v30, %v685_v1  ;;  %v1252_v47 = vrot.slane %v1250_v42, 1  ;;  %v1238_v16 = vrot.slane %v943_v15, 1 }
  0x74   : > { %v845_v45 = vsel %vm773_vm5, %v840_v22, %v844_v20  ;;  %v742_v11 = vpack.c.bf16 %v687_v35, %v687_v35  ;;  %v1239_v44 = vrot.slane %v945_v17, 2  ;;  %v1241_v46 = vshrl.u32 %v4487_v38, 16 }
  0x75   : > { %v823_v26 = vshrl.u32 %v4571_v36, 16  ;;  %v825_v50 = vshll.u32 %v4571_v36, 16  ;;  %v1254_v40 = vor.u32 %v1253_v33, %v1252_v47  ;;  %v1244_v51 = vrot.slane %v950_v60, 2  ;;  %v4605_v47 = vld [vmem:[%s5471_s1] ss:$0 sm:$0xff] }
  0x76   : > { %996 = vrot.lane.b32.xlu0 %v965_v7, %s4098_s27  ;;  %v830_v15 = vshll.u32 %v742_v11, 16  ;;  %v1240_v37 = vor.u32 %v1239_v44, %v1238_v16  ;;  %v1243_v57 = vrot.slane %v1241_v46, 1  ;;  %v1046_v5 = vrot.slane %v4541_v10, 1 }
  0x77   : > { %976 = vrot.lane.b32.xlu1 %v845_v45, %s4098_s27  ;;  %v827_v17 = vrot.slane %v825_v50, 1  ;;  %v1255_v0 = vsel %vm1111_vm4, %v1249_v29, %v1254_v40  ;;  %v1047_v32 = vrot.slane %v4545_v19, 1  ;;  %v1043_v63 = vrot.slane %v4571_v36, 1  ;;  %v4619_v40 = vld [vmem:[%s5472_s2] ss:$0 sm:$0xff] }
  0x78   : > { %v832_v12 = vrot.slane %v830_v15, 1  ;;  %v1245_v39 = vor.u32 %v1244_v51, %v1243_v57  ;;  %v1044_v60 = vrot.slane %v742_v11, 1  ;;  %v1334_v41 = vrot.slane %v4519_v4, 2  ;;  %v358_v57 = vld [vmem:[%s4172_s9 + $0x54] sm:$0xff]  }
  0x79   : > { %v828_v56 = vor.u32 %v827_v17, %v823_v26  ;;  %v1048_v27 = vsel %vm1030_vm3, %v1046_v5, %v1047_v32  ;;  %v1335_v7 = vrot.slane %v4527_v43, 2  ;;  %v1331_v28 = vrot.slane %v4485_v52, 2 }
  0x7a   : > { %v1246_v53 = vsel %vm1111_vm4, %v1240_v37, %v1245_v39  ;;  %v1045_v61 = vsel %vm1030_vm3, %v1043_v63, %v1044_v60  ;;  %v1151_v20 = vshrl.u32 %v742_v11, 16  ;;  %v1301_v30 = vrot.slane %v4571_v36, 2  ;;  %v360_v39 = vld [vmem:[%s4172_s9 + $0x5c] sm:$0x3] }
  0x7b   : > { %v833_v8 = vsel %vm773_vm5, %v828_v56, %v832_v12  ;;  %1286 = vrot.lane.b32.xlu1 %v1255_v0, %s4102_s16  ;;  %v3747_v31 = vunpack.c.l.bf16 %v3771_v23  ;;  %v3748_v42 = vunpack.c.h.bf16 %v3771_v23  ;;  %v439_v22 = vunpack.c.l.bf16 %v357_v25 }
  0x7c   : > { %974 = vrot.lane.b32.xlu0 %v833_v8, %s4098_s27  ;;  %v1302_v1 = vrot.slane %v742_v11, 2  ;;  %v1148_v29 = vrot.slane %v823_v26, 1  ;;  %v1149_v33 = vrot.slane %v825_v50, 2  ;;  %v1154_v35 = vrot.slane %v830_v15, 2 }
  0x7d   : > { %v1153_v43 = vrot.slane %v1151_v20, 1  ;;  %v504_v16 = vmul.f32 %v4605_v47, %v3747_v31  ;;  %v505_v45 = vmul.f32 %v4605_v47, %v3748_v42  ;;  %v506_v44 = vmul.f32 %v4605_v47, %v439_v22 }
  0x7e   : > { %v1336_v11 = vsel %vm1288_vm2, %v1334_v41, %v1335_v7  ;;  %v1332_v46 = vrot.slane %v4487_v38, 2  ;;  %v1157_v26 = vrot.slane %v835_v59, 1  ;;  %v1160_v50 = vshrl.u32 %v4545_v19, 16 }
  0x7f   : > { %1089 = vrot.lane.b32.xlu1 %v1048_v27, %s4101_s13  ;;  %v571_v51 = vadd.f32 %v4619_v40, %v504_v16  ;;  %v572_v15 = vadd.f32 %v4619_v40, %v505_v45  ;;  %v573_v37 = vadd.f32 %v4619_v40, %v506_v44  ;;  %v1158_v38 = vrot.slane %v837_v24, 2 }
  0x80   : > { %1284 = vrot.lane.b32.xlu0 %v1246_v53, %s4102_s16  ;;  %v1303_v17 = vsel %vm1288_vm2, %v1301_v30, %v1302_v1  ;;  %v1150_v59 = vor.u32 %v1149_v33, %v1148_v29  ;;  %v1155_v0 = vor.u32 %v1154_v35, %v1153_v43  ;;  %v1162_v63 = vrot.slane %v1160_v50, 1 }
  0x81   : > { %v631_v5 = vmax.f32 %v571_v51, 0.0  ;;  %v632_v32 = vmax.f32 %v572_v15, 0.0  ;;  %v633_v12 = vmax.f32 %v573_v37, 0.0  ;;  %v1163_v60 = vrot.slane %v842_v48, 2  ;;  %v4662_v37 = vpop.permute.xlu1 %4073 }
  0x82   : > { %v440_v56 = vunpack.c.l.bf16 %v358_v57  ;;  %v441_v23 = vunpack.c.h.bf16 %v358_v57  ;;  %v1333_v24 = vsel %vm1288_vm2, %v1331_v28, %v1332_v46  ;;  %v1159_v27 = vor.u32 %v1158_v38, %v1157_v26  ;;  %v4078_v51 = vld [vmem:[%s5473_s3 + $0x8] ss:$0 sps:$4 sm:$0x33]  }
  0x83   : > { %1367 = vrot.lane.b32.xlu1 %v1336_v11, %s4100_s12  ;;  %v691_v25 = vsel %vm401_vm0, %v631_v5, 0.0  ;;  %v693_v8 = vsel %vm412_vm1, %v633_v12, 0.0  ;;  %v1304_v53 = vrot.slane %v4541_v10, 2  ;;  %v1156_v48 = vsel %vm1111_vm4, %v1150_v59, %v1155_v0  ;;  %4052 = vmatprep.subr.msk.bf16.mxu1 %vm1577_vm6, %v4078_v51 }
  0x84   : > { %1087 = vrot.lane.b32.xlu0 %v1045_v61, %s4101_s13  ;;  %v4638_v41 = vpack.c.bf16 %v632_v32, %v691_v25  ;;  %v4640_v7 = vpack.c.bf16 %v693_v8, %v693_v8  ;;  %v442_v61 = vunpack.c.l.bf16 %v360_v39  ;;  %v1305_v28 = vrot.slane %v4545_v19, 2  ;;  %v3776_v32 = vld [vmem:[%s4172_s9 + $0xc0] sm:$0xff]   ;;  %v387_v8 = vld [vmem:[%s4172_s9 + $0xc8] sm:$0x3]  ;;  %4051 = vmatprep.subr.msk.bf16.mxu0 %vm1577_vm6, %v4078_v51 }
  0x85   : > { %v507_v20 = vmul.f32 %v4605_v47, %v440_v56  ;;  %v508_v30 = vmul.f32 %v4605_v47, %v441_v23  ;;  %v1164_v1 = vor.u32 %v1163_v60, %v1162_v63  ;;  %v4673_v60 = vld [vmem:[%s5473_s3 + $0xc] sm:$0xff]   ;;  %v4678_v56 = vld [vmem:[%s5473_s3 + $0x18] sm:$0xff]  }
  0x86   : > { %v847_v31 = vshrl.u32 %v4638_v41, 16  ;;  %v849_v42 = vshll.u32 %v4638_v41, 16  ;;  %v854_v22 = vshll.u32 %v4640_v7, 16  ;;  %v1049_v29 = vrot.slane %v4638_v41, 1 }
  0x87   : > { %1345 = vrot.lane.b32.xlu1 %v1303_v17, %s4100_s12  ;;  %v1169_v33 = vshrl.u32 %v4640_v7, 16  ;;  %v509_v35 = vmul.f32 %v4605_v47, %v442_v61  ;;  %v574_v19 = vadd.f32 %v4619_v40, %v507_v20  ;;  %v1050_v11 = vrot.slane %v4640_v7, 1 }
  0x88   : > { %1365 = vrot.lane.b32.xlu0 %v1333_v24, %s4100_s12  ;;  %v851_v43 = vrot.slane %v849_v42, 1  ;;  %v856_v16 = vrot.slane %v854_v22, 1  ;;  %v1166_v45 = vrot.slane %v847_v31, 1  ;;  %v1167_v44 = vrot.slane %v849_v42, 2 }
  0x89   : > { %v1171_v46 = vrot.slane %v1169_v33, 1  ;;  %v1172_v26 = vrot.slane %v854_v22, 2  ;;  %v575_v50 = vadd.f32 %v4619_v40, %v508_v30  ;;  %v576_v38 = vadd.f32 %v4619_v40, %v509_v35 }
  0x8a   : > { %v852_v15 = vor.u32 %v851_v43, %v847_v31  ;;  %v634_v57 = vmax.f32 %v574_v19, 0.0  ;;  %v1165_v17 = vsel %vm1111_vm4, %v1159_v27, %v1164_v1  ;;  %v1168_v59 = vor.u32 %v1167_v44, %v1166_v45 }
  0x8b   : > { %v1173_v0 = vor.u32 %v1172_v26, %v1171_v46  ;;  %v635_v5 = vmax.f32 %v575_v50, 0.0  ;;  %v636_v39 = vmax.f32 %v576_v38, 0.0  ;;  %v1051_v23 = vsel %vm1030_vm3, %v1049_v29, %v1050_v11  ;;  %v388_v26 = vld [vmem:[%s4172_s9 + $0xcc] sm:$0xff]  }
  0x8c   : > { %1264 = vrot.lane.b32.xlu0 %v1156_v48, %s4102_s16  ;;  %v857_v12 = vsel %vm773_vm5, %v852_v15, %v856_v16  ;;  %v694_v63 = vsel %vm401_vm0, %v634_v57, 0.0  ;;  %v1306_v24 = vsel %vm1288_vm2, %v1304_v53, %v1305_v28  ;;  %v1307_v61 = vrot.slane %v4638_v41, 2  ;;  %v390_v57 = vld [vmem:[%s4172_s9 + $0xd4] sm:$0x3]  ;;  %s295_s9 = scalar_lea.vmem %s5477_s7, %s5479_s25 }
  0x8d   : > { %978 = vrot.lane.b32.xlu1 %v857_v12, %s4098_s27  ;;  %v4683_v25 = vpack.c.bf16 %v635_v5, %v694_v63  ;;  %v696_v27 = vsel %vm412_vm1, %v636_v39, 0.0  ;;  %v1579_v48 = vsel %vm1577_vm6, %v4078_v51, 0  ;;  %v3767_v20 = vunpack.c.l.bf16 %v3776_v32 }
  0x8e   : > { %v4693_v30 = vpack.c.bf16 %v696_v27, %v696_v27  ;;  %v1308_v31 = vrot.slane %v4640_v7, 2  ;;  %4050 = vmatpush3.bf16.msra.mxu1 %v1579_v48  ;;  %3870 = vmatpush3.bf16.msra.mxu0 %v1579_v48  ;;  %v1174_v42 = vsel %vm1111_vm4, %v1168_v59, %v1173_v0  ;;  %v3768_v29 = vunpack.c.h.bf16 %v3776_v32 }
  0x8f   : > { %v859_v53 = vshrl.u32 %v4683_v25, 16  ;;  %v861_v28 = vshll.u32 %v4683_v25, 16  ;;  %v1052_v1 = vrot.slane %v4683_v25, 1  ;;  %v469_v33 = vunpack.c.l.bf16 %v387_v8  ;;  %3903 = vmatprep.subr.bf16.mxu1 %v4673_v60  ;;  %3939 = vmatprep.subr.bf16.mxu0 %v4678_v56 }
  0x90   : > { %1266 = vrot.lane.b32.xlu0 %v1165_v17, %s4102_s16  ;;  %v866_v7 = vshll.u32 %v4693_v30, 16  ;;  %v1053_v19 = vrot.slane %v4693_v30, 1  ;;  %v534_v43 = vmul.f32 %v4605_v47, %v3767_v20  ;;  %v1178_v11 = vshrl.u32 %v4693_v30, 16 }
  0x91   : > { %1091 = vrot.lane.b32.xlu1 %v1051_v23, %s4101_s13  ;;  %v863_v35 = vrot.slane %v861_v28, 1  ;;  %v1175_v45 = vrot.slane %v859_v53, 1  ;;  %v1176_v44 = vrot.slane %v861_v28, 2  ;;  %v535_v46 = vmul.f32 %v4605_v47, %v3768_v29 }
  0x92   : > { %v4699_v22 = vpop.permute.xlu1 %1095  ;;  %v4709_v16 = vpop.permute.xlu0 %1353  ;;  %v868_v51 = vrot.slane %v866_v7, 1  ;;  %v1309_v15 = vsel %vm1288_vm2, %v1307_v61, %v1308_v31  ;;  %v1181_v38 = vrot.slane %v866_v7, 2  ;;  %v1054_v17 = vsel %vm1030_vm3, %v1052_v1, %v1053_v19 }
  0x93   : > { %v864_v50 = vor.u32 %v863_v35, %v859_v53  ;;  %v1180_v0 = vrot.slane %v1178_v11, 1  ;;  %v1310_v5 = vrot.slane %v4683_v25, 2  ;;  %v536_v32 = vmul.f32 %v4605_v47, %v469_v33 }
  0x94   : > { %1347 = vrot.lane.b32.xlu0 %v1306_v24, %s4100_s12  ;;  %v601_v39 = vadd.f32 %v4619_v40, %v534_v43  ;;  %v602_v63 = vadd.f32 %v4619_v40, %v535_v46  ;;  %v470_v23 = vunpack.c.l.bf16 %v388_v26  ;;  %v1177_v24 = vor.u32 %v1176_v44, %v1175_v45 }
  0x95   : > { %1268 = vrot.lane.b32.xlu1 %v1174_v42, %s4102_s16  ;;  %v869_v12 = vsel %vm773_vm5, %v864_v50, %v868_v51  ;;  %v603_v8 = vadd.f32 %v4619_v40, %v536_v32  ;;  %v471_v27 = vunpack.c.h.bf16 %v388_v26  ;;  %v472_v61 = vunpack.c.l.bf16 %v390_v57 }
  0x96   : > { %v4717_v59 = vpop.permute.xlu1 %1097  ;;  %v1182_v48 = vor.u32 %v1181_v38, %v1180_v0  ;;  %v661_v20 = vmax.f32 %v601_v39, 0.0  ;;  %v662_v53 = vmax.f32 %v602_v63, 0.0  ;;  %v537_v28 = vmul.f32 %v4605_v47, %v470_v23  ;;  %v4728_v31 = vpop.permute.xlu0 %1099 }
  0x97   : > { %v1311_v1 = vrot.slane %v4693_v30, 2  ;;  %v663_v29 = vmax.f32 %v603_v8, 0.0  ;;  %v538_v33 = vmul.f32 %v4605_v47, %v471_v27  ;;  %v539_v35 = vmul.f32 %v4605_v47, %v472_v61 }
  0x98   : > { %980 = vrot.lane.b32.xlu0 %v869_v12, %s4098_s27  ;;  %v721_v7 = vsel %vm401_vm0, %v661_v20, 0.0  ;;  %v604_v19 = vadd.f32 %v4619_v40, %v537_v28  ;;  %v1183_v44 = vsel %vm1111_vm4, %v1177_v24, %v1182_v48 }
  0x99   : > { %1349 = vrot.lane.b32.xlu1 %v1309_v15, %s4100_s12  ;;  %v723_v43 = vsel %vm412_vm1, %v663_v29, 0.0  ;;  %v4742_v45 = vpack.c.bf16 %v662_v53, %v721_v7  ;;  %v605_v30 = vadd.f32 %v4619_v40, %v538_v33  ;;  %v1312_v47 = vsel %vm1288_vm2, %v1310_v5, %v1311_v1 }
  0x9a   : > { %v4730_v42 = vpop.permute.xlu1 %1355  ;;  %v766_v11 = vpack.c.bf16 %v723_v43, %v723_v43  ;;  %v606_v50 = vadd.f32 %v4619_v40, %v539_v35 }
  0x9b   : > { %v1807_v46 = vshrl.u32 %v4742_v45, 16  ;;  %v1809_v26 = vshll.u32 %v4742_v45, 16  ;;  %v1822_v38 = vrot.slane %v4742_v45, 1  ;;  %v665_v5 = vmax.f32 %v605_v30, 0.0 }
  0x9c   : > { %1093 = vrot.lane.b32.xlu0 %v1054_v17, %s4101_s13  ;;  %v1814_v15 = vshll.u32 %v766_v11, 16  ;;  %v1830_v57 = vshrl.u32 %v766_v11, 16  ;;  %v664_v17 = vmax.f32 %v604_v19, 0.0  ;;  %v1823_v23 = vrot.slane %v766_v11, 1 }
  0x9d   : > { %v1811_v32 = vrot.slane %v1809_v26, 1  ;;  %v1827_v12 = vrot.slane %v1807_v46, 1  ;;  %v1828_v39 = vrot.slane %v1809_v26, 2  ;;  %v666_v61 = vmax.f32 %v606_v50, 0.0 }
  0x9e   : > { %v1275_v51 = vpop.permute.xlu1 %1274  ;;  %v1816_v63 = vrot.slane %v1814_v15, 1  ;;  %v1832_v24 = vrot.slane %v1830_v57, 1  ;;  %v1833_v8 = vrot.slane %v1814_v15, 2  ;;  %v1838_v20 = vrot.slane %v4742_v45, 2 }
  0x9f   : > { %v1812_v27 = vor.u32 %v1811_v32, %v1807_v46  ;;  %v1829_v40 = vor.u32 %v1828_v39, %v1827_v12  ;;  %v1839_v53 = vrot.slane %v766_v11, 2  ;;  %v724_v28 = vsel %vm401_vm0, %v664_v17, 0.0 }
  0xa0   : > { %1270 = vrot.lane.b32.xlu0 %v1183_v44, %s4102_s16  ;;  %v4752_v0 = vpop.permute.xlu0 %1101  ;;  %v1834_v48 = vor.u32 %v1833_v8, %v1832_v24  ;;  %v726_v33 = vsel %vm412_vm1, %v666_v61, 0.0  ;;  %v4761_v35 = vpack.c.bf16 %v665_v5, %v724_v28  ;;  %v1824_v19 = vsel %vm1030_vm3, %v1822_v38, %v1823_v23 }
  0xa1   : > { %v1817_v29 = vsel %vm773_vm5, %v1812_v27, %v1816_v63  ;;  %v768_v43 = vpack.c.bf16 %v726_v33, %v726_v33  ;;  %v1840_v11 = vsel %vm1288_vm2, %v1838_v20, %v1839_v53 }
  0xa2   : > { %1818 = vrot.lane.b32.xlu1 %v1817_v29, %s4098_s27  ;;  %v1835_v3 = vsel %vm1111_vm4, %v1829_v40, %v1834_v48  ;;  %v2127_v30 = vshrl.u32 %v4761_v35, 16  ;;  %v2129_v44 = vshll.u32 %v4761_v35, 16  ;;  %v2142_v46 = vrot.slane %v4761_v35, 1 }
  0xa3   : > { %v2150_v57 = vshrl.u32 %v768_v43, 16  ;;  %v2158_v53 = vrot.slane %v4761_v35, 2  ;;  %v2159_v28 = vrot.slane %v768_v43, 2 }
  0xa4   : > { %1351 = vrot.lane.b32.xlu0 %v1312_v47, %s4100_s12  ;;  %v983_v1 = vpop.permute.xlu0 %982  ;;  %v2134_v47 = vshll.u32 %v768_v43, 16  ;;  %v2131_v50 = vrot.slane %v2129_v44, 1  ;;  %v2147_v15 = vrot.slane %v2127_v30, 1  ;;  %v2148_v38 = vrot.slane %v2129_v44, 2 }
  0xa5   : > { %v989_v7 = vpop.permute.xlu1 %988  ;;  %v1386_v6 = vsel %vm304_vm7, %v4218_v55, %v983_v1  ;;  %v2143_v55 = vrot.slane %v768_v43, 1  ;;  %v2152_v24 = vrot.slane %v2150_v57, 1  ;;  %v4081_v1 = vld [vmem:[%s5473_s3 + $0x14] ss:$0 sps:$4 sm:$0x33]  }
  0xa6   : > { %1836 = vrot.lane.b32.xlu1 %v1835_v3, %s4102_s16  ;;  %v2136_v12 = vrot.slane %v2134_v47, 1  ;;  %v2153_v39 = vrot.slane %v2134_v47, 2  ;;  %v2132_v63 = vor.u32 %v2131_v50, %v2127_v30  ;;  %v2149_v23 = vor.u32 %v2148_v38, %v2147_v15  ;;  %v4814_v3 = vld [vmem:[%s5473_s3 + $0x24] sm:$0xff]  }
  0xa7   : > { %v1419_v27 = vsel %vm1401_vm8, %v1386_v6, %v4699_v22  ;;  %v1392_v30 = vsel %vm304_vm7, %v4272_v62, %v989_v7 }
  0xa8   : > { %v985_v26 = vpop.permute.xlu0 %984  ;;  %1825 = vrot.lane.b32.xlu0 %v1824_v19, %s4101_s13  ;;  %v2137_v40 = vsel %vm773_vm5, %v2132_v63, %v2136_v12  ;;  %v2154_v61 = vor.u32 %v2153_v39, %v2152_v24  ;;  %v2160_v19 = vsel %vm1288_vm2, %v2158_v53, %v2159_v28 }
  0xa9   : > { %v1388_v17 = vsel %vm304_vm7, %v4242_v18, %v985_v26  ;;  %v1277_v32 = vpop.permute.xlu1 %1276 }
  0xaa   : > { %v1421_v5 = vsel %vm1401_vm8, %v1388_v17, %v4717_v59  ;;  %2138 = vrot.lane.b32.xlu1 %v2137_v40, %s4098_s27  ;;  %v2144_v59 = vsel %vm1030_vm3, %v2142_v46, %v2143_v55  ;;  %v2155_v22 = vsel %vm1111_vm4, %v2149_v23, %v2154_v61  ;;  %v4076_v17 = vunpack.i.h.bf16 %v4662_v37 }
  0xab   : > { %v1454_v8 = vsel %vm1434_vm9, %v1421_v5, %v1275_v51 }
  0xac   : > { %v1273_v18 = vpop.permute.xlu0 %1272  ;;  %1841 = vrot.lane.b32.xlu0 %v1840_v11, %s4100_s12  ;;  %v4799_v29 = vsel %vm1467_vm10, %v1454_v8, %v4730_v42  ;;  %v1899_v42 = vsel %vm1577_vm6, %v4081_v1, 0  ;;  %v4075_v11 = vunpack.i.l.bf16 %v4662_v37  ;;  %v1372_v39 = vsel %vm304_vm7, 0.0|0.0, %v4076_v17  ;;  %v4082_v37 = vld [vmem:[%s5473_s3 + $0x20] ss:$0 sps:$4 sm:$0x33]   ;;  %v4876_v8 = vld [vmem:[%s5473_s3 + $0x30] sm:$0xff]  }
  0xad   : > { %v1452_v48 = vsel %vm1434_vm9, %v1419_v27, %v1273_v18  ;;  %v1279_v20 = vpop.permute.xlu1 %1278  ;;  %v2219_v24 = vsel %vm1577_vm6, %v4082_v37, 0 }
  0xae   : > { %v4789_v51 = vsel %vm1467_vm10, %v1452_v48, %v4709_v16  ;;  %2156 = vrot.lane.b32.xlu1 %v2155_v22, %s4102_s16 }
  0xaf   : > { %3887 = vmatprep.mubr.msk.bf16.mxu1 %vm1544_vm11, %v4789_v51 }
  0xb0   : > { %3888 = vmatmul.mubr.msk.bf16.vlgmr.msra.gmra.mrb[0].mxu1 %vm1544_vm11, %v4799_v29  ;;  %v987_v33 = vpop.permute.xlu0 %986  ;;  %2145 = vrot.lane.b32.xlu0 %v2144_v59, %s4101_s13 }
  0xb1   : > { %v1082_v16 = vpop.permute.xlu1 %1081  ;;  %3904 = vmatpush3.bf16.msra.mxu1 %v4673_v60  ;;  %v1390_v43 = vsel %vm304_vm7, %v4224_v58, %v987_v33  ;;  %v1425_v58 = vsel %vm1401_vm8, %v1392_v30, %v4752_v0  ;;  %v1370_v0 = vsel %vm304_vm7, 0.0|0.0, %v4075_v11 }
  0xb2   : > { %4053 = vmatprep.subr.msk.bf16.mxu1 %vm1577_vm6, %v4081_v1  ;;  %v1423_v60 = vsel %vm1401_vm8, %v1390_v43, %v4728_v31  ;;  %2458 = vrot.lane.b32.xlu1 %v4151_v2, %s4098_s27  ;;  %v1458_v62 = vsel %vm1434_vm9, %v1425_v58, %v1279_v20  ;;  %v1405_v5 = vsel %vm1401_vm8, %v1372_v39, %v1082_v16 }
  0xb3   : > { %v1456_v47 = vsel %vm1434_vm9, %v1423_v60, %v1277_v32 }
  0xb4   : > { %v1080_v44 = vpop.permute.xlu0 %1079  ;;  %2161 = vrot.lane.b32.xlu0 %v2160_v19, %s4100_s12 }
  0xb5   : > { %v1360_v6 = vpop.permute.xlu1 %1359  ;;  %3906 = vmatpush3.bf16.msra.mxu1 %v1899_v42  ;;  %v1403_v50 = vsel %vm1401_vm8, %v1370_v0, %v1080_v44 }
  0xb6   : > { %3975 = vmatprep.subr.bf16.mxu1 %v4814_v3  ;;  %v4829_v7 = vsel %vm1467_vm10, %v1458_v62, %v1360_v6  ;;  %2476 = vrot.lane.b32.xlu1 %v4184_v14, %s4102_s16 }
  0xb8   : > { %v1358_v31 = vpop.permute.xlu0 %1357  ;;  %2465 = vrot.lane.b32.xlu0 %v4175_v9, %s4101_s13 }
  0xb9   : > { %v4835_v46 = vsel %vm1467_vm10, %v1456_v47, %v1358_v31  ;;  %v1338_v26 = vpop.permute.xlu1 %1337 }
  0xba   : > { %3891 = vmatprep.mubr.msk.bf16.mxu1 %vm1544_vm11, %v4835_v46  ;;  %2778 = vrot.lane.b32.xlu1 %v4151_v2, %s4098_s27 }
  0xbb   : > { %3892 = vmatmul.mubr.msk.bf16.gmra.mrb[4].mxu1 %vm1544_vm11, %v4829_v7 }
  0xbc   : > { %v1257_v15 = vpop.permute.xlu0 %1256  ;;  %2481 = vrot.lane.b32.xlu0 %v4181_v13, %s4100_s12 }
  0xbd   : > { %v1436_v38 = vsel %vm1434_vm9, %v1403_v50, %v1257_v15  ;;  %v991_v57 = vpop.permute.xlu1 %990 }
  0xbe   : > { %v1469_v32 = vsel %vm1467_vm10, %v1436_v38, %v1338_v26  ;;  %2796 = vrot.lane.b32.xlu1 %v4184_v14, %s4102_s16  ;;  %v1394_v48 = vsel %vm304_vm7, %v4341_v49, %v991_v57 }
  0xbf   : > { %3871 = vmatprep.mubr.msk.bf16.mxu0 %vm1544_vm11, %v1469_v32 }
  0xc0   : > { %v1259_v12 = vpop.permute.xlu0 %1258  ;;  %2785 = vrot.lane.b32.xlu0 %v4175_v9, %s4101_s13 }
  0xc1   : > { %v1104_v55 = vpop.permute.xlu1 %1103  ;;  %v1438_v2 = vsel %vm1434_vm9, %v1405_v5, %v1259_v12 }
  0xc2   : > { %v1427_v28 = vsel %vm1401_vm8, %v1394_v48, %v1104_v55 }
  0xc4   : > { %v1340_v63 = vpop.permute.xlu0 %1339  ;;  %2801 = vrot.lane.b32.xlu0 %v4181_v13, %s4100_s12 }
  0xc5   : > { %v4866_v9 = vsel %vm1467_vm10, %v1438_v2, %v1340_v63  ;;  %v1106_v23 = vpop.permute.xlu1 %1105 }
  0xc6   : > { %3872 = vmatmul.mubr.msk.bf16.vlgmr.msra.gmra.mrb[0].mxu0 %vm1544_vm11, %v4866_v9 }
  0xc7   : > { %3940 = vmatpush3.bf16.msra.mxu0 %v4678_v56 }
  0xc8   : > { %v993_v14 = vpop.permute.xlu0 %992  ;;  %4054 = vmatprep.subr.msk.bf16.mxu0 %vm1577_vm6, %v4082_v37 }
  0xc9   : > { %v973_v13 = vpop.permute.xlu1 %972  ;;  %v1396_v56 = vsel %vm304_vm7, %v4350_v54, %v993_v14 }
  0xca   : > { %v1429_v53 = vsel %vm1401_vm8, %v1396_v56, %v1106_v23  ;;  %v1376_v6 = vsel %vm304_vm7, %v4381_v34, %v973_v13  ;;  %v4085_v56 = vld [vmem:[%s5473_s3 + $0x2c] ss:$0 sps:$4 sm:$0x33]  }
  0xcb   : > { %3942 = vmatpush3.bf16.msra.mxu0 %v2219_v24  ;;  %v3565_v24 = vld [vmem:[%s5474_s4] ss:$0 sm:$0xff] }
  0xcc   : > { %v971_v27 = vpop.permute.xlu0 %970  ;;  %4011 = vmatprep.subr.bf16.mxu0 %v4876_v8  ;;  %323 = vst.msk [vmem:[#allocation2 + $0x90] sm:$0xff] %vm304_vm7, %v3565_v24  ;;  %305 = vst.msk [vmem:[#allocation2] sm:$0xff] %vm304_vm7, %v3565_v24 }
  0xcd   : > { %v1283_v18 = vpop.permute.xlu1 %1282  ;;  %v1374_v49 = vsel %vm304_vm7, %v4414_v21, %v971_v27  ;;  %306 = vst.msk [vmem:[#allocation2 + $0x8] sm:$0xff] %vm304_vm7, %v3565_v24  ;;  %307 = vst.msk [vmem:[#allocation2 + $0x10] sm:$0xff] %vm304_vm7, %v3565_v24 }
  0xce   : > { %v1462_v22 = vsel %vm1434_vm9, %v1429_v53, %v1283_v18  ;;  %308 = vst.msk [vmem:[#allocation2 + $0x18] sm:$0xff] %vm304_vm7, %v3565_v24  ;;  %309 = vst.msk [vmem:[#allocation2 + $0x20] sm:$0xff] %vm304_vm7, %v3565_v24 }
  0xcf   : > { %310 = vst.msk [vmem:[#allocation2 + $0x28] sm:$0xff] %vm304_vm7, %v3565_v24  ;;  %311 = vst.msk [vmem:[#allocation2 + $0x30] sm:$0xff] %vm304_vm7, %v3565_v24 }
  0xd0   : > { %v1281_v40 = vpop.permute.xlu0 %1280  ;;  %312 = vst.msk [vmem:[#allocation2 + $0x38] sm:$0xff] %vm304_vm7, %v3565_v24  ;;  %313 = vst.msk [vmem:[#allocation2 + $0x40] sm:$0xff] %vm304_vm7, %v3565_v24 }
  0xd1   : > { %v1086_v61 = vpop.permute.xlu1 %1085  ;;  %v1460_v1 = vsel %vm1434_vm9, %v1427_v28, %v1281_v40  ;;  %314 = vst.msk [vmem:[#allocation2 + $0x48] sm:$0xff] %vm304_vm7, %v3565_v24  ;;  %315 = vst.msk [vmem:[#allocation2 + $0x50] sm:$0xff] %vm304_vm7, %v3565_v24 }
  0xd2   : > { %v1409_v11 = vsel %vm1401_vm8, %v1376_v6, %v1086_v61  ;;  %316 = vst.msk [vmem:[#allocation2 + $0x58] sm:$0xff] %vm304_vm7, %v3565_v24  ;;  %317 = vst.msk [vmem:[#allocation2 + $0x60] sm:$0xff] %vm304_vm7, %v3565_v24 }
  0xd3   : > { %318 = vst.msk [vmem:[#allocation2 + $0x68] sm:$0xff] %vm304_vm7, %v3565_v24  ;;  %319 = vst.msk [vmem:[#allocation2 + $0x70] sm:$0xff] %vm304_vm7, %v3565_v24 }
  0xd4   : > { %v1084_v20 = vpop.permute.xlu0 %1083  ;;  %320 = vst.msk [vmem:[#allocation2 + $0x78] sm:$0xff] %vm304_vm7, %v3565_v24  ;;  %321 = vst.msk [vmem:[#allocation2 + $0x80] sm:$0xff] %vm304_vm7, %v3565_v24 }
  0xd5   : > { %v1364_v59 = vpop.permute.xlu1 %1363  ;;  %v1407_v43 = vsel %vm1401_vm8, %v1374_v49, %v1084_v20  ;;  %322 = vst.msk [vmem:[#allocation2 + $0x88] sm:$0xff] %vm304_vm7, %v3565_v24  ;;  %324 = vst.msk [vmem:[#allocation2 + $0x98] sm:$0xff] %vm304_vm7, %v3565_v24 }
  0xd6   : > { %v4888_v33 = vsel %vm1467_vm10, %v1462_v22, %v1364_v59  ;;  %325 = vst.msk [vmem:[#allocation2 + $0xa0] sm:$0xff] %vm304_vm7, %v3565_v24  ;;  %326 = vst.msk [vmem:[#allocation2 + $0xa8] sm:$0xff] %vm304_vm7, %v3565_v24  ;;  %v2539_v22 = vsel %vm1577_vm6, %v4085_v56, 0 }
  0xd7   : > { %327 = vst.msk [vmem:[#allocation2 + $0xb0] sm:$0xff] %vm304_vm7, %v3565_v24  ;;  %328 = vst.msk [vmem:[#allocation2 + $0xb8] sm:$0xff] %vm304_vm7, %v3565_v24 }
  0xd8   : > { %v1362_v16 = vpop.permute.xlu0 %1361  ;;  %329 = vst.msk [vmem:[#allocation2 + $0xc0] sm:$0xff] %vm304_vm7, %v3565_v24  ;;  %330 = vst.msk [vmem:[#allocation2 + $0xc8] sm:$0xff] %vm304_vm7, %v3565_v24 }
  0xd9   : > { %v4891_v19 = vsel %vm1467_vm10, %v1460_v1, %v1362_v16  ;;  %v1342_v54 = vpop.permute.xlu1 %1341  ;;  %331 = vst.msk [vmem:[#allocation2 + $0xd0] sm:$0xff] %vm304_vm7, %v3565_v24  ;;  %332 = vst.msk [vmem:[#allocation2 + $0xd8] sm:$0xff] %vm304_vm7, %v3565_v24 }
  0xda   : > { %3895 = vmatprep.mubr.msk.bf16.mxu1 %vm1544_vm11, %v4891_v19  ;;  %333 = vst.msk [vmem:[#allocation2 + $0xe0] sm:$0xff] %vm304_vm7, %v3565_v24  ;;  %334 = vst.msk [vmem:[#allocation2 + $0xe8] sm:$0xff] %vm304_vm7, %v3565_v24 }
  0xdb   : > { %3896 = vmatmul.mubr.msk.bf16.gmra.mrb[8].mxu1 %vm1544_vm11, %v4888_v33  ;;  %335 = vst.msk [vmem:[#allocation2 + $0xf0] sm:$0xff] %vm304_vm7, %v3565_v24  ;;  %336 = vst.msk [vmem:[#allocation2 + $0xf8] sm:$0xff] %vm304_vm7, %v3565_v24 }
  0xdc   : > { %v1261_v42 = vpop.permute.xlu0 %1260 }
  0xdd   : > { %v1440_v30 = vsel %vm1434_vm9, %v1407_v43, %v1261_v42  ;;  %v995_v44 = vpop.permute.xlu1 %994 }
  0xde   : > { %v4902_v60 = vsel %vm1467_vm10, %v1440_v30, %v1342_v54  ;;  %v1398_v12 = vsel %vm304_vm7, %v4485_v52, %v995_v44 }
  0xdf   : > { %3875 = vmatprep.mubr.msk.bf16.mxu0 %vm1544_vm11, %v4902_v60 }
  0xe0   : > { %v1263_v58 = vpop.permute.xlu0 %1262 }
  0xe1   : > { %v1108_v21 = vpop.permute.xlu1 %1107  ;;  %v1442_v62 = vsel %vm1434_vm9, %v1409_v11, %v1263_v58 }
  0xe2   : > { %v1431_v5 = vsel %vm1401_vm8, %v1398_v12, %v1108_v21 }
  0xe4   : > { %v1344_v47 = vpop.permute.xlu0 %1343 }
  0xe5   : > { %v4911_v31 = vsel %vm1467_vm10, %v1442_v62, %v1344_v47  ;;  %v1110_v26 = vpop.permute.xlu1 %1109 }
  0xe6   : > { %3876 = vmatmul.mubr.msk.bf16.gmra.mrb[4].mxu0 %vm1544_vm11, %v4911_v31 }
  0xe8   : > { %v997_v0 = vpop.permute.xlu0 %996 }
  0xe9   : > { %v977_v50 = vpop.permute.xlu1 %976  ;;  %v1400_v17 = vsel %vm304_vm7, %v4519_v4, %v997_v0 }
  0xea   : > { %v1433_v39 = vsel %vm1401_vm8, %v1400_v17, %v1110_v26  ;;  %v1380_v40 = vsel %vm304_vm7, %v4541_v10, %v977_v50 }
  0xed   : > { %v1287_v15 = vpop.permute.xlu1 %1286 }
  0xee   : > { %v975_v38 = vpop.permute.xlu0 %974  ;;  %v1466_v2 = vsel %vm1434_vm9, %v1433_v39, %v1287_v15 }
  0xef   : > { %v1378_v52 = vsel %vm304_vm7, %v4571_v36, %v975_v38 }
  0xf1   : > { %v1090_v57 = vpop.permute.xlu1 %1089 }
  0xf2   : > { %v1285_v34 = vpop.permute.xlu0 %1284  ;;  %v1413_v48 = vsel %vm1401_vm8, %v1380_v40, %v1090_v57  ;;  %v1520_v40 = vld [vmem:[#allocation2 + $0xa0] sm:$0xff] }
  0xf3   : > { %v1464_v63 = vsel %vm1434_vm9, %v1431_v5, %v1285_v34 }
  0xf5   : > { %v1368_v32 = vpop.permute.xlu1 %1367 }
  0xf6   : > { %v1088_v55 = vpop.permute.xlu0 %1087  ;;  %v4924_v37 = vsel %vm1467_vm10, %v1466_v2, %v1368_v32 }
  0xf7   : > { %v1411_v13 = vsel %vm1401_vm8, %v1378_v52, %v1088_v55  ;;  %v1519_v52 = vld [vmem:[#allocation2 + $0x98] sm:$0xff] }
  0xf9   : > { %v1346_v4 = vpop.permute.xlu1 %1345 }
  0xfa   : > { %v1366_v23 = vpop.permute.xlu0 %1365 }
  0xfb   : > { %v4927_v14 = vsel %vm1467_vm10, %v1464_v63, %v1366_v23  ;;  %v1516_v23 = vld [vmem:[#allocation2 + $0x80] sm:$0xff] }
  0xfc   : > { %3899 = vmatprep.mubr.msk.bf16.mxu1 %vm1544_vm11, %v4927_v14 }
  0xfd   : > { %3900 = vmatmul.mubr.msk.bf16.gmra.mrb[12].mxu1 %vm1544_vm11, %v4924_v37 }
  0xfe   : > { %3907 = vmatprep.mubr.msk.bf16.mxu1 %vm1544_vm11, %v4866_v9  ;;  %v1265_v27 = vpop.permute.xlu0 %1264 }
  0xff   : > { %v1444_v36 = vsel %vm1434_vm9, %v1411_v13, %v1265_v27  ;;  %v979_v18 = vpop.permute.xlu1 %978 }
 0x100   : > { %v4975_v9 = vsel %vm1467_vm10, %v1444_v36, %v1346_v4  ;;  %v1382_v10 = vsel %vm304_vm7, %v4638_v41, %v979_v18 }
 0x101   : > { %3879 = vmatprep.mubr.msk.bf16.mxu0 %vm1544_vm11, %v4975_v9 }
 0x102   : > { %v1267_v61 = vpop.permute.xlu0 %1266 }
 0x103   : > { %v1092_v20 = vpop.permute.xlu1 %1091  ;;  %v1446_v59 = vsel %vm1434_vm9, %v1413_v48, %v1267_v61 }
 0x104   : > { %v1415_v16 = vsel %vm1401_vm8, %v1382_v10, %v1092_v20  ;;  %v1523_v20 = vld [vmem:[#allocation2 + $0xb8] sm:$0xff]  ;;  %v1521_v10 = vld [vmem:[#allocation2 + $0xa8] sm:$0xff] }
 0x105   : > { %3908 = vmatmul.mubr.msk.bf16.vlgmr.msra.gmra.mrb[16].mxu1 %vm1544_vm11, %v4902_v60 }
 0x106   : > { %3911 = vmatprep.mubr.msk.bf16.mxu1 %vm1544_vm11, %v4911_v31  ;;  %v1348_v53 = vpop.permute.xlu0 %1347  ;;  %3976 = vmatpush3.bf16.msra.mxu1 %v4814_v3 }
 0x107   : > { %v4994_v28 = vsel %vm1467_vm10, %v1446_v59, %v1348_v53  ;;  %4055 = vmatprep.subr.msk.bf16.mxu1 %vm1577_vm6, %v4085_v56  ;;  %v1269_v1 = vpop.permute.xlu1 %1268 }
 0x108   : > { %3880 = vmatmul.mubr.msk.bf16.gmra.mrb[8].mxu0 %vm1544_vm11, %v4994_v28  ;;  %v1448_v3 = vsel %vm1434_vm9, %v1415_v16, %v1269_v1 }
 0x10a   : > { %v981_v54 = vpop.permute.xlu0 %980  ;;  %3978 = vmatpush3.bf16.msra.mxu1 %v2539_v22 }
 0x10b   : > { %v1350_v41 = vpop.permute.xlu1 %1349  ;;  %v1384_v30 = vsel %vm304_vm7, %v4683_v25, %v981_v54  ;;  %v4086_v25 = vld [vmem:[%s5473_s3 + $0x38] ss:$0 sps:$4 sm:$0x33]  }
 0x10c   : > { %v5005_v49 = vsel %vm1467_vm10, %v1448_v3, %v1350_v41 }
 0x10d   : > { %3912 = vmatmul.mubr.msk.bf16.gmra.mrb[20].mxu1 %vm1544_vm11, %v4975_v9  ;;  %3883 = vmatprep.mubr.msk.bf16.mxu0 %vm1544_vm11, %v5005_v49 }
 0x10e   : > { %3915 = vmatprep.mubr.msk.bf16.mxu1 %vm1544_vm11, %v4994_v28  ;;  %v1094_v43 = vpop.permute.xlu0 %1093 }
 0x10f   : > { %v1417_v44 = vsel %vm1401_vm8, %v1384_v30, %v1094_v43  ;;  %v1500_v30 = vld [vmem:[#allocation2] sm:$0xff] }
 0x112   : > { %v1271_v42 = vpop.permute.xlu0 %1270 }
 0x113   : > { %v1450_v6 = vsel %vm1434_vm9, %v1417_v44, %v1271_v42  ;;  %v1502_v42 = vld [vmem:[#allocation2 + $0x10] sm:$0xff] }
 0x115   : > { %3916 = vmatmul.mubr.msk.bf16.gmra.mrb[24].mxu1 %vm1544_vm11, %v5005_v49 }
 0x116   : > { %v1352_v58 = vpop.permute.xlu0 %1351 }
 0x117   : > { %v5018_v21 = vsel %vm1467_vm10, %v1450_v6, %v1352_v58  ;;  %v1503_v6 = vld [vmem:[#allocation2 + $0x18] sm:$0xff] }
 0x118   : > { %3884 = vmatmul.mubr.msk.bf16.gmra.mrb[12].mxu0 %vm1544_vm11, %v5018_v21  ;;  %3919 = vmatprep.mubr.msk.bf16.mxu1 %vm1544_vm11, %v5018_v21 }
 0x119   : > { %3943 = vmatprep.mubr.msk.bf16.mxu0 %vm1544_vm11, %v4902_v60  ;;  %v2859_v60 = vsel %vm1577_vm6, %v4086_v25, 0 }
 0x11a   : > { %v1826_v62 = vpop.permute.xlu0 %1825 }
 0x11d   : > { %3920 = vmatmul.mubr.msk.bf16.gmra.mrb[28].mxu1 %vm1544_vm11, %v4789_v51 }
 0x11e   : > { %3923 = vmatprep.mubr.msk.bf16.mxu1 %vm1544_vm11, %v4799_v29  ;;  %v1842_v50 = vpop.permute.xlu0 %1841 }
 0x120   : > { %3944 = vmatmul.mubr.msk.bf16.vlgmr.msra.gmra.mrb[16].mxu0 %vm1544_vm11, %v4911_v31 }
 0x121   : > { %4012 = vmatpush3.bf16.msra.mxu0 %v4876_v8  ;;  %3947 = vmatprep.mubr.msk.bf16.mxu0 %vm1544_vm11, %v4975_v9  ;;  %v1819_v8 = vpop.permute.xlu1 %1818 }
 0x122   : > { %4056 = vmatprep.subr.msk.bf16.mxu0 %vm1577_vm6, %v4086_v25  ;;  %v1844_v11 = vsel %vm304_vm7, %v4742_v45, %v1819_v8  ;;  %v2146_v38 = vpop.permute.xlu0 %2145  ;;  %v1501_v25 = vld [vmem:[#allocation2 + $0x8] sm:$0xff] }
 0x123   : > { %v1846_v47 = vsel %vm1401_vm8, %v1844_v11, %v1826_v62 }
 0x125   : > { %3924 = vmatmul.mubr.msk.bf16.gmra.mrb[32].mxu1 %vm1544_vm11, %v4835_v46  ;;  %4014 = vmatpush3.bf16.msra.mxu0 %v2859_v60  ;;  %v1837_v26 = vpop.permute.xlu1 %1836 }
 0x126   : > { %3927 = vmatprep.mubr.msk.bf16.mxu1 %vm1544_vm11, %v4829_v7  ;;  %v1848_v0 = vsel %vm1434_vm9, %v1846_v47, %v1837_v26  ;;  %v2162_v32 = vpop.permute.xlu0 %2161  ;;  %v1526_v26 = vld [vmem:[#allocation2 + $0xd0] sm:$0xff] }
 0x127   : > { %v5069_v45 = vsel %vm1467_vm10, %v1848_v0, %v1842_v50  ;;  %v1524_v0 = vld [vmem:[#allocation2 + $0xc0] sm:$0xff] }
 0x128   : > { %3948 = vmatmul.mubr.msk.bf16.gmra.mrb[20].mxu0 %vm1544_vm11, %v4994_v28 }
 0x129   : > { %3951 = vmatprep.mubr.msk.bf16.mxu0 %vm1544_vm11, %v5005_v49  ;;  %v2139_v15 = vpop.permute.xlu1 %2138 }
 0x12a   : > { %v2466_v39 = vpop.permute.xlu0 %2465 }
 0x12d   : > { %3928 = vmatmul.mubr.msk.bf16.gmra.mrb[36].mxu1 %vm1544_vm11, %v4891_v19  ;;  %v2157_v34 = vpop.permute.xlu1 %2156 }
 0x12e   : > { %3931 = vmatprep.mubr.msk.bf16.mxu1 %vm1544_vm11, %v4888_v33  ;;  %v2482_v63 = vpop.permute.xlu0 %2481 }
 0x130   : > { %3952 = vmatmul.mubr.msk.bf16.gmra.mrb[24].mxu0 %vm1544_vm11, %v5018_v21 }
 0x131   : > { %3955 = vmatprep.mubr.msk.bf16.mxu0 %vm1544_vm11, %v4789_v51  ;;  %v2459_v12 = vpop.permute.xlu1 %2458 }
 0x132   : > { %v2484_v55 = vsel %vm304_vm7, 0.0|0.0, %v2459_v12  ;;  %v2786_v48 = vpop.permute.xlu0 %2785  ;;  %v1506_v12 = vld [vmem:[#allocation2 + $0x30] sm:$0xff] }
 0x133   : > { %v2486_v5 = vsel %vm1401_vm8, %v2484_v55, %v2466_v39  ;;  %v1504_v55 = vld [vmem:[#allocation2 + $0x20] sm:$0xff] }
 0x135   : > { %3932 = vmatmul.mubr.msk.bf16.gmra.mrb[40].mxu1 %vm1544_vm11, %v4927_v14  ;;  %v2477_v2 = vpop.permute.xlu1 %2476 }
 0x136   : > { %3935 = vmatprep.mubr.msk.bf16.mxu1 %vm1544_vm11, %v4924_v37 }
 0x138   : > { %3956 = vmatmul.mubr.msk.bf16.gmra.mrb[28].mxu0 %vm1544_vm11, %v4799_v29 }
 0x139   : > { %3959 = vmatprep.mubr.msk.bf16.mxu0 %vm1544_vm11, %v4835_v46 }
 0x13d   : > { %3936 = vmatmul.mubr.msk.bf16.gmra.mrb[44].mxu1 %vm1544_vm11, %v5069_v45 }
 0x13e   : > { %3979 = vmatprep.mubr.msk.bf16.mxu1 %vm1544_vm11, %v4911_v31  ;;  %v2164_v31 = vsel %vm304_vm7, %v4761_v35, %v2139_v15 }
 0x13f   : > { %v2166_v57 = vsel %vm1401_vm8, %v2164_v31, %v2146_v38  ;;  %v1525_v38 = vld [vmem:[#allocation2 + $0xc8] sm:$0xff] }
 0x140   : > { %3960 = vmatmul.mubr.msk.bf16.gmra.mrb[32].mxu0 %vm1544_vm11, %v4829_v7  ;;  %v2168_v17 = vsel %vm1434_vm9, %v2166_v57, %v2157_v34 }
 0x141   : > { %3963 = vmatprep.mubr.msk.bf16.mxu0 %vm1544_vm11, %v4891_v19  ;;  %v2170_v35 = vsel %vm1467_vm10, %v2168_v17, %v2162_v32 }
 0x145   : > { %3980 = vmatmul.mubr.msk.bf16.vlgmr.msra.gmra.mrb[48].mxu1 %vm1544_vm11, %v4975_v9 }
 0x146   : > { %3983 = vmatprep.mubr.msk.bf16.mxu1 %vm1544_vm11, %v4994_v28 }
 0x148   : > { %3964 = vmatmul.mubr.msk.bf16.gmra.mrb[36].mxu0 %vm1544_vm11, %v4888_v33 }
 0x149   : > { %3967 = vmatprep.mubr.msk.bf16.mxu0 %vm1544_vm11, %v4927_v14 }
 0x14d   : > { %3984 = vmatmul.mubr.msk.bf16.gmra.mrb[52].mxu1 %vm1544_vm11, %v5005_v49 }
 0x14e   : > { %3987 = vmatprep.mubr.msk.bf16.mxu1 %vm1544_vm11, %v5018_v21 }
 0x150   : > { %3968 = vmatmul.mubr.msk.bf16.gmra.mrb[40].mxu0 %vm1544_vm11, %v4924_v37 }
 0x151   : > { %3971 = vmatprep.mubr.msk.bf16.mxu0 %vm1544_vm11, %v5069_v45 }
 0x155   : > { %3988 = vmatmul.mubr.msk.bf16.gmra.mrb[56].mxu1 %vm1544_vm11, %v4789_v51 }
 0x156   : > { %3991 = vmatprep.mubr.msk.bf16.mxu1 %vm1544_vm11, %v4799_v29 }
 0x158   : > { %3972 = vmatmul.mubr.msk.bf16.gmra.mrb[44].mxu0 %vm1544_vm11, %v2170_v35 }
 0x159   : > { %4015 = vmatprep.mubr.msk.bf16.mxu0 %vm1544_vm11, %v4975_v9 }
 0x15d   : > { %3992 = vmatmul.mubr.msk.bf16.gmra.mrb[60].mxu1 %vm1544_vm11, %v4835_v46 }
 0x15e   : > { %3995 = vmatprep.mubr.msk.bf16.mxu1 %vm1544_vm11, %v4829_v7 }
 0x160   : > { %4016 = vmatmul.mubr.msk.bf16.vlgmr.msra.gmra.mrb[48].mxu0 %vm1544_vm11, %v4994_v28 }
 0x161   : > { %4019 = vmatprep.mubr.msk.bf16.mxu0 %vm1544_vm11, %v5005_v49  ;;  %v2802_v49 = vpop.permute.xlu0 %2801 }
 0x165   : > { %3996 = vmatmul.mubr.msk.bf16.gmra.mrb[64].mxu1 %vm1544_vm11, %v4891_v19 }
 0x166   : > { %3999 = vmatprep.mubr.msk.bf16.mxu1 %vm1544_vm11, %v4888_v33 }
 0x168   : > { %4020 = vmatmul.mubr.msk.bf16.gmra.mrb[52].mxu0 %vm1544_vm11, %v5018_v21 }
 0x169   : > { %4023 = vmatprep.mubr.msk.bf16.mxu0 %vm1544_vm11, %v4789_v51  ;;  %v2488_v51 = vsel %vm1434_vm9, %v2486_v5, %v2477_v2  ;;  %v1507_v5 = vld [vmem:[#allocation2 + $0x38] sm:$0xff] }
 0x16d   : > { %4000 = vmatmul.mubr.msk.bf16.gmra.mrb[68].mxu1 %vm1544_vm11, %v4927_v14 }
 0x16e   : > { %4003 = vmatprep.mubr.msk.bf16.mxu1 %vm1544_vm11, %v4924_v37 }
 0x170   : > { %4024 = vmatmul.mubr.msk.bf16.gmra.mrb[56].mxu0 %vm1544_vm11, %v4799_v29  ;;  %v2490_v29 = vsel %vm1467_vm10, %v2488_v51, %v2482_v63  ;;  %v1505_v63 = vld [vmem:[#allocation2 + $0x28] sm:$0xff] }
 0x171   : > { %4027 = vmatprep.mubr.msk.bf16.mxu0 %vm1544_vm11, %v4835_v46  ;;  %v1518_v46 = vld [vmem:[#allocation2 + $0x90] sm:$0xff] }
 0x175   : > { %4004 = vmatmul.mubr.msk.bf16.gmra.mrb[72].mxu1 %vm1544_vm11, %v5069_v45 }
 0x176   : > { %4007 = vmatprep.mubr.msk.bf16.mxu1 %vm1544_vm11, %v2170_v35 }
 0x178   : > { %4028 = vmatmul.mubr.msk.bf16.gmra.mrb[60].mxu0 %vm1544_vm11, %v4829_v7  ;;  %v1517_v7 = vld [vmem:[#allocation2 + $0x88] sm:$0xff] }
 0x179   : > { %4031 = vmatprep.mubr.msk.bf16.mxu0 %vm1544_vm11, %v4891_v19 }
 0x17d   : > { %4008 = vmatmul.mubr.msk.bf16.gmra.mrb[76].mxu1 %vm1544_vm11, %v2490_v29 }
 0x180   : > { %4032 = vmatmul.mubr.msk.bf16.gmra.mrb[64].mxu0 %vm1544_vm11, %v4888_v33  ;;  %v2779_v33 = vpop.permute.xlu1 %2778 }
 0x181   : > { %4035 = vmatprep.mubr.msk.bf16.mxu0 %vm1544_vm11, %v4927_v14  ;;  %v1522_v14 = vld [vmem:[#allocation2 + $0xb0] sm:$0xff]  ;;  %v2804_v61 = vsel %vm304_vm7, 0.0|0.0, %v2779_v33 }
 0x182   : > { %v2806_v22 = vsel %vm1401_vm8, %v2804_v61, %v2786_v48 }
 0x183   : > { %v3889_v4 = vpop.f32.mrb[0].mxu1 }
 0x184   : > { %v1760_v24 = vadd.f32 %v3889_v4, %v1518_v46  ;;  %v1679_v13 = vpop.f32.mrb[1].mxu1  ;;  %v2797_v54 = vpop.permute.xlu1 %2796 }
 0x185   : > { %v1758_v27 = vadd.f32 %v1679_v13, %v1516_v23  ;;  %v3890_v36 = vpop.f32.mrb[2].mxu1  ;;  %v2808_v41 = vsel %vm1434_vm9, %v2806_v22, %v2797_v54  ;;  %v1528_v13 = vld [vmem:[#allocation2 + $0xe0] sm:$0xff] }
 0x186   : > { %1792 = vst.msk [vmem:[#allocation2 + $0x90] sm:$0xff] %vm304_vm7, %v1760_v24  ;;  %v1761_v19 = vadd.f32 %v3890_v36, %v1519_v52  ;;  %v1682_v9 = vpop.f32.mrb[3].mxu1  ;;  %v2810_v43 = vsel %vm1467_vm10, %v2808_v41, %v2802_v49  ;;  %v1530_v24 = vld [vmem:[#allocation2 + $0xf0] sm:$0xff]  ;;  %v1511_v49 = vld [vmem:[#allocation2 + $0x58] sm:$0xff] }
 0x187   : > { %1790 = vst.msk [vmem:[#allocation2 + $0x80] sm:$0xff] %vm304_vm7, %v1758_v27  ;;  %v1759_v18 = vadd.f32 %v1682_v9, %v1517_v7  ;;  %v1531_v27 = vld [vmem:[#allocation2 + $0xf8] sm:$0xff]  ;;  %v1529_v9 = vld [vmem:[#allocation2 + $0xe8] sm:$0xff] }
 0x188   : > { %1793 = vst.msk [vmem:[#allocation2 + $0x98] sm:$0xff] %vm304_vm7, %v1761_v19  ;;  %4036 = vmatmul.mubr.msk.bf16.gmra.mrb[68].mxu0 %vm1544_vm11, %v4924_v37 }
 0x189   : > { %1791 = vst.msk [vmem:[#allocation2 + $0x88] sm:$0xff] %vm304_vm7, %v1759_v18  ;;  %4039 = vmatprep.mubr.msk.bf16.mxu0 %vm1544_vm11, %v5069_v45  ;;  %v1527_v45 = vld [vmem:[#allocation2 + $0xd8] sm:$0xff] }
 0x18e   : > { %v3893_v56 = vpop.f32.mrb[4].mxu1 }
 0x18f   : > { %v1764_v59 = vadd.f32 %v3893_v56, %v1522_v14  ;;  %v1695_v53 = vpop.f32.mrb[5].mxu1 }
 0x190   : > { %4040 = vmatmul.mubr.msk.bf16.gmra.mrb[72].mxu0 %vm1544_vm11, %v2170_v35  ;;  %v1762_v28 = vadd.f32 %v1695_v53, %v1520_v40  ;;  %v3894_v37 = vpop.f32.mrb[6].mxu1 }
 0x191   : > { %1796 = vst.msk [vmem:[#allocation2 + $0xb0] sm:$0xff] %vm304_vm7, %v1764_v59  ;;  %4043 = vmatprep.mubr.msk.bf16.mxu0 %vm1544_vm11, %v2490_v29  ;;  %v1765_v1 = vadd.f32 %v3894_v37, %v1523_v20  ;;  %v1698_v16 = vpop.f32.mrb[7].mxu1 }
 0x192   : > { %1794 = vst.msk [vmem:[#allocation2 + $0xa0] sm:$0xff] %vm304_vm7, %v1762_v28  ;;  %v1763_v3 = vadd.f32 %v1698_v16, %v1521_v10  ;;  %v1510_v10 = vld [vmem:[#allocation2 + $0x50] sm:$0xff] }
 0x193   : > { %1797 = vst.msk [vmem:[#allocation2 + $0xb8] sm:$0xff] %vm304_vm7, %v1765_v1  ;;  %v1508_v1 = vld [vmem:[#allocation2 + $0x40] sm:$0xff] }
 0x194   : > { %1795 = vst.msk [vmem:[#allocation2 + $0xa8] sm:$0xff] %vm304_vm7, %v1763_v3 }
 0x198   : > { %4044 = vmatmul.mubr.msk.bf16.gmra.mrb[76].mxu0 %vm1544_vm11, %v2810_v43 }
 0x199   : > { %v3873_v44 = vpop.f32.mrb[0].mxu0 }
 0x19a   : > { %v1744_v58 = vadd.f32 %v3873_v44, %v1502_v42  ;;  %v1615_v21 = vpop.f32.mrb[1].mxu0  ;;  %v1509_v44 = vld [vmem:[#allocation2 + $0x48] sm:$0xff] }
 0x19b   : > { %v1742_v60 = vadd.f32 %v1615_v21, %v1500_v30  ;;  %v3874_v8 = vpop.f32.mrb[2].mxu0 }
 0x19c   : > { %1776 = vst.msk [vmem:[#allocation2 + $0x10] sm:$0xff] %vm304_vm7, %v1744_v58  ;;  %v1745_v11 = vadd.f32 %v3874_v8, %v1503_v6  ;;  %v1618_v62 = vpop.f32.mrb[3].mxu0 }
 0x19d   : > { %1774 = vst.msk [vmem:[#allocation2] sm:$0xff] %vm304_vm7, %v1742_v60  ;;  %v1743_v47 = vadd.f32 %v1618_v62, %v1501_v25 }
 0x19e   : > { %1777 = vst.msk [vmem:[#allocation2 + $0x18] sm:$0xff] %vm304_vm7, %v1745_v11 }
 0x19f   : > { %1775 = vst.msk [vmem:[#allocation2 + $0x8] sm:$0xff] %vm304_vm7, %v1743_v47 }
 0x1a3   : > { %v1853_v56 = vld [vmem:[#allocation2 + $0x10] sm:$0xff] }
 0x1a4   : > { %v1851_v59 = vld [vmem:[#allocation2] sm:$0xff] }
 0x1a5   : > { %v1854_v37 = vld [vmem:[#allocation2 + $0x18] sm:$0xff] }
 0x1a6   : > { %v1852_v3 = vld [vmem:[#allocation2 + $0x8] sm:$0xff] }
 0x1ae   : > { %v3897_v50 = vpop.f32.mrb[8].mxu1 }
 0x1af   : > { %v1768_v15 = vadd.f32 %v3897_v50, %v1526_v26  ;;  %v1711_v31 = vpop.f32.mrb[9].mxu1 }
 0x1b0   : > { %v1766_v57 = vadd.f32 %v1711_v31, %v1524_v0  ;;  %v3898_v34 = vpop.f32.mrb[10].mxu1 }
 0x1b1   : > { %1800 = vst.msk [vmem:[#allocation2 + $0xd0] sm:$0xff] %vm304_vm7, %v1768_v15  ;;  %v1769_v17 = vadd.f32 %v3898_v34, %v1527_v45  ;;  %v1714_v32 = vpop.f32.mrb[11].mxu1 }
 0x1b2   : > { %1798 = vst.msk [vmem:[#allocation2 + $0xc0] sm:$0xff] %vm304_vm7, %v1766_v57  ;;  %v1767_v35 = vadd.f32 %v1714_v32, %v1525_v38 }
 0x1b3   : > { %1801 = vst.msk [vmem:[#allocation2 + $0xd8] sm:$0xff] %vm304_vm7, %v1769_v17 }
 0x1b4   : > { %1799 = vst.msk [vmem:[#allocation2 + $0xc8] sm:$0xff] %vm304_vm7, %v1767_v35 }
 0x1b9   : > { %v3877_v39 = vpop.f32.mrb[4].mxu0 }
 0x1ba   : > { %v1748_v2 = vadd.f32 %v3877_v39, %v1506_v12  ;;  %v1631_v51 = vpop.f32.mrb[5].mxu0 }
 0x1bb   : > { %v1746_v29 = vadd.f32 %v1631_v51, %v1504_v55  ;;  %v3878_v46 = vpop.f32.mrb[6].mxu0  ;;  %v1514_v55 = vld [vmem:[#allocation2 + $0x70] sm:$0xff]  ;;  %v1512_v51 = vld [vmem:[#allocation2 + $0x60] sm:$0xff] }
 0x1bc   : > { %1780 = vst.msk [vmem:[#allocation2 + $0x30] sm:$0xff] %vm304_vm7, %v1748_v2  ;;  %v1749_v23 = vadd.f32 %v3878_v46, %v1507_v5  ;;  %v1634_v4 = vpop.f32.mrb[7].mxu0 }
 0x1bd   : > { %1778 = vst.msk [vmem:[#allocation2 + $0x20] sm:$0xff] %vm304_vm7, %v1746_v29  ;;  %v1747_v52 = vadd.f32 %v1634_v4, %v1505_v63  ;;  %v1515_v4 = vld [vmem:[#allocation2 + $0x78] sm:$0xff] }
 0x1be   : > { %1781 = vst.msk [vmem:[#allocation2 + $0x38] sm:$0xff] %vm304_vm7, %v1749_v23 }
 0x1bf   : > { %1779 = vst.msk [vmem:[#allocation2 + $0x28] sm:$0xff] %vm304_vm7, %v1747_v52 }
 0x1c3   : > { %v1857_v8 = vld [vmem:[#allocation2 + $0x30] sm:$0xff] }
 0x1c4   : > { %v1855_v47 = vld [vmem:[#allocation2 + $0x20] sm:$0xff] }
 0x1c5   : > { %v1858_v50 = vld [vmem:[#allocation2 + $0x38] sm:$0xff] }
 0x1c6   : > { %v1856_v31 = vld [vmem:[#allocation2 + $0x28] sm:$0xff] }
 0x1d0   : > { %v3901_v7 = vpop.f32.mrb[12].mxu1 }
 0x1d1   : > { %v1772_v36 = vadd.f32 %v3901_v7, %v1530_v24  ;;  %v1727_v19 = vpop.f32.mrb[13].mxu1  ;;  %v1513_v7 = vld [vmem:[#allocation2 + $0x68] sm:$0xff] }
 0x1d2   : > { %v1770_v18 = vadd.f32 %v1727_v19, %v1528_v13  ;;  %v3902_v33 = vpop.f32.mrb[14].mxu1 }
 0x1d3   : > { %1804 = vst.msk [vmem:[#allocation2 + $0xf0] sm:$0xff] %vm304_vm7, %v1772_v36  ;;  %v1773_v14 = vadd.f32 %v3902_v33, %v1531_v27  ;;  %v1730_v40 = vpop.f32.mrb[15].mxu1 }
 0x1d4   : > { %1802 = vst.msk [vmem:[#allocation2 + $0xe0] sm:$0xff] %vm304_vm7, %v1770_v18  ;;  %v1771_v61 = vadd.f32 %v1730_v40, %v1529_v9 }
 0x1d5   : > { %1805 = vst.msk [vmem:[#allocation2 + $0xf8] sm:$0xff] %vm304_vm7, %v1773_v14 }
 0x1d6   : > { %1803 = vst.msk [vmem:[#allocation2 + $0xe8] sm:$0xff] %vm304_vm7, %v1771_v61 }
 0x1d8   : > { %v3909_v48 = vpop.f32.mrb[16].mxu1 }
 0x1d9   : > { %v2064_v20 = vadd.f32 %v3909_v48, %v1853_v56  ;;  %v1935_v53 = vpop.f32.mrb[17].mxu1 }
 0x1da   : > { %v2062_v28 = vadd.f32 %v1935_v53, %v1851_v59  ;;  %v3910_v22 = vpop.f32.mrb[18].mxu1 }
 0x1db   : > { %2096 = vst.msk [vmem:[#allocation2 + $0x10] sm:$0xff] %vm304_vm7, %v2064_v20  ;;  %v2065_v16 = vadd.f32 %v3910_v22, %v1854_v37  ;;  %v3881_v54 = vpop.f32.mrb[8].mxu0  ;;  %v1938_v41 = vpop.f32.mrb[19].mxu1 }
 0x1dc   : > { %2094 = vst.msk [vmem:[#allocation2] sm:$0xff] %vm304_vm7, %v2062_v28  ;;  %v1752_v43 = vadd.f32 %v3881_v54, %v1510_v10  ;;  %v2063_v42 = vadd.f32 %v1938_v41, %v1852_v3  ;;  %v1647_v30 = vpop.f32.mrb[9].mxu0 }
 0x1dd   : > { %2097 = vst.msk [vmem:[#allocation2 + $0x18] sm:$0xff] %vm304_vm7, %v2065_v16  ;;  %v1750_v6 = vadd.f32 %v1647_v30, %v1508_v1  ;;  %v3882_v58 = vpop.f32.mrb[10].mxu0 }
 0x1de   : > { %1784 = vst.msk [vmem:[#allocation2 + $0x50] sm:$0xff] %vm304_vm7, %v1752_v43  ;;  %2095 = vst.msk [vmem:[#allocation2 + $0x8] sm:$0xff] %vm304_vm7, %v2063_v42  ;;  %v1753_v21 = vadd.f32 %v3882_v58, %v1511_v49  ;;  %v1650_v25 = vpop.f32.mrb[11].mxu0 }
 0x1df   : > { %1782 = vst.msk [vmem:[#allocation2 + $0x40] sm:$0xff] %vm304_vm7, %v1750_v6  ;;  %v1751_v60 = vadd.f32 %v1650_v25, %v1509_v44  ;;  %v1869_v6 = vld [vmem:[#allocation2 + $0x90] sm:$0xff] }
 0x1e0   : > { %1785 = vst.msk [vmem:[#allocation2 + $0x58] sm:$0xff] %vm304_vm7, %v1753_v21  ;;  %v3913_v11 = vpop.f32.mrb[20].mxu1 }
 0x1e1   : > { %1783 = vst.msk [vmem:[#allocation2 + $0x48] sm:$0xff] %vm304_vm7, %v1751_v60  ;;  %v2068_v62 = vadd.f32 %v3913_v11, %v1857_v8  ;;  %v1951_v26 = vpop.f32.mrb[21].mxu1  ;;  %v1867_v60 = vld [vmem:[#allocation2 + $0x80] sm:$0xff] }
 0x1e2   : > { %v2066_v0 = vadd.f32 %v1951_v26, %v1855_v47  ;;  %v3914_v45 = vpop.f32.mrb[22].mxu1  ;;  %v2173_v56 = vld [vmem:[#allocation2 + $0x10] sm:$0xff] }
 0x1e3   : > { %2100 = vst.msk [vmem:[#allocation2 + $0x30] sm:$0xff] %vm304_vm7, %v2068_v62  ;;  %v2069_v15 = vadd.f32 %v3914_v45, %v1858_v50  ;;  %v1954_v38 = vpop.f32.mrb[23].mxu1  ;;  %v2171_v59 = vld [vmem:[#allocation2] sm:$0xff]  ;;  %v1870_v62 = vld [vmem:[#allocation2 + $0x98] sm:$0xff] }
 0x1e4   : > { %2098 = vst.msk [vmem:[#allocation2 + $0x20] sm:$0xff] %vm304_vm7, %v2066_v0  ;;  %v2067_v57 = vadd.f32 %v1954_v38, %v1856_v31  ;;  %v2174_v37 = vld [vmem:[#allocation2 + $0x18] sm:$0xff]  ;;  %v1868_v0 = vld [vmem:[#allocation2 + $0x88] sm:$0xff] }
 0x1e5   : > { %2101 = vst.msk [vmem:[#allocation2 + $0x38] sm:$0xff] %vm304_vm7, %v2069_v15  ;;  %v1861_v34 = vld [vmem:[#allocation2 + $0x50] sm:$0xff]  ;;  %v2172_v3 = vld [vmem:[#allocation2 + $0x8] sm:$0xff] }
 0x1e6   : > { %2099 = vst.msk [vmem:[#allocation2 + $0x28] sm:$0xff] %vm304_vm7, %v2067_v57  ;;  %v1859_v35 = vld [vmem:[#allocation2 + $0x40] sm:$0xff] }
 0x1e7   : > { %v1862_v5 = vld [vmem:[#allocation2 + $0x58] sm:$0xff] }
 0x1e8   : > { %v3917_v17 = vpop.f32.mrb[24].mxu1  ;;  %v1860_v46 = vld [vmem:[#allocation2 + $0x48] sm:$0xff] }
 0x1e9   : > { %v2072_v32 = vadd.f32 %v3917_v17, %v1861_v34  ;;  %v1967_v12 = vpop.f32.mrb[25].mxu1 }
 0x1ea   : > { %v2070_v39 = vadd.f32 %v1967_v12, %v1859_v35  ;;  %v3918_v2 = vpop.f32.mrb[26].mxu1  ;;  %v2177_v45 = vld [vmem:[#allocation2 + $0x30] sm:$0xff] }
 0x1eb   : > { %2104 = vst.msk [vmem:[#allocation2 + $0x50] sm:$0xff] %vm304_vm7, %v2072_v32  ;;  %v2073_v63 = vadd.f32 %v3918_v2, %v1862_v5  ;;  %v3885_v29 = vpop.f32.mrb[12].mxu0  ;;  %v1970_v23 = vpop.f32.mrb[27].mxu1  ;;  %v2175_v57 = vld [vmem:[#allocation2 + $0x20] sm:$0xff]  ;;  %v1873_v2 = vld [vmem:[#allocation2 + $0xb0] sm:$0xff] }
 0x1ec   : > { %2102 = vst.msk [vmem:[#allocation2 + $0x40] sm:$0xff] %vm304_vm7, %v2070_v39  ;;  %v1756_v52 = vadd.f32 %v3885_v29, %v1514_v55  ;;  %v2071_v24 = vadd.f32 %v1970_v23, %v1860_v46  ;;  %v1663_v13 = vpop.f32.mrb[13].mxu0  ;;  %v2178_v32 = vld [vmem:[#allocation2 + $0x38] sm:$0xff]  ;;  %v1871_v29 = vld [vmem:[#allocation2 + $0xa0] sm:$0xff] }
 0x1ed   : > { %2105 = vst.msk [vmem:[#allocation2 + $0x58] sm:$0xff] %vm304_vm7, %v2073_v63  ;;  %v1754_v27 = vadd.f32 %v1663_v13, %v1512_v51  ;;  %v3886_v36 = vpop.f32.mrb[14].mxu0  ;;  %v2176_v55 = vld [vmem:[#allocation2 + $0x28] sm:$0xff] }
 0x1ee   : > { %1788 = vst.msk [vmem:[#allocation2 + $0x70] sm:$0xff] %vm304_vm7, %v1756_v52  ;;  %2103 = vst.msk [vmem:[#allocation2 + $0x48] sm:$0xff] %vm304_vm7, %v2071_v24  ;;  %v1757_v19 = vadd.f32 %v3886_v36, %v1515_v4  ;;  %v1666_v9 = vpop.f32.mrb[15].mxu0  ;;  %v1874_v4 = vld [vmem:[#allocation2 + $0xb8] sm:$0xff]  ;;  %v1872_v13 = vld [vmem:[#allocation2 + $0xa8] sm:$0xff] }
 0x1ef   : > { %1786 = vst.msk [vmem:[#allocation2 + $0x60] sm:$0xff] %vm304_vm7, %v1754_v27  ;;  %v1755_v18 = vadd.f32 %v1666_v9, %v1513_v7 }
 0x1f0   : > { %1789 = vst.msk [vmem:[#allocation2 + $0x78] sm:$0xff] %vm304_vm7, %v1757_v19  ;;  %v3921_v33 = vpop.f32.mrb[28].mxu1 }
 0x1f1   : > { %1787 = vst.msk [vmem:[#allocation2 + $0x68] sm:$0xff] %vm304_vm7, %v1755_v18  ;;  %v1983_v14 = vpop.f32.mrb[29].mxu1 }
 0x1f2   : > { %v3922_v40 = vpop.f32.mrb[30].mxu1  ;;  %v2181_v27 = vld [vmem:[#allocation2 + $0x50] sm:$0xff] }
 0x1f3   : > { %v1986_v61 = vpop.f32.mrb[31].mxu1  ;;  %v3945_v48 = vpop.f32.mrb[16].mxu0  ;;  %v2179_v18 = vld [vmem:[#allocation2 + $0x40] sm:$0xff] }
 0x1f4   : > { %v2384_v20 = vadd.f32 %v3945_v48, %v2173_v56  ;;  %v2255_v53 = vpop.f32.mrb[17].mxu0 }
 0x1f5   : > { %v1865_v10 = vld [vmem:[#allocation2 + $0x70] sm:$0xff]  ;;  %v2382_v28 = vadd.f32 %v2255_v53, %v2171_v59  ;;  %v3946_v22 = vpop.f32.mrb[18].mxu0  ;;  %v2180_v48 = vld [vmem:[#allocation2 + $0x48] sm:$0xff] }
 0x1f6   : > { %v2076_v1 = vadd.f32 %v3921_v33, %v1865_v10  ;;  %v1863_v16 = vld [vmem:[#allocation2 + $0x60] sm:$0xff]  ;;  %2416 = vst.msk [vmem:[#allocation2 + $0x10] sm:$0xff] %vm304_vm7, %v2384_v20  ;;  %v2385_v54 = vadd.f32 %v3946_v22, %v2174_v37  ;;  %v2258_v41 = vpop.f32.mrb[19].mxu0  ;;  %v1877_v53 = vld [vmem:[#allocation2 + $0xd0] sm:$0xff] }
 0x1f7   : > { %v2074_v49 = vadd.f32 %v1983_v14, %v1863_v16  ;;  %v1866_v43 = vld [vmem:[#allocation2 + $0x78] sm:$0xff]  ;;  %2414 = vst.msk [vmem:[#allocation2] sm:$0xff] %vm304_vm7, %v2382_v28  ;;  %v2383_v42 = vadd.f32 %v2258_v41, %v2172_v3  ;;  %v1875_v37 = vld [vmem:[#allocation2 + $0xc0] sm:$0xff]  ;;  %v1876_v41 = vld [vmem:[#allocation2 + $0xc8] sm:$0xff] }
 0x1f8   : > { %2108 = vst.msk [vmem:[#allocation2 + $0x70] sm:$0xff] %vm304_vm7, %v2076_v1  ;;  %v2077_v30 = vadd.f32 %v3922_v40, %v1866_v43  ;;  %v1864_v44 = vld [vmem:[#allocation2 + $0x68] sm:$0xff]  ;;  %2417 = vst.msk [vmem:[#allocation2 + $0x18] sm:$0xff] %vm304_vm7, %v2385_v54  ;;  %v3925_v58 = vpop.f32.mrb[32].mxu1  ;;  %v2182_v40 = vld [vmem:[#allocation2 + $0x58] sm:$0xff] }
 0x1f9   : > { %2106 = vst.msk [vmem:[#allocation2 + $0x60] sm:$0xff] %vm304_vm7, %v2074_v49  ;;  %v2075_v21 = vadd.f32 %v1986_v61, %v1864_v44  ;;  %2415 = vst.msk [vmem:[#allocation2 + $0x8] sm:$0xff] %vm304_vm7, %v2383_v42  ;;  %v2080_v25 = vadd.f32 %v3925_v58, %v1869_v6  ;;  %v1999_v8 = vpop.f32.mrb[33].mxu1  ;;  %v1878_v16 = vld [vmem:[#allocation2 + $0xd8] sm:$0xff] }
 0x1fa   : > { %2109 = vst.msk [vmem:[#allocation2 + $0x78] sm:$0xff] %vm304_vm7, %v2077_v30  ;;  %v2078_v11 = vadd.f32 %v1999_v8, %v1867_v60  ;;  %v3926_v47 = vpop.f32.mrb[34].mxu1 }
 0x1fb   : > { %2107 = vst.msk [vmem:[#allocation2 + $0x68] sm:$0xff] %vm304_vm7, %v2075_v21  ;;  %2112 = vst.msk [vmem:[#allocation2 + $0x90] sm:$0xff] %vm304_vm7, %v2080_v25  ;;  %v2081_v26 = vadd.f32 %v3926_v47, %v1870_v62  ;;  %v2002_v50 = vpop.f32.mrb[35].mxu1  ;;  %v3949_v15 = vpop.f32.mrb[20].mxu0 }
 0x1fc   : > { %2110 = vst.msk [vmem:[#allocation2 + $0x80] sm:$0xff] %vm304_vm7, %v2078_v11  ;;  %v2079_v31 = vadd.f32 %v2002_v50, %v1868_v0  ;;  %v2388_v38 = vadd.f32 %v3949_v15, %v2177_v45  ;;  %v2271_v34 = vpop.f32.mrb[21].mxu0  ;;  %v1879_v45 = vld [vmem:[#allocation2 + $0xe0] sm:$0xff] }
 0x1fd   : > { %2113 = vst.msk [vmem:[#allocation2 + $0x98] sm:$0xff] %vm304_vm7, %v2081_v26  ;;  %v2386_v17 = vadd.f32 %v2271_v34, %v2175_v57  ;;  %v3950_v35 = vpop.f32.mrb[22].mxu0  ;;  %v1881_v26 = vld [vmem:[#allocation2 + $0xf0] sm:$0xff] }
 0x1fe   : > { %2111 = vst.msk [vmem:[#allocation2 + $0x88] sm:$0xff] %vm304_vm7, %v2079_v31  ;;  %2420 = vst.msk [vmem:[#allocation2 + $0x30] sm:$0xff] %vm304_vm7, %v2388_v38  ;;  %v2389_v12 = vadd.f32 %v3950_v35, %v2178_v32  ;;  %v2274_v39 = vpop.f32.mrb[23].mxu0  ;;  %v1882_v38 = vld [vmem:[#allocation2 + $0xf8] sm:$0xff] }
 0x1ff   : > { %2418 = vst.msk [vmem:[#allocation2 + $0x20] sm:$0xff] %vm304_vm7, %v2386_v17  ;;  %v2387_v5 = vadd.f32 %v2274_v39, %v2176_v55  ;;  %v2185_v43 = vld [vmem:[#allocation2 + $0x70] sm:$0xff]  ;;  %v1880_v17 = vld [vmem:[#allocation2 + $0xe8] sm:$0xff] }
 0x200   : > { %2421 = vst.msk [vmem:[#allocation2 + $0x38] sm:$0xff] %vm304_vm7, %v2389_v12  ;;  %v3929_v51 = vpop.f32.mrb[36].mxu1  ;;  %v2183_v6 = vld [vmem:[#allocation2 + $0x60] sm:$0xff] }
 0x201   : > { %2419 = vst.msk [vmem:[#allocation2 + $0x28] sm:$0xff] %vm304_vm7, %v2387_v5  ;;  %v2084_v63 = vadd.f32 %v3929_v51, %v1873_v2  ;;  %v2015_v46 = vpop.f32.mrb[37].mxu1  ;;  %v2186_v25 = vld [vmem:[#allocation2 + $0x78] sm:$0xff] }
 0x202   : > { %v2082_v23 = vadd.f32 %v2015_v46, %v1871_v29  ;;  %v3930_v52 = vpop.f32.mrb[38].mxu1  ;;  %v2184_v11 = vld [vmem:[#allocation2 + $0x68] sm:$0xff]  ;;  %v2189_v35 = vld [vmem:[#allocation2 + $0x90] sm:$0xff] }
 0x203   : > { %2116 = vst.msk [vmem:[#allocation2 + $0xb0] sm:$0xff] %vm304_vm7, %v2084_v63  ;;  %v2085_v24 = vadd.f32 %v3930_v52, %v1874_v4  ;;  %v2018_v7 = vpop.f32.mrb[39].mxu1  ;;  %v3953_v36 = vpop.f32.mrb[24].mxu0  ;;  %v2187_v5 = vld [vmem:[#allocation2 + $0x80] sm:$0xff] }
 0x204   : > { %2114 = vst.msk [vmem:[#allocation2 + $0xa0] sm:$0xff] %vm304_vm7, %v2082_v23  ;;  %v2083_v19 = vadd.f32 %v2018_v7, %v1872_v13  ;;  %v2392_v9 = vadd.f32 %v3953_v36, %v2181_v27  ;;  %v2287_v33 = vpop.f32.mrb[25].mxu0  ;;  %v2190_v63 = vld [vmem:[#allocation2 + $0x98] sm:$0xff]  ;;  %v2491_v27 = vld [vmem:[#allocation2] sm:$0xff] }
 0x205   : > { %2117 = vst.msk [vmem:[#allocation2 + $0xb8] sm:$0xff] %vm304_vm7, %v2085_v24  ;;  %v2390_v14 = vadd.f32 %v2287_v33, %v2179_v18  ;;  %v3954_v61 = vpop.f32.mrb[26].mxu0  ;;  %v2188_v23 = vld [vmem:[#allocation2 + $0x88] sm:$0xff]  ;;  %v2493_v24 = vld [vmem:[#allocation2 + $0x10] sm:$0xff] }
 0x206   : > { %2115 = vst.msk [vmem:[#allocation2 + $0xa8] sm:$0xff] %vm304_vm7, %v2083_v19  ;;  %2424 = vst.msk [vmem:[#allocation2 + $0x50] sm:$0xff] %vm304_vm7, %v2392_v9  ;;  %v2393_v56 = vadd.f32 %v3954_v61, %v2182_v40  ;;  %v2290_v20 = vpop.f32.mrb[27].mxu0  ;;  %v2494_v9 = vld [vmem:[#allocation2 + $0x18] sm:$0xff]  ;;  %v2492_v61 = vld [vmem:[#allocation2 + $0x8] sm:$0xff] }
 0x207   : > { %2422 = vst.msk [vmem:[#allocation2 + $0x40] sm:$0xff] %vm304_vm7, %v2390_v14  ;;  %v2391_v59 = vadd.f32 %v2290_v20, %v2180_v48 }
 0x208   : > { %2425 = vst.msk [vmem:[#allocation2 + $0x58] sm:$0xff] %vm304_vm7, %v2393_v56  ;;  %v3933_v10 = vpop.f32.mrb[40].mxu1 }
 0x209   : > { %2423 = vst.msk [vmem:[#allocation2 + $0x48] sm:$0xff] %vm304_vm7, %v2391_v59  ;;  %v2088_v28 = vadd.f32 %v3933_v10, %v1877_v53  ;;  %v2031_v22 = vpop.f32.mrb[41].mxu1 }
 0x20a   : > { %v2086_v1 = vadd.f32 %v2031_v22, %v1875_v37  ;;  %v3934_v54 = vpop.f32.mrb[42].mxu1  ;;  %v2193_v14 = vld [vmem:[#allocation2 + $0xb0] sm:$0xff] }
 0x20b   : > { %2120 = vst.msk [vmem:[#allocation2 + $0xd0] sm:$0xff] %vm304_vm7, %v2088_v28  ;;  %v2089_v3 = vadd.f32 %v3934_v54, %v1878_v16  ;;  %v2034_v49 = vpop.f32.mrb[43].mxu1  ;;  %v3957_v42 = vpop.f32.mrb[28].mxu0  ;;  %v2191_v59 = vld [vmem:[#allocation2 + $0xa0] sm:$0xff] }
 0x20c   : > { %2118 = vst.msk [vmem:[#allocation2 + $0xc0] sm:$0xff] %vm304_vm7, %v2086_v1  ;;  %v2087_v30 = vadd.f32 %v2034_v49, %v1876_v41  ;;  %v2396_v44 = vadd.f32 %v3957_v42, %v2185_v43  ;;  %v2303_v58 = vpop.f32.mrb[29].mxu0  ;;  %v2194_v28 = vld [vmem:[#allocation2 + $0xb8] sm:$0xff]  ;;  %v2495_v43 = vld [vmem:[#allocation2 + $0x20] sm:$0xff] }
 0x20d   : > { %2121 = vst.msk [vmem:[#allocation2 + $0xd8] sm:$0xff] %vm304_vm7, %v2089_v3  ;;  %v2394_v21 = vadd.f32 %v2303_v58, %v2183_v6  ;;  %v3958_v60 = vpop.f32.mrb[30].mxu0  ;;  %v2192_v1 = vld [vmem:[#allocation2 + $0xa8] sm:$0xff]  ;;  %v2497_v3 = vld [vmem:[#allocation2 + $0x30] sm:$0xff] }
 0x20e   : > { %2119 = vst.msk [vmem:[#allocation2 + $0xc8] sm:$0xff] %vm304_vm7, %v2087_v30  ;;  %2428 = vst.msk [vmem:[#allocation2 + $0x70] sm:$0xff] %vm304_vm7, %v2396_v44  ;;  %v2397_v8 = vadd.f32 %v3958_v60, %v2186_v25  ;;  %v2306_v62 = vpop.f32.mrb[31].mxu0  ;;  %v2498_v44 = vld [vmem:[#allocation2 + $0x38] sm:$0xff]  ;;  %v2496_v60 = vld [vmem:[#allocation2 + $0x28] sm:$0xff] }
 0x20f   : > { %2426 = vst.msk [vmem:[#allocation2 + $0x60] sm:$0xff] %vm304_vm7, %v2394_v21  ;;  %v2395_v47 = vadd.f32 %v2306_v62, %v2184_v11 }
 0x210   : > { %2429 = vst.msk [vmem:[#allocation2 + $0x78] sm:$0xff] %vm304_vm7, %v2397_v8  ;;  %v3937_v0 = vpop.f32.mrb[44].mxu1 }
 0x211   : > { %2427 = vst.msk [vmem:[#allocation2 + $0x68] sm:$0xff] %vm304_vm7, %v2395_v47  ;;  %v2092_v50 = vadd.f32 %v3937_v0, %v1881_v26  ;;  %v2047_v15 = vpop.f32.mrb[45].mxu1 }
 0x212   : > { %v2090_v31 = vadd.f32 %v2047_v15, %v1879_v45  ;;  %v3938_v57 = vpop.f32.mrb[46].mxu1  ;;  %v2197_v21 = vld [vmem:[#allocation2 + $0xd0] sm:$0xff] }
 0x213   : > { %2124 = vst.msk [vmem:[#allocation2 + $0xf0] sm:$0xff] %vm304_vm7, %v2092_v50  ;;  %v2093_v34 = vadd.f32 %v3938_v57, %v1882_v38  ;;  %v2050_v32 = vpop.f32.mrb[47].mxu1  ;;  %v3961_v12 = vpop.f32.mrb[32].mxu0  ;;  %v2195_v47 = vld [vmem:[#allocation2 + $0xc0] sm:$0xff] }
 0x214   : > { %2122 = vst.msk [vmem:[#allocation2 + $0xe0] sm:$0xff] %vm304_vm7, %v2090_v31  ;;  %v2091_v55 = vadd.f32 %v2050_v32, %v1880_v17  ;;  %v2400_v39 = vadd.f32 %v3961_v12, %v2189_v35  ;;  %v2319_v2 = vpop.f32.mrb[33].mxu0  ;;  %v2198_v50 = vld [vmem:[#allocation2 + $0xd8] sm:$0xff]  ;;  %v2499_v35 = vld [vmem:[#allocation2 + $0x40] sm:$0xff] }
 0x215   : > { %2125 = vst.msk [vmem:[#allocation2 + $0xf8] sm:$0xff] %vm304_vm7, %v2093_v34  ;;  %v2398_v51 = vadd.f32 %v2319_v2, %v2187_v5  ;;  %v3962_v29 = vpop.f32.mrb[34].mxu0  ;;  %v2196_v31 = vld [vmem:[#allocation2 + $0xc8] sm:$0xff]  ;;  %v2501_v34 = vld [vmem:[#allocation2 + $0x50] sm:$0xff] }
 0x216   : > { %2123 = vst.msk [vmem:[#allocation2 + $0xe8] sm:$0xff] %vm304_vm7, %v2091_v55  ;;  %2432 = vst.msk [vmem:[#allocation2 + $0x90] sm:$0xff] %vm304_vm7, %v2400_v39  ;;  %v2401_v46 = vadd.f32 %v3962_v29, %v2190_v63  ;;  %v2322_v4 = vpop.f32.mrb[35].mxu0  ;;  %v2502_v39 = vld [vmem:[#allocation2 + $0x58] sm:$0xff]  ;;  %v2500_v29 = vld [vmem:[#allocation2 + $0x48] sm:$0xff] }
 0x217   : > { %2430 = vst.msk [vmem:[#allocation2 + $0x80] sm:$0xff] %vm304_vm7, %v2398_v51  ;;  %v2399_v52 = vadd.f32 %v2322_v4, %v2188_v23 }
 0x218   : > { %2433 = vst.msk [vmem:[#allocation2 + $0x98] sm:$0xff] %vm304_vm7, %v2401_v46  ;;  %v3981_v13 = vpop.f32.mrb[48].mxu1 }
 0x219   : > { %2431 = vst.msk [vmem:[#allocation2 + $0x88] sm:$0xff] %vm304_vm7, %v2399_v52  ;;  %v2704_v7 = vadd.f32 %v3981_v13, %v2493_v24  ;;  %v2575_v36 = vpop.f32.mrb[49].mxu1 }
 0x21a   : > { %v2702_v19 = vadd.f32 %v2575_v36, %v2491_v27  ;;  %v3982_v18 = vpop.f32.mrb[50].mxu1  ;;  %v2201_v51 = vld [vmem:[#allocation2 + $0xf0] sm:$0xff] }
 0x21b   : > { %2736 = vst.msk [vmem:[#allocation2 + $0x10] sm:$0xff] %vm304_vm7, %v2704_v7  ;;  %v2705_v33 = vadd.f32 %v3982_v18, %v2494_v9  ;;  %v3965_v40 = vpop.f32.mrb[36].mxu0  ;;  %v2578_v56 = vpop.f32.mrb[51].mxu1  ;;  %v2199_v52 = vld [vmem:[#allocation2 + $0xe0] sm:$0xff] }
 0x21c   : > { %2734 = vst.msk [vmem:[#allocation2] sm:$0xff] %vm304_vm7, %v2702_v19  ;;  %v2404_v48 = vadd.f32 %v3965_v40, %v2193_v14  ;;  %v2703_v20 = vadd.f32 %v2578_v56, %v2492_v61  ;;  %v2335_v53 = vpop.f32.mrb[37].mxu0  ;;  %v2202_v7 = vld [vmem:[#allocation2 + $0xf8] sm:$0xff]  ;;  %v2503_v61 = vld [vmem:[#allocation2 + $0x60] sm:$0xff] }
 0x21d   : > { %2737 = vst.msk [vmem:[#allocation2 + $0x18] sm:$0xff] %vm304_vm7, %v2705_v33  ;;  %v2402_v10 = vadd.f32 %v2335_v53, %v2191_v59  ;;  %v3966_v37 = vpop.f32.mrb[38].mxu0  ;;  %v2200_v19 = vld [vmem:[#allocation2 + $0xe8] sm:$0xff]  ;;  %v2505_v33 = vld [vmem:[#allocation2 + $0x70] sm:$0xff] }
 0x21e   : > { %2436 = vst.msk [vmem:[#allocation2 + $0xb0] sm:$0xff] %vm304_vm7, %v2404_v48  ;;  %2735 = vst.msk [vmem:[#allocation2 + $0x8] sm:$0xff] %vm304_vm7, %v2703_v20  ;;  %v2405_v22 = vadd.f32 %v3966_v37, %v2194_v28  ;;  %v2338_v16 = vpop.f32.mrb[39].mxu0  ;;  %v2506_v20 = vld [vmem:[#allocation2 + $0x78] sm:$0xff] }
 0x21f   : > { %2434 = vst.msk [vmem:[#allocation2 + $0xa0] sm:$0xff] %vm304_vm7, %v2402_v10  ;;  %v2403_v54 = vadd.f32 %v2338_v16, %v2192_v1  ;;  %v2504_v10 = vld [vmem:[#allocation2 + $0x68] sm:$0xff] }
 0x220   : > { %2437 = vst.msk [vmem:[#allocation2 + $0xb8] sm:$0xff] %vm304_vm7, %v2405_v22  ;;  %v3985_v41 = vpop.f32.mrb[52].mxu1 }
 0x221   : > { %2435 = vst.msk [vmem:[#allocation2 + $0xa8] sm:$0xff] %vm304_vm7, %v2403_v54  ;;  %v2708_v49 = vadd.f32 %v3985_v41, %v2497_v3  ;;  %v2591_v42 = vpop.f32.mrb[53].mxu1 }
 0x222   : > { %v2706_v30 = vadd.f32 %v2591_v42, %v2495_v43  ;;  %v3986_v6 = vpop.f32.mrb[54].mxu1  ;;  %v2813_v37 = vld [vmem:[#allocation2 + $0x10] sm:$0xff] }
 0x223   : > { %2740 = vst.msk [vmem:[#allocation2 + $0x30] sm:$0xff] %vm304_vm7, %v2708_v49  ;;  %v2709_v58 = vadd.f32 %v3986_v6, %v2498_v44  ;;  %v3969_v25 = vpop.f32.mrb[40].mxu0  ;;  %v2594_v8 = vpop.f32.mrb[55].mxu1  ;;  %v2811_v54 = vld [vmem:[#allocation2] sm:$0xff] }
 0x224   : > { %2738 = vst.msk [vmem:[#allocation2 + $0x20] sm:$0xff] %vm304_vm7, %v2706_v30  ;;  %v2408_v11 = vadd.f32 %v3969_v25, %v2197_v21  ;;  %v2707_v62 = vadd.f32 %v2594_v8, %v2496_v60  ;;  %v2351_v26 = vpop.f32.mrb[41].mxu0  ;;  %v2814_v49 = vld [vmem:[#allocation2 + $0x18] sm:$0xff]  ;;  %v2507_v60 = vld [vmem:[#allocation2 + $0x80] sm:$0xff] }
 0x225   : > { %2741 = vst.msk [vmem:[#allocation2 + $0x38] sm:$0xff] %vm304_vm7, %v2709_v58  ;;  %v2406_v0 = vadd.f32 %v2351_v26, %v2195_v47  ;;  %v3970_v45 = vpop.f32.mrb[42].mxu0  ;;  %v2812_v30 = vld [vmem:[#allocation2 + $0x8] sm:$0xff]  ;;  %v2509_v58 = vld [vmem:[#allocation2 + $0x90] sm:$0xff] }
 0x226   : > { %2440 = vst.msk [vmem:[#allocation2 + $0xd0] sm:$0xff] %vm304_vm7, %v2408_v11  ;;  %2739 = vst.msk [vmem:[#allocation2 + $0x28] sm:$0xff] %vm304_vm7, %v2707_v62  ;;  %v2409_v15 = vadd.f32 %v3970_v45, %v2198_v50  ;;  %v2354_v38 = vpop.f32.mrb[43].mxu0  ;;  %v2510_v62 = vld [vmem:[#allocation2 + $0x98] sm:$0xff] }
 0x227   : > { %2438 = vst.msk [vmem:[#allocation2 + $0xc0] sm:$0xff] %vm304_vm7, %v2406_v0  ;;  %v2407_v57 = vadd.f32 %v2354_v38, %v2196_v31  ;;  %v2508_v0 = vld [vmem:[#allocation2 + $0x88] sm:$0xff] }
 0x228   : > { %2441 = vst.msk [vmem:[#allocation2 + $0xd8] sm:$0xff] %vm304_vm7, %v2409_v15  ;;  %v3989_v17 = vpop.f32.mrb[56].mxu1 }
 0x229   : > { %2439 = vst.msk [vmem:[#allocation2 + $0xc8] sm:$0xff] %vm304_vm7, %v2407_v57  ;;  %v2712_v32 = vadd.f32 %v3989_v17, %v2501_v34  ;;  %v2607_v12 = vpop.f32.mrb[57].mxu1 }
 0x22a   : > { %v2710_v55 = vadd.f32 %v2607_v12, %v2499_v35  ;;  %v3990_v5 = vpop.f32.mrb[58].mxu1  ;;  %v2817_v45 = vld [vmem:[#allocation2 + $0x30] sm:$0xff] }
 0x22b   : > { %2744 = vst.msk [vmem:[#allocation2 + $0x50] sm:$0xff] %vm304_vm7, %v2712_v32  ;;  %v2713_v2 = vadd.f32 %v3990_v5, %v2502_v39  ;;  %v3973_v63 = vpop.f32.mrb[44].mxu0  ;;  %v2610_v46 = vpop.f32.mrb[59].mxu1  ;;  %v2815_v57 = vld [vmem:[#allocation2 + $0x20] sm:$0xff] }
 0x22c   : > { %2742 = vst.msk [vmem:[#allocation2 + $0x40] sm:$0xff] %vm304_vm7, %v2710_v55  ;;  %v2412_v23 = vadd.f32 %v3973_v63, %v2201_v51  ;;  %v2711_v4 = vadd.f32 %v2610_v46, %v2500_v29  ;;  %v2367_v24 = vpop.f32.mrb[45].mxu0  ;;  %v2818_v35 = vld [vmem:[#allocation2 + $0x38] sm:$0xff] }
 0x22d   : > { %2745 = vst.msk [vmem:[#allocation2 + $0x58] sm:$0xff] %vm304_vm7, %v2713_v2  ;;  %v2410_v13 = vadd.f32 %v2367_v24, %v2199_v52  ;;  %v3974_v27 = vpop.f32.mrb[46].mxu0  ;;  %v2816_v2 = vld [vmem:[#allocation2 + $0x28] sm:$0xff] }
 0x22e   : > { %2444 = vst.msk [vmem:[#allocation2 + $0xf0] sm:$0xff] %vm304_vm7, %v2412_v23  ;;  %2743 = vst.msk [vmem:[#allocation2 + $0x48] sm:$0xff] %vm304_vm7, %v2711_v4  ;;  %v2413_v36 = vadd.f32 %v3974_v27, %v2202_v7  ;;  %v2370_v9 = vpop.f32.mrb[47].mxu0 }
 0x22f   : > { %2442 = vst.msk [vmem:[#allocation2 + $0xe0] sm:$0xff] %vm304_vm7, %v2410_v13  ;;  %v2411_v18 = vadd.f32 %v2370_v9, %v2200_v19  ;;  %v2513_v9 = vld [vmem:[#allocation2 + $0xb0] sm:$0xff] }
 0x230   : > { %2445 = vst.msk [vmem:[#allocation2 + $0xf8] sm:$0xff] %vm304_vm7, %v2413_v36  ;;  %v3993_v14 = vpop.f32.mrb[60].mxu1 }
 0x231   : > { %2443 = vst.msk [vmem:[#allocation2 + $0xe8] sm:$0xff] %vm304_vm7, %v2411_v18  ;;  %v2716_v40 = vadd.f32 %v3993_v14, %v2505_v33  ;;  %v2623_v56 = vpop.f32.mrb[61].mxu1  ;;  %v2511_v18 = vld [vmem:[#allocation2 + $0xa0] sm:$0xff] }
 0x232   : > { %v2714_v48 = vadd.f32 %v2623_v56, %v2503_v61  ;;  %v3994_v59 = vpop.f32.mrb[62].mxu1 }
 0x233   : > { %2748 = vst.msk [vmem:[#allocation2 + $0x70] sm:$0xff] %vm304_vm7, %v2716_v40  ;;  %v2717_v53 = vadd.f32 %v3994_v59, %v2506_v20  ;;  %v2626_v28 = vpop.f32.mrb[63].mxu1  ;;  %v4017_v22 = vpop.f32.mrb[48].mxu0  ;;  %v2512_v59 = vld [vmem:[#allocation2 + $0xa8] sm:$0xff] }
 0x234   : > { %2746 = vst.msk [vmem:[#allocation2 + $0x60] sm:$0xff] %vm304_vm7, %v2714_v48  ;;  %v2715_v1 = vadd.f32 %v2626_v28, %v2504_v10  ;;  %v3024_v16 = vadd.f32 %v4017_v22, %v2813_v37  ;;  %v2895_v3 = vpop.f32.mrb[49].mxu0  ;;  %v2514_v48 = vld [vmem:[#allocation2 + $0xb8] sm:$0xff] }
 0x235   : > { %2749 = vst.msk [vmem:[#allocation2 + $0x78] sm:$0xff] %vm304_vm7, %v2717_v53  ;;  %v3022_v41 = vadd.f32 %v2895_v3, %v2811_v54  ;;  %v4018_v43 = vpop.f32.mrb[50].mxu0 }
 0x236   : > { %2747 = vst.msk [vmem:[#allocation2 + $0x68] sm:$0xff] %vm304_vm7, %v2715_v1  ;;  %3056 = vst.msk [vmem:[#allocation2 + $0x10] sm:$0xff] %vm304_vm7, %v3024_v16  ;;  %v3025_v42 = vadd.f32 %v4018_v43, %v2814_v49  ;;  %v2898_v44 = vpop.f32.mrb[51].mxu0  ;;  %v2821_v1 = vld [vmem:[#allocation2 + $0x50] sm:$0xff]  ;;  %v2819_v43 = vld [vmem:[#allocation2 + $0x40] sm:$0xff] }
 0x237   : > { %3054 = vst.msk [vmem:[#allocation2] sm:$0xff] %vm304_vm7, %v3022_v41  ;;  %v3023_v6 = vadd.f32 %v2898_v44, %v2812_v30 }
 0x238   : > { %3057 = vst.msk [vmem:[#allocation2 + $0x18] sm:$0xff] %vm304_vm7, %v3025_v42  ;;  %v3997_v21 = vpop.f32.mrb[64].mxu1 }
 0x239   : > { %3055 = vst.msk [vmem:[#allocation2 + $0x8] sm:$0xff] %vm304_vm7, %v3023_v6  ;;  %v2720_v25 = vadd.f32 %v3997_v21, %v2509_v58  ;;  %v2639_v8 = vpop.f32.mrb[65].mxu1 }
 0x23a   : > { %v2718_v11 = vadd.f32 %v2639_v8, %v2507_v60  ;;  %v3998_v47 = vpop.f32.mrb[66].mxu1 }
 0x23b   : > { %2752 = vst.msk [vmem:[#allocation2 + $0x90] sm:$0xff] %vm304_vm7, %v2720_v25  ;;  %v2721_v26 = vadd.f32 %v3998_v47, %v2510_v62  ;;  %v2642_v50 = vpop.f32.mrb[67].mxu1  ;;  %v4021_v15 = vpop.f32.mrb[52].mxu0 }
 0x23c   : > { %2750 = vst.msk [vmem:[#allocation2 + $0x80] sm:$0xff] %vm304_vm7, %v2718_v11  ;;  %v2719_v31 = vadd.f32 %v2642_v50, %v2508_v0  ;;  %v3028_v38 = vadd.f32 %v4021_v15, %v2817_v45  ;;  %v2911_v34 = vpop.f32.mrb[53].mxu0 }
 0x23d   : > { %v3088_v17 = vld [vmem:[#allocation2 + $0x10] sm:$0xff]  ;;  %2753 = vst.msk [vmem:[#allocation2 + $0x98] sm:$0xff] %vm304_vm7, %v2721_v26  ;;  %v3026_v32 = vadd.f32 %v2911_v34, %v2815_v57  ;;  %v4022_v12 = vpop.f32.mrb[54].mxu0 }
 0x23e   : > { %v3707_v55 = vpack.c.bf16 %v3088_v17, %v3088_v17  ;;  %v3086_v39 = vld [vmem:[#allocation2] sm:$0xff]  ;;  %2751 = vst.msk [vmem:[#allocation2 + $0x88] sm:$0xff] %vm304_vm7, %v2719_v31  ;;  %3060 = vst.msk [vmem:[#allocation2 + $0x30] sm:$0xff] %vm304_vm7, %v3028_v38  ;;  %v3029_v5 = vadd.f32 %v4022_v12, %v2818_v35  ;;  %v2914_v51 = vpop.f32.mrb[55].mxu0  ;;  %v3352_v4 = vmul.f32 %v3088_v17, %v3088_v17  ;;  %v3282_v53 = vsel %vm304_vm7, %v3088_v17, 0.0 }
 0x23f   : > { %v3705_v63 = vpack.c.bf16 %v3086_v39, %v3086_v39  ;;  %v3350_v29 = vmul.f32 %v3086_v39, %v3086_v39  ;;  %v3089_v46 = vld [vmem:[#allocation2 + $0x18] sm:$0xff]  ;;  %3058 = vst.msk [vmem:[#allocation2 + $0x20] sm:$0xff] %vm304_vm7, %v3026_v32  ;;  %v3027_v23 = vadd.f32 %v2914_v51, %v2816_v2  ;;  %v3279_v7 = vsel %vm304_vm7, %v3086_v39, 0.0 }
 0x240   : > { %3249 = vst.msk [vmem:[%s5280_s23 + $0x8] sm:$0xf] %vm3246_vm12, %v3707_v55  ;;  %v3708_v52 = vpack.c.bf16 %v3089_v46, %v3089_v46  ;;  %v3087_v24 = vld [vmem:[#allocation2 + $0x8] sm:$0xff]  ;;  %v4001_v13 = vpop.f32.mrb[68].mxu1  ;;  %v3353_v14 = vmul.f32 %v3089_v46, %v3089_v46  ;;  %v3385_v30 = vsel %vm304_vm7, %v3352_v4, 0.0  ;;  %v3284_v21 = vsel %vm304_vm7, %v3089_v46, 0.0 }
 0x241   : > { %3061 = vst.msk [vmem:[#allocation2 + $0x38] sm:$0xff] %vm304_vm7, %v3029_v5  ;;  %v3706_v27 = vpack.c.bf16 %v3087_v24, %v3087_v24  ;;  %v3280_v36 = vsel %vm304_vm7, %v3087_v24, 0.0  ;;  %v3351_v19 = vmul.f32 %v3087_v24, %v3087_v24  ;;  %3059 = vst.msk [vmem:[#allocation2 + $0x28] sm:$0xff] %vm304_vm7, %v3027_v23  ;;  %v2655_v33 = vpop.f32.mrb[69].mxu1  ;;  %v2724_v61 = vadd.f32 %v4001_v13, %v2513_v9  ;;  %v2822_v55 = vld [vmem:[#allocation2 + $0x58] sm:$0xff]  ;;  %v2517_v46 = vld [vmem:[#allocation2 + $0xd0] sm:$0xff] }
 0x242   : > { %3247 = vst.msk [vmem:[%s5280_s23] sm:$0xf] %vm3246_vm12, %v3705_v63  ;;  %3250 = vst.msk [vmem:[%s5280_s23 + $0xc] sm:$0xf] %vm3246_vm12, %v3708_v52  ;;  %v3281_v40 = vadd.f32 %v3280_v36, %v3279_v7  ;;  %v2722_v56 = vadd.f32 %v2655_v33, %v2511_v18  ;;  %v4002_v20 = vpop.f32.mrb[70].mxu1  ;;  %v3382_v10 = vsel %vm304_vm7, %v3350_v29, 0.0 }
 0x243   : > { %3248 = vst.msk [vmem:[%s5280_s23 + $0x4] sm:$0xf] %vm3246_vm12, %v3706_v27  ;;  %v3383_v28 = vsel %vm304_vm7, %v3351_v19, 0.0  ;;  %v2725_v37 = vadd.f32 %v4002_v20, %v2514_v48  ;;  %v2658_v22 = vpop.f32.mrb[71].mxu1  ;;  %v4025_v16 = vpop.f32.mrb[56].mxu0  ;;  %v3387_v25 = vsel %vm304_vm7, %v3353_v14, 0.0 }
 0x244   : > { %v3283_v54 = vadd.f32 %v3282_v53, %v3281_v40  ;;  %v3384_v3 = vadd.f32 %v3383_v28, %v3382_v10  ;;  %2756 = vst.msk [vmem:[#allocation2 + $0xb0] sm:$0xff] %vm304_vm7, %v2724_v61  ;;  %2754 = vst.msk [vmem:[#allocation2 + $0xa0] sm:$0xff] %vm304_vm7, %v2722_v56  ;;  %v2723_v41 = vadd.f32 %v2658_v22, %v2512_v59  ;;  %v2927_v42 = vpop.f32.mrb[57].mxu0  ;;  %v2820_v29 = vld [vmem:[#allocation2 + $0x48] sm:$0xff]  ;;  %v2515_v7 = vld [vmem:[#allocation2 + $0xc0] sm:$0xff] }
 0x245   : > { %v3032_v49 = vadd.f32 %v4025_v16, %v2821_v1  ;;  %v3092_v44 = vld [vmem:[#allocation2 + $0x30] sm:$0xff]  ;;  %2757 = vst.msk [vmem:[#allocation2 + $0xb8] sm:$0xff] %vm304_vm7, %v2725_v37  ;;  %v3030_v6 = vadd.f32 %v2927_v42, %v2819_v43  ;;  %v4026_v58 = vpop.f32.mrb[58].mxu0  ;;  %v2518_v27 = vld [vmem:[#allocation2 + $0xd8] sm:$0xff]  ;;  %v2516_v36 = vld [vmem:[#allocation2 + $0xc8] sm:$0xff] }
 0x246   : > { %v3386_v60 = vadd.f32 %v3385_v30, %v3384_v3  ;;  %v3711_v8 = vpack.c.bf16 %v3092_v44, %v3092_v44  ;;  %v3090_v11 = vld [vmem:[#allocation2 + $0x20] sm:$0xff]  ;;  %2755 = vst.msk [vmem:[#allocation2 + $0xa8] sm:$0xff] %vm304_vm7, %v2723_v41  ;;  %v2930_v62 = vpop.f32.mrb[59].mxu0  ;;  %v3285_v26 = vadd.f32 %v3284_v21, %v3283_v54  ;;  %v3290_v15 = vsel %vm304_vm7, %v3092_v44, 0.0  ;;  %v2825_v61 = vld [vmem:[#allocation2 + $0x70] sm:$0xff]  ;;  %v2826_v37 = vld [vmem:[#allocation2 + $0x78] sm:$0xff] }
 0x247   : > { %3064 = vst.msk [vmem:[#allocation2 + $0x50] sm:$0xff] %vm304_vm7, %v3032_v49  ;;  %v3709_v47 = vpack.c.bf16 %v3090_v11, %v3090_v11  ;;  %v3286_v0 = vsel %vm304_vm7, %v3090_v11, 0.0  ;;  %v3354_v50 = vmul.f32 %v3090_v11, %v3090_v11  ;;  %3062 = vst.msk [vmem:[#allocation2 + $0x40] sm:$0xff] %vm304_vm7, %v3030_v6  ;;  %v3356_v17 = vmul.f32 %v3092_v44, %v3092_v44  ;;  %v2823_v56 = vld [vmem:[#allocation2 + $0x60] sm:$0xff]  ;;  %v2824_v6 = vld [vmem:[#allocation2 + $0x68] sm:$0xff] }
 0x248   : > { %v3093_v45 = vld [vmem:[#allocation2 + $0x38] sm:$0xff]  ;;  %3253 = vst.msk [vmem:[%s5280_s23 + $0x18] sm:$0xf] %vm3246_vm12, %v3711_v8  ;;  %v3388_v31 = vadd.f32 %v3387_v25, %v3386_v60  ;;  %v3091_v57 = vld [vmem:[#allocation2 + $0x28] sm:$0xff]  ;;  %v4005_v34 = vpop.f32.mrb[72].mxu1  ;;  %v3287_v32 = vadd.f32 %v3286_v0, %v3285_v26  ;;  %v3033_v63 = vadd.f32 %v4026_v58, %v2822_v55  ;;  %v3031_v24 = vadd.f32 %v2930_v62, %v2820_v29  ;;  %v2521_v60 = vld [vmem:[#allocation2 + $0xf0] sm:$0xff] }
 0x249   : > { %v3712_v38 = vpack.c.bf16 %v3093_v45, %v3093_v45  ;;  %3251 = vst.msk [vmem:[%s5280_s23 + $0x10] sm:$0xf] %vm3246_vm12, %v3709_v47  ;;  %v3389_v35 = vsel %vm304_vm7, %v3354_v50, 0.0  ;;  %v3710_v12 = vpack.c.bf16 %v3091_v57, %v3091_v57  ;;  %v2671_v39 = vpop.f32.mrb[73].mxu1  ;;  %v3288_v2 = vsel %vm304_vm7, %v3091_v57, 0.0  ;;  %v2519_v47 = vld [vmem:[#allocation2 + $0xe0] sm:$0xff] }
 0x24a   : > { %v3390_v5 = vadd.f32 %v3389_v35, %v3388_v31  ;;  %v3355_v51 = vmul.f32 %v3091_v57, %v3091_v57  ;;  %v4006_v23 = vpop.f32.mrb[74].mxu1  ;;  %v3357_v4 = vmul.f32 %v3093_v45, %v3093_v45  ;;  %v3289_v52 = vadd.f32 %v3288_v2, %v3287_v32  ;;  %3065 = vst.msk [vmem:[#allocation2 + $0x58] sm:$0xff] %vm304_vm7, %v3033_v63  ;;  %v2829_v2 = vld [vmem:[#allocation2 + $0x90] sm:$0xff] }
 0x24b   : > { %3254 = vst.msk [vmem:[%s5280_s23 + $0x1c] sm:$0xf] %vm3246_vm12, %v3712_v38  ;;  %3252 = vst.msk [vmem:[%s5280_s23 + $0x14] sm:$0xf] %vm3246_vm12, %v3710_v12  ;;  %v2728_v13 = vadd.f32 %v4005_v34, %v2517_v46  ;;  %v2674_v19 = vpop.f32.mrb[75].mxu1  ;;  %v4029_v9 = vpop.f32.mrb[60].mxu0  ;;  %v2726_v33 = vadd.f32 %v2671_v39, %v2515_v7  ;;  %v2729_v14 = vadd.f32 %v4006_v23, %v2518_v27 }
 0x24c   : > { %v3391_v18 = vsel %vm304_vm7, %v3355_v51, 0.0  ;;  %v2727_v40 = vadd.f32 %v2674_v19, %v2516_v36  ;;  %v2943_v48 = vpop.f32.mrb[61].mxu0  ;;  %v3291_v20 = vadd.f32 %v3290_v15, %v3289_v52  ;;  %3063 = vst.msk [vmem:[#allocation2 + $0x48] sm:$0xff] %vm304_vm7, %v3031_v24  ;;  %v3036_v10 = vadd.f32 %v4029_v9, %v2825_v61  ;;  %v2522_v15 = vld [vmem:[#allocation2 + $0xf8] sm:$0xff]  ;;  %v2520_v34 = vld [vmem:[#allocation2 + $0xe8] sm:$0xff] }
 0x24d   : > { %v3392_v59 = vadd.f32 %v3391_v18, %v3390_v5  ;;  %2760 = vst.msk [vmem:[#allocation2 + $0xd0] sm:$0xff] %vm304_vm7, %v2728_v13  ;;  %v3034_v28 = vadd.f32 %v2943_v48, %v2823_v56  ;;  %v4030_v22 = vpop.f32.mrb[62].mxu0  ;;  %v3393_v1 = vsel %vm304_vm7, %v3356_v17, 0.0  ;;  %v3292_v16 = vsel %vm304_vm7, %v3093_v45, 0.0  ;;  %2758 = vst.msk [vmem:[#allocation2 + $0xc0] sm:$0xff] %vm304_vm7, %v2726_v33  ;;  %v2830_v52 = vld [vmem:[#allocation2 + $0x98] sm:$0xff] }
 0x24e   : > { %v5324_v53 = vld [vmem:[#allocation2 + $0x50] sm:$0xff]  ;;  %v3094_v3 = vld [vmem:[#allocation2 + $0x40] sm:$0xff]  ;;  %2761 = vst.msk [vmem:[#allocation2 + $0xd8] sm:$0xff] %vm304_vm7, %v2729_v14  ;;  %2759 = vst.msk [vmem:[#allocation2 + $0xc8] sm:$0xff] %vm304_vm7, %v2727_v40  ;;  %v3037_v41 = vadd.f32 %v4030_v22, %v2826_v37  ;;  %v2946_v49 = vpop.f32.mrb[63].mxu0  ;;  %v3293_v30 = vadd.f32 %v3292_v16, %v3291_v20  ;;  %v3395_v58 = vsel %vm304_vm7, %v3357_v4, 0.0 }
 0x24f   : > { %v3715_v54 = vpack.c.bf16 %v5324_v53, %v5324_v53  ;;  %v3394_v43 = vadd.f32 %v3393_v1, %v3392_v59  ;;  %v3713_v42 = vpack.c.bf16 %v3094_v3, %v3094_v3  ;;  %v3294_v44 = vsel %vm304_vm7, %v3094_v3, 0.0  ;;  %3068 = vst.msk [vmem:[#allocation2 + $0x70] sm:$0xff] %vm304_vm7, %v3036_v10  ;;  %3066 = vst.msk [vmem:[#allocation2 + $0x60] sm:$0xff] %vm304_vm7, %v3034_v28  ;;  %v2827_v4 = vld [vmem:[#allocation2 + $0x80] sm:$0xff] }
 0x250   : > { %v3358_v21 = vmul.f32 %v3094_v3, %v3094_v3  ;;  %3069 = vst.msk [vmem:[#allocation2 + $0x78] sm:$0xff] %vm304_vm7, %v3037_v41  ;;  %v3035_v25 = vadd.f32 %v2946_v49, %v2824_v6  ;;  %v4009_v8 = vpop.f32.mrb[76].mxu1  ;;  %v3295_v0 = vadd.f32 %v3294_v44, %v3293_v30  ;;  %v3360_v35 = vmul.f32 %v5324_v53, %v5324_v53  ;;  %v2828_v41 = vld [vmem:[#allocation2 + $0x88] sm:$0xff]  ;;  %v2833_v44 = vld [vmem:[#allocation2 + $0xb0] sm:$0xff] }
 0x251   : > { %3257 = vst.msk [vmem:[%s5280_s23 + $0x28] sm:$0xf] %vm3246_vm12, %v3715_v54  ;;  %3255 = vst.msk [vmem:[%s5280_s23 + $0x20] sm:$0xf] %vm3246_vm12, %v3713_v42  ;;  %v3396_v11 = vadd.f32 %v3395_v58, %v3394_v43  ;;  %v2732_v62 = vadd.f32 %v4009_v8, %v2521_v60  ;;  %v2687_v26 = vpop.f32.mrb[77].mxu1  ;;  %v3097_v38 = vld [vmem:[#allocation2 + $0x58] sm:$0xff] }
 0x252   : > { %v3397_v50 = vsel %vm304_vm7, %v3358_v21, 0.0  ;;  %3067 = vst.msk [vmem:[#allocation2 + $0x68] sm:$0xff] %vm304_vm7, %v3035_v25  ;;  %v2730_v45 = vadd.f32 %v2687_v26, %v2519_v47  ;;  %v4010_v31 = vpop.f32.mrb[78].mxu1  ;;  %v3716_v55 = vpack.c.bf16 %v3097_v38, %v3097_v38  ;;  %v3361_v13 = vmul.f32 %v3097_v38, %v3097_v38  ;;  %v2831_v8 = vld [vmem:[#allocation2 + $0xa0] sm:$0xff]  ;;  %v2834_v26 = vld [vmem:[#allocation2 + $0xb8] sm:$0xff] }
 0x253   : > { %2764 = vst.msk [vmem:[#allocation2 + $0xf0] sm:$0xff] %vm304_vm7, %v2732_v62  ;;  %v2733_v57 = vadd.f32 %v4010_v31, %v2522_v15  ;;  %v2690_v17 = vpop.f32.mrb[79].mxu1  ;;  %v4033_v32 = vpop.f32.mrb[64].mxu0  ;;  %v3398_v12 = vadd.f32 %v3397_v50, %v3396_v11  ;;  %v3095_v39 = vld [vmem:[#allocation2 + $0x48] sm:$0xff]  ;;  %v3298_v33 = vsel %vm304_vm7, %v5324_v53, 0.0  ;;  %v3401_v56 = vsel %vm304_vm7, %v3360_v35, 0.0 }
 0x254   : > { %2762 = vst.msk [vmem:[#allocation2 + $0xe0] sm:$0xff] %vm304_vm7, %v2730_v45  ;;  %v2731_v5 = vadd.f32 %v2690_v17, %v2520_v34  ;;  %v2959_v51 = vpop.f32.mrb[65].mxu0  ;;  %v3714_v63 = vpack.c.bf16 %v3095_v39, %v3095_v39  ;;  %v3296_v29 = vsel %vm304_vm7, %v3095_v39, 0.0  ;;  %v3359_v46 = vmul.f32 %v3095_v39, %v3095_v39 }
 0x255   : > { %2765 = vst.msk [vmem:[#allocation2 + $0xf8] sm:$0xff] %vm304_vm7, %v2733_v57  ;;  %v3040_v23 = vadd.f32 %v4033_v32, %v2829_v2  ;;  %v4034_v24 = vpop.f32.mrb[66].mxu0  ;;  %v3297_v7 = vadd.f32 %v3296_v29, %v3295_v0  ;;  %v3038_v19 = vadd.f32 %v2959_v51, %v2827_v4  ;;  %v3300_v53 = vsel %vm304_vm7, %v3097_v38, 0.0  ;;  %v2832_v38 = vld [vmem:[#allocation2 + $0xa8] sm:$0xff] }
 0x256   : > { %3258 = vst.msk [vmem:[%s5280_s23 + $0x2c] sm:$0xf] %vm3246_vm12, %v3716_v55  ;;  %v3100_v27 = vld [vmem:[#allocation2 + $0x70] sm:$0xff]  ;;  %v3098_v36 = vld [vmem:[#allocation2 + $0x60] sm:$0xff]  ;;  %v3041_v9 = vadd.f32 %v4034_v24, %v2830_v52  ;;  %v2962_v18 = vpop.f32.mrb[67].mxu0  ;;  %v3399_v14 = vsel %vm304_vm7, %v3359_v46, 0.0 }
 0x257   : > { %2763 = vst.msk [vmem:[#allocation2 + $0xe8] sm:$0xff] %vm304_vm7, %v2731_v5  ;;  %v3719_v40 = vpack.c.bf16 %v3100_v27, %v3100_v27  ;;  %v3101_v61 = vld [vmem:[#allocation2 + $0x78] sm:$0xff]  ;;  %3072 = vst.msk [vmem:[#allocation2 + $0x90] sm:$0xff] %vm304_vm7, %v3040_v23  ;;  %v3299_v48 = vadd.f32 %v3298_v33, %v3297_v7  ;;  %v3400_v20 = vadd.f32 %v3399_v14, %v3398_v12  ;;  %v3302_v10 = vsel %vm304_vm7, %v3098_v36, 0.0  ;;  %v2837_v7 = vld [vmem:[#allocation2 + $0xd0] sm:$0xff] }
 0x258   : > { %3256 = vst.msk [vmem:[%s5280_s23 + $0x24] sm:$0xf] %vm3246_vm12, %v3714_v63  ;;  %v3717_v59 = vpack.c.bf16 %v3098_v36, %v3098_v36  ;;  %v3362_v28 = vmul.f32 %v3098_v36, %v3098_v36  ;;  %v3720_v37 = vpack.c.bf16 %v3101_v61, %v3101_v61  ;;  %v3403_v1 = vsel %vm304_vm7, %v3361_v13, 0.0  ;;  %v2835_v14 = vld [vmem:[#allocation2 + $0xc0] sm:$0xff] }
 0x259   : > { %3070 = vst.msk [vmem:[#allocation2 + $0x80] sm:$0xff] %vm304_vm7, %v3038_v19  ;;  %3073 = vst.msk [vmem:[#allocation2 + $0x98] sm:$0xff] %vm304_vm7, %v3041_v9  ;;  %v3099_v22 = vld [vmem:[#allocation2 + $0x68] sm:$0xff]  ;;  %v3402_v16 = vadd.f32 %v3401_v56, %v3400_v20  ;;  %v3301_v54 = vadd.f32 %v3300_v53, %v3299_v48  ;;  %v3039_v30 = vadd.f32 %v2962_v18, %v2828_v41  ;;  %v3306_v34 = vsel %vm304_vm7, %v3100_v27, 0.0 }
 0x25a   : > { %3261 = vst.msk [vmem:[%s5280_s23 + $0x38] sm:$0xf] %vm3246_vm12, %v3719_v40  ;;  %3259 = vst.msk [vmem:[%s5280_s23 + $0x30] sm:$0xf] %vm3246_vm12, %v3717_v59  ;;  %v3718_v3 = vpack.c.bf16 %v3099_v22, %v3099_v22  ;;  %v3405_v49 = vsel %vm304_vm7, %v3362_v28, 0.0  ;;  %v3304_v43 = vsel %vm304_vm7, %v3099_v22, 0.0  ;;  %v3363_v42 = vmul.f32 %v3099_v22, %v3099_v22 }
 0x25b   : > { %3262 = vst.msk [vmem:[%s5280_s23 + $0x3c] sm:$0xf] %vm3246_vm12, %v3720_v37  ;;  %v4037_v6 = vpop.f32.mrb[68].mxu0  ;;  %v3364_v58 = vmul.f32 %v3100_v27, %v3100_v27  ;;  %v3303_v21 = vadd.f32 %v3302_v10, %v3301_v54  ;;  %v3404_v25 = vadd.f32 %v3403_v1, %v3402_v16  ;;  %v3365_v17 = vmul.f32 %v3101_v61, %v3101_v61 }
 0x25c   : > { %3260 = vst.msk [vmem:[%s5280_s23 + $0x34] sm:$0xf] %vm3246_vm12, %v3718_v3  ;;  %v3044_v60 = vadd.f32 %v4037_v6, %v2833_v44  ;;  %v2975_v11 = vpop.f32.mrb[69].mxu0  ;;  %v3407_v62 = vsel %vm304_vm7, %v3363_v42, 0.0  ;;  %v3308_v63 = vsel %vm304_vm7, %v3101_v61, 0.0 }
 0x25d   : > { %3071 = vst.msk [vmem:[#allocation2 + $0x88] sm:$0xff] %vm304_vm7, %v3039_v30  ;;  %v3042_v47 = vadd.f32 %v2975_v11, %v2831_v8  ;;  %v4038_v0 = vpop.f32.mrb[70].mxu0  ;;  %v3406_v50 = vadd.f32 %v3405_v49, %v3404_v25  ;;  %v3305_v45 = vadd.f32 %v3304_v43, %v3303_v21  ;;  %v3409_v39 = vsel %vm304_vm7, %v3364_v58, 0.0 }
 0x25e   : > { %v3104_v15 = vld [vmem:[#allocation2 + $0x90] sm:$0xff]  ;;  %3076 = vst.msk [vmem:[#allocation2 + $0xb0] sm:$0xff] %vm304_vm7, %v3044_v60  ;;  %v3045_v31 = vadd.f32 %v4038_v0, %v2834_v26  ;;  %v2978_v57 = vpop.f32.mrb[71].mxu0  ;;  %v3411_v24 = vsel %vm304_vm7, %v3365_v17, 0.0  ;;  %v2838_v26 = vld [vmem:[#allocation2 + $0xd8] sm:$0xff]  ;;  %v2836_v0 = vld [vmem:[#allocation2 + $0xc8] sm:$0xff] }
 0x25f   : > { %v3723_v32 = vpack.c.bf16 %v3104_v15, %v3104_v15  ;;  %3074 = vst.msk [vmem:[#allocation2 + $0xa0] sm:$0xff] %vm304_vm7, %v3042_v47  ;;  %v3043_v55 = vadd.f32 %v2978_v57, %v2832_v38  ;;  %v3307_v5 = vadd.f32 %v3306_v34, %v3305_v45  ;;  %v3408_v2 = vadd.f32 %v3407_v62, %v3406_v50  ;;  %v2841_v38 = vld [vmem:[#allocation2 + $0xf0] sm:$0xff] }
 0x260   : > { %v3102_v35 = vld [vmem:[#allocation2 + $0x80] sm:$0xff]  ;;  %v3105_v12 = vld [vmem:[#allocation2 + $0x98] sm:$0xff]  ;;  %3077 = vst.msk [vmem:[#allocation2 + $0xb8] sm:$0xff] %vm304_vm7, %v3045_v31  ;;  %v3368_v36 = vmul.f32 %v3104_v15, %v3104_v15  ;;  %v3314_v54 = vsel %vm304_vm7, %v3104_v15, 0.0 }
 0x261   : > { %v3721_v51 = vpack.c.bf16 %v3102_v35, %v3102_v35  ;;  %3265 = vst.msk [vmem:[%s5280_s23 + $0x48] sm:$0xf] %vm3246_vm12, %v3723_v32  ;;  %v3310_v29 = vsel %vm304_vm7, %v3102_v35, 0.0  ;;  %v3366_v46 = vmul.f32 %v3102_v35, %v3102_v35  ;;  %v3724_v23 = vpack.c.bf16 %v3105_v12, %v3105_v12  ;;  %v2839_v35 = vld [vmem:[#allocation2 + $0xe0] sm:$0xff] }
 0x262   : > { %3075 = vst.msk [vmem:[#allocation2 + $0xa8] sm:$0xff] %vm304_vm7, %v3043_v55  ;;  %v3410_v4 = vadd.f32 %v3409_v39, %v3408_v2  ;;  %v3309_v52 = vadd.f32 %v3308_v63, %v3307_v5  ;;  %v3369_v28 = vmul.f32 %v3105_v12, %v3105_v12  ;;  %v3417_v58 = vsel %vm304_vm7, %v3368_v36, 0.0  ;;  %v2840_v36 = vld [vmem:[#allocation2 + $0xe8] sm:$0xff] }
 0x263   : > { %3263 = vst.msk [vmem:[%s5280_s23 + $0x40] sm:$0xf] %vm3246_vm12, %v3721_v51  ;;  %v3413_v13 = vsel %vm304_vm7, %v3366_v46, 0.0  ;;  %3266 = vst.msk [vmem:[%s5280_s23 + $0x4c] sm:$0xf] %vm3246_vm12, %v3724_v23  ;;  %v4041_v27 = vpop.f32.mrb[72].mxu0 }
 0x264   : > { %v3311_v19 = vadd.f32 %v3310_v29, %v3309_v52  ;;  %v3412_v9 = vadd.f32 %v3411_v24, %v3410_v4  ;;  %v3103_v18 = vld [vmem:[#allocation2 + $0x88] sm:$0xff]  ;;  %v3048_v33 = vadd.f32 %v4041_v27, %v2837_v7  ;;  %v2991_v40 = vpop.f32.mrb[73].mxu0  ;;  %v3316_v21 = vsel %vm304_vm7, %v3105_v12, 0.0  ;;  %v2842_v27 = vld [vmem:[#allocation2 + $0xf8] sm:$0xff] }
 0x265   : > { %v3722_v61 = vpack.c.bf16 %v3103_v18, %v3103_v18  ;;  %v3312_v56 = vsel %vm304_vm7, %v3103_v18, 0.0  ;;  %v3367_v48 = vmul.f32 %v3103_v18, %v3103_v18  ;;  %v3108_v20 = vld [vmem:[#allocation2 + $0xb0] sm:$0xff]  ;;  %v3046_v59 = vadd.f32 %v2991_v40, %v2835_v14  ;;  %v4042_v53 = vpop.f32.mrb[74].mxu0 }
 0x266   : > { %v3414_v10 = vadd.f32 %v3413_v13, %v3412_v9  ;;  %v3313_v37 = vadd.f32 %v3312_v56, %v3311_v19  ;;  %v3727_v22 = vpack.c.bf16 %v3108_v20, %v3108_v20  ;;  %v3106_v1 = vld [vmem:[#allocation2 + $0xa0] sm:$0xff]  ;;  %3080 = vst.msk [vmem:[#allocation2 + $0xd0] sm:$0xff] %vm304_vm7, %v3048_v33  ;;  %v2994_v16 = vpop.f32.mrb[75].mxu0  ;;  %v3419_v8 = vsel %vm304_vm7, %v3369_v28, 0.0 }
 0x267   : > { %3264 = vst.msk [vmem:[%s5280_s23 + $0x44] sm:$0xf] %vm3246_vm12, %v3722_v61  ;;  %v3415_v3 = vsel %vm304_vm7, %v3367_v48, 0.0  ;;  %v3725_v41 = vpack.c.bf16 %v3106_v1, %v3106_v1  ;;  %v3109_v49 = vld [vmem:[#allocation2 + $0xb8] sm:$0xff]  ;;  %v3370_v30 = vmul.f32 %v3106_v1, %v3106_v1  ;;  %v3318_v25 = vsel %vm304_vm7, %v3106_v1, 0.0 }
 0x268   : > { %3078 = vst.msk [vmem:[#allocation2 + $0xc0] sm:$0xff] %vm304_vm7, %v3046_v59  ;;  %v3315_v43 = vadd.f32 %v3314_v54, %v3313_v37  ;;  %v3416_v42 = vadd.f32 %v3415_v3, %v3414_v10  ;;  %v3728_v44 = vpack.c.bf16 %v3109_v49, %v3109_v49  ;;  %v3049_v15 = vadd.f32 %v4042_v53, %v2838_v26 }
 0x269   : > { %3269 = vst.msk [vmem:[%s5280_s23 + $0x58] sm:$0xf] %vm3246_vm12, %v3727_v22  ;;  %v3107_v6 = vld [vmem:[#allocation2 + $0xa8] sm:$0xff]  ;;  %3267 = vst.msk [vmem:[%s5280_s23 + $0x50] sm:$0xf] %vm3246_vm12, %v3725_v41  ;;  %v3421_v47 = vsel %vm304_vm7, %v3370_v30, 0.0  ;;  %v3047_v31 = vadd.f32 %v2994_v16, %v2836_v0  ;;  %v3372_v55 = vmul.f32 %v3108_v20, %v3108_v20  ;;  %v3373_v24 = vmul.f32 %v3109_v49, %v3109_v49 }
 0x26a   : > { %v3726_v60 = vpack.c.bf16 %v3107_v6, %v3107_v6  ;;  %v3418_v11 = vadd.f32 %v3417_v58, %v3416_v42  ;;  %v3317_v62 = vadd.f32 %v3316_v21, %v3315_v43  ;;  %3270 = vst.msk [vmem:[%s5280_s23 + $0x5c] sm:$0xf] %vm3246_vm12, %v3728_v44  ;;  %v3320_v50 = vsel %vm304_vm7, %v3107_v6, 0.0 }
 0x26b   : > { %v3371_v45 = vmul.f32 %v3107_v6, %v3107_v6  ;;  %v4045_v57 = vpop.f32.mrb[76].mxu0  ;;  %3081 = vst.msk [vmem:[#allocation2 + $0xd8] sm:$0xff] %vm304_vm7, %v3049_v15  ;;  %3079 = vst.msk [vmem:[#allocation2 + $0xc8] sm:$0xff] %vm304_vm7, %v3047_v31  ;;  %v3322_v52 = vsel %vm304_vm7, %v3108_v20, 0.0  ;;  %v3425_v14 = vsel %vm304_vm7, %v3372_v55, 0.0  ;;  %v3324_v40 = vsel %vm304_vm7, %v3109_v49, 0.0 }
 0x26c   : > { %3268 = vst.msk [vmem:[%s5280_s23 + $0x54] sm:$0xf] %vm3246_vm12, %v3726_v60  ;;  %v3319_v34 = vadd.f32 %v3318_v25, %v3317_v62  ;;  %v3420_v17 = vadd.f32 %v3419_v8, %v3418_v11  ;;  %v3052_v32 = vadd.f32 %v4045_v57, %v2841_v38  ;;  %v3007_v12 = vpop.f32.mrb[77].mxu0  ;;  %v3427_v20 = vsel %vm304_vm7, %v3373_v24, 0.0 }
 0x26d   : > { %v3423_v39 = vsel %vm304_vm7, %v3371_v45, 0.0  ;;  %v3112_v5 = vld [vmem:[#allocation2 + $0xd0] sm:$0xff]  ;;  %v3050_v2 = vadd.f32 %v3007_v12, %v2839_v35  ;;  %v4046_v51 = vpop.f32.mrb[78].mxu0 }
 0x26e   : > { %v3422_v63 = vadd.f32 %v3421_v47, %v3420_v17  ;;  %v3321_v29 = vadd.f32 %v3320_v50, %v3319_v34  ;;  %v3731_v46 = vpack.c.bf16 %v3112_v5, %v3112_v5  ;;  %3084 = vst.msk [vmem:[#allocation2 + $0xf0] sm:$0xff] %vm304_vm7, %v3052_v32  ;;  %v3010_v4 = vpop.f32.mrb[79].mxu0  ;;  %v3053_v18 = vadd.f32 %v4046_v51, %v2842_v27 }
 0x26f   : > { %v3110_v23 = vld [vmem:[#allocation2 + $0xc0] sm:$0xff]  ;;  %3082 = vst.msk [vmem:[#allocation2 + $0xe0] sm:$0xff] %vm304_vm7, %v3050_v2  ;;  %v3051_v33 = vadd.f32 %v3010_v4, %v2840_v36  ;;  %v3376_v22 = vmul.f32 %v3112_v5, %v3112_v5  ;;  %v3330_v30 = vsel %vm304_vm7, %v3112_v5, 0.0 }
 0x270   : > { %v3729_v13 = vpack.c.bf16 %v3110_v23, %v3110_v23  ;;  %v3374_v7 = vmul.f32 %v3110_v23, %v3110_v23  ;;  %v3323_v19 = vadd.f32 %v3322_v52, %v3321_v29  ;;  %v3424_v9 = vadd.f32 %v3423_v39, %v3422_v63  ;;  %3273 = vst.msk [vmem:[%s5280_s23 + $0x68] sm:$0xf] %vm3246_vm12, %v3731_v46 }
 0x271   : > { %v3326_v61 = vsel %vm304_vm7, %v3110_v23, 0.0  ;;  %3085 = vst.msk [vmem:[#allocation2 + $0xf8] sm:$0xff] %vm304_vm7, %v3053_v18  ;;  %3083 = vst.msk [vmem:[#allocation2 + $0xe8] sm:$0xff] %vm304_vm7, %v3051_v33  ;;  %v3433_v47 = vsel %vm304_vm7, %v3376_v22, 0.0 }
 0x272   : > { %3271 = vst.msk [vmem:[%s5280_s23 + $0x60] sm:$0xf] %vm3246_vm12, %v3729_v13  ;;  %v3426_v56 = vadd.f32 %v3425_v14, %v3424_v9  ;;  %v3325_v48 = vadd.f32 %v3324_v40, %v3323_v19  ;;  %v3429_v59 = vsel %vm304_vm7, %v3374_v7, 0.0  ;;  %v3113_v28 = vld [vmem:[#allocation2 + $0xd8] sm:$0xff]  ;;  %v3111_v37 = vld [vmem:[#allocation2 + $0xc8] sm:$0xff] }
 0x273   : > { %v3732_v1 = vpack.c.bf16 %v3113_v28, %v3113_v28  ;;  %v3730_v16 = vpack.c.bf16 %v3111_v37, %v3111_v37  ;;  %v3328_v41 = vsel %vm304_vm7, %v3111_v37, 0.0  ;;  %v3375_v49 = vmul.f32 %v3111_v37, %v3111_v37 }
 0x274   : > { %v3327_v53 = vadd.f32 %v3326_v61, %v3325_v48  ;;  %v3428_v10 = vadd.f32 %v3427_v20, %v3426_v56  ;;  %v3377_v6 = vmul.f32 %v3113_v28, %v3113_v28  ;;  %v3332_v26 = vsel %vm304_vm7, %v3113_v28, 0.0 }
 0x275   : > { %v3116_v54 = vld [vmem:[#allocation2 + $0xf0] sm:$0xff]  ;;  %3274 = vst.msk [vmem:[%s5280_s23 + $0x6c] sm:$0xf] %vm3246_vm12, %v3732_v1  ;;  %3272 = vst.msk [vmem:[%s5280_s23 + $0x64] sm:$0xf] %vm3246_vm12, %v3730_v16  ;;  %v3431_v58 = vsel %vm304_vm7, %v3375_v49, 0.0 }
 0x276   : > { %v3430_v3 = vadd.f32 %v3429_v59, %v3428_v10  ;;  %v3735_v43 = vpack.c.bf16 %v3116_v54, %v3116_v54  ;;  %v3114_v42 = vld [vmem:[#allocation2 + $0xe0] sm:$0xff]  ;;  %v3329_v44 = vadd.f32 %v3328_v41, %v3327_v53  ;;  %v3435_v38 = vsel %vm304_vm7, %v3377_v6, 0.0 }
 0x277   : > { %v3733_v21 = vpack.c.bf16 %v3114_v42, %v3114_v42  ;;  %v3378_v25 = vmul.f32 %v3114_v42, %v3114_v42  ;;  %v3334_v0 = vsel %vm304_vm7, %v3114_v42, 0.0  ;;  %v3380_v12 = vmul.f32 %v3116_v54, %v3116_v54 }
 0x278   : > { %3277 = vst.msk [vmem:[%s5280_s23 + $0x78] sm:$0xf] %vm3246_vm12, %v3735_v43  ;;  %v3331_v60 = vadd.f32 %v3330_v30, %v3329_v44  ;;  %v3432_v8 = vadd.f32 %v3431_v58, %v3430_v3  ;;  %v3117_v11 = vld [vmem:[#allocation2 + $0xf8] sm:$0xff]  ;;  %v3115_v62 = vld [vmem:[#allocation2 + $0xe8] sm:$0xff]  ;;  %v3338_v2 = vsel %vm304_vm7, %v3116_v54, 0.0 }
 0x279   : > { %3275 = vst.msk [vmem:[%s5280_s23 + $0x70] sm:$0xf] %vm3246_vm12, %v3733_v21  ;;  %v3736_v50 = vpack.c.bf16 %v3117_v11, %v3117_v11  ;;  %v3734_v31 = vpack.c.bf16 %v3115_v62, %v3115_v62  ;;  %v3437_v57 = vsel %vm304_vm7, %v3378_v25, 0.0  ;;  %v3336_v34 = vsel %vm304_vm7, %v3115_v62, 0.0 }
 0x27a   : > { %v3434_v45 = vadd.f32 %v3433_v47, %v3432_v8  ;;  %v3333_v15 = vadd.f32 %v3332_v26, %v3331_v60  ;;  %v3379_v17 = vmul.f32 %v3115_v62, %v3115_v62  ;;  %v3381_v51 = vmul.f32 %v3117_v11, %v3117_v11 }
 0x27b   : > { %3278 = vst.msk [vmem:[%s5280_s23 + $0x7c] sm:$0xf] %vm3246_vm12, %v3736_v50  ;;  %3276 = vst.msk [vmem:[%s5280_s23 + $0x74] sm:$0xf] %vm3246_vm12, %v3734_v31  ;;  %v3441_v46 = vsel %vm304_vm7, %v3380_v12, 0.0  ;;  %v3340_v23 = vsel %vm304_vm7, %v3117_v11, 0.0 }
 0x27c   : > { %v3335_v32 = vadd.f32 %v3334_v0, %v3333_v15  ;;  %v3436_v35 = vadd.f32 %v3435_v38, %v3434_v45  ;;  %v3439_v55 = vsel %vm304_vm7, %v3379_v17, 0.0  ;;  %v3443_v24 = vsel %vm304_vm7, %v3381_v51, 0.0 }
 0x27e   : > { %v3438_v39 = vadd.f32 %v3437_v57, %v3436_v35  ;;  %v3337_v5 = vadd.f32 %v3336_v34, %v3335_v32 }
 0x280   : > { %v3339_v63 = vadd.f32 %v3338_v2, %v3337_v5  ;;  %v3440_v29 = vadd.f32 %v3439_v55, %v3438_v39 }
 0x282   : > { %v3341_v4 = vadd.f32 %v3340_v23, %v3339_v63  ;;  %v3442_v52 = vadd.f32 %v3441_v46, %v3440_v29 }
 0x284   : > { %v3342_v13 = vrot.slane %v3341_v4, 4  ;;  %v3444_v7 = vadd.f32 %v3443_v24, %v3442_v52 }
 0x286   : > { %v3343_v27 = vadd.f32 %v3342_v13, %v3341_v4  ;;  %v3445_v36 = vrot.slane %v3444_v7, 4 }
 0x288   : > { %v3344_v19 = vrot.slane %v3343_v27, 2  ;;  %v3446_v9 = vadd.f32 %v3445_v36, %v3444_v7 }
 0x28a   : > { %v3345_v18 = vadd.f32 %v3344_v19, %v3343_v27  ;;  %v3447_v33 = vrot.slane %v3446_v9, 2 }
 0x28c   : > { %v3346_v14 = vrot.slane %v3345_v18, 1  ;;  %v3448_v40 = vadd.f32 %v3447_v33, %v3446_v9 }
 0x28e   : > { %v3347_v61 = vadd.f32 %v3346_v14, %v3345_v18  ;;  %v3449_v56 = vrot.slane %v3448_v40, 1 }
 0x290   : > { %3349 = vst.msk [vmem:[%s292_s29] sm:$0x1] %vm3348_vm13, %v3347_v61  ;;  %v3450_v48 = vadd.f32 %v3449_v56, %v3448_v40 }
 0x292   : > { %3451 = vst.msk [vmem:[%s295_s9] sm:$0x1] %vm3348_vm13, %v3450_v48 }
 0x293 PF: > { %s18_s24 = sadd.s32 1, %s4095_s24  }
 0x294   : > { %p15_p4 = scmp.ge.s32.totalorder %s18_s24, 4  }
 0x296   :  { %17 = sbr.rel (!%p15_p4) target bundleno = 1 (0x1), region = 98 }

// kernel: decoder_block_forward.5
= control target key start
LH: loop header
LB: loop body
LE: loop exit
PB: predicated region body
PF: predicated region fallthrough
CT: control target
= control target key end

     0   :  { %s6933_s24 = smov 0   ;;  %s9172_s0 = inlined_call_operand.vmem [shape: bf16[2,20,20,4], index: 0, kind: input, shape index: {}]   ;;  %s9173_s1 = inlined_call_operand.vmem [shape: bf16[2,20,20,4], index: 1, kind: input, shape index: {}]   ;;  %s9174_s2 = inlined_call_operand.vmem [shape: bf16[5,20,4], index: 2, kind: input, shape index: {}]   ;;  %s9175_s3 = inlined_call_operand.vmem [shape: bf16[5,20,4], index: 3, kind: input, shape index: {}]   ;;  %s9176_s4 = inlined_call_operand.vmem [shape: f32[1,4], index: 4, kind: input, shape index: {}]   ;;  %s9177_s5 = inlined_call_operand.vmem [shape: bf16[2,256,4], index: 5, kind: output, shape index: {0}]   ;;  %s9178_s6 = inlined_call_operand.vmem [shape: f32[2,1,4], index: 6, kind: output, shape index: {1}]   ;;  %s9179_s7 = inlined_call_operand.vmem [shape: f32[2,1,4], index: 7, kind: output, shape index: {2}]  }
   0x1 LB: > { %s5817_s25 = sadd.s32 4294967295, %s6887_s24   ;;  %p5821_p0 = scmp.ge.s32.totalorder %s6887_s24, 1  ;;  %s6887_s24 = sphi %s6933_s24, %s18_s24  }
   0x2   : > { %p252_p1 = scmp.lt.s32.totalorder %s6887_s24, 3 }
   0x4   : > { %p253_p2 = pnand %p5821_p0, %p252_p1 }
   0x5   : > { %p295_p3 = scmp.lt.s32.totalorder (!%p253_p2), %s5817_s25, 1  ;;  %vm1028_vm0 = vcmask (!%p253_p2), 1045504   ;;  %vm770_vm1 = vcmask (!%p253_p2), 1046528   ;;  %vm545_vm2 = vsmask.f32 (!%p253_p2), 7424  ;;  %v6773_v0 = vld [vmem:[%s9174_s2] sm:$0xff] (!%p253_p2)  }
   0x6   : > { %256 = sbr.rel (%p253_p2) target bundleno = 804 (0x324), region = 40  ;;  %6358 = vmatprep.subr.bf16.mxu0 (!%p253_p2), %v6773_v0  ;;  %s6889_s9 = smov (!%p253_p2), 16   ;;  %vm851_vm3 = vsmask.f32 (!%p253_p2), 6400  ;;  %vm1317_vm4 = vcmask (!%p253_p2), 1041408   ;;  %vm324_vm5 = vcmask (!%p253_p2), 31744  }
   0x7   : > { %6359 = vmatpush3.bf16.msra.mxu0 (!%p253_p2), %v6773_v0  ;;  %s6890_s10 = smov (!%p253_p2), 8   ;;  %s6891_s11 = smov (!%p253_p2), 4   ;;  %vm1141_vm6 = vcmask (!%p253_p2), 64512   ;;  %vm1174_vm7 = vcmask (!%p253_p2), 97280   ;;  %vm1207_vm8 = vcmask (!%p253_p2), 130048   ;;  %vm1284_vm9 = vcmask (!%p253_p2), 162816  }
   0x8   : > { %s6892_s12 = smov (!%p253_p2), 12   ;;  %vm5494_vm10 = vcmask (!%p253_p2), 27648   ;;  %vm5596_vm11 = vcmask (!%p253_p2), 24576  }
   0xd   : > { %s9181_s25 = smov (!%p295_p3, %s5817_s25), 1 }
   0xe   : > { %s6728_s26 = smul.u32 240, %s9181_s25  ;;  %s312_s28 = scalar_lea.vmem %s9178_s6, %s9181_s25 }
   0xf   : > { %s315_s13 = scalar_lea.vmem %s9179_s7, %s9181_s25 }
  0x10   : > { %s6949_s29 = scalar_lea.vmem %s9172_s0, %s6728_s26  ;;  %s7124_s17 = scalar_lea.vmem %s9173_s1, %s6728_s26 }
  0x11   : > { %v6741_v1 = vld [vmem:[%s6949_s29] sm:$0xff]   ;;  %v6742_v2 = vld [vmem:[%s6949_s29 + $0x8] ss:$0 sps:$4 sm:$0x33]   ;;  %v6743_v3 = vld [vmem:[%s6949_s29 + $0xc] sm:$0xff]  }
  0x12   : > { %v1029_v4 = vrot.slane %v6741_v1, 2  ;;  %v1030_v5 = vrot.slane %v6742_v2, 2  ;;  %v771_v6 = vrot.slane %v6741_v1, 1  ;;  %v772_v7 = vrot.slane %v6742_v2, 1  ;;  %v6963_v20 = vld [vmem:[%s6949_s29 + $0x24] sm:$0xff]   ;;  %v6971_v30 = vld [vmem:[%s6949_s29 + $0x18] sm:$0xff]  }
  0x13   : > { %v6744_v8 = vld [vmem:[%s6949_s29 + $0x14] ss:$0 sps:$4 sm:$0x33]   ;;  %v774_v9 = vrot.slane %v6743_v3, 1  ;;  %v547_v10 = vshrl.u32 %v6741_v1, 16  ;;  %v549_v11 = vshll.u32 %v6741_v1, 16 }
  0x14   : > { %v1031_v12 = vsel %vm1028_vm0, %v1029_v4, %v1030_v5  ;;  %v773_v13 = vsel %vm770_vm1, %v771_v6, %v772_v7  ;;  %v554_v14 = vshll.u32 %v6742_v2, 16  ;;  %v1032_v15 = vrot.slane %v6743_v3, 2  ;;  %v6968_v29 = vld [vmem:[%s6949_s29 + $0x2c] ss:$0 sps:$4 sm:$0x33]  }
  0x15   : > { %1077 = vrot.lane.b32.xlu0 %v1031_v12, %s6889_s9  ;;  %819 = vrot.lane.b32.xlu1 %v773_v13, %s6890_s10  ;;  %v775_v16 = vrot.slane %v6744_v8, 1  ;;  %v551_v17 = vrot.slane %v549_v11, 1  ;;  %v1033_v18 = vrot.slane %v6744_v8, 2  ;;  %v559_v19 = vshrl.u32 %v6743_v3, 16 }
  0x16   : > { %v556_v21 = vrot.slane %v554_v14, 1  ;;  %v561_v22 = vshll.u32 %v6743_v3, 16  ;;  %v566_v23 = vshll.u32 %v6744_v8, 16  ;;  %v864_v24 = vshrl.u32 %v6744_v8, 16 }
  0x17   : > { %v776_v25 = vsel %vm770_vm1, %v774_v9, %v775_v16  ;;  %v552_v26 = vor.u32 %v551_v17, %v547_v10  ;;  %v1034_v27 = vsel %vm1028_vm0, %v1032_v15, %v1033_v18  ;;  %v861_v28 = vrot.slane %v559_v19, 1  ;;  %v6976_v39 = vld [vmem:[%s6949_s29 + $0x20] ss:$0 sps:$4 sm:$0x33]   ;;  %v7004_v15 = vld [vmem:[%s6949_s29 + $0x30] sm:$0xff]  }
  0x18   : > { %v563_v31 = vrot.slane %v561_v22, 1  ;;  %v568_v32 = vrot.slane %v566_v23, 1  ;;  %v862_v33 = vrot.slane %v561_v22, 2  ;;  %v866_v34 = vrot.slane %v864_v24, 1  ;;  %v6999_v9 = vld [vmem:[%s6949_s29 + $0x3c] sm:$0xff]  }
  0x19   : > { %821 = vrot.lane.b32.xlu1 %v776_v25, %s6890_s10  ;;  %v557_v35 = vsel %vm545_vm2, %v552_v26, %v556_v21  ;;  %v867_v36 = vrot.slane %v566_v23, 2  ;;  %v852_v37 = vrot.slane %v547_v10, 1  ;;  %v853_v38 = vrot.slane %v549_v11, 2  ;;  %v7010_v21 = vld [vmem:[%s6949_s29 + $0x44] ss:$0 sps:$4 sm:$0x33]  }
  0x1a   : > { %738 = vrot.lane.b32.xlu0 %v557_v35, %s6891_s11  ;;  %v564_v40 = vor.u32 %v563_v31, %v559_v19  ;;  %v863_v41 = vor.u32 %v862_v33, %v861_v28  ;;  %v855_v42 = vshrl.u32 %v6742_v2, 16  ;;  %v858_v43 = vrot.slane %v554_v14, 2  ;;  %v7015_v26 = vld [vmem:[%s6949_s29 + $0x38] ss:$0 sps:$4 sm:$0x33]  }
  0x1b   : > { %v868_v44 = vor.u32 %v867_v36, %v866_v34  ;;  %v583_v45 = vshrl.u32 %v6963_v20, 16  ;;  %v585_v46 = vshll.u32 %v6963_v20, 16  ;;  %v854_v48 = vor.u32 %v853_v38, %v852_v37 }
  0x1c   : > { %v569_v47 = vsel %vm545_vm2, %v564_v40, %v568_v32  ;;  %v857_v49 = vrot.slane %v855_v42, 1  ;;  %v590_v50 = vshll.u32 %v6968_v29, 16  ;;  %v571_v52 = vshrl.u32 %v6971_v30, 16 }
  0x1d   : > { %1079 = vrot.lane.b32.xlu1 %v1034_v27, %s6889_s9  ;;  %v587_v51 = vrot.slane %v585_v46, 1  ;;  %v573_v53 = vshll.u32 %v6971_v30, 16  ;;  %v578_v54 = vshll.u32 %v6976_v39, 16  ;;  %v869_v55 = vsel %vm851_vm3, %v863_v41, %v868_v44 }
  0x1e   : > { %740 = vrot.lane.b32.xlu0 %v569_v47, %s6891_s11  ;;  %v859_v56 = vor.u32 %v858_v43, %v857_v49  ;;  %v592_v57 = vrot.slane %v590_v50, 1  ;;  %v780_v61 = vrot.slane %v6963_v20, 1  ;;  %v781_v63 = vrot.slane %v6968_v29, 1 }
  0x1f   : > { %v588_v58 = vor.u32 %v587_v51, %v583_v45  ;;  %v575_v59 = vrot.slane %v573_v53, 1  ;;  %v580_v60 = vrot.slane %v578_v54, 1  ;;  %v777_v0 = vrot.slane %v6971_v30, 1 }
  0x20   : > { %v860_v62 = vsel %vm851_vm3, %v854_v48, %v859_v56  ;;  %v778_v1 = vrot.slane %v6976_v39, 1  ;;  %v879_v3 = vrot.slane %v583_v45, 1  ;;  %v882_v4 = vshrl.u32 %v6968_v29, 16 }
  0x21   : > { %998 = vrot.lane.b32.xlu1 %v869_v55, %s6892_s12  ;;  %v576_v2 = vor.u32 %v575_v59, %v571_v52  ;;  %v593_v5 = vsel %vm545_vm2, %v588_v58, %v592_v57  ;;  %v880_v6 = vrot.slane %v585_v46, 2  ;;  %v885_v7 = vrot.slane %v590_v50, 2  ;;  %v7045_v55 = vld [vmem:[%s6949_s29 + $0x54] sm:$0xff]  }
  0x22   : > { %996 = vrot.lane.b32.xlu0 %v860_v62, %s6892_s12  ;;  %v870_v8 = vrot.slane %v571_v52, 1  ;;  %v884_v11 = vrot.slane %v882_v4, 1  ;;  %v871_v12 = vrot.slane %v573_v53, 2  ;;  %v873_v13 = vshrl.u32 %v6976_v39, 16 }
  0x23   : > { %v581_v10 = vsel %vm545_vm2, %v576_v2, %v580_v60  ;;  %v876_v14 = vrot.slane %v578_v54, 2  ;;  %v782_v17 = vsel %vm770_vm1, %v780_v61, %v781_v63  ;;  %v881_v18 = vor.u32 %v880_v6, %v879_v3  ;;  %v7051_v63 = vld [vmem:[%s6949_s29 + $0x48] sm:$0xff]  }
  0x24   : > { %v875_v16 = vrot.slane %v873_v13, 1  ;;  %v886_v19 = vor.u32 %v885_v7, %v884_v11  ;;  %v609_v22 = vshll.u32 %v6999_v9, 16  ;;  %v779_v23 = vsel %vm770_vm1, %v777_v0, %v778_v1  ;;  %v7055_v0 = vld [vmem:[%s6949_s29 + $0x5c] ss:$0 sps:$4 sm:$0x33]  }
  0x25   : > { %744 = vrot.lane.b32.xlu1 %v593_v5, %s6891_s11  ;;  %v872_v24 = vor.u32 %v871_v12, %v870_v8  ;;  %v597_v27 = vshll.u32 %v7004_v15, 16  ;;  %v1038_v28 = vrot.slane %v6963_v20, 2  ;;  %v1039_v31 = vrot.slane %v6968_v29, 2  ;;  %v7062_v8 = vld [vmem:[%s6949_s29 + $0x50] ss:$0 sps:$4 sm:$0x33]  }
  0x26   : > { %742 = vrot.lane.b32.xlu0 %v581_v10, %s6891_s11  ;;  %v877_v25 = vor.u32 %v876_v14, %v875_v16  ;;  %v1035_v32 = vrot.slane %v6971_v30, 2  ;;  %v1036_v33 = vrot.slane %v6976_v39, 2  ;;  %v887_v34 = vsel %vm851_vm3, %v881_v18, %v886_v19  ;;  %v6777_v30 = vld [vmem:[%s9174_s2 + $0xc] sm:$0xff]  }
  0x27   : > { %v607_v35 = vshrl.u32 %v6999_v9, 16  ;;  %v611_v36 = vrot.slane %v609_v22, 1  ;;  %v614_v37 = vshll.u32 %v7010_v21, 16  ;;  %v595_v40 = vshrl.u32 %v7004_v15, 16  ;;  %6394 = vmatprep.subr.bf16.mxu1 %v6777_v30 }
  0x28   : > { %v878_v38 = vsel %vm851_vm3, %v872_v24, %v877_v25  ;;  %v599_v20 = vrot.slane %v597_v27, 1  ;;  %v602_v29 = vshll.u32 %v7015_v26, 16  ;;  %v1040_v39 = vsel %vm1028_vm0, %v1038_v28, %v1039_v31  ;;  %6395 = vmatpush3.bf16.msra.mxu1 %v6777_v30 }
  0x29   : > { %825 = vrot.lane.b32.xlu1 %v782_v17, %s6890_s10  ;;  %v612_v41 = vor.u32 %v611_v36, %v607_v35  ;;  %v616_v42 = vrot.slane %v614_v37, 1  ;;  %v900_v43 = vshrl.u32 %v7010_v21, 16  ;;  %v1037_v44 = vsel %vm1028_vm0, %v1035_v32, %v1036_v33 }
  0x2a   : > { %823 = vrot.lane.b32.xlu0 %v779_v23, %s6890_s10  ;;  %v600_v45 = vor.u32 %v599_v20, %v595_v40  ;;  %v604_v46 = vrot.slane %v602_v29, 1  ;;  %v891_v47 = vshrl.u32 %v7015_v26, 16  ;;  %v786_v48 = vrot.slane %v6999_v9, 1 }
  0x2b   : > { %v787_v49 = vrot.slane %v7010_v21, 1  ;;  %v783_v50 = vrot.slane %v7004_v15, 1  ;;  %v784_v51 = vrot.slane %v7015_v26, 1  ;;  %v897_v52 = vrot.slane %v607_v35, 1 }
  0x2c   : > { %v898_v53 = vrot.slane %v609_v22, 2  ;;  %v903_v54 = vrot.slane %v614_v37, 2  ;;  %v617_v56 = vsel %vm545_vm2, %v612_v41, %v616_v42  ;;  %v902_v57 = vrot.slane %v900_v43, 1 }
  0x2d   : > { %1002 = vrot.lane.b32.xlu1 %v887_v34, %s6892_s12  ;;  %v888_v58 = vrot.slane %v595_v40, 1  ;;  %v605_v59 = vsel %vm545_vm2, %v600_v45, %v604_v46  ;;  %v889_v60 = vrot.slane %v597_v27, 2  ;;  %v893_v61 = vrot.slane %v891_v47, 1  ;;  %v7090_v40 = vld [vmem:[%s6949_s29 + $0x6c] sm:$0xff]   ;;  %v7095_v45 = vld [vmem:[%s6949_s29 + $0x60] sm:$0xff]  }
  0x2e   : > { %1000 = vrot.lane.b32.xlu0 %v878_v38, %s6892_s12  ;;  %v894_v62 = vrot.slane %v602_v29, 2  ;;  %v633_v1 = vshll.u32 %v7045_v55, 16  ;;  %v788_v2 = vsel %vm770_vm1, %v786_v48, %v787_v49  ;;  %v899_v3 = vor.u32 %v898_v53, %v897_v52  ;;  %v7099_v46 = vld [vmem:[%s6949_s29 + $0x74] ss:$0 sps:$4 sm:$0x33]  }
  0x2f   : > { %v904_v4 = vor.u32 %v903_v54, %v902_v57  ;;  %v785_v5 = vsel %vm770_vm1, %v783_v50, %v784_v51  ;;  %v890_v6 = vor.u32 %v889_v60, %v888_v58  ;;  %v621_v10 = vshll.u32 %v7051_v63, 16  ;;  %v7106_v54 = vld [vmem:[%s6949_s29 + $0x68] ss:$0 sps:$4 sm:$0x33]  }
  0x30   : > { %v895_v7 = vor.u32 %v894_v62, %v893_v61  ;;  %v1044_v11 = vrot.slane %v6999_v9, 2  ;;  %v631_v12 = vshrl.u32 %v7045_v55, 16  ;;  %v635_v13 = vrot.slane %v633_v1, 1 }
  0x31   : > { %1083 = vrot.lane.b32.xlu1 %v1040_v39, %s6889_s9  ;;  %v638_v14 = vshll.u32 %v7055_v0, 16  ;;  %v905_v16 = vsel %vm851_vm3, %v899_v3, %v904_v4  ;;  %v1045_v17 = vrot.slane %v7010_v21, 2  ;;  %v1041_v18 = vrot.slane %v7004_v15, 2 }
  0x32   : > { %1081 = vrot.lane.b32.xlu0 %v1037_v44, %s6889_s9  ;;  %v1042_v19 = vrot.slane %v7015_v26, 2  ;;  %v896_v22 = vsel %vm851_vm3, %v890_v6, %v895_v7  ;;  %v619_v23 = vshrl.u32 %v7051_v63, 16  ;;  %v623_v9 = vrot.slane %v621_v10, 1 }
  0x33   : > { %v626_v24 = vshll.u32 %v7062_v8, 16  ;;  %v636_v25 = vor.u32 %v635_v13, %v631_v12  ;;  %v640_v27 = vrot.slane %v638_v14, 1  ;;  %v1046_v21 = vsel %vm1028_vm0, %v1044_v11, %v1045_v17 }
  0x34   : > { %v918_v15 = vshrl.u32 %v7055_v0, 16  ;;  %v1043_v26 = vsel %vm1028_vm0, %v1041_v18, %v1042_v19  ;;  %v624_v28 = vor.u32 %v623_v9, %v619_v23  ;;  %v909_v32 = vshrl.u32 %v7062_v8, 16 }
  0x35   : > { %748 = vrot.lane.b32.xlu1 %v617_v56, %s6891_s11  ;;  %v628_v31 = vrot.slane %v626_v24, 1  ;;  %v792_v33 = vrot.slane %v7045_v55, 1  ;;  %v793_v34 = vrot.slane %v7055_v0, 1  ;;  %v641_v35 = vsel %vm545_vm2, %v636_v25, %v640_v27  ;;  %v7142_v25 = vld [vmem:[%s6949_s29 + $0x84] sm:$0xff]  }
  0x36   : > { %746 = vrot.lane.b32.xlu0 %v605_v59, %s6891_s11  ;;  %v789_v36 = vrot.slane %v7051_v63, 1  ;;  %v790_v37 = vrot.slane %v7062_v8, 1  ;;  %v915_v38 = vrot.slane %v631_v12, 1  ;;  %v916_v20 = vrot.slane %v633_v1, 2 }
  0x37   : > { %v920_v29 = vrot.slane %v918_v15, 1  ;;  %v921_v30 = vrot.slane %v638_v14, 2  ;;  %v906_v39 = vrot.slane %v619_v23, 1  ;;  %v629_v41 = vsel %vm545_vm2, %v624_v28, %v628_v31  ;;  %v7146_v28 = vld [vmem:[%s6949_s29 + $0x78] sm:$0xff]  }
  0x38   : > { %v907_v42 = vrot.slane %v621_v10, 2  ;;  %v911_v43 = vrot.slane %v909_v32, 1  ;;  %v912_v44 = vrot.slane %v626_v24, 2  ;;  %v794_v47 = vsel %vm770_vm1, %v792_v33, %v793_v34  ;;  %v7150_v31 = vld [vmem:[%s6949_s29 + $0x8c] ss:$0 sps:$4 sm:$0x33]  }
  0x39   : > { %829 = vrot.lane.b32.xlu1 %v788_v2, %s6890_s10  ;;  %v917_v48 = vor.u32 %v916_v20, %v915_v38  ;;  %v922_v49 = vor.u32 %v921_v30, %v920_v29  ;;  %v657_v50 = vshll.u32 %v7090_v40, 16  ;;  %v791_v51 = vsel %vm770_vm1, %v789_v36, %v790_v37  ;;  %v7157_v20 = vld [vmem:[%s6949_s29 + $0x80] ss:$0 sps:$4 sm:$0x33]  }
  0x3a   : > { %827 = vrot.lane.b32.xlu0 %v785_v5, %s6890_s10  ;;  %v908_v52 = vor.u32 %v907_v42, %v906_v39  ;;  %v913_v53 = vor.u32 %v912_v44, %v911_v43  ;;  %v645_v56 = vshll.u32 %v7095_v45, 16  ;;  %v1050_v57 = vrot.slane %v7045_v55, 2 }
  0x3b   : > { %v1051_v58 = vrot.slane %v7055_v0, 2  ;;  %v1047_v59 = vrot.slane %v7051_v63, 2  ;;  %v1048_v60 = vrot.slane %v7062_v8, 2  ;;  %v655_v61 = vshrl.u32 %v7090_v40, 16 }
  0x3c   : > { %v923_v62 = vsel %vm851_vm3, %v917_v48, %v922_v49  ;;  %v659_v1 = vrot.slane %v657_v50, 1  ;;  %v662_v2 = vshll.u32 %v7099_v46, 16  ;;  %v643_v3 = vshrl.u32 %v7095_v45, 16 }
  0x3d   : > { %1006 = vrot.lane.b32.xlu1 %v905_v16, %s6892_s12  ;;  %v914_v55 = vsel %vm851_vm3, %v908_v52, %v913_v53  ;;  %v647_v63 = vrot.slane %v645_v56, 1  ;;  %v650_v0 = vshll.u32 %v7106_v54, 16  ;;  %v1052_v4 = vsel %vm1028_vm0, %v1050_v57, %v1051_v58 }
  0x3e   : > { %1004 = vrot.lane.b32.xlu0 %v896_v22, %s6892_s12  ;;  %v660_v5 = vor.u32 %v659_v1, %v655_v61  ;;  %v664_v6 = vrot.slane %v662_v2, 1  ;;  %v936_v7 = vshrl.u32 %v7099_v46, 16  ;;  %v1049_v8 = vsel %vm1028_vm0, %v1047_v59, %v1048_v60 }
  0x3f   : > { %v648_v10 = vor.u32 %v647_v63, %v643_v3  ;;  %v652_v11 = vrot.slane %v650_v0, 1  ;;  %v927_v12 = vshrl.u32 %v7106_v54, 16  ;;  %v798_v13 = vrot.slane %v7090_v40, 1  ;;  %v7187_v63 = vld [vmem:[%s6949_s29 + $0x9c] sm:$0xff]  }
  0x40   : > { %v799_v14 = vrot.slane %v7099_v46, 1  ;;  %v795_v16 = vrot.slane %v7095_v45, 1  ;;  %v796_v17 = vrot.slane %v7106_v54, 1  ;;  %v933_v18 = vrot.slane %v655_v61, 1 }
  0x41   : > { %1087 = vrot.lane.b32.xlu1 %v1046_v21, %s6889_s9  ;;  %v934_v19 = vrot.slane %v657_v50, 2  ;;  %v665_v22 = vsel %vm545_vm2, %v660_v5, %v664_v6  ;;  %v938_v23 = vrot.slane %v936_v7, 1  ;;  %v939_v9 = vrot.slane %v662_v2, 2 }
  0x42   : > { %1085 = vrot.lane.b32.xlu0 %v1043_v26, %s6889_s9  ;;  %v924_v24 = vrot.slane %v643_v3, 1  ;;  %v653_v27 = vsel %vm545_vm2, %v648_v10, %v652_v11  ;;  %v925_v21 = vrot.slane %v645_v56, 2  ;;  %v929_v15 = vrot.slane %v927_v12, 1  ;;  %v7196_v12 = vld [vmem:[%s6949_s29 + $0x90] sm:$0xff]  }
  0x43   : > { %v930_v26 = vrot.slane %v650_v0, 2  ;;  %v800_v32 = vsel %vm770_vm1, %v798_v13, %v799_v14  ;;  %v935_v33 = vor.u32 %v934_v19, %v933_v18  ;;  %v940_v34 = vor.u32 %v939_v9, %v938_v23  ;;  %v6780_v0 = vld [vmem:[%s9174_s2 + $0x14] ss:$0 sps:$4 sm:$0x33]   ;;  %v7204_v14 = vld [vmem:[%s9174_s2 + $0x18] sm:$0xff]  }
  0x44   : > { %v797_v36 = vsel %vm770_vm1, %v795_v16, %v796_v17  ;;  %v926_v37 = vor.u32 %v925_v21, %v924_v24  ;;  %v669_v29 = vshll.u32 %v7146_v28, 16  ;;  %v1056_v30 = vrot.slane %v7090_v40, 2  ;;  %v7199_v13 = vld [vmem:[%s6949_s29 + $0xa4] ss:$0 sps:$4 sm:$0x33]   ;;  %6719 = vmatprep.subr.msk.bf16.mxu1 %vm1317_vm4, %v6780_v0 }
  0x45   : > { %752 = vrot.lane.b32.xlu1 %v641_v35, %s6891_s11  ;;  %v681_v35 = vshll.u32 %v7142_v25, 16  ;;  %v931_v38 = vor.u32 %v930_v26, %v929_v15  ;;  %v1057_v39 = vrot.slane %v7099_v46, 2  ;;  %v1054_v42 = vrot.slane %v7106_v54, 2 }
  0x46   : > { %750 = vrot.lane.b32.xlu0 %v629_v41, %s6891_s11  ;;  %v1053_v41 = vrot.slane %v7095_v45, 2  ;;  %v941_v43 = vsel %vm851_vm3, %v935_v33, %v940_v34  ;;  %v679_v44 = vshrl.u32 %v7142_v25, 16  ;;  %v686_v48 = vshll.u32 %v7150_v31, 16 }
  0x47   : > { %v932_v49 = vsel %vm851_vm3, %v926_v37, %v931_v38  ;;  %v667_v40 = vshrl.u32 %v7146_v28, 16  ;;  %v671_v46 = vrot.slane %v669_v29, 1  ;;  %v674_v50 = vshll.u32 %v7157_v20, 16 }
  0x48   : > { %v1058_v45 = vsel %vm1028_vm0, %v1056_v30, %v1057_v39  ;;  %v688_v53 = vrot.slane %v686_v48, 1  ;;  %v954_v54 = vshrl.u32 %v7150_v31, 16  ;;  %v804_v58 = vrot.slane %v7142_v25, 1 }
  0x49   : > { %833 = vrot.lane.b32.xlu1 %v794_v47, %s6890_s10  ;;  %v683_v47 = vrot.slane %v681_v35, 1  ;;  %v672_v56 = vor.u32 %v671_v46, %v667_v40  ;;  %v676_v57 = vrot.slane %v674_v50, 1  ;;  %v945_v59 = vshrl.u32 %v7157_v20, 16  ;;  %v7246_v46 = vld [vmem:[%s6949_s29 + $0xb4] sm:$0xff]  }
  0x4a   : > { %831 = vrot.lane.b32.xlu0 %v791_v51, %s6890_s10  ;;  %v1055_v51 = vsel %vm1028_vm0, %v1053_v41, %v1054_v42  ;;  %v805_v60 = vrot.slane %v7150_v31, 1  ;;  %v801_v61 = vrot.slane %v7146_v28, 1  ;;  %v802_v1 = vrot.slane %v7157_v20, 1 }
  0x4b   : > { %v684_v52 = vor.u32 %v683_v47, %v679_v44  ;;  %v951_v2 = vrot.slane %v679_v44, 1  ;;  %v952_v3 = vrot.slane %v681_v35, 2  ;;  %v956_v5 = vrot.slane %v954_v54, 1  ;;  %v7253_v54 = vld [vmem:[%s6949_s29 + $0xa8] sm:$0xff]  }
  0x4c   : > { %v942_v6 = vrot.slane %v667_v40, 1  ;;  %v677_v7 = vsel %vm545_vm2, %v672_v56, %v676_v57  ;;  %v947_v10 = vrot.slane %v945_v59, 1  ;;  %v948_v11 = vrot.slane %v674_v50, 2 }
  0x4d   : > { %1010 = vrot.lane.b32.xlu1 %v923_v62, %s6892_s12  ;;  %v6774_v62 = vld [vmem:[%s9174_s2 + $0x8] ss:$0 sps:$4 sm:$0x33]   ;;  %v705_v16 = vshll.u32 %v7187_v63, 16  ;;  %v806_v17 = vsel %vm770_vm1, %v804_v58, %v805_v60  ;;  %v953_v18 = vor.u32 %v952_v3, %v951_v2  ;;  %v803_v23 = vsel %vm770_vm1, %v801_v61, %v802_v1 }
  0x4e   : > { %1008 = vrot.lane.b32.xlu0 %v914_v55, %s6892_s12  ;;  %v957_v55 = vrot.slane %v686_v48, 2  ;;  %6718 = vmatprep.subr.msk.bf16.mxu0 %vm1317_vm4, %v6774_v62  ;;  %v949_v24 = vor.u32 %v948_v11, %v947_v10  ;;  %v693_v21 = vshll.u32 %v7196_v12, 16  ;;  %v1062_v15 = vrot.slane %v7142_v25, 2 }
  0x4f   : > { %v703_v26 = vshrl.u32 %v7187_v63, 16  ;;  %v710_v33 = vshll.u32 %v7199_v13, 16  ;;  %v1063_v35 = vrot.slane %v7150_v31, 2  ;;  %v1060_v37 = vrot.slane %v7157_v20, 2 }
  0x50   : > { %v958_v19 = vor.u32 %v957_v55, %v956_v5  ;;  %v695_v25 = vrot.slane %v693_v21, 1  ;;  %v810_v20 = vrot.slane %v7187_v63, 1  ;;  %v972_v42 = vshrl.u32 %v7199_v13, 16  ;;  %v7262_v55 = vld [vmem:[%s6949_s29 + $0xbc] ss:$0 sps:$4 sm:$0x33]  }
  0x51   : > { %1091 = vrot.lane.b32.xlu1 %v1052_v4, %s6889_s9  ;;  %v689_v4 = vsel %vm545_vm2, %v684_v52, %v688_v53  ;;  %v712_v41 = vrot.slane %v710_v33, 1  ;;  %v1064_v31 = vsel %vm1028_vm0, %v1062_v15, %v1063_v35  ;;  %v811_v48 = vrot.slane %v7199_v13, 1 }
  0x52   : > { %1089 = vrot.lane.b32.xlu0 %v1049_v8, %s6889_s9  ;;  %v943_v8 = vrot.slane %v669_v29, 2  ;;  %v959_v34 = vsel %vm851_vm3, %v953_v18, %v958_v19  ;;  %v691_v29 = vshrl.u32 %v7196_v12, 16  ;;  %v807_v40 = vrot.slane %v7196_v12, 1 }
  0x53   : > { %v1645_v50 = vsel %vm1317_vm4, %v6780_v0, 0  ;;  %v969_v52 = vrot.slane %v703_v26, 1  ;;  %v970_v53 = vrot.slane %v705_v16, 2  ;;  %v974_v56 = vrot.slane %v972_v42, 1 }
  0x54   : > { %v944_v9 = vor.u32 %v943_v8, %v942_v6  ;;  %v696_v44 = vor.u32 %v695_v25, %v691_v29  ;;  %6397 = vmatpush3.bf16.msra.mxu1 %v1645_v50  ;;  %v975_v57 = vrot.slane %v710_v33, 2  ;;  %v960_v58 = vrot.slane %v691_v29, 1 }
  0x55   : > { %756 = vrot.lane.b32.xlu1 %v665_v22, %s6891_s11  ;;  %v1319_v22 = vsel %vm1317_vm4, %v6774_v62, 0  ;;  %v961_v59 = vrot.slane %v693_v21, 2  ;;  %v812_v1 = vsel %vm770_vm1, %v810_v20, %v811_v48  ;;  %v971_v2 = vor.u32 %v970_v53, %v969_v52  ;;  %v7301_v48 = vld [vmem:[%s6949_s29 + $0xc8] ss:$0 sps:$4 sm:$0x33]  }
  0x56   : > { %754 = vrot.lane.b32.xlu0 %v653_v27, %s6891_s11  ;;  %v7214_v27 = vld [vmem:[%s6949_s29 + $0x98] ss:$0 sps:$4 sm:$0x33]   ;;  %6361 = vmatpush3.bf16.msra.mxu0 %v1319_v22  ;;  %v950_v38 = vsel %vm851_vm3, %v944_v9, %v949_v24  ;;  %v976_v3 = vor.u32 %v975_v57, %v974_v56  ;;  %v729_v0 = vshll.u32 %v7246_v46, 16  ;;  %v717_v8 = vshll.u32 %v7253_v54, 16 }
  0x57   : > { %6430 = vmatprep.subr.bf16.mxu0 %v7204_v14  ;;  %v698_v30 = vshll.u32 %v7214_v27, 16  ;;  %v962_v5 = vor.u32 %v961_v59, %v960_v58  ;;  %v1068_v10 = vrot.slane %v7187_v63, 2  ;;  %v1069_v11 = vrot.slane %v7199_v13, 2 }
  0x58   : > { %v727_v18 = vshrl.u32 %v7246_v46, 16  ;;  %v977_v19 = vsel %vm851_vm3, %v971_v2, %v976_v3  ;;  %v731_v22 = vrot.slane %v729_v0, 1  ;;  %v715_v9 = vshrl.u32 %v7253_v54, 16 }
  0x59   : > { %837 = vrot.lane.b32.xlu1 %v800_v32, %s6890_s10  ;;  %v707_v32 = vrot.slane %v705_v16, 1  ;;  %v700_v47 = vrot.slane %v698_v30, 1  ;;  %v966_v62 = vrot.slane %v698_v30, 2  ;;  %v1065_v16 = vrot.slane %v7196_v12, 2 }
  0x5a   : > { %835 = vrot.lane.b32.xlu0 %v797_v36, %s6890_s10  ;;  %v1059_v36 = vrot.slane %v7146_v28, 2  ;;  %v719_v24 = vrot.slane %v717_v8, 1  ;;  %v1070_v12 = vsel %vm1028_vm0, %v1068_v10, %v1069_v11  ;;  %v990_v15 = vshrl.u32 %v7262_v55, 16 }
  0x5b   : > { %v708_v39 = vor.u32 %v707_v32, %v703_v26  ;;  %v701_v60 = vsel %vm545_vm2, %v696_v44, %v700_v47  ;;  %v816_v35 = vrot.slane %v7246_v46, 1  ;;  %v987_v25 = vrot.slane %v727_v18, 1 }
  0x5c   : > { %v1061_v28 = vsel %vm1028_vm0, %v1059_v36, %v1060_v37  ;;  %v720_v32 = vor.u32 %v719_v24, %v715_v9  ;;  %v817_v36 = vrot.slane %v7262_v55, 1  ;;  %v813_v37 = vrot.slane %v7253_v54, 1 }
  0x5d   : > { %1014 = vrot.lane.b32.xlu1 %v941_v43, %s6892_s12  ;;  %v7240_v43 = vld [vmem:[%s9174_s2 + $0x24] sm:$0xff]   ;;  %v988_v30 = vrot.slane %v729_v0, 2  ;;  %v979_v42 = vrot.slane %v717_v8, 2  ;;  %v1074_v58 = vrot.slane %v7246_v46, 2  ;;  %v1075_v59 = vrot.slane %v7262_v55, 2 }
  0x5e   : > { %1012 = vrot.lane.b32.xlu0 %v932_v49, %s6892_s12  ;;  %v963_v49 = vshrl.u32 %v7214_v27, 16  ;;  %6466 = vmatprep.subr.bf16.mxu1 %v7240_v43  ;;  %v1071_v0 = vrot.slane %v7253_v54, 2  ;;  %v1576_v46 = vshrl.u32 %v7301_v48, 16  ;;  %v1569_v10 = vrot.slane %v7301_v48, 1 }
  0x5f   : > { %v7328_v54 = vld [vmem:[%s6949_s29 + $0xd4] ss:$0 sps:$4 sm:$0x33]  }
  0x60   : > { %v965_v61 = vrot.slane %v963_v49, 1  ;;  %v818_v49 = vsel %vm770_vm1, %v816_v35, %v817_v36  ;;  %v1888_v35 = vshll.u32 %v7328_v54, 16 }
  0x61   : > { %1095 = vrot.lane.b32.xlu1 %v1058_v45, %s6889_s9  ;;  %v713_v45 = vsel %vm545_vm2, %v708_v39, %v712_v41 }
  0x62   : > { %1093 = vrot.lane.b32.xlu0 %v1055_v51, %s6889_s9  ;;  %v808_v51 = vrot.slane %v7214_v27, 1  ;;  %v967_v6 = vor.u32 %v966_v62, %v965_v61 }
  0x64   : > { %v968_v63 = vsel %vm851_vm3, %v962_v5, %v967_v6  ;;  %v1076_v6 = vsel %vm1028_vm0, %v1074_v58, %v1075_v59 }
  0x65   : > { %760 = vrot.lane.b32.xlu1 %v689_v4, %s6891_s11  ;;  %v809_v4 = vsel %vm770_vm1, %v807_v40, %v808_v51  ;;  %v989_v40 = vor.u32 %v988_v30, %v987_v25  ;;  %v1902_v25 = vshrl.u32 %v7328_v54, 16  ;;  %v7348_v30 = vld [vmem:[%s6949_s29 + $0xd8] sm:$0xff]  }
  0x66   : > { %758 = vrot.lane.b32.xlu0 %v677_v7, %s6891_s11  ;;  %v7267_v7 = vld [vmem:[%s6949_s29 + $0xb0] ss:$0 sps:$4 sm:$0x33]  }
  0x67   : > { %v722_v13 = vshll.u32 %v7267_v7, 16  ;;  %v814_v29 = vrot.slane %v7267_v7, 1  ;;  %v1904_v59 = vrot.slane %v1902_v25, 1  ;;  %v6844_v25 = vld [vmem:[%s6949_s29 + $0x18] sm:$0xff]  }
  0x69   : > { %841 = vrot.lane.b32.xlu1 %v806_v17, %s6890_s10  ;;  %v1066_v17 = vrot.slane %v7214_v27, 2  ;;  %v732_v27 = vor.u32 %v731_v22, %v727_v18  ;;  %v724_v33 = vrot.slane %v722_v13, 1  ;;  %v984_v47 = vrot.slane %v722_v13, 2  ;;  %v6841_v13 = vld [vmem:[%s6949_s29] sm:$0xff]  }
  0x6a   : > { %839 = vrot.lane.b32.xlu0 %v803_v23, %s6890_s10  ;;  %v734_v23 = vshll.u32 %v7262_v55, 16  ;;  %v815_v53 = vsel %vm770_vm1, %v813_v37, %v814_v29  ;;  %v7321_v55 = vld [vmem:[%s6949_s29 + $0xcc] sm:$0xff]  }
  0x6b   : > { %v1067_v26 = vsel %vm1028_vm0, %v1065_v16, %v1066_v17  ;;  %v725_v20 = vsel %vm545_vm2, %v720_v32, %v724_v33 }
  0x6c   : > { %v736_v21 = vrot.slane %v734_v23, 1  ;;  %v993_v39 = vrot.slane %v734_v23, 2  ;;  %v1578_v23 = vrot.slane %v1576_v46, 1  ;;  %v2207_v46 = vshrl.u32 %v7348_v30, 16 }
  0x6d   : > { %1018 = vrot.lane.b32.xlu1 %v959_v34, %s6892_s12  ;;  %v981_v34 = vshrl.u32 %v7267_v7, 16 }
  0x6e   : > { %1016 = vrot.lane.b32.xlu0 %v950_v38, %s6892_s12  ;;  %v7292_v38 = vld [vmem:[%s6949_s29 + $0xc0] sm:$0xff]   ;;  %v737_v41 = vsel %vm545_vm2, %v732_v27, %v736_v21  ;;  %v6842_v27 = vld [vmem:[%s6949_s29 + $0xc] sm:$0xff]  }
  0x6f   : > { %v983_v44 = vrot.slane %v981_v34, 1  ;;  %v1555_v62 = vshrl.u32 %v7292_v38, 16  ;;  %v1568_v8 = vrot.slane %v7292_v38, 1  ;;  %v1584_v24 = vrot.slane %v7292_v38, 2 }
  0x70   : > { %v1881_v34 = vshrl.u32 %v7321_v55, 16 }
  0x71   : > { %1099 = vrot.lane.b32.xlu1 %v1064_v31, %s6889_s9  ;;  %v992_v31 = vrot.slane %v990_v15, 1  ;;  %v985_v57 = vor.u32 %v984_v47, %v983_v44  ;;  %v1573_v16 = vrot.slane %v1555_v62, 1  ;;  %v1570_v15 = vsel %vm770_vm1, %v1568_v8, %v1569_v10  ;;  %v7360_v44 = vld [vmem:[%s9174_s2 + $0x20] ss:$0 sps:$4 sm:$0x33]  }
  0x72   : > { %1097 = vrot.lane.b32.xlu0 %v1061_v28, %s6889_s9  ;;  %v978_v28 = vrot.slane %v715_v9, 1  ;;  %v1883_v9 = vshll.u32 %v7321_v55, 16 }
  0x73   : > { %v994_v50 = vor.u32 %v993_v39, %v992_v31 }
  0x74   : > { %v980_v56 = vor.u32 %v979_v42, %v978_v28  ;;  %v1885_v29 = vrot.slane %v1883_v9, 1  ;;  %v1894_v28 = vrot.slane %v7321_v55, 1  ;;  %v7355_v42 = vld [vmem:[%s6949_s29 + $0xe0] ss:$0 sps:$4 sm:$0x33]  }
  0x75   : > { %764 = vrot.lane.b32.xlu1 %v713_v45, %s6891_s11  ;;  %v1557_v45 = vshll.u32 %v7292_v38, 16  ;;  %v995_v61 = vsel %vm851_vm3, %v989_v40, %v994_v50  ;;  %v1900_v40 = vrot.slane %v1883_v9, 2  ;;  %v7403_v9 = vld [vmem:[%s7124_s17 + $0x8] ss:$0 sps:$4 sm:$0x33]  }
  0x76   : > { %762 = vrot.lane.b32.xlu0 %v701_v60, %s6891_s11  ;;  %v1562_v60 = vshll.u32 %v7301_v48, 16  ;;  %v986_v3 = vsel %vm851_vm3, %v980_v56, %v985_v57  ;;  %v1886_v58 = vor.u32 %v1885_v29, %v1881_v34 }
  0x77   : > { %v1574_v17 = vrot.slane %v1557_v45, 2 }
  0x78   : > { %v1564_v11 = vrot.slane %v1562_v60, 1  ;;  %v1579_v18 = vrot.slane %v1562_v60, 2  ;;  %v2209_v60 = vshll.u32 %v7348_v30, 16 }
  0x79   : > { %845 = vrot.lane.b32.xlu1 %v812_v1, %s6890_s10  ;;  %v1559_v1 = vrot.slane %v1557_v45, 1  ;;  %v1575_v33 = vor.u32 %v1574_v17, %v1573_v16  ;;  %v7396_v17 = vld [vmem:[%s7124_s17 + $0x14] ss:$0 sps:$4 sm:$0x33]  }
  0x7a   : > { %843 = vrot.lane.b32.xlu0 %v809_v4, %s6890_s10  ;;  %v1072_v4 = vrot.slane %v7267_v7, 2  ;;  %v1580_v38 = vor.u32 %v1579_v18, %v1578_v23  ;;  %v2211_v10 = vrot.slane %v2209_v60, 1  ;;  %v2226_v16 = vrot.slane %v2209_v60, 2 }
  0x7b   : > { %v1560_v7 = vor.u32 %v1559_v1, %v1555_v62  ;;  %v1910_v62 = vrot.slane %v7321_v55, 2  ;;  %v1911_v1 = vrot.slane %v7328_v54, 2 }
  0x7c   : > { %v1073_v22 = vsel %vm1028_vm0, %v1071_v0, %v1072_v4  ;;  %v1581_v57 = vsel %vm851_vm3, %v1575_v33, %v1580_v38  ;;  %v2220_v0 = vrot.slane %v7348_v30, 1  ;;  %v2221_v4 = vrot.slane %v7355_v42, 1 }
  0x7d   : > { %1022 = vrot.lane.b32.xlu1 %v977_v19, %s6892_s12  ;;  %v1565_v32 = vsel %vm545_vm2, %v1560_v7, %v1564_v11  ;;  %v2228_v11 = vshrl.u32 %v7355_v42, 16  ;;  %v2225_v7 = vrot.slane %v2207_v46, 1  ;;  %v3058_v38 = vshll.u32 %v7396_v17, 16 }
  0x7e   : > { %1020 = vrot.lane.b32.xlu0 %v968_v63, %s6892_s12 }
  0x7f   : > { %v2227_v33 = vor.u32 %v2226_v16, %v2225_v7 }
  0x81   : > { %1103 = vrot.lane.b32.xlu1 %v1070_v12, %s6889_s9 }
  0x82   : > { %1101 = vrot.lane.b32.xlu0 %v1067_v26, %s6889_s9  ;;  %v1585_v26 = vrot.slane %v7301_v48, 2 }
  0x84   : > { %v1586_v45 = vsel %vm1028_vm0, %v1584_v24, %v1585_v26  ;;  %v2236_v26 = vrot.slane %v7348_v30, 2 }
  0x85   : > { %768 = vrot.lane.b32.xlu1 %v737_v41, %s6891_s11 }
  0x86   : > { %766 = vrot.lane.b32.xlu0 %v725_v20, %s6891_s11  ;;  %v1895_v20 = vrot.slane %v7328_v54, 1 }
  0x87   : > { %v7306_v51 = vpop.permute.xlu0 %1077  ;;  %v820_v52 = vpop.permute.xlu1 %819 }
  0x89   : > { %849 = vrot.lane.b32.xlu1 %v818_v49, %s6890_s10  ;;  %v1899_v49 = vrot.slane %v1881_v34, 1 }
  0x8a   : > { %847 = vrot.lane.b32.xlu0 %v815_v53, %s6890_s10  ;;  %v1905_v53 = vrot.slane %v1888_v35, 2 }
  0x8b   : > { %v822_v2 = vpop.permute.xlu1 %821 }
  0x8c   : > { %v739_v5 = vpop.permute.xlu0 %738  ;;  %v1906_v8 = vor.u32 %v1905_v53, %v1904_v59  ;;  %v3354_v53 = vshrl.u32 %v7396_v17, 16 }
  0x8d   : > { %1026 = vrot.lane.b32.xlu1 %v995_v61, %s6892_s12  ;;  %v1110_v12 = vsel %vm324_vm5, %v6841_v13, %v739_v5  ;;  %v1896_v61 = vsel %vm770_vm1, %v1894_v28, %v1895_v20  ;;  %v2214_v5 = vshll.u32 %v7355_v42, 16 }
  0x8e   : > { %1024 = vrot.lane.b32.xlu0 %v986_v3, %s6892_s12  ;;  %v1143_v41 = vsel %vm1141_vm6, %v1110_v12, %v820_v52  ;;  %v1890_v52 = vrot.slane %v1888_v35, 1  ;;  %v7379_v3 = vld [vmem:[%s7124_s17 + $0xc] sm:$0xff]   ;;  %v2212_v12 = vor.u32 %v2211_v10, %v2207_v46  ;;  %v6843_v35 = vld [vmem:[%s6949_s29 + $0x24] sm:$0xff]  }
  0x8f   : > { %v1080_v19 = vpop.permute.xlu1 %1079  ;;  %v3053_v18 = vshll.u32 %v7379_v3, 16  ;;  %v2216_v23 = vrot.slane %v2214_v5, 1  ;;  %v3051_v34 = vshrl.u32 %v7379_v3, 16 }
  0x90   : > { %v741_v63 = vpop.permute.xlu0 %740 }
  0x91   : > { %v1112_v21 = vsel %vm324_vm5, %v6842_v27, %v741_v63  ;;  %1107 = vrot.lane.b32.xlu1 %v1076_v6, %s6889_s9  ;;  %v7388_v6 = vld [vmem:[%s7124_s17] sm:$0xff]   ;;  %v2230_v27 = vrot.slane %v2228_v11, 1  ;;  %v3352_v46 = vrot.slane %v3053_v18, 2 }
  0x92   : > { %1105 = vrot.lane.b32.xlu0 %v1073_v22, %s6889_s9  ;;  %v1145_v37 = vsel %vm1141_vm6, %v1112_v21, %v822_v2  ;;  %v1901_v2 = vor.u32 %v1900_v40, %v1899_v49  ;;  %v2222_v22 = vsel %vm770_vm1, %v2220_v0, %v2221_v4  ;;  %v3041_v63 = vshll.u32 %v7388_v6, 16  ;;  %v7463_v11 = vld [vmem:[%s7124_s17 + $0x24] sm:$0xff]  }
  0x93   : > { %v999_v36 = vpop.permute.xlu1 %998  ;;  %v2231_v21 = vrot.slane %v2214_v5, 2  ;;  %v3039_v29 = vshrl.u32 %v7388_v6, 16  ;;  %v3266_v0 = vrot.slane %v7396_v17, 1  ;;  %v3351_v4 = vrot.slane %v3051_v34, 1 }
  0x94   : > { %v1178_v39 = vsel %vm1174_vm7, %v1145_v37, %v999_v36  ;;  %v997_v31 = vpop.permute.xlu0 %996  ;;  %v1907_v13 = vsel %vm851_vm3, %v1901_v2, %v1906_v8  ;;  %v3055_v37 = vrot.slane %v3053_v18, 1  ;;  %v3265_v2 = vrot.slane %v7379_v3, 1 }
  0x95   : > { %v1176_v47 = vsel %vm1174_vm7, %v1143_v41, %v997_v31  ;;  %1571 = vrot.lane.b32.xlu1 %v1570_v15, %s6890_s10  ;;  %v1211_v48 = vsel %vm1207_vm8, %v1178_v39, %v1080_v19  ;;  %v1912_v19 = vsel %vm1028_vm0, %v1910_v62, %v1911_v1  ;;  %v3043_v41 = vrot.slane %v3041_v63, 1 }
  0x96   : > { %1566 = vrot.lane.b32.xlu0 %v1565_v32, %s6891_s11  ;;  %v1209_v50 = vsel %vm1207_vm8, %v1176_v47, %v7306_v51  ;;  %6398 = vmatprep.mubr.msk.bf16.mxu1 %vm1284_vm9, %v1211_v48  ;;  %v2237_v32 = vrot.slane %v7355_v42, 2  ;;  %v3046_v31 = vshll.u32 %v7403_v9, 16  ;;  %v2217_v47 = vsel %vm545_vm2, %v2212_v12, %v2216_v23  ;;  %v7472_v12 = vld [vmem:[%s7124_s17 + $0x2c] ss:$0 sps:$4 sm:$0x33]  }
  0x97   : > { %6362 = vmatprep.mubr.msk.bf16.mxu0 %vm1284_vm9, %v1209_v50  ;;  %v745_v56 = vpop.permute.xlu1 %744  ;;  %v3044_v59 = vor.u32 %v3043_v41, %v3039_v29  ;;  %v3345_v62 = vshrl.u32 %v7403_v9, 16  ;;  %v3356_v5 = vrot.slane %v3354_v53, 1  ;;  %v3262_v10 = vrot.slane %v7388_v6, 1 }
  0x98   : > { %6363 = vmatmul.mubr.msk.bf16.vlgmr.msra.gmra.mrb[0].mxu0 %vm1284_vm9, %v1211_v48  ;;  %v743_v51 = vpop.permute.xlu0 %742  ;;  %v1116_v36 = vsel %vm324_vm5, %v6843_v35, %v745_v56  ;;  %v2232_v48 = vor.u32 %v2231_v21, %v2230_v27  ;;  %v7438_v56 = vld [vmem:[%s9174_s2 + $0x2c] ss:$0 sps:$4 sm:$0x33]   ;;  %v3048_v60 = vrot.slane %v3046_v31, 1  ;;  %v3342_v7 = vrot.slane %v3039_v29, 1 }
  0x99   : > { %1587 = vrot.lane.b32.xlu1 %v1586_v45, %s6889_s9  ;;  %6431 = vmatpush3.bf16.msra.mxu0 %v7204_v14  ;;  %v1891_v14 = vsel %vm545_vm2, %v1886_v58, %v1890_v52  ;;  %v1114_v39 = vsel %vm324_vm5, %v6844_v25, %v743_v51  ;;  %v2238_v52 = vsel %vm1028_vm0, %v2236_v26, %v2237_v32  ;;  %v3060_v58 = vrot.slane %v3058_v38, 1 }
  0x9a   : > { %1582 = vrot.lane.b32.xlu0 %v1581_v57, %s6892_s12  ;;  %6720 = vmatprep.subr.msk.bf16.mxu0 %vm1317_vm4, %v7360_v44  ;;  %v3056_v57 = vor.u32 %v3055_v37, %v3051_v34  ;;  %v3049_v8 = vsel %vm545_vm2, %v3044_v59, %v3048_v60  ;;  %v3343_v16 = vrot.slane %v3041_v63, 2  ;;  %v3347_v18 = vrot.slane %v3345_v62, 1  ;;  %v7515_v60 = vld [vmem:[%s9174_s2 + $0x30] sm:$0xff]  }
  0x9b   : > { %v826_v55 = vpop.permute.xlu1 %825  ;;  %v3267_v27 = vsel %vm770_vm1, %v3265_v2, %v3266_v0  ;;  %v3077_v63 = vshll.u32 %v7463_v11, 16  ;;  %v3521_v34 = vrot.slane %v7379_v3, 2  ;;  %v3522_v37 = vrot.slane %v7396_v17, 2 }
  0x9c   : > { %v824_v54 = vpop.permute.xlu0 %823  ;;  %v1149_v30 = vsel %vm1141_vm6, %v1116_v36, %v826_v55  ;;  %v3357_v55 = vrot.slane %v3058_v38, 2  ;;  %v3344_v32 = vor.u32 %v3343_v16, %v3342_v7  ;;  %v3518_v38 = vrot.slane %v7388_v6, 2  ;;  %v7535_v7 = vld [vmem:[%s7124_s17 + $0x3c] sm:$0xff]  }
  0x9d   : > { %1897 = vrot.lane.b32.xlu1 %v1896_v61, %s6890_s10  ;;  %v1147_v28 = vsel %vm1141_vm6, %v1114_v39, %v824_v54  ;;  %v2233_v61 = vsel %vm851_vm3, %v2227_v33, %v2232_v48  ;;  %v3519_v29 = vrot.slane %v7403_v9, 2  ;;  %v3075_v25 = vshrl.u32 %v7463_v11, 16  ;;  %v6845_v39 = vld [vmem:[%s6949_s29 + $0x3c] sm:$0xff]  }
  0x9e   : > { %1892 = vrot.lane.b32.xlu0 %v1891_v14, %s6891_s11  ;;  %v3061_v14 = vsel %vm545_vm2, %v3056_v57, %v3060_v58  ;;  %v3082_v3 = vshll.u32 %v7472_v12, 16  ;;  %v3372_v59 = vshrl.u32 %v7472_v12, 16 }
  0x9f   : > { %v1003_v24 = vpop.permute.xlu1 %1002  ;;  %v3520_v0 = vsel %vm1028_vm0, %v3518_v38, %v3519_v29  ;;  %v7556_v38 = vld [vmem:[%s9175_s3] sm:$0xff]  }
  0xa0   : > { %v1001_v15 = vpop.permute.xlu0 %1000  ;;  %v1182_v20 = vsel %vm1174_vm7, %v1149_v30, %v1003_v24  ;;  %v3353_v24 = vor.u32 %v3352_v46, %v3351_v4  ;;  %v3084_v62 = vrot.slane %v3082_v3, 1 }
  0xa1   : > { %1913 = vrot.lane.b32.xlu1 %v1912_v19, %s6889_s9  ;;  %v1180_v49 = vsel %vm1174_vm7, %v1147_v28, %v1001_v15  ;;  %v3348_v19 = vrot.slane %v3046_v31, 2  ;;  %v7479_v15 = vld [vmem:[%s7124_s17 + $0x20] ss:$0 sps:$4 sm:$0x33]   ;;  %v6846_v28 = vld [vmem:[%s6949_s29 + $0x30] sm:$0xff]  }
  0xa2   : > { %1908 = vrot.lane.b32.xlu0 %v1907_v13, %s6892_s12  ;;  %v3358_v13 = vor.u32 %v3357_v55, %v3356_v5  ;;  %v3363_v5 = vshrl.u32 %v7479_v15, 16 }
  0xa3   : > { %v1084_v42 = vpop.permute.xlu1 %1083  ;;  %v3349_v33 = vor.u32 %v3348_v19, %v3347_v18  ;;  %v3269_v19 = vrot.slane %v7479_v15, 1 }
  0xa4   : > { %v7427_v40 = vsel %vm1207_vm8, %v1182_v20, %v1084_v42  ;;  %v1082_v50 = vpop.permute.xlu0 %1081  ;;  %v3359_v41 = vsel %vm851_vm3, %v3353_v24, %v3358_v13  ;;  %v3070_v20 = vshll.u32 %v7479_v15, 16 }
  0xa5   : > { %v7430_v45 = vsel %vm1207_vm8, %v1180_v49, %v1082_v50  ;;  %2223 = vrot.lane.b32.xlu1 %v2222_v22, %s6890_s10  ;;  %v7468_v22 = vld [vmem:[%s7124_s17 + $0x18] sm:$0xff]   ;;  %v3350_v49 = vsel %vm851_vm3, %v3344_v32, %v3349_v33 }
  0xa6   : > { %2218 = vrot.lane.b32.xlu0 %v2217_v47, %s6891_s11  ;;  %6366 = vmatprep.mubr.msk.bf16.mxu0 %vm1284_vm9, %v7430_v45  ;;  %v3065_v35 = vshll.u32 %v7468_v22, 16  ;;  %v3063_v31 = vshrl.u32 %v7468_v22, 16  ;;  %v3072_v46 = vrot.slane %v3070_v20, 1  ;;  %v3268_v18 = vrot.slane %v7468_v22, 1 }
  0xa7   : > { %6399 = vmatmul.mubr.msk.bf16.vlgmr.msra.gmra.mrb[0].mxu1 %vm1284_vm9, %v7430_v45  ;;  %6367 = vmatmul.mubr.msk.bf16.gmra.mrb[4].mxu0 %vm1284_vm9, %v7427_v40  ;;  %v749_v51 = vpop.permute.xlu1 %748 }
  0xa8   : > { %6402 = vmatprep.mubr.msk.bf16.mxu1 %vm1284_vm9, %v7427_v40  ;;  %v747_v1 = vpop.permute.xlu0 %746  ;;  %6467 = vmatpush3.bf16.msra.mxu1 %v7240_v43  ;;  %v3263_v43 = vrot.slane %v7403_v9, 1  ;;  %v1120_v30 = vsel %vm324_vm5, %v6845_v39, %v749_v51  ;;  %v3079_v9 = vrot.slane %v3077_v63, 1  ;;  %v3067_v50 = vrot.slane %v3065_v35, 1  ;;  %v7563_v39 = vld [vmem:[%s7124_s17 + $0x38] ss:$0 sps:$4 sm:$0x33]  }
  0xa9   : > { %2239 = vrot.lane.b32.xlu1 %v2238_v52, %s6889_s9  ;;  %6721 = vmatprep.subr.msk.bf16.mxu1 %vm1317_vm4, %v7438_v56  ;;  %v1118_v17 = vsel %vm324_vm5, %v6846_v28, %v747_v1  ;;  %v3523_v51 = vsel %vm1028_vm0, %v3521_v34, %v3522_v37  ;;  %v1971_v1 = vsel %vm1317_vm4, %v7360_v44, 0  ;;  %v3271_v44 = vrot.slane %v7463_v11, 1 }
  0xaa   : > { %2234 = vrot.lane.b32.xlu0 %v2233_v61, %s6892_s12  ;;  %v3264_v21 = vsel %vm770_vm1, %v3262_v10, %v3263_v43  ;;  %v3080_v61 = vor.u32 %v3079_v9, %v3075_v25  ;;  %v3068_v4 = vor.u32 %v3067_v50, %v3063_v31  ;;  %6433 = vmatpush3.bf16.msra.mxu0 %v1971_v1  ;;  %v3370_v10 = vrot.slane %v3077_v63, 2 }
  0xab   : > { %v830_v54 = vpop.permute.xlu1 %829  ;;  %v3374_v43 = vrot.slane %v3372_v59, 1  ;;  %6502 = vmatprep.subr.bf16.mxu0 %v7515_v60  ;;  %v3366_v63 = vrot.slane %v3070_v20, 2  ;;  %v3101_v37 = vshll.u32 %v7535_v7, 16  ;;  %v3270_v29 = vsel %vm770_vm1, %v3268_v18, %v3269_v19 }
  0xac   : > { %v828_v23 = vpop.permute.xlu0 %827  ;;  %v1153_v6 = vsel %vm1141_vm6, %v1120_v30, %v830_v54  ;;  %v3375_v54 = vrot.slane %v3082_v3, 2  ;;  %v3085_v16 = vsel %vm545_vm2, %v3080_v61, %v3084_v62  ;;  %v3073_v13 = vsel %vm545_vm2, %v3068_v4, %v3072_v46 }
  0xad   : > { %3232 = vrot.lane.b32.xlu1 %v3061_v14, %s6891_s11  ;;  %v1151_v42 = vsel %vm1141_vm6, %v1118_v17, %v828_v23  ;;  %v3272_v14 = vrot.slane %v7472_v12, 1  ;;  %v3360_v23 = vrot.slane %v3063_v31, 1  ;;  %v2297_v28 = vsel %vm1317_vm4, %v7438_v56, 0 }
  0xae   : > { %3230 = vrot.lane.b32.xlu0 %v3049_v8, %s6891_s11  ;;  %v3369_v8 = vrot.slane %v3075_v25, 1  ;;  %v3376_v34 = vor.u32 %v3375_v54, %v3374_v43  ;;  %v3527_v25 = vrot.slane %v7463_v11, 2  ;;  %v3524_v9 = vrot.slane %v7468_v22, 2  ;;  %6469 = vmatpush3.bf16.msra.mxu1 %v2297_v28  ;;  %v6848_v22 = vld [vmem:[%s6949_s29 + $0x48] sm:$0xff]  }
  0xaf   : > { %v1007_v26 = vpop.permute.xlu1 %1006  ;;  %v3525_v20 = vrot.slane %v7479_v15, 2  ;;  %v3099_v11 = vshrl.u32 %v7535_v7, 16  ;;  %v3103_v56 = vrot.slane %v3101_v37, 1  ;;  %6538 = vmatprep.subr.bf16.mxu1 %v7556_v38  ;;  %v3277_v18 = vrot.slane %v7535_v7, 1 }
  0xb0   : > { %v1005_v36 = vpop.permute.xlu0 %1004  ;;  %v1186_v47 = vsel %vm1174_vm7, %v1153_v6, %v1007_v26  ;;  %v7546_v26 = vld [vmem:[%s7124_s17 + $0x30] sm:$0xff]   ;;  %v3371_v33 = vor.u32 %v3370_v10, %v3369_v8  ;;  %v3528_v6 = vrot.slane %v7472_v12, 2 }
  0xb1   : > { %3312 = vrot.lane.b32.xlu1 %v3267_v27, %s6890_s10  ;;  %v1184_v52 = vsel %vm1174_vm7, %v1151_v42, %v1005_v36  ;;  %v3361_v27 = vrot.slane %v3065_v35, 2  ;;  %v7550_v36 = vld [vmem:[%s7124_s17 + $0x44] ss:$0 sps:$4 sm:$0x33]   ;;  %v3273_v35 = vsel %vm770_vm1, %v3271_v44, %v3272_v14  ;;  %v3089_v31 = vshll.u32 %v7546_v26, 16  ;;  %v6847_v42 = vld [vmem:[%s6949_s29 + $0x54] sm:$0xff]  }
  0xb2   : > { %3310 = vrot.lane.b32.xlu0 %v3264_v21, %s6890_s10  ;;  %v3365_v21 = vrot.slane %v3363_v5, 1  ;;  %v3087_v50 = vshrl.u32 %v7546_v26, 16  ;;  %v3104_v46 = vor.u32 %v3103_v56, %v3099_v11  ;;  %v3529_v44 = vsel %vm1028_vm0, %v3527_v25, %v3528_v6  ;;  %v7636_v56 = vld [vmem:[%s7124_s17 + $0x50] ss:$0 sps:$4 sm:$0x33]  }
  0xb3   : > { %v1088_v48 = vpop.permute.xlu1 %1087  ;;  %v3091_v62 = vrot.slane %v3089_v31, 1  ;;  %v3381_v14 = vshrl.u32 %v7563_v39, 16  ;;  %v3526_v10 = vsel %vm1028_vm0, %v3524_v9, %v3525_v20  ;;  %v3278_v19 = vrot.slane %v7550_v36, 1 }
  0xb4   : > { %v7505_v53 = vsel %vm1207_vm8, %v1186_v47, %v1088_v48  ;;  %v1086_v57 = vpop.permute.xlu0 %1085  ;;  %v3367_v3 = vor.u32 %v3366_v63, %v3365_v21  ;;  %v3377_v48 = vsel %vm851_vm3, %v3371_v33, %v3376_v34  ;;  %v3379_v33 = vrot.slane %v3089_v31, 2 }
  0xb5   : > { %v7508_v58 = vsel %vm1207_vm8, %v1184_v52, %v1086_v57  ;;  %3488 = vrot.lane.b32.xlu1 %v3359_v41, %s6892_s12  ;;  %v3362_v41 = vor.u32 %v3361_v27, %v3360_v23  ;;  %v3094_v52 = vshll.u32 %v7563_v39, 16  ;;  %v3092_v43 = vor.u32 %v3091_v62, %v3087_v50  ;;  %v6850_v62 = vld [vmem:[%s6949_s29 + $0x60] sm:$0xff]  }
  0xb6   : > { %3486 = vrot.lane.b32.xlu0 %v3350_v49, %s6892_s12  ;;  %6370 = vmatprep.mubr.msk.bf16.mxu0 %vm1284_vm9, %v7508_v58  ;;  %v3106_v49 = vshll.u32 %v7550_v36, 16  ;;  %v3387_v23 = vrot.slane %v3099_v11, 1  ;;  %v3388_v27 = vrot.slane %v3101_v37, 2  ;;  %v3383_v34 = vrot.slane %v3381_v14, 1 }
  0xb7   : > { %6403 = vmatmul.mubr.msk.bf16.gmra.mrb[4].mxu1 %vm1284_vm9, %v7508_v58  ;;  %6371 = vmatmul.mubr.msk.bf16.gmra.mrb[8].mxu0 %vm1284_vm9, %v7505_v53  ;;  %v753_v2 = vpop.permute.xlu1 %752  ;;  %v3368_v61 = vsel %vm851_vm3, %v3362_v41, %v3367_v3  ;;  %v3096_v54 = vrot.slane %v3094_v52, 1  ;;  %v3275_v41 = vrot.slane %v7563_v39, 1  ;;  %v7624_v3 = vld [vmem:[%s7124_s17 + $0x48] sm:$0xff]   ;;  %v7627_v37 = vld [vmem:[%s7124_s17 + $0x5c] ss:$0 sps:$4 sm:$0x33]   ;;  %v3279_v9 = vsel %vm770_vm1, %v3277_v18, %v3278_v19 }
  0xb8   : > { %6406 = vmatprep.mubr.msk.bf16.mxu1 %vm1284_vm9, %v7505_v53  ;;  %v751_v55 = vpop.permute.xlu0 %750  ;;  %v1124_v47 = vsel %vm324_vm5, %v6847_v42, %v753_v2  ;;  %v3108_v5 = vrot.slane %v3106_v49, 1  ;;  %v3393_v63 = vrot.slane %v3106_v49, 2  ;;  %v3389_v31 = vor.u32 %v3388_v27, %v3387_v23 }
  0xb9   : > { %3568 = vrot.lane.b32.xlu1 %v3523_v51, %s6889_s9  ;;  %v1122_v12 = vsel %vm324_vm5, %v6848_v22, %v751_v55  ;;  %v3390_v55 = vshrl.u32 %v7550_v36, 16  ;;  %v3097_v25 = vsel %vm545_vm2, %v3092_v43, %v3096_v54  ;;  %v3113_v49 = vshll.u32 %v7624_v3, 16 }
  0xba   : > { %3566 = vrot.lane.b32.xlu0 %v3520_v0, %s6889_s9  ;;  %v3408_v18 = vshrl.u32 %v7627_v37, 16  ;;  %v3399_v23 = vshrl.u32 %v7636_v56, 16 }
  0xbb   : > { %v834_v24 = vpop.permute.xlu1 %833  ;;  %v3392_v21 = vrot.slane %v3390_v55, 1  ;;  %v3115_v14 = vrot.slane %v3113_v49, 1 }
  0xbc   : > { %v832_v32 = vpop.permute.xlu0 %831  ;;  %v1157_v15 = vsel %vm1141_vm6, %v1124_v47, %v834_v24  ;;  %v7613_v24 = vld [vmem:[%s7124_s17 + $0x54] sm:$0xff]  }
  0xbd   : > { %3236 = vrot.lane.b32.xlu1 %v3085_v16, %s6891_s11  ;;  %v1155_v57 = vsel %vm1141_vm6, %v1122_v12, %v832_v32  ;;  %v3378_v32 = vrot.slane %v3087_v50, 1  ;;  %v3394_v6 = vor.u32 %v3393_v63, %v3392_v21  ;;  %v3534_v12 = vrot.slane %v7550_v36, 2 }
  0xbe   : > { %3234 = vrot.lane.b32.xlu0 %v3073_v13, %s6891_s11  ;;  %v3109_v13 = vsel %vm545_vm2, %v3104_v46, %v3108_v5  ;;  %v3111_v46 = vshrl.u32 %v7624_v3, 16 }
  0xbf   : > { %v1011_v30 = vpop.permute.xlu1 %1010  ;;  %v3380_v20 = vor.u32 %v3379_v33, %v3378_v32 }
  0xc0   : > { %v1009_v17 = vpop.permute.xlu0 %1008  ;;  %v1190_v59 = vsel %vm1174_vm7, %v1157_v15, %v1011_v30  ;;  %v3274_v30 = vrot.slane %v7546_v26, 1  ;;  %v3123_v15 = vshrl.u32 %v7613_v24, 16  ;;  %v3116_v21 = vor.u32 %v3115_v14, %v3111_v46 }
  0xc1   : > { %3316 = vrot.lane.b32.xlu1 %v3273_v35, %s6890_s10  ;;  %v1188_v1 = vsel %vm1174_vm7, %v1155_v57, %v1009_v17  ;;  %v3384_v35 = vrot.slane %v3094_v52, 2  ;;  %v3125_v17 = vshll.u32 %v7613_v24, 16  ;;  %v3130_v52 = vshll.u32 %v7627_v37, 16  ;;  %v6849_v57 = vld [vmem:[%s6949_s29 + $0x6c] sm:$0xff]  }
  0xc2   : > { %3314 = vrot.lane.b32.xlu0 %v3270_v29, %s6890_s10  ;;  %v3276_v47 = vsel %vm770_vm1, %v3274_v30, %v3275_v41  ;;  %v3410_v30 = vrot.slane %v3408_v18, 1 }
  0xc3   : > { %v1092_v51 = vpop.permute.xlu1 %1091  ;;  %v3385_v11 = vor.u32 %v3384_v35, %v3383_v34  ;;  %v3127_v50 = vrot.slane %v3125_v17, 1  ;;  %v3132_v54 = vrot.slane %v3130_v52, 1  ;;  %v3283_v34 = vrot.slane %v7613_v24, 1 }
  0xc4   : > { %v7591_v2 = vsel %vm1207_vm8, %v1190_v59, %v1092_v51  ;;  %v1090_v0 = vpop.permute.xlu0 %1089  ;;  %v3395_v51 = vsel %vm851_vm3, %v3389_v31, %v3394_v6  ;;  %v3284_v35 = vrot.slane %v7627_v37, 1  ;;  %v3411_v41 = vrot.slane %v3130_v52, 2 }
  0xc5   : > { %v7594_v4 = vsel %vm1207_vm8, %v1188_v1, %v1090_v0  ;;  %3492 = vrot.lane.b32.xlu1 %v3377_v48, %s6892_s12  ;;  %v3533_v48 = vrot.slane %v7535_v7, 2  ;;  %v3530_v7 = vrot.slane %v7546_v26, 2  ;;  %v3386_v0 = vsel %vm851_vm3, %v3380_v20, %v3385_v11 }
  0xc6   : > { %3490 = vrot.lane.b32.xlu0 %v3368_v61, %s6892_s12  ;;  %6374 = vmatprep.mubr.msk.bf16.mxu0 %vm1284_vm9, %v7594_v4  ;;  %v3531_v61 = vrot.slane %v7563_v39, 2  ;;  %v3118_v26 = vshll.u32 %v7636_v56, 16  ;;  %v3128_v43 = vor.u32 %v3127_v50, %v3123_v15  ;;  %v3396_v31 = vrot.slane %v3111_v46, 1  ;;  %v7694_v50 = vld [vmem:[%s7124_s17 + $0x74] ss:$0 sps:$4 sm:$0x33]  }
  0xc7   : > { %6407 = vmatmul.mubr.msk.bf16.gmra.mrb[8].mxu1 %vm1284_vm9, %v7594_v4  ;;  %6375 = vmatmul.mubr.msk.bf16.gmra.mrb[12].mxu0 %vm1284_vm9, %v7591_v2  ;;  %v757_v8 = vpop.permute.xlu1 %756  ;;  %v3535_v19 = vsel %vm1028_vm0, %v3533_v48, %v3534_v12  ;;  %v3397_v6 = vrot.slane %v3113_v49, 2  ;;  %v3281_v48 = vrot.slane %v7636_v56, 1  ;;  %v3285_v52 = vsel %vm770_vm1, %v3283_v34, %v3284_v35 }
  0xc8   : > { %6410 = vmatprep.mubr.msk.bf16.mxu1 %vm1284_vm9, %v7591_v2  ;;  %v755_v16 = vpop.permute.xlu0 %754  ;;  %v1128_v59 = vsel %vm324_vm5, %v6849_v57, %v757_v8  ;;  %v3532_v27 = vsel %vm1028_vm0, %v3530_v7, %v3531_v61  ;;  %v3120_v63 = vrot.slane %v3118_v26, 1  ;;  %v3133_v33 = vsel %vm545_vm2, %v3128_v43, %v3132_v54  ;;  %v6852_v43 = vld [vmem:[%s6949_s29 + $0x78] sm:$0xff]  }
  0xc9   : > { %3572 = vrot.lane.b32.xlu1 %v3529_v44, %s6889_s9  ;;  %v1126_v1 = vsel %vm324_vm5, %v6850_v62, %v755_v16  ;;  %v3402_v20 = vrot.slane %v3118_v26, 2  ;;  %v3398_v57 = vor.u32 %v3397_v6, %v3396_v31  ;;  %v3539_v61 = vrot.slane %v7613_v24, 2  ;;  %v7702_v62 = vld [vmem:[%s7124_s17 + $0x68] ss:$0 sps:$4 sm:$0x33]  }
  0xca   : > { %3570 = vrot.lane.b32.xlu0 %v3526_v10, %s6889_s9  ;;  %v3536_v46 = vrot.slane %v7624_v3, 2 }
  0xcb   : > { %v838_v29 = vpop.permute.xlu1 %837 }
  0xcc   : > { %v836_v28 = vpop.permute.xlu0 %835  ;;  %v1161_v36 = vsel %vm1141_vm6, %v1128_v59, %v838_v29  ;;  %v3405_v29 = vrot.slane %v3123_v15, 1  ;;  %v3412_v15 = vor.u32 %v3411_v41, %v3410_v30  ;;  %v3426_v30 = vshrl.u32 %v7694_v50, 16 }
  0xcd   : > { %3240 = vrot.lane.b32.xlu1 %v3109_v13, %s6891_s11  ;;  %v1159_v5 = vsel %vm1141_vm6, %v1126_v1, %v836_v28  ;;  %v7683_v28 = vld [vmem:[%s7124_s17 + $0x6c] sm:$0xff]  }
  0xce   : > { %3238 = vrot.lane.b32.xlu0 %v3097_v25, %s6891_s11  ;;  %v3406_v25 = vrot.slane %v3125_v17, 2  ;;  %v7690_v17 = vld [vmem:[%s7124_s17 + $0x60] sm:$0xff]   ;;  %v3149_v49 = vshll.u32 %v7683_v28, 16 }
  0xcf   : > { %v1015_v42 = vpop.permute.xlu1 %1014  ;;  %v3137_v1 = vshll.u32 %v7690_v17, 16 }
  0xd0   : > { %v1013_v22 = vpop.permute.xlu0 %1012  ;;  %v1194_v55 = vsel %vm1174_vm7, %v1161_v36, %v1015_v42  ;;  %v3121_v42 = vsel %vm545_vm2, %v3116_v21, %v3120_v63  ;;  %v3407_v12 = vor.u32 %v3406_v25, %v3405_v29  ;;  %v5826_v29 = vld [vmem:[%s9176_s4] ss:$0 sm:$0xff] }
  0xd1   : > { %3320 = vrot.lane.b32.xlu1 %v3279_v9, %s6890_s10  ;;  %v1192_v39 = vsel %vm1174_vm7, %v1159_v5, %v1013_v22  ;;  %v3401_v9 = vrot.slane %v3399_v23, 1  ;;  %v3537_v5 = vrot.slane %v7636_v56, 2  ;;  %v3135_v23 = vshrl.u32 %v7690_v17, 16  ;;  %327 = vst.msk [vmem:[#allocation2 + $0x10] sm:$0xff] %vm324_vm5, %v5826_v29  ;;  %325 = vst.msk [vmem:[#allocation2] sm:$0xff] %vm324_vm5, %v5826_v29 }
  0xd2   : > { %3318 = vrot.lane.b32.xlu0 %v3276_v47, %s6890_s10  ;;  %v3280_v47 = vrot.slane %v7624_v3, 1  ;;  %v3413_v26 = vsel %vm851_vm3, %v3407_v12, %v3412_v15  ;;  %v3139_v63 = vrot.slane %v3137_v1, 1  ;;  %326 = vst.msk [vmem:[#allocation2 + $0x8] sm:$0xff] %vm324_vm5, %v5826_v29  ;;  %328 = vst.msk [vmem:[#allocation2 + $0x18] sm:$0xff] %vm324_vm5, %v5826_v29  ;;  %v3290_v56 = vrot.slane %v7694_v50, 1  ;;  %v7809_v15 = vld [vmem:[%s7124_s17 + $0x84] sm:$0xff]  }
  0xd3   : > { %v1096_v44 = vpop.permute.xlu1 %1095  ;;  %v3403_v59 = vor.u32 %v3402_v20, %v3401_v9  ;;  %329 = vst.msk [vmem:[#allocation2 + $0x20] sm:$0xff] %vm324_vm5, %v5826_v29  ;;  %330 = vst.msk [vmem:[#allocation2 + $0x28] sm:$0xff] %vm324_vm5, %v5826_v29  ;;  %v3538_v24 = vsel %vm1028_vm0, %v3536_v46, %v3537_v5 }
  0xd4   : > { %v7659_v8 = vsel %vm1207_vm8, %v1194_v55, %v1096_v44  ;;  %v1094_v10 = vpop.permute.xlu0 %1093  ;;  %v3282_v7 = vsel %vm770_vm1, %v3280_v47, %v3281_v48  ;;  %v3147_v55 = vshrl.u32 %v7683_v28, 16  ;;  %v6851_v44 = vld [vmem:[%s6949_s29 + $0x84] sm:$0xff]   ;;  %331 = vst.msk [vmem:[#allocation2 + $0x30] sm:$0xff] %vm324_vm5, %v5826_v29  ;;  %332 = vst.msk [vmem:[#allocation2 + $0x38] sm:$0xff] %vm324_vm5, %v5826_v29  ;;  %v3289_v47 = vrot.slane %v7683_v28, 1 }
  0xd5   : > { %v7662_v16 = vsel %vm1207_vm8, %v1192_v39, %v1094_v10  ;;  %3496 = vrot.lane.b32.xlu1 %v3395_v51, %s6892_s12  ;;  %v3151_v39 = vrot.slane %v3149_v49, 1  ;;  %v3154_v10 = vshll.u32 %v7694_v50, 16  ;;  %333 = vst.msk [vmem:[#allocation2 + $0x40] sm:$0xff] %vm324_vm5, %v5826_v29  ;;  %334 = vst.msk [vmem:[#allocation2 + $0x48] sm:$0xff] %vm324_vm5, %v5826_v29  ;;  %v3424_v48 = vrot.slane %v3149_v49, 2  ;;  %v7818_v49 = vld [vmem:[%s7124_s17 + $0x78] sm:$0xff]  }
  0xd6   : > { %3494 = vrot.lane.b32.xlu0 %v3386_v0, %s6892_s12  ;;  %6378 = vmatprep.mubr.msk.bf16.mxu0 %vm1284_vm9, %v7662_v16  ;;  %v3540_v0 = vrot.slane %v7627_v37, 2  ;;  %335 = vst.msk [vmem:[#allocation2 + $0x50] sm:$0xff] %vm324_vm5, %v5826_v29  ;;  %336 = vst.msk [vmem:[#allocation2 + $0x58] sm:$0xff] %vm324_vm5, %v5826_v29  ;;  %v3140_v37 = vor.u32 %v3139_v63, %v3135_v23  ;;  %v3423_v3 = vrot.slane %v3147_v55, 1  ;;  %v3171_v63 = vshrl.u32 %v7809_v15, 16 }
  0xd7   : > { %6411 = vmatmul.mubr.msk.bf16.gmra.mrb[12].mxu1 %vm1284_vm9, %v7662_v16  ;;  %6379 = vmatmul.mubr.msk.bf16.gmra.mrb[16].mxu0 %vm1284_vm9, %v7659_v8  ;;  %v761_v13 = vpop.permute.xlu1 %760  ;;  %337 = vst.msk [vmem:[#allocation2 + $0x60] sm:$0xff] %vm324_vm5, %v5826_v29  ;;  %338 = vst.msk [vmem:[#allocation2 + $0x68] sm:$0xff] %vm324_vm5, %v5826_v29  ;;  %v3152_v31 = vor.u32 %v3151_v39, %v3147_v55  ;;  %v3156_v6 = vrot.slane %v3154_v10, 1  ;;  %v3429_v12 = vrot.slane %v3154_v10, 2 }
  0xd8   : > { %6414 = vmatprep.mubr.msk.bf16.mxu1 %vm1284_vm9, %v7659_v8  ;;  %v759_v32 = vpop.permute.xlu0 %758  ;;  %v1132_v14 = vsel %vm324_vm5, %v6851_v44, %v761_v13  ;;  %339 = vst.msk [vmem:[#allocation2 + $0x70] sm:$0xff] %vm324_vm5, %v5826_v29  ;;  %340 = vst.msk [vmem:[#allocation2 + $0x78] sm:$0xff] %vm324_vm5, %v5826_v29  ;;  %v3541_v41 = vsel %vm1028_vm0, %v3539_v61, %v3540_v0  ;;  %v7826_v55 = vld [vmem:[%s7124_s17 + $0x8c] ss:$0 sps:$4 sm:$0x33]   ;;  %v3425_v44 = vor.u32 %v3424_v48, %v3423_v3 }
  0xd9   : > { %3576 = vrot.lane.b32.xlu1 %v3535_v19, %s6889_s9  ;;  %v1130_v54 = vsel %vm324_vm5, %v6852_v43, %v759_v32  ;;  %v3404_v19 = vsel %vm851_vm3, %v3398_v57, %v3403_v59  ;;  %341 = vst.msk [vmem:[#allocation2 + $0x80] sm:$0xff] %vm324_vm5, %v5826_v29  ;;  %342 = vst.msk [vmem:[#allocation2 + $0x88] sm:$0xff] %vm324_vm5, %v5826_v29  ;;  %v3286_v57 = vrot.slane %v7690_v17, 1  ;;  %v3287_v59 = vrot.slane %v7702_v62, 1 }
  0xda   : > { %3574 = vrot.lane.b32.xlu0 %v3532_v27, %s6889_s9  ;;  %343 = vst.msk [vmem:[#allocation2 + $0x90] sm:$0xff] %vm324_vm5, %v5826_v29  ;;  %344 = vst.msk [vmem:[#allocation2 + $0x98] sm:$0xff] %vm324_vm5, %v5826_v29  ;;  %v3291_v39 = vsel %vm770_vm1, %v3289_v47, %v3290_v56  ;;  %v7833_v10 = vld [vmem:[%s7124_s17 + $0x80] ss:$0 sps:$4 sm:$0x33]  }
  0xdb   : > { %v842_v11 = vpop.permute.xlu1 %841  ;;  %345 = vst.msk [vmem:[#allocation2 + $0xa0] sm:$0xff] %vm324_vm5, %v5826_v29  ;;  %346 = vst.msk [vmem:[#allocation2 + $0xa8] sm:$0xff] %vm324_vm5, %v5826_v29 }
  0xdc   : > { %v840_v22 = vpop.permute.xlu0 %839  ;;  %v1165_v18 = vsel %vm1141_vm6, %v1132_v14, %v842_v11  ;;  %347 = vst.msk [vmem:[#allocation2 + $0xb0] sm:$0xff] %vm324_vm5, %v5826_v29  ;;  %348 = vst.msk [vmem:[#allocation2 + $0xb8] sm:$0xff] %vm324_vm5, %v5826_v29  ;;  %v3417_v11 = vshrl.u32 %v7702_v62, 16 }
  0xdd   : > { %3244 = vrot.lane.b32.xlu1 %v3133_v33, %s6891_s11  ;;  %v1163_v13 = vsel %vm1141_vm6, %v1130_v54, %v840_v22  ;;  %v3142_v33 = vshll.u32 %v7702_v62, 16  ;;  %349 = vst.msk [vmem:[#allocation2 + $0xc0] sm:$0xff] %vm324_vm5, %v5826_v29  ;;  %350 = vst.msk [vmem:[#allocation2 + $0xc8] sm:$0xff] %vm324_vm5, %v5826_v29  ;;  %v3428_v22 = vrot.slane %v3426_v30, 1  ;;  %v3288_v54 = vsel %vm770_vm1, %v3286_v57, %v3287_v59 }
  0xde   : > { %3242 = vrot.lane.b32.xlu0 %v3121_v42, %s6891_s11  ;;  %351 = vst.msk [vmem:[#allocation2 + $0xd0] sm:$0xff] %vm324_vm5, %v5826_v29  ;;  %352 = vst.msk [vmem:[#allocation2 + $0xd8] sm:$0xff] %vm324_vm5, %v5826_v29  ;;  %v3419_v0 = vrot.slane %v3417_v11, 1  ;;  %v3543_v11 = vrot.slane %v7702_v62, 2 }
  0xdf   : > { %v1019_v51 = vpop.permute.xlu1 %1018  ;;  %353 = vst.msk [vmem:[#allocation2 + $0xe0] sm:$0xff] %vm324_vm5, %v5826_v29  ;;  %354 = vst.msk [vmem:[#allocation2 + $0xe8] sm:$0xff] %vm324_vm5, %v5826_v29  ;;  %v3144_v20 = vrot.slane %v3142_v33, 1  ;;  %v3420_v46 = vrot.slane %v3142_v33, 2  ;;  %v3430_v14 = vor.u32 %v3429_v12, %v3428_v22  ;;  %v3178_v33 = vshll.u32 %v7826_v55, 16 }
  0xe0   : > { %v1017_v36 = vpop.permute.xlu0 %1016  ;;  %v1198_v27 = vsel %vm1174_vm7, %v1165_v18, %v1019_v51  ;;  %355 = vst.msk [vmem:[#allocation2 + $0xf0] sm:$0xff] %vm324_vm5, %v5826_v29  ;;  %356 = vst.msk [vmem:[#allocation2 + $0xf8] sm:$0xff] %vm324_vm5, %v5826_v29  ;;  %v3414_v51 = vrot.slane %v3135_v23, 1  ;;  %v3545_v23 = vrot.slane %v7683_v28, 2  ;;  %v6854_v28 = vld [vmem:[%s6949_s29 + $0x90] sm:$0xff]   ;;  %v3444_v22 = vshrl.u32 %v7826_v55, 16 }
  0xe1   : > { %3324 = vrot.lane.b32.xlu1 %v3285_v52, %s6890_s10  ;;  %v1196_v32 = vsel %vm1174_vm7, %v1163_v13, %v1017_v36  ;;  %v3157_v52 = vsel %vm545_vm2, %v3152_v31, %v3156_v6  ;;  %v3145_v61 = vsel %vm545_vm2, %v3140_v37, %v3144_v20  ;;  %v3415_v36 = vrot.slane %v3137_v1, 2 }
  0xe2   : > { %3322 = vrot.lane.b32.xlu0 %v3282_v7, %s6890_s10  ;;  %v3161_v1 = vshll.u32 %v7818_v49, 16  ;;  %v3431_v29 = vsel %vm851_vm3, %v3425_v44, %v3430_v14  ;;  %v3166_v6 = vshll.u32 %v7833_v10, 16  ;;  %v3180_v12 = vrot.slane %v3178_v33, 1 }
  0xe3   : > { %v1100_v21 = vpop.permute.xlu1 %1099  ;;  %v3416_v18 = vor.u32 %v3415_v36, %v3414_v51  ;;  %v3295_v36 = vrot.slane %v7809_v15, 1  ;;  %v3446_v44 = vrot.slane %v3444_v22, 1  ;;  %v3447_v14 = vrot.slane %v3178_v33, 2 }
  0xe4   : > { %v7729_v34 = vsel %vm1207_vm8, %v1198_v27, %v1100_v21  ;;  %v1098_v35 = vpop.permute.xlu0 %1097  ;;  %v3546_v27 = vrot.slane %v7694_v50, 2  ;;  %v3542_v21 = vrot.slane %v7690_v17, 2  ;;  %v3163_v17 = vrot.slane %v3161_v1, 1 }
  0xe5   : > { %v7735_v25 = vsel %vm1207_vm8, %v1196_v32, %v1098_v35  ;;  %3500 = vrot.lane.b32.xlu1 %v3413_v26, %s6892_s12  ;;  %v3173_v26 = vshll.u32 %v7809_v15, 16  ;;  %v6853_v32 = vld [vmem:[%s6949_s29 + $0x9c] sm:$0xff]   ;;  %v3168_v57 = vrot.slane %v3166_v6, 1  ;;  %v3551_v33 = vrot.slane %v7809_v15, 2 }
  0xe6   : > { %3498 = vrot.lane.b32.xlu0 %v3404_v19, %s6892_s12  ;;  %6382 = vmatprep.mubr.msk.bf16.mxu0 %vm1284_vm9, %v7735_v25  ;;  %v3421_v19 = vor.u32 %v3420_v46, %v3419_v0  ;;  %v3547_v48 = vsel %vm1028_vm0, %v3545_v23, %v3546_v27  ;;  %v3544_v51 = vsel %vm1028_vm0, %v3542_v21, %v3543_v11  ;;  %v3296_v0 = vrot.slane %v7826_v55, 1 }
  0xe7   : > { %6415 = vmatmul.mubr.msk.bf16.gmra.mrb[16].mxu1 %vm1284_vm9, %v7735_v25  ;;  %6383 = vmatmul.mubr.msk.bf16.gmra.mrb[20].mxu0 %vm1284_vm9, %v7729_v34  ;;  %v765_v9 = vpop.permute.xlu1 %764  ;;  %v3175_v30 = vrot.slane %v3173_v26, 1  ;;  %v3441_v46 = vrot.slane %v3171_v63, 1  ;;  %v3433_v27 = vrot.slane %v3161_v1, 2 }
  0xe8   : > { %6418 = vmatprep.mubr.msk.bf16.mxu1 %vm1284_vm9, %v7729_v34  ;;  %v763_v42 = vpop.permute.xlu0 %762  ;;  %v1136_v35 = vsel %vm324_vm5, %v6853_v32, %v765_v9  ;;  %v3422_v20 = vsel %vm851_vm3, %v3416_v18, %v3421_v19  ;;  %v3293_v18 = vrot.slane %v7833_v10, 1  ;;  %v7886_v19 = vld [vmem:[%s6949_s29 + $0xe4] sm:$0xff]   ;;  %v3552_v32 = vrot.slane %v7826_v55, 2  ;;  %v7899_v55 = vld [vmem:[%s7124_s17 + $0x90] sm:$0xff]  }
  0xe9   : > { %3580 = vrot.lane.b32.xlu1 %v3541_v41, %s6889_s9  ;;  %v3159_v41 = vshrl.u32 %v7818_v49, 16  ;;  %v1134_v31 = vsel %vm324_vm5, %v6854_v28, %v763_v42  ;;  %v3176_v62 = vor.u32 %v3175_v30, %v3171_v63  ;;  %v7892_v30 = vld [vmem:[%s6949_s29 + $0xec] ss:$0 sps:$4 sm:$0x33]   ;;  %v2535_v1 = vshll.u32 %v7886_v19, 16 }
  0xea   : > { %3578 = vrot.lane.b32.xlu0 %v3538_v24, %s6889_s9 }
  0xeb   : > { %v846_v7 = vpop.permute.xlu1 %845 }
  0xec   : > { %v844_v5 = vpop.permute.xlu0 %843  ;;  %v1169_v50 = vsel %vm1141_vm6, %v1136_v35, %v846_v7  ;;  %v3435_v7 = vshrl.u32 %v7833_v10, 16 }
  0xed   : > { %3248 = vrot.lane.b32.xlu1 %v3157_v52, %s6891_s11  ;;  %v1167_v24 = vsel %vm1141_vm6, %v1134_v31, %v844_v5  ;;  %v3164_v52 = vor.u32 %v3163_v17, %v3159_v41  ;;  %v3442_v5 = vrot.slane %v3173_v26, 2  ;;  %v3438_v26 = vrot.slane %v3166_v6, 2 }
  0xee   : > { %3246 = vrot.lane.b32.xlu0 %v3145_v61, %s6891_s11  ;;  %v3437_v21 = vrot.slane %v3435_v7, 1  ;;  %v3553_v6 = vsel %vm1028_vm0, %v3551_v33, %v3552_v32  ;;  %v3185_v7 = vshll.u32 %v7899_v55, 16 }
  0xef   : > { %v1023_v43 = vpop.permute.xlu1 %1022  ;;  %v3443_v35 = vor.u32 %v3442_v5, %v3441_v46  ;;  %v2546_v5 = vrot.slane %v7886_v19, 1 }
  0xf0   : > { %v1021_v13 = vpop.permute.xlu0 %1020  ;;  %v1202_v9 = vsel %vm1174_vm7, %v1169_v50, %v1023_v43  ;;  %v3169_v43 = vsel %vm545_vm2, %v3164_v52, %v3168_v57  ;;  %v3439_v50 = vor.u32 %v3438_v26, %v3437_v21  ;;  %v7940_v21 = vld [vmem:[%s7124_s17 + $0xa4] ss:$0 sps:$4 sm:$0x33]   ;;  %v3187_v33 = vrot.slane %v3185_v7, 1 }
  0xf1   : > { %3328 = vrot.lane.b32.xlu1 %v3291_v39, %s6890_s10  ;;  %v1200_v47 = vsel %vm1174_vm7, %v1167_v24, %v1021_v13  ;;  %v3181_v39 = vsel %vm545_vm2, %v3176_v62, %v3180_v12  ;;  %v3432_v13 = vrot.slane %v3159_v41, 1  ;;  %v3297_v41 = vsel %vm770_vm1, %v3295_v36, %v3296_v0  ;;  %v7923_v36 = vld [vmem:[%s7124_s17 + $0x9c] sm:$0xff]  }
  0xf2   : > { %3326 = vrot.lane.b32.xlu0 %v3288_v54, %s6890_s10  ;;  %v3292_v54 = vrot.slane %v7818_v49, 1  ;;  %v3548_v24 = vrot.slane %v7818_v49, 2  ;;  %v2554_v62 = vshrl.u32 %v7892_v30, 16 }
  0xf3   : > { %v1104_v37 = vpop.permute.xlu1 %1103  ;;  %v3434_v15 = vor.u32 %v3433_v27, %v3432_v13 }
  0xf4   : > { %v7858_v42 = vsel %vm1207_vm8, %v1202_v9, %v1104_v37  ;;  %v1102_v56 = vpop.permute.xlu0 %1101  ;;  %v3294_v31 = vsel %vm770_vm1, %v3292_v54, %v3293_v18  ;;  %v3549_v9 = vrot.slane %v7833_v10, 2  ;;  %v6855_v37 = vld [vmem:[%s6949_s29 + $0xb4] sm:$0xff]   ;;  %v2537_v10 = vrot.slane %v2535_v1, 1 }
  0xf5   : > { %v7861_v3 = vsel %vm1207_vm8, %v1200_v47, %v1102_v56  ;;  %3504 = vrot.lane.b32.xlu1 %v3431_v29, %s6892_s12  ;;  %v3448_v29 = vor.u32 %v3447_v14, %v3446_v44  ;;  %v2533_v47 = vshrl.u32 %v7886_v19, 16  ;;  %v2540_v56 = vshll.u32 %v7892_v30, 16 }
  0xf6   : > { %3502 = vrot.lane.b32.xlu0 %v3422_v20, %s6892_s12  ;;  %6386 = vmatprep.mubr.msk.bf16.mxu0 %vm1284_vm9, %v7861_v3  ;;  %v2547_v44 = vrot.slane %v7892_v30, 1  ;;  %v2556_v13 = vrot.slane %v2554_v62, 1  ;;  %v6823_v62 = vld [vmem:[%s9174_s2 + $0x38] ss:$0 sps:$4 sm:$0x33]  }
  0xf7   : > { %6419 = vmatmul.mubr.msk.bf16.gmra.mrb[20].mxu1 %vm1284_vm9, %v7861_v3  ;;  %6387 = vmatmul.mubr.msk.bf16.gmra.mrb[24].mxu0 %vm1284_vm9, %v7858_v42  ;;  %v769_v59 = vpop.permute.xlu1 %768  ;;  %v3449_v11 = vsel %vm851_vm3, %v3443_v35, %v3448_v29  ;;  %v2551_v54 = vrot.slane %v2533_v47, 1  ;;  %v2538_v18 = vor.u32 %v2537_v10, %v2533_v47  ;;  %v2557_v27 = vrot.slane %v2540_v56, 2 }
  0xf8   : > { %6422 = vmatprep.mubr.msk.bf16.mxu1 %vm1284_vm9, %v7858_v42  ;;  %v767_v61 = vpop.permute.xlu0 %766  ;;  %v1140_v20 = vsel %vm324_vm5, %v6855_v37, %v769_v59  ;;  %v3440_v59 = vsel %vm851_vm3, %v3434_v15, %v3439_v50  ;;  %v3197_v35 = vshll.u32 %v7923_v36, 16  ;;  %v3462_v10 = vshrl.u32 %v7940_v21, 16 }
  0xf9   : > { %3584 = vrot.lane.b32.xlu1 %v3547_v48, %s6889_s9  ;;  %v6856_v48 = vld [vmem:[%s6949_s29 + $0xa8] sm:$0xff]   ;;  %v2558_v50 = vor.u32 %v2557_v27, %v2556_v13 }
  0xfa   : > { %3582 = vrot.lane.b32.xlu0 %v3544_v51, %s6889_s9  ;;  %v1138_v22 = vsel %vm324_vm5, %v6856_v48, %v767_v61  ;;  %v7919_v51 = vld [vmem:[%s7124_s17 + $0x98] ss:$0 sps:$4 sm:$0x33]   ;;  %v3464_v13 = vrot.slane %v3462_v10, 1 }
  0xfb   : > { %v850_v23 = vpop.permute.xlu1 %849  ;;  %v3190_v32 = vshll.u32 %v7919_v51, 16 }
  0xfc   : > { %v848_v63 = vpop.permute.xlu0 %847  ;;  %v1173_v49 = vsel %vm1141_vm6, %v1140_v20, %v850_v23  ;;  %v2552_v23 = vrot.slane %v2535_v1, 2  ;;  %v3202_v20 = vshll.u32 %v7940_v21, 16 }
  0xfd   : > { %3252 = vrot.lane.b32.xlu1 %v3181_v39, %s6891_s11  ;;  %v1171_v12 = vsel %vm1141_vm6, %v1138_v22, %v848_v63  ;;  %v3550_v39 = vsel %vm1028_vm0, %v3548_v24, %v3549_v9  ;;  %v3183_v63 = vshrl.u32 %v7899_v55, 16  ;;  %v3192_v37 = vrot.slane %v3190_v32, 1 }
  0xfe   : > { %3250 = vrot.lane.b32.xlu0 %v3169_v43, %s6891_s11  ;;  %v2542_v43 = vrot.slane %v2540_v56, 1  ;;  %v2553_v15 = vor.u32 %v2552_v23, %v2551_v54  ;;  %v3299_v56 = vrot.slane %v7919_v51, 1  ;;  %v2563_v54 = vrot.slane %v7892_v30, 2 }
  0xff   : > { %v1027_v28 = vpop.permute.xlu1 %1026  ;;  %v3188_v9 = vor.u32 %v3187_v33, %v3183_v63  ;;  %v3460_v23 = vrot.slane %v3197_v35, 2  ;;  %v3465_v27 = vrot.slane %v3202_v20, 2  ;;  %v2623_v33 = vsel %vm1317_vm4, %v6823_v62, 0 }
 0x100   : > { %v1025_v17 = vpop.permute.xlu0 %1024  ;;  %v1206_v52 = vsel %vm1174_vm7, %v1173_v49, %v1027_v28  ;;  %v2548_v28 = vsel %vm770_vm1, %v2546_v5, %v2547_v44  ;;  %v2559_v49 = vsel %vm851_vm3, %v2553_v15, %v2558_v50  ;;  %v3301_v44 = vrot.slane %v7923_v36, 1 }
 0x101   : > { %3332 = vrot.lane.b32.xlu1 %v3297_v41, %s6890_s10  ;;  %v1204_v61 = vsel %vm1174_vm7, %v1171_v12, %v1025_v17  ;;  %v6857_v41 = vld [vmem:[%s6949_s29 + $0xc0] sm:$0xff]   ;;  %v3195_v17 = vshrl.u32 %v7923_v36, 16 }
 0x102   : > { %3330 = vrot.lane.b32.xlu0 %v3294_v31, %s6890_s10  ;;  %v2543_v31 = vsel %vm545_vm2, %v2538_v18, %v2542_v43  ;;  %v2562_v43 = vrot.slane %v7886_v19, 2  ;;  %v8007_v19 = vld [vmem:[%s9175_s3 + $0xc] sm:$0xff]  }
 0x103   : > { %v1108_v57 = vpop.permute.xlu1 %1107  ;;  %v3459_v18 = vrot.slane %v3195_v17, 1 }
 0x104   : > { %v7927_v0 = vsel %vm1207_vm8, %v1206_v52, %v1108_v57  ;;  %v1106_v46 = vpop.permute.xlu0 %1105  ;;  %v3193_v52 = vsel %vm545_vm2, %v3188_v9, %v3192_v37 }
 0x105   : > { %v7932_v14 = vsel %vm1207_vm8, %v1204_v61, %v1106_v46  ;;  %3508 = vrot.lane.b32.xlu1 %v3449_v11, %s6892_s12  ;;  %v3453_v61 = vshrl.u32 %v7919_v51, 16  ;;  %v3461_v50 = vor.u32 %v3460_v23, %v3459_v18 }
 0x106   : > { %3506 = vrot.lane.b32.xlu0 %v3440_v59, %s6892_s12  ;;  %6390 = vmatprep.mubr.msk.bf16.mxu0 %vm1284_vm9, %v7932_v14  ;;  %v3204_v59 = vrot.slane %v3202_v20, 1 }
 0x107   : > { %6423 = vmatmul.mubr.msk.bf16.gmra.mrb[24].mxu1 %vm1284_vm9, %v7932_v14  ;;  %6391 = vmatmul.mubr.msk.bf16.gmra.mrb[28].mxu0 %vm1284_vm9, %v7927_v0  ;;  %v1572_v26 = vpop.permute.xlu1 %1571 }
 0x108   : > { %6426 = vmatprep.mubr.msk.bf16.mxu1 %vm1284_vm9, %v7927_v0  ;;  %6434 = vmatprep.mubr.msk.bf16.mxu0 %vm1284_vm9, %v7430_v45  ;;  %v1567_v29 = vpop.permute.xlu0 %1566  ;;  %v3199_v45 = vrot.slane %v3197_v35, 1  ;;  %v3451_v35 = vrot.slane %v3185_v7, 2  ;;  %v3466_v7 = vor.u32 %v3465_v27, %v3464_v13 }
 0x109   : > { %v1590_v1 = vsel %vm324_vm5, %v6857_v41, %v1567_v29  ;;  %3588 = vrot.lane.b32.xlu1 %v3553_v6, %s6889_s9  ;;  %v3298_v6 = vrot.slane %v7899_v55, 1  ;;  %v3455_v29 = vrot.slane %v3453_v61, 1  ;;  %v3456_v41 = vrot.slane %v3190_v32, 2  ;;  %v6824_v32 = vld [vmem:[%s9175_s3 + $0x8] ss:$0 sps:$4 sm:$0x33]  }
 0x10a   : > { %3586 = vrot.lane.b32.xlu0 %v3550_v39, %s6889_s9  ;;  %v1592_v11 = vsel %vm1141_vm6, %v1590_v1, %v1572_v26  ;;  %v3200_v57 = vor.u32 %v3199_v45, %v3195_v17  ;;  %v3302_v39 = vrot.slane %v7940_v21, 1  ;;  %v3450_v26 = vrot.slane %v3183_v63, 1  ;;  %v8015_v1 = vld [vmem:[%s7124_s17 + $0xa8] sm:$0xff]   ;;  %v8038_v45 = vld [vmem:[%s7124_s17 + $0xb0] ss:$0 sps:$4 sm:$0x33]  }
 0x10b   : > { %v1588_v24 = vpop.permute.xlu1 %1587  ;;  %v3300_v5 = vsel %vm770_vm1, %v3298_v6, %v3299_v56  ;;  %v3457_v37 = vor.u32 %v3456_v41, %v3455_v29  ;;  %v3209_v20 = vshll.u32 %v8015_v1, 16  ;;  %v3558_v6 = vrot.slane %v7940_v21, 2 }
 0x10c   : > { %v1583_v47 = vpop.permute.xlu0 %1582  ;;  %v3303_v15 = vsel %vm770_vm1, %v3301_v44, %v3302_v39  ;;  %v3452_v9 = vor.u32 %v3451_v35, %v3450_v26  ;;  %v3467_v10 = vsel %vm851_vm3, %v3461_v50, %v3466_v7  ;;  %v3803_v21 = vsel %vm1317_vm4, %v6824_v32, 0 }
 0x10d   : > { %v1594_v48 = vsel %vm1174_vm7, %v1592_v11, %v1583_v47  ;;  %2549 = vrot.lane.b32.xlu1 %v2548_v28, %s6890_s10  ;;  %v8021_v28 = vld [vmem:[%s7124_s17 + $0xbc] ss:$0 sps:$4 sm:$0x33]   ;;  %v3557_v47 = vrot.slane %v7923_v36, 2  ;;  %v3555_v36 = vrot.slane %v7919_v51, 2  ;;  %v3211_v61 = vrot.slane %v3209_v20, 1 }
 0x10e   : > { %2544 = vrot.lane.b32.xlu0 %v2543_v31, %s6891_s11  ;;  %v7970_v22 = vsel %vm1207_vm8, %v1594_v48, %v1588_v24  ;;  %v2564_v24 = vsel %vm1028_vm0, %v2562_v43, %v2563_v54  ;;  %v3480_v43 = vshrl.u32 %v8021_v28, 16  ;;  %v3471_v27 = vshrl.u32 %v8038_v45, 16 }
 0x10f   : > { %6427 = vmatmul.mubr.msk.bf16.gmra.mrb[28].mxu1 %vm1284_vm9, %v7970_v22  ;;  %6435 = vmatmul.mubr.msk.bf16.vlgmr.msra.gmra.mrb[32].mxu0 %vm1284_vm9, %v7427_v40  ;;  %v7981_v12 = vpop.permute.xlu1 %1897  ;;  %v3559_v39 = vsel %vm1028_vm0, %v3557_v47, %v3558_v6  ;;  %v3304_v29 = vrot.slane %v8015_v1, 1  ;;  %v3305_v41 = vrot.slane %v8038_v45, 1  ;;  %v3469_v47 = vrot.slane %v3209_v20, 2 }
 0x110   : > { %6438 = vmatprep.mubr.msk.bf16.mxu0 %vm1284_vm9, %v7508_v58  ;;  %6470 = vmatprep.mubr.msk.bf16.mxu1 %vm1284_vm9, %v7427_v40  ;;  %v7989_v46 = vpop.permute.xlu0 %1892  ;;  %v7999_v40 = vld [vmem:[%s7124_s17 + $0xb4] sm:$0xff]   ;;  %v3482_v7 = vrot.slane %v3480_v43, 1  ;;  %v3473_v6 = vrot.slane %v3471_v27, 1  ;;  %v3561_v43 = vrot.slane %v8038_v45, 2 }
 0x111   : > { %2560 = vrot.lane.b32.xlu1 %v2559_v49, %s6892_s12  ;;  %6503 = vmatpush3.bf16.msra.mxu0 %v7515_v60  ;;  %v3205_v60 = vsel %vm545_vm2, %v3200_v57, %v3204_v59  ;;  %v3221_v31 = vshll.u32 %v7999_v40, 16  ;;  %v3219_v56 = vshrl.u32 %v7999_v40, 16  ;;  %v3226_v49 = vshll.u32 %v8021_v28, 16 }
 0x112   : > { %3254 = vrot.lane.b32.xlu0 %v3193_v52, %s6891_s11  ;;  %6722 = vmatprep.subr.msk.bf16.mxu0 %vm1317_vm4, %v6823_v62  ;;  %v3554_v62 = vrot.slane %v7899_v55, 2  ;;  %v8064_v52 = vld [vmem:[%s9175_s3 + $0x18] sm:$0xff]   ;;  %v3207_v59 = vshrl.u32 %v8015_v1, 16  ;;  %v3214_v55 = vshll.u32 %v8038_v45, 16 }
 0x113   : > { %v8009_v30 = vpop.permute.xlu1 %1913  ;;  %v3223_v48 = vrot.slane %v3221_v31, 1  ;;  %v3228_v44 = vrot.slane %v3226_v49, 1  ;;  %v3478_v50 = vrot.slane %v3221_v31, 2 }
 0x114   : > { %v8017_v63 = vpop.permute.xlu0 %1908  ;;  %v3556_v18 = vsel %vm1028_vm0, %v3554_v62, %v3555_v36  ;;  %v3212_v23 = vor.u32 %v3211_v61, %v3207_v59  ;;  %v3216_v13 = vrot.slane %v3214_v55, 1  ;;  %v8113_v36 = vld [vmem:[%s7124_s17 + $0xc8] ss:$0 sps:$4 sm:$0x33]  }
 0x115   : > { %3334 = vrot.lane.b32.xlu1 %v3300_v5, %s6890_s10  ;;  %6505 = vmatpush3.bf16.msra.mxu0 %v2623_v33  ;;  %v3224_v51 = vor.u32 %v3223_v48, %v3219_v56  ;;  %v3307_v33 = vrot.slane %v7999_v40, 1  ;;  %v3474_v48 = vrot.slane %v3214_v55, 2 }
 0x116   : > { %3256 = vrot.lane.b32.xlu0 %v3205_v60, %s6891_s11  ;;  %6574 = vmatprep.subr.bf16.mxu0 %v8007_v19  ;;  %v3308_v60 = vrot.slane %v8021_v28, 1 }
 0x117   : > { %6439 = vmatmul.mubr.msk.bf16.gmra.mrb[36].mxu0 %vm1284_vm9, %v7505_v53  ;;  %6471 = vmatmul.mubr.msk.bf16.vlgmr.msra.gmra.mrb[32].mxu1 %vm1284_vm9, %v7508_v58  ;;  %v8034_v17 = vpop.permute.xlu1 %2223  ;;  %v3229_v35 = vsel %vm545_vm2, %v3224_v51, %v3228_v44  ;;  %v3563_v51 = vrot.slane %v7999_v40, 2  ;;  %v3564_v44 = vrot.slane %v8021_v28, 2 }
 0x118   : > { %6442 = vmatprep.mubr.msk.bf16.mxu0 %vm1284_vm9, %v7594_v4  ;;  %6474 = vmatprep.mubr.msk.bf16.mxu1 %vm1284_vm9, %v7505_v53  ;;  %v8045_v11 = vpop.permute.xlu0 %2218  ;;  %v3309_v31 = vsel %vm770_vm1, %v3307_v33, %v3308_v60  ;;  %v4060_v60 = vshrl.u32 %v8113_v36, 16 }
 0x119   : > { %3336 = vrot.lane.b32.xlu1 %v3303_v15, %s6890_s10  ;;  %6539 = vmatpush3.bf16.msra.mxu1 %v7556_v38  ;;  %v3458_v38 = vsel %vm851_vm3, %v3452_v9, %v3457_v37  ;;  %v3477_v15 = vrot.slane %v3219_v56, 1  ;;  %v3217_v37 = vsel %vm545_vm2, %v3212_v23, %v3216_v13  ;;  %v4046_v13 = vshll.u32 %v8113_v36, 16 }
 0x11a   : > { %2565 = vrot.lane.b32.xlu0 %v2564_v24, %s6889_s9  ;;  %6723 = vmatprep.subr.msk.bf16.mxu1 %vm1317_vm4, %v6824_v32  ;;  %v3483_v32 = vrot.slane %v3226_v49, 2  ;;  %v3468_v24 = vrot.slane %v3207_v59, 1  ;;  %v3475_v59 = vor.u32 %v3474_v48, %v3473_v6  ;;  %v3565_v45 = vsel %vm1028_vm0, %v3563_v51, %v3564_v44 }
 0x11b   : > { %v8066_v57 = vpop.permute.xlu1 %2239  ;;  %v3479_v56 = vor.u32 %v3478_v50, %v3477_v15  ;;  %v4048_v15 = vrot.slane %v4046_v13, 1  ;;  %v4062_v6 = vrot.slane %v4060_v60, 1  ;;  %v4063_v48 = vrot.slane %v4046_v13, 2 }
 0x11c   : > { %v8071_v5 = vpop.permute.xlu0 %2234  ;;  %v3484_v49 = vor.u32 %v3483_v32, %v3482_v7  ;;  %v4053_v7 = vrot.slane %v8113_v36, 1 }
 0x11d   : > { %3512 = vrot.lane.b32.xlu1 %v3467_v10, %s6892_s12  ;;  %6541 = vmatpush3.bf16.msra.mxu1 %v3803_v21  ;;  %v8105_v10 = vld [vmem:[%s7124_s17 + $0xc0] sm:$0xff]   ;;  %v3306_v21 = vsel %vm770_vm1, %v3304_v29, %v3305_v41  ;;  %v8151_v29 = vld [vmem:[%s7124_s17 + $0xd4] ss:$0 sps:$4 sm:$0x33]  }
 0x11e   : > { %3510 = vrot.lane.b32.xlu0 %v3458_v38, %s6892_s12  ;;  %6610 = vmatprep.subr.bf16.mxu1 %v8064_v52  ;;  %v3470_v38 = vor.u32 %v3469_v47, %v3468_v24  ;;  %v4041_v61 = vshll.u32 %v8105_v10, 16  ;;  %v3485_v23 = vsel %vm851_vm3, %v3479_v56, %v3484_v49  ;;  %v4039_v40 = vshrl.u32 %v8105_v10, 16 }
 0x11f   : > { %6443 = vmatmul.mubr.msk.bf16.gmra.mrb[40].mxu0 %vm1284_vm9, %v7591_v2  ;;  %6475 = vmatmul.mubr.msk.bf16.gmra.mrb[36].mxu1 %vm1284_vm9, %v7594_v4  ;;  %v8082_v54 = vpop.permute.xlu1 %3232  ;;  %v4052_v50 = vrot.slane %v8105_v10, 1  ;;  %v4068_v56 = vrot.slane %v8105_v10, 2  ;;  %v4069_v49 = vrot.slane %v8113_v36, 2  ;;  %v4386_v10 = vshrl.u32 %v8151_v29, 16 }
 0x120   : > { %6446 = vmatprep.mubr.msk.bf16.mxu0 %vm1284_vm9, %v7662_v16  ;;  %6478 = vmatprep.mubr.msk.bf16.mxu1 %vm1284_vm9, %v7591_v2  ;;  %v8090_v26 = vpop.permute.xlu0 %3230  ;;  %v3476_v33 = vsel %vm851_vm3, %v3470_v38, %v3475_v59  ;;  %v4043_v28 = vrot.slane %v4041_v61, 1  ;;  %v4057_v32 = vrot.slane %v4039_v40, 1  ;;  %v4058_v47 = vrot.slane %v4041_v61, 2 }
 0x121   : > { %3592 = vrot.lane.b32.xlu1 %v3559_v39, %s6889_s9  ;;  %v3560_v39 = vrot.slane %v8015_v1, 2  ;;  %v4372_v59 = vshll.u32 %v8151_v29, 16  ;;  %v4054_v61 = vsel %vm770_vm1, %v4052_v50, %v4053_v7  ;;  %v4070_v13 = vsel %vm1028_vm0, %v4068_v56, %v4069_v49 }
 0x122   : > { %3590 = vrot.lane.b32.xlu0 %v3556_v18, %s6889_s9  ;;  %v8135_v18 = vld [vmem:[%s7124_s17 + $0xcc] sm:$0xff]   ;;  %v4379_v60 = vrot.slane %v8151_v29, 1  ;;  %v4388_v7 = vrot.slane %v4386_v10, 1 }
 0x123   : > { %v8101_v9 = vpop.permute.xlu1 %3312  ;;  %v4367_v41 = vshll.u32 %v8135_v18, 16 }
 0x124   : > { %v8107_v62 = vpop.permute.xlu0 %3310 }
 0x125   : > { %3260 = vrot.lane.b32.xlu1 %v3229_v35, %s6891_s11  ;;  %v3562_v35 = vsel %vm1028_vm0, %v3560_v39, %v3561_v43  ;;  %v4369_v38 = vrot.slane %v4367_v41, 1  ;;  %v4059_v39 = vor.u32 %v4058_v47, %v4057_v32  ;;  %v4064_v43 = vor.u32 %v4063_v48, %v4062_v6 }
 0x126   : > { %3258 = vrot.lane.b32.xlu0 %v3217_v37, %s6891_s11  ;;  %v4044_v37 = vor.u32 %v4043_v28, %v4039_v40  ;;  %v4374_v40 = vrot.slane %v4372_v59, 1  ;;  %v4378_v28 = vrot.slane %v8135_v18, 1  ;;  %v4389_v32 = vrot.slane %v4372_v59, 2  ;;  %v8215_v59 = vld [vmem:[%s7124_s17 + $0xe4] sm:$0xff]  }
 0x127   : > { %6447 = vmatmul.mubr.msk.bf16.gmra.mrb[44].mxu0 %vm1284_vm9, %v7659_v8  ;;  %6479 = vmatmul.mubr.msk.bf16.gmra.mrb[40].mxu1 %vm1284_vm9, %v7662_v16  ;;  %v8119_v20 = vpop.permute.xlu1 %3488  ;;  %v4065_v50 = vsel %vm851_vm3, %v4059_v39, %v4064_v43 }
 0x128   : > { %6450 = vmatprep.mubr.msk.bf16.mxu0 %vm1284_vm9, %v7735_v25  ;;  %6482 = vmatprep.mubr.msk.bf16.mxu1 %vm1284_vm9, %v7659_v8  ;;  %v8127_v55 = vpop.permute.xlu0 %3486  ;;  %v4049_v44 = vsel %vm545_vm2, %v4044_v37, %v4048_v15  ;;  %v8198_v37 = vld [vmem:[%s7124_s17 + $0xe0] ss:$0 sps:$4 sm:$0x33]   ;;  %v4380_v56 = vsel %vm770_vm1, %v4378_v28, %v4379_v60 }
 0x129   : > { %3340 = vrot.lane.b32.xlu1 %v3309_v31, %s6890_s10  ;;  %v4712_v48 = vshrl.u32 %v8198_v37, 16  ;;  %v4698_v10 = vshll.u32 %v8198_v37, 16 }
 0x12a   : > { %3338 = vrot.lane.b32.xlu0 %v3306_v21, %s6890_s10  ;;  %v4365_v21 = vshrl.u32 %v8135_v18, 16 }
 0x12b   : > { %v8140_v27 = vpop.permute.xlu1 %3568  ;;  %v4714_v28 = vrot.slane %v4712_v48, 1  ;;  %v4715_v60 = vrot.slane %v4698_v10, 2 }
 0x12c   : > { %v8145_v1 = vpop.permute.xlu0 %3566 }
 0x12d   : > { %3516 = vrot.lane.b32.xlu1 %v3485_v23, %s6892_s12  ;;  %v8181_v23 = vld [vmem:[%s7124_s17 + $0xd8] sm:$0xff]  }
 0x12e   : > { %3514 = vrot.lane.b32.xlu0 %v3476_v33, %s6892_s12  ;;  %v4370_v33 = vor.u32 %v4369_v38, %v4365_v21  ;;  %v4693_v47 = vshll.u32 %v8181_v23, 16  ;;  %v4395_v38 = vrot.slane %v8151_v29, 2  ;;  %v4691_v39 = vshrl.u32 %v8181_v23, 16 }
 0x12f   : > { %6451 = vmatmul.mubr.msk.bf16.gmra.mrb[48].mxu0 %vm1284_vm9, %v7729_v34  ;;  %6483 = vmatmul.mubr.msk.bf16.gmra.mrb[44].mxu1 %vm1284_vm9, %v7735_v25  ;;  %v8161_v24 = vpop.permute.xlu1 %3236 }
 0x130   : > { %6454 = vmatprep.mubr.msk.bf16.mxu0 %vm1284_vm9, %v7861_v3  ;;  %6486 = vmatprep.mubr.msk.bf16.mxu1 %vm1284_vm9, %v7729_v34  ;;  %v8167_v31 = vpop.permute.xlu0 %3234  ;;  %v4375_v6 = vsel %vm545_vm2, %v4370_v33, %v4374_v40  ;;  %v4695_v43 = vrot.slane %v4693_v47, 1  ;;  %v4710_v29 = vrot.slane %v4693_v47, 2 }
 0x131   : > { %3596 = vrot.lane.b32.xlu1 %v3565_v45, %s6889_s9  ;;  %v4383_v45 = vrot.slane %v4365_v21, 1  ;;  %v4394_v21 = vrot.slane %v8135_v18, 2  ;;  %v4709_v18 = vrot.slane %v4691_v39, 1 }
 0x132   : > { %3594 = vrot.lane.b32.xlu0 %v3562_v35, %s6889_s9  ;;  %v4384_v35 = vrot.slane %v4367_v41, 2  ;;  %v4696_v48 = vor.u32 %v4695_v43, %v4691_v39  ;;  %v5017_v39 = vshrl.u32 %v8215_v59, 16 }
 0x133   : > { %v8176_v51 = vpop.permute.xlu1 %3316 }
 0x134   : > { %v8183_v36 = vpop.permute.xlu0 %3314  ;;  %v4385_v49 = vor.u32 %v4384_v35, %v4383_v45  ;;  %v4396_v45 = vsel %vm1028_vm0, %v4394_v21, %v4395_v38  ;;  %v4704_v35 = vrot.slane %v8181_v23, 1  ;;  %v4711_v38 = vor.u32 %v4710_v29, %v4709_v18 }
 0x135   : > { %4055 = vrot.lane.b32.xlu1 %v4054_v61, %s6890_s10 }
 0x136   : > { %4050 = vrot.lane.b32.xlu0 %v4049_v44, %s6891_s11  ;;  %v4390_v44 = vor.u32 %v4389_v32, %v4388_v7  ;;  %v8232_v7 = vld [vmem:[%s7124_s17 + $0xec] ss:$0 sps:$4 sm:$0x33]  }
 0x137   : > { %6455 = vmatmul.mubr.msk.bf16.gmra.mrb[52].mxu0 %vm1284_vm9, %v7858_v42  ;;  %6487 = vmatmul.mubr.msk.bf16.gmra.mrb[48].mxu1 %vm1284_vm9, %v7861_v3  ;;  %v8194_v15 = vpop.permute.xlu1 %3492  ;;  %v5038_v18 = vshrl.u32 %v8232_v7, 16 }
 0x138   : > { %6458 = vmatprep.mubr.msk.bf16.mxu0 %vm1284_vm9, %v7932_v14  ;;  %6490 = vmatprep.mubr.msk.bf16.mxu1 %vm1284_vm9, %v7858_v42  ;;  %v8205_v41 = vpop.permute.xlu0 %3490 }
 0x139   : > { %4071 = vrot.lane.b32.xlu1 %v4070_v13, %s6889_s9  ;;  %v6858_v13 = vld [vmem:[%s6949_s29 + $0xcc] sm:$0xff]  }
 0x13a   : > { %4066 = vrot.lane.b32.xlu0 %v4065_v50, %s6892_s12  ;;  %v1916_v33 = vsel %vm324_vm5, %v6858_v13, %v7989_v46  ;;  %v4705_v50 = vrot.slane %v8198_v37, 1  ;;  %v5019_v46 = vshll.u32 %v8215_v59, 16  ;;  %v4716_v13 = vor.u32 %v4715_v60, %v4714_v28 }
 0x13b   : > { %v8217_v61 = vpop.permute.xlu1 %3572  ;;  %v1918_v32 = vsel %vm1141_vm6, %v1916_v33, %v7981_v12 }
 0x13c   : > { %v8224_v40 = vpop.permute.xlu0 %3570  ;;  %v1920_v21 = vsel %vm1174_vm7, %v1918_v32, %v8017_v63  ;;  %v4706_v63 = vsel %vm770_vm1, %v4704_v35, %v4705_v50  ;;  %v5021_v43 = vrot.slane %v5019_v46, 1  ;;  %v4717_v60 = vsel %vm851_vm3, %v4711_v38, %v4716_v13 }
 0x13d   : > { %4381 = vrot.lane.b32.xlu1 %v4380_v56, %s6890_s10  ;;  %v4700_v56 = vrot.slane %v4698_v10, 1  ;;  %v5024_v10 = vshll.u32 %v8232_v7, 16  ;;  %v8270_v28 = vsel %vm1207_vm8, %v1920_v21, %v8009_v30  ;;  %v5040_v21 = vrot.slane %v5038_v18, 1  ;;  %v6860_v18 = vld [vmem:[%s7124_s17] sm:$0xff]  }
 0x13e   : > { %4376 = vrot.lane.b32.xlu0 %v4375_v6, %s6891_s11  ;;  %v4391_v6 = vsel %vm851_vm3, %v4385_v49, %v4390_v44  ;;  %v4720_v49 = vrot.slane %v8181_v23, 2  ;;  %v4721_v44 = vrot.slane %v8198_v37, 2  ;;  %v6859_v23 = vld [vmem:[%s6949_s29 + $0xd8] sm:$0xff]   ;;  %v5022_v35 = vor.u32 %v5021_v43, %v5017_v39 }
 0x13f   : > { %6459 = vmatmul.mubr.msk.bf16.gmra.mrb[56].mxu0 %vm1284_vm9, %v7927_v0  ;;  %6491 = vmatmul.mubr.msk.bf16.gmra.mrb[52].mxu1 %vm1284_vm9, %v7932_v14  ;;  %v8241_v47 = vpop.permute.xlu1 %3240  ;;  %v4701_v32 = vsel %vm545_vm2, %v4696_v48, %v4700_v56  ;;  %v2242_v37 = vsel %vm324_vm5, %v6859_v23, %v8045_v11  ;;  %v5026_v50 = vrot.slane %v5024_v10, 1  ;;  %v5031_v48 = vrot.slane %v8232_v7, 1 }
 0x140   : > { %6462 = vmatprep.mubr.msk.bf16.mxu0 %vm1284_vm9, %v7970_v22  ;;  %6494 = vmatprep.mubr.msk.bf16.mxu1 %vm1284_vm9, %v7927_v0  ;;  %v8250_v12 = vpop.permute.xlu0 %3238  ;;  %v5035_v11 = vrot.slane %v5017_v39, 1  ;;  %v5036_v56 = vrot.slane %v5019_v46, 2  ;;  %v5041_v38 = vrot.slane %v5024_v10, 2 }
 0x141   : > { %4397 = vrot.lane.b32.xlu1 %v4396_v45, %s6889_s9  ;;  %v4722_v45 = vsel %vm1028_vm0, %v4720_v49, %v4721_v44  ;;  %v2244_v49 = vsel %vm1141_vm6, %v2242_v37, %v8034_v17  ;;  %v5046_v44 = vrot.slane %v8215_v59, 2  ;;  %v3599_v17 = vsel %vm324_vm5, %v6860_v18, %v8090_v26 }
 0x142   : > { %4392 = vrot.lane.b32.xlu0 %v4391_v6, %s6892_s12  ;;  %v5030_v6 = vrot.slane %v8215_v59, 1  ;;  %v2246_v39 = vsel %vm1174_vm7, %v2244_v49, %v8071_v5  ;;  %v5037_v10 = vor.u32 %v5036_v56, %v5035_v11  ;;  %v3631_v37 = vsel %vm1141_vm6, %v3599_v17, %v8107_v62  ;;  %v6864_v49 = vld [vmem:[%s7124_s17 + $0x30] sm:$0xff]  }
 0x143   : > { %v8259_v33 = vpop.permute.xlu1 %3320  ;;  %v3663_v59 = vsel %vm1174_vm7, %v3631_v37, %v8127_v55  ;;  %v8312_v5 = vsel %vm1207_vm8, %v2246_v39, %v8066_v57  ;;  %v1240_v37 = vld [vmem:[#allocation2] sm:$0xff] }
 0x144   : > { %v8263_v29 = vpop.permute.xlu0 %3318  ;;  %v5032_v46 = vsel %vm770_vm1, %v5030_v6, %v5031_v48  ;;  %v3695_v62 = vsel %vm1207_vm8, %v3663_v59, %v8145_v1  ;;  %v6867_v59 = vld [vmem:[%s7124_s17 + $0x54] sm:$0xff]  }
 0x145   : > { %4707 = vrot.lane.b32.xlu1 %v4706_v63, %s6890_s10  ;;  %v5047_v63 = vrot.slane %v8232_v7, 2  ;;  %v6831_v7 = vld [vmem:[%s9175_s3 + $0x14] ss:$0 sps:$4 sm:$0x33]  }
 0x146   : > { %4702 = vrot.lane.b32.xlu0 %v4701_v32, %s6891_s11  ;;  %v5042_v32 = vor.u32 %v5041_v38, %v5040_v21  ;;  %v4129_v1 = vsel %vm1317_vm4, %v6831_v7, 0 }
 0x147   : > { %6463 = vmatmul.mubr.msk.bf16.gmra.mrb[60].mxu0 %vm1284_vm9, %v8270_v28  ;;  %6495 = vmatmul.mubr.msk.bf16.gmra.mrb[56].mxu1 %vm1284_vm9, %v7970_v22  ;;  %v8282_v30 = vpop.permute.xlu1 %3496  ;;  %v5048_v26 = vsel %vm1028_vm0, %v5046_v44, %v5047_v63 }
 0x148   : > { %6498 = vmatprep.mubr.msk.bf16.mxu1 %vm1284_vm9, %v8270_v28  ;;  %6506 = vmatprep.mubr.msk.bf16.mxu0 %vm1284_vm9, %v7508_v58  ;;  %v8288_v13 = vpop.permute.xlu0 %3494  ;;  %v5027_v58 = vsel %vm545_vm2, %v5022_v35, %v5026_v50  ;;  %v5043_v55 = vsel %vm851_vm3, %v5037_v10, %v5042_v32  ;;  %v6862_v50 = vld [vmem:[%s7124_s17 + $0x18] sm:$0xff]  }
 0x149   : > { %4723 = vrot.lane.b32.xlu1 %v4722_v45, %s6889_s9  ;;  %v6861_v45 = vld [vmem:[%s7124_s17 + $0xc] sm:$0xff]   ;;  %v3603_v6 = vsel %vm324_vm5, %v6862_v50, %v8167_v31  ;;  %v6832_v31 = vld [vmem:[%s9175_s3 + $0x20] ss:$0 sps:$4 sm:$0x33]  }
 0x14a   : > { %4718 = vrot.lane.b32.xlu0 %v4717_v60, %s6892_s12  ;;  %v3635_v56 = vsel %vm1141_vm6, %v3603_v6, %v8183_v36 }
 0x14b   : > { %v8299_v43 = vpop.permute.xlu1 %3576 }
 0x14c   : > { %v3575_v23 = vpop.permute.xlu0 %3574 }
 0x14d   : > { %5033 = vrot.lane.b32.xlu1 %v5032_v46, %s6890_s10 }
 0x14e   : > { %5028 = vrot.lane.b32.xlu0 %v5027_v58, %s6891_s11 }
 0x14f   : > { %6499 = vmatmul.mubr.msk.bf16.gmra.mrb[60].mxu1 %vm1284_vm9, %v8312_v5  ;;  %6507 = vmatmul.mubr.msk.bf16.vlgmr.msra.gmra.mrb[64].mxu0 %vm1284_vm9, %v7505_v53  ;;  %v8325_v57 = vpop.permute.xlu1 %3244  ;;  %v8338_v53 = vld [vmem:[%s9175_s3 + $0x24] sm:$0xff]  }
 0x150   : > { %6510 = vmatprep.mubr.msk.bf16.mxu0 %vm1284_vm9, %v7594_v4  ;;  %6542 = vmatprep.mubr.msk.bf16.mxu1 %vm1284_vm9, %v3695_v62  ;;  %v3243_v60 = vpop.permute.xlu0 %3242  ;;  %v3601_v4 = vsel %vm324_vm5, %v6861_v45, %v8082_v54 }
 0x151   : > { %6575 = vmatpush3.bf16.msra.mxu0 %v8007_v19  ;;  %5049 = vrot.lane.b32.xlu1 %v5048_v26, %s6889_s9  ;;  %v3633_v19 = vsel %vm1141_vm6, %v3601_v4, %v8101_v9  ;;  %v3667_v9 = vsel %vm1174_vm7, %v3635_v56, %v8205_v41  ;;  %v4455_v41 = vsel %vm1317_vm4, %v6832_v31, 0 }
 0x152   : > { %6724 = vmatprep.subr.msk.bf16.mxu0 %vm1317_vm4, %v6831_v7  ;;  %5044 = vrot.lane.b32.xlu0 %v5043_v55, %s6892_s12  ;;  %v3665_v11 = vsel %vm1174_vm7, %v3633_v19, %v8119_v20  ;;  %v8367_v20 = vsel %vm1207_vm8, %v3667_v9, %v8224_v40  ;;  %v6863_v40 = vld [vmem:[%s7124_s17 + $0x24] sm:$0xff]   ;;  %v3613_v7 = vsel %vm324_vm5, %v6867_v59, %v8325_v57 }
 0x153   : > { %v8344_v35 = vpop.permute.xlu1 %3324  ;;  %v8357_v54 = vsel %vm1207_vm8, %v3665_v11, %v8140_v27  ;;  %v3605_v21 = vsel %vm324_vm5, %v6863_v40, %v8161_v24  ;;  %v1241_v19 = vld [vmem:[#allocation2 + $0x8] sm:$0xff] }
 0x154   : > { %v3323_v48 = vpop.permute.xlu0 %3322  ;;  %v3637_v38 = vsel %vm1141_vm6, %v3605_v21, %v8176_v51  ;;  %v3645_v55 = vsel %vm1141_vm6, %v3613_v7, %v8344_v35  ;;  %v6869_v40 = vld [vmem:[%s7124_s17 + $0x6c] sm:$0xff]  }
 0x155   : > { %6577 = vmatpush3.bf16.msra.mxu0 %v4129_v1  ;;  %v3669_v44 = vsel %vm1174_vm7, %v3637_v38, %v8194_v15  ;;  %v1245_v59 = vld [vmem:[#allocation2 + $0x28] sm:$0xff] }
 0x156   : > { %6646 = vmatprep.subr.bf16.mxu0 %v8338_v53  ;;  %v8399_v24 = vsel %vm1207_vm8, %v3669_v44, %v8217_v61  ;;  %v1246_v44 = vld [vmem:[#allocation2 + $0x30] sm:$0xff] }
 0x157   : > { %6511 = vmatmul.mubr.msk.bf16.gmra.mrb[68].mxu0 %vm1284_vm9, %v7591_v2  ;;  %6543 = vmatmul.mubr.msk.bf16.vlgmr.msra.gmra.mrb[64].mxu1 %vm1284_vm9, %v8357_v54  ;;  %v3501_v27 = vpop.permute.xlu1 %3500  ;;  %v8383_v2 = vld [vmem:[%s9175_s3 + $0x30] sm:$0xff]  }
 0x158   : > { %6514 = vmatprep.mubr.msk.bf16.mxu0 %vm1284_vm9, %v7662_v16  ;;  %6546 = vmatprep.mubr.msk.bf16.mxu1 %vm1284_vm9, %v8367_v20  ;;  %v3499_v36 = vpop.permute.xlu0 %3498  ;;  %v3677_v50 = vsel %vm1174_vm7, %v3645_v55, %v3501_v27 }
 0x159   : > { %6611 = vmatpush3.bf16.msra.mxu1 %v8064_v52  ;;  %v3607_v52 = vsel %vm324_vm5, %v6864_v49, %v8250_v12 }
 0x15a   : > { %6725 = vmatprep.subr.msk.bf16.mxu1 %vm1317_vm4, %v6832_v31  ;;  %v3639_v63 = vsel %vm1141_vm6, %v3607_v52, %v8263_v29  ;;  %v6865_v29 = vld [vmem:[%s7124_s17 + $0x3c] sm:$0xff]  }
 0x15b   : > { %v3581_v16 = vpop.permute.xlu1 %3580  ;;  %v3671_v51 = vsel %vm1174_vm7, %v3639_v63, %v8288_v13  ;;  %v3609_v13 = vsel %vm324_vm5, %v6865_v29, %v8241_v47  ;;  %v1244_v63 = vld [vmem:[#allocation2 + $0x20] sm:$0xff] }
 0x15c   : > { %v3579_v46 = vpop.permute.xlu0 %3578  ;;  %v8405_v12 = vsel %vm1207_vm8, %v3671_v51, %v3575_v23  ;;  %v3641_v58 = vsel %vm1141_vm6, %v3609_v13, %v8259_v33  ;;  %v8451_v57 = vsel %vm1207_vm8, %v3677_v50, %v3581_v16  ;;  %v6870_v29 = vld [vmem:[%s7124_s17 + $0x84] sm:$0xff]  }
 0x15d   : > { %6613 = vmatpush3.bf16.msra.mxu1 %v4455_v41 }
 0x15e   : > { %6682 = vmatprep.subr.bf16.mxu1 %v8383_v2 }
 0x15f   : > { %6515 = vmatmul.mubr.msk.bf16.gmra.mrb[72].mxu0 %vm1284_vm9, %v7659_v8  ;;  %6547 = vmatmul.mubr.msk.bf16.gmra.mrb[68].mxu1 %vm1284_vm9, %v8399_v24  ;;  %v3249_v15 = vpop.permute.xlu1 %3248  ;;  %v6866_v8 = vld [vmem:[%s7124_s17 + $0x48] sm:$0xff]  }
 0x160   : > { %6518 = vmatprep.mubr.msk.bf16.mxu0 %vm1284_vm9, %v7735_v25  ;;  %6550 = vmatprep.mubr.msk.bf16.mxu1 %vm1284_vm9, %v8405_v12  ;;  %v3247_v61 = vpop.permute.xlu0 %3246  ;;  %v3611_v10 = vsel %vm324_vm5, %v6866_v8, %v3243_v60  ;;  %v3673_v25 = vsel %vm1174_vm7, %v3641_v58, %v8282_v30  ;;  %v6868_v60 = vld [vmem:[%s7124_s17 + $0x60] sm:$0xff]   ;;  %v3617_v21 = vsel %vm324_vm5, %v6869_v40, %v3249_v15 }
 0x161   : > { %v3643_v18 = vsel %vm1141_vm6, %v3611_v10, %v3323_v48  ;;  %v8427_v17 = vsel %vm1207_vm8, %v3673_v25, %v8299_v43  ;;  %v1242_v43 = vld [vmem:[#allocation2 + $0x10] sm:$0xff]  ;;  %v3615_v1 = vsel %vm324_vm5, %v6868_v60, %v3247_v61  ;;  %v6871_v25 = vld [vmem:[%s7124_s17 + $0x78] sm:$0xff]  }
 0x162   : > { %v3675_v47 = vsel %vm1174_vm7, %v3643_v18, %v3499_v36 }
 0x163   : > { %v3329_v39 = vpop.permute.xlu1 %3328  ;;  %v8431_v23 = vsel %vm1207_vm8, %v3675_v47, %v3579_v46 }
 0x164   : > { %v3327_v32 = vpop.permute.xlu0 %3326  ;;  %v3649_v16 = vsel %vm1141_vm6, %v3617_v21, %v3329_v39 }
 0x165   : > { %v3647_v6 = vsel %vm1141_vm6, %v3615_v1, %v3327_v32  ;;  %v1247_v32 = vld [vmem:[#allocation2 + $0x38] sm:$0xff] }
 0x167   : > { %6519 = vmatmul.mubr.msk.bf16.gmra.mrb[76].mxu0 %vm1284_vm9, %v7729_v34  ;;  %6551 = vmatmul.mubr.msk.bf16.gmra.mrb[72].mxu1 %vm1284_vm9, %v8427_v17  ;;  %v3505_v33 = vpop.permute.xlu1 %3504  ;;  %v1243_v34 = vld [vmem:[#allocation2 + $0x18] sm:$0xff] }
 0x168   : > { %6522 = vmatprep.mubr.msk.bf16.mxu0 %vm1284_vm9, %v7861_v3  ;;  %6554 = vmatprep.mubr.msk.bf16.mxu1 %vm1284_vm9, %v8431_v23  ;;  %v3503_v30 = vpop.permute.xlu0 %3502  ;;  %v3681_v49 = vsel %vm1174_vm7, %v3649_v16, %v3505_v33  ;;  %v1248_v16 = vld [vmem:[#allocation2 + $0x40] sm:$0xff] }
 0x169   : > { %v3679_v56 = vsel %vm1174_vm7, %v3647_v6, %v3503_v30 }
 0x16b   : > { %v6364_v26 = vpop.f32.mrb[0].mxu0  ;;  %v3585_v62 = vpop.permute.xlu1 %3584 }
 0x16c   : > { %v1484_v3 = vadd.f32 %v6364_v26, %v1242_v43  ;;  %v1355_v45 = vpop.f32.mrb[1].mxu0  ;;  %v3583_v4 = vpop.permute.xlu0 %3582  ;;  %v8474_v52 = vsel %vm1207_vm8, %v3681_v49, %v3585_v62 }
 0x16d   : > { %v1482_v48 = vadd.f32 %v1355_v45, %v1240_v37  ;;  %v6365_v11 = vpop.f32.mrb[2].mxu0  ;;  %v8457_v31 = vsel %vm1207_vm8, %v3679_v56, %v3583_v4 }
 0x16e   : > { %1516 = vst.msk [vmem:[#allocation2 + $0x10] sm:$0xff] %vm324_vm5, %v1484_v3  ;;  %v1485_v35 = vadd.f32 %v6365_v11, %v1243_v34  ;;  %v1358_v9 = vpop.f32.mrb[3].mxu0 }
 0x16f   : > { %1514 = vst.msk [vmem:[#allocation2] sm:$0xff] %vm324_vm5, %v1482_v48  ;;  %v1483_v27 = vadd.f32 %v1358_v9, %v1241_v19  ;;  %6523 = vmatmul.mubr.msk.bf16.gmra.mrb[80].mxu0 %vm1284_vm9, %v7858_v42  ;;  %6555 = vmatmul.mubr.msk.bf16.gmra.mrb[76].mxu1 %vm1284_vm9, %v8451_v57  ;;  %v3253_v36 = vpop.permute.xlu1 %3252 }
 0x170   : > { %1517 = vst.msk [vmem:[#allocation2 + $0x18] sm:$0xff] %vm324_vm5, %v1485_v35  ;;  %6526 = vmatprep.mubr.msk.bf16.mxu0 %vm1284_vm9, %v7932_v14  ;;  %6558 = vmatprep.mubr.msk.bf16.mxu1 %vm1284_vm9, %v8457_v31  ;;  %v3251_v41 = vpop.permute.xlu0 %3250  ;;  %v3621_v13 = vsel %vm324_vm5, %v6870_v29, %v3253_v36  ;;  %v6872_v36 = vld [vmem:[%s6949_s29 + $0xe4] sm:$0xff]  }
 0x171   : > { %1515 = vst.msk [vmem:[#allocation2 + $0x8] sm:$0xff] %vm324_vm5, %v1483_v27  ;;  %v3619_v18 = vsel %vm324_vm5, %v6871_v25, %v3251_v41  ;;  %v1250_v27 = vld [vmem:[#allocation2 + $0x50] sm:$0xff] }
 0x173   : > { %v3333_v42 = vpop.permute.xlu1 %3332 }
 0x174   : > { %v3331_v38 = vpop.permute.xlu0 %3330 }
 0x175   : > { %v1599_v51 = vld [vmem:[#allocation2 + $0x10] sm:$0xff]  ;;  %v3651_v7 = vsel %vm1141_vm6, %v3619_v18, %v3331_v38 }
 0x177   : > { %6527 = vmatmul.mubr.msk.bf16.gmra.mrb[84].mxu0 %vm1284_vm9, %v7927_v0  ;;  %6559 = vmatmul.mubr.msk.bf16.gmra.mrb[80].mxu1 %vm1284_vm9, %v8474_v52  ;;  %v3509_v14 = vpop.permute.xlu1 %3508  ;;  %v1597_v0 = vld [vmem:[#allocation2] sm:$0xff]  ;;  %v1600_v30 = vld [vmem:[#allocation2 + $0x18] sm:$0xff] }
 0x178   : > { %6530 = vmatprep.mubr.msk.bf16.mxu0 %vm1284_vm9, %v7970_v22  ;;  %v3507_v46 = vpop.permute.xlu0 %3506  ;;  %v3653_v22 = vsel %vm1141_vm6, %v3621_v13, %v3333_v42  ;;  %v1598_v55 = vld [vmem:[#allocation2 + $0x8] sm:$0xff] }
 0x179   : > { %v3685_v26 = vsel %vm1174_vm7, %v3653_v22, %v3509_v14  ;;  %v3683_v1 = vsel %vm1174_vm7, %v3651_v7, %v3507_v46  ;;  %v1251_v46 = vld [vmem:[#allocation2 + $0x58] sm:$0xff] }
 0x17a   : > { %v6400_v15 = vpop.f32.mrb[0].mxu1  ;;  %v6368_v61 = vpop.f32.mrb[4].mxu0  ;;  %v6873_v7 = vld [vmem:[%s7124_s17 + $0x9c] sm:$0xff]  }
 0x17b   : > { %v1810_v39 = vadd.f32 %v6400_v15, %v1599_v51  ;;  %v1488_v58 = vadd.f32 %v6368_v61, %v1246_v44  ;;  %v1681_v8 = vpop.f32.mrb[1].mxu1  ;;  %v1371_v10 = vpop.f32.mrb[5].mxu0 }
 0x17c   : > { %v1808_v47 = vadd.f32 %v1681_v8, %v1597_v0  ;;  %v1486_v33 = vadd.f32 %v1371_v10, %v1244_v63  ;;  %v6401_v43 = vpop.f32.mrb[2].mxu1  ;;  %v3589_v37 = vpop.permute.xlu1 %3588  ;;  %v1249_v8 = vld [vmem:[#allocation2 + $0x48] sm:$0xff] }
 0x17d   : > { %1842 = vst.msk [vmem:[#allocation2 + $0x10] sm:$0xff] %vm324_vm5, %v1810_v39  ;;  %1520 = vst.msk [vmem:[#allocation2 + $0x30] sm:$0xff] %vm324_vm5, %v1488_v58  ;;  %v1811_v62 = vadd.f32 %v6401_v43, %v1600_v30  ;;  %v6369_v34 = vpop.f32.mrb[6].mxu0  ;;  %v1684_v60 = vpop.f32.mrb[3].mxu1  ;;  %v8495_v3 = vsel %vm1207_vm8, %v3685_v26, %v3589_v37 }
 0x17e   : > { %1840 = vst.msk [vmem:[#allocation2] sm:$0xff] %vm324_vm5, %v1808_v47  ;;  %1518 = vst.msk [vmem:[#allocation2 + $0x20] sm:$0xff] %vm324_vm5, %v1486_v33  ;;  %v1489_v45 = vadd.f32 %v6369_v34, %v1247_v32  ;;  %v1809_v4 = vadd.f32 %v1684_v60, %v1598_v55  ;;  %v3587_v19 = vpop.permute.xlu0 %3586  ;;  %v1374_v50 = vpop.f32.mrb[7].mxu0 }
 0x17f   : > { %1843 = vst.msk [vmem:[#allocation2 + $0x18] sm:$0xff] %vm324_vm5, %v1811_v62  ;;  %v8499_v6 = vsel %vm1207_vm8, %v3683_v1, %v3587_v19  ;;  %v1487_v48 = vadd.f32 %v1374_v50, %v1245_v59  ;;  %6531 = vmatmul.mubr.msk.bf16.gmra.mrb[88].mxu0 %vm1284_vm9, %v8270_v28  ;;  %v6874_v62 = vld [vmem:[%s7124_s17 + $0x90] sm:$0xff]  }
 0x180   : > { %1521 = vst.msk [vmem:[#allocation2 + $0x38] sm:$0xff] %vm324_vm5, %v1489_v45  ;;  %1841 = vst.msk [vmem:[#allocation2 + $0x8] sm:$0xff] %vm324_vm5, %v1809_v4  ;;  %6562 = vmatprep.mubr.msk.bf16.mxu1 %vm1284_vm9, %v8499_v6  ;;  %v2550_v11 = vpop.permute.xlu1 %2549  ;;  %6534 = vmatprep.mubr.msk.bf16.mxu0 %vm1284_vm9, %v8312_v5 }
 0x181   : > { %1519 = vst.msk [vmem:[#allocation2 + $0x28] sm:$0xff] %vm324_vm5, %v1487_v48  ;;  %6563 = vmatmul.mubr.msk.bf16.gmra.mrb[84].mxu1 %vm1284_vm9, %v8495_v3  ;;  %v6839_v48 = vld [vmem:[%s9175_s3 + $0x2c] ss:$0 sps:$4 sm:$0x33]  }
 0x182   : > { %v2545_v56 = vpop.permute.xlu0 %2544 }
 0x183   : > { %v2568_v41 = vsel %vm324_vm5, %v6872_v36, %v2545_v56  ;;  %v1254_v56 = vld [vmem:[#allocation2 + $0x70] sm:$0xff] }
 0x184   : > { %v2561_v35 = vpop.permute.xlu1 %2560  ;;  %v1603_v21 = vld [vmem:[#allocation2 + $0x30] sm:$0xff]  ;;  %v2570_v29 = vsel %vm1141_vm6, %v2568_v41, %v2550_v11 }
 0x185   : > { %v1601_v5 = vld [vmem:[#allocation2 + $0x20] sm:$0xff]  ;;  %v2572_v10 = vsel %vm1174_vm7, %v2570_v29, %v2561_v35 }
 0x186   : > { %v3255_v9 = vpop.permute.xlu0 %3254 }
 0x187   : > { %v1604_v15 = vld [vmem:[#allocation2 + $0x38] sm:$0xff]  ;;  %v3623_v34 = vsel %vm324_vm5, %v6874_v62, %v3255_v9 }
 0x188   : > { %v3335_v28 = vpop.permute.xlu1 %3334  ;;  %v1602_v25 = vld [vmem:[#allocation2 + $0x28] sm:$0xff] }
 0x189   : > { %v3655_v60 = vsel %vm1141_vm6, %v3623_v34, %v3335_v28  ;;  %v1258_v34 = vld [vmem:[#allocation2 + $0x90] sm:$0xff] }
 0x18a   : > { %v3257_v40 = vpop.permute.xlu0 %3256  ;;  %v6404_v42 = vpop.f32.mrb[4].mxu1 }
 0x18b   : > { %v1814_v38 = vadd.f32 %v6404_v42, %v1603_v21  ;;  %v6372_v49 = vpop.f32.mrb[8].mxu0  ;;  %v1697_v14 = vpop.f32.mrb[5].mxu1  ;;  %v3625_v26 = vsel %vm324_vm5, %v6873_v7, %v3257_v40  ;;  %v1255_v42 = vld [vmem:[#allocation2 + $0x78] sm:$0xff] }
 0x18c   : > { %v1492_v44 = vadd.f32 %v6372_v49, %v1250_v27  ;;  %v1812_v63 = vadd.f32 %v1697_v14, %v1601_v5  ;;  %v1387_v51 = vpop.f32.mrb[9].mxu0  ;;  %v6405_v61 = vpop.f32.mrb[6].mxu1  ;;  %v1252_v27 = vld [vmem:[#allocation2 + $0x60] sm:$0xff] }
 0x18d   : > { %1846 = vst.msk [vmem:[#allocation2 + $0x30] sm:$0xff] %vm324_vm5, %v1814_v38  ;;  %v1490_v13 = vadd.f32 %v1387_v51, %v1248_v16  ;;  %v1815_v39 = vadd.f32 %v6405_v61, %v1604_v15  ;;  %v3337_v58 = vpop.permute.xlu1 %3336  ;;  %v6373_v0 = vpop.f32.mrb[10].mxu0  ;;  %v4781_v16 = vsel %vm1317_vm4, %v6839_v48, 0  ;;  %v1253_v15 = vld [vmem:[#allocation2 + $0x68] sm:$0xff] }
 0x18e   : > { %1524 = vst.msk [vmem:[#allocation2 + $0x50] sm:$0xff] %vm324_vm5, %v1492_v44  ;;  %1844 = vst.msk [vmem:[#allocation2 + $0x20] sm:$0xff] %vm324_vm5, %v1812_v63  ;;  %v1493_v32 = vadd.f32 %v6373_v0, %v1251_v46  ;;  %v1700_v18 = vpop.f32.mrb[7].mxu1  ;;  %v2566_v22 = vpop.permute.xlu0 %2565  ;;  %v3657_v55 = vsel %vm1141_vm6, %v3625_v26, %v3337_v58 }
 0x18f   : > { %1522 = vst.msk [vmem:[#allocation2 + $0x40] sm:$0xff] %vm324_vm5, %v1490_v13  ;;  %1847 = vst.msk [vmem:[#allocation2 + $0x38] sm:$0xff] %vm324_vm5, %v1815_v39  ;;  %v1813_v47 = vadd.f32 %v1700_v18, %v1602_v25  ;;  %v2574_v33 = vsel %vm1207_vm8, %v2572_v10, %v2566_v22  ;;  %v1390_v30 = vpop.f32.mrb[11].mxu0  ;;  %v6875_v25 = vld [vmem:[%s7124_s17 + $0xb4] sm:$0xff]   ;;  %v6876_v22 = vld [vmem:[%s7124_s17 + $0xa8] sm:$0xff]  }
 0x190   : > { %1525 = vst.msk [vmem:[#allocation2 + $0x58] sm:$0xff] %vm324_vm5, %v1493_v32  ;;  %v1491_v43 = vadd.f32 %v1390_v30, %v1249_v8  ;;  %6535 = vmatmul.mubr.msk.bf16.gmra.mrb[92].mxu0 %vm1284_vm9, %v2574_v33 }
 0x191   : > { %1845 = vst.msk [vmem:[#allocation2 + $0x28] sm:$0xff] %vm324_vm5, %v1813_v47  ;;  %6578 = vmatprep.mubr.msk.bf16.mxu0 %vm1284_vm9, %v8357_v54  ;;  %v3513_v37 = vpop.permute.xlu1 %3512 }
 0x192   : > { %1523 = vst.msk [vmem:[#allocation2 + $0x48] sm:$0xff] %vm324_vm5, %v1491_v43  ;;  %v3511_v59 = vpop.permute.xlu0 %3510  ;;  %v3689_v1 = vsel %vm1174_vm7, %v3657_v55, %v3513_v37  ;;  %v1256_v55 = vld [vmem:[#allocation2 + $0x80] sm:$0xff] }
 0x193   : > { %v3687_v4 = vsel %vm1174_vm7, %v3655_v60, %v3511_v59 }
 0x195   : > { %v3593_v45 = vpop.permute.xlu1 %3592  ;;  %v1607_v9 = vld [vmem:[#allocation2 + $0x50] sm:$0xff] }
 0x196   : > { %v8537_v54 = vsel %vm1207_vm8, %v3689_v1, %v3593_v45  ;;  %v3591_v19 = vpop.permute.xlu0 %3590  ;;  %v1605_v40 = vld [vmem:[#allocation2 + $0x40] sm:$0xff] }
 0x197   : > { %v8540_v50 = vsel %vm1207_vm8, %v3687_v4, %v3591_v19  ;;  %v1608_v14 = vld [vmem:[#allocation2 + $0x58] sm:$0xff] }
 0x198   : > { %6566 = vmatprep.mubr.msk.bf16.mxu1 %vm1284_vm9, %v8540_v50  ;;  %6579 = vmatmul.mubr.msk.bf16.vlgmr.msra.gmra.mrb[96].mxu0 %vm1284_vm9, %v8367_v20  ;;  %v1259_v4 = vld [vmem:[#allocation2 + $0x98] sm:$0xff] }
 0x199   : > { %6567 = vmatmul.mubr.msk.bf16.gmra.mrb[88].mxu1 %vm1284_vm9, %v8537_v54  ;;  %6582 = vmatprep.mubr.msk.bf16.mxu0 %vm1284_vm9, %v8399_v24  ;;  %v3261_v11 = vpop.permute.xlu1 %3260  ;;  %v1606_v29 = vld [vmem:[#allocation2 + $0x48] sm:$0xff] }
 0x19a   : > { %v3259_v35 = vpop.permute.xlu0 %3258  ;;  %v6408_v28 = vpop.f32.mrb[8].mxu1  ;;  %6647 = vmatpush3.bf16.msra.mxu0 %v8338_v53  ;;  %v3629_v18 = vsel %vm324_vm5, %v6875_v25, %v3261_v11 }
 0x19b   : > { %v1818_v36 = vadd.f32 %v6408_v28, %v1607_v9  ;;  %v6376_v41 = vpop.f32.mrb[12].mxu0  ;;  %v1713_v21 = vpop.f32.mrb[9].mxu1  ;;  %6726 = vmatprep.subr.msk.bf16.mxu0 %vm1317_vm4, %v6839_v48  ;;  %v3627_v47 = vsel %vm324_vm5, %v6876_v22, %v3259_v35  ;;  %v1257_v9 = vld [vmem:[#allocation2 + $0x88] sm:$0xff] }
 0x19c   : > { %v1496_v38 = vadd.f32 %v6376_v41, %v1254_v56  ;;  %v1816_v49 = vadd.f32 %v1713_v21, %v1605_v40  ;;  %v1403_v5 = vpop.f32.mrb[13].mxu0  ;;  %v6409_v46 = vpop.f32.mrb[10].mxu1 }
 0x19d   : > { %1850 = vst.msk [vmem:[#allocation2 + $0x50] sm:$0xff] %vm324_vm5, %v1818_v36  ;;  %v1494_v44 = vadd.f32 %v1403_v5, %v1252_v27  ;;  %v1819_v63 = vadd.f32 %v6409_v46, %v1608_v14  ;;  %v3341_v51 = vpop.permute.xlu1 %3340  ;;  %v6377_v53 = vpop.f32.mrb[14].mxu0  ;;  %v6840_v14 = vld [vmem:[%s9175_s3 + $0x38] ss:$0 sps:$4 sm:$0x33]  }
 0x19e   : > { %1528 = vst.msk [vmem:[#allocation2 + $0x70] sm:$0xff] %vm324_vm5, %v1496_v38  ;;  %1848 = vst.msk [vmem:[#allocation2 + $0x40] sm:$0xff] %vm324_vm5, %v1816_v49  ;;  %v1497_v61 = vadd.f32 %v6377_v53, %v1255_v42  ;;  %v1716_v13 = vpop.f32.mrb[11].mxu1  ;;  %v3339_v39 = vpop.permute.xlu0 %3338  ;;  %6649 = vmatpush3.bf16.msra.mxu0 %v4781_v16  ;;  %v3661_v33 = vsel %vm1141_vm6, %v3629_v18, %v3341_v51  ;;  %v5107_v46 = vsel %vm1317_vm4, %v6840_v14, 0 }
 0x19f   : > { %1526 = vst.msk [vmem:[#allocation2 + $0x60] sm:$0xff] %vm324_vm5, %v1494_v44  ;;  %1851 = vst.msk [vmem:[#allocation2 + $0x58] sm:$0xff] %vm324_vm5, %v1819_v63  ;;  %v1817_v58 = vadd.f32 %v1716_v13, %v1606_v29  ;;  %v1406_v0 = vpop.f32.mrb[15].mxu0  ;;  %v3659_v30 = vsel %vm1141_vm6, %v3627_v47, %v3339_v39  ;;  %v1262_v44 = vld [vmem:[#allocation2 + $0xb0] sm:$0xff]  ;;  %v1260_v63 = vld [vmem:[#allocation2 + $0xa0] sm:$0xff] }
 0x1a0   : > { %1529 = vst.msk [vmem:[#allocation2 + $0x78] sm:$0xff] %vm324_vm5, %v1497_v61  ;;  %v1495_v8 = vadd.f32 %v1406_v0, %v1253_v15  ;;  %6583 = vmatmul.mubr.msk.bf16.gmra.mrb[100].mxu0 %vm1284_vm9, %v8405_v12  ;;  %v1263_v15 = vld [vmem:[#allocation2 + $0xb8] sm:$0xff]  ;;  %v1261_v0 = vld [vmem:[#allocation2 + $0xa8] sm:$0xff] }
 0x1a1   : > { %1849 = vst.msk [vmem:[#allocation2 + $0x48] sm:$0xff] %vm324_vm5, %v1817_v58  ;;  %6586 = vmatprep.mubr.msk.bf16.mxu0 %vm1284_vm9, %v8427_v17  ;;  %v3517_v10 = vpop.permute.xlu1 %3516 }
 0x1a2   : > { %1527 = vst.msk [vmem:[#allocation2 + $0x68] sm:$0xff] %vm324_vm5, %v1495_v8  ;;  %v3515_v32 = vpop.permute.xlu0 %3514  ;;  %v3693_v43 = vsel %vm1174_vm7, %v3661_v33, %v3517_v10 }
 0x1a3   : > { %v3691_v59 = vsel %vm1174_vm7, %v3659_v30, %v3515_v32 }
 0x1a5   : > { %v3597_v37 = vpop.permute.xlu1 %3596  ;;  %v1611_v60 = vld [vmem:[#allocation2 + $0x70] sm:$0xff] }
 0x1a6   : > { %v8577_v7 = vsel %vm1207_vm8, %v3693_v43, %v3597_v37  ;;  %v3595_v26 = vpop.permute.xlu0 %3594  ;;  %v1609_v11 = vld [vmem:[#allocation2 + $0x60] sm:$0xff] }
 0x1a7   : > { %v8580_v62 = vsel %vm1207_vm8, %v3691_v59, %v3595_v26  ;;  %v1612_v36 = vld [vmem:[#allocation2 + $0x78] sm:$0xff] }
 0x1a8   : > { %6570 = vmatprep.mubr.msk.bf16.mxu1 %vm1284_vm9, %v8580_v62  ;;  %6587 = vmatmul.mubr.msk.bf16.gmra.mrb[104].mxu0 %vm1284_vm9, %v8431_v23 }
 0x1a9   : > { %6571 = vmatmul.mubr.msk.bf16.gmra.mrb[92].mxu1 %vm1284_vm9, %v8577_v7  ;;  %6590 = vmatprep.mubr.msk.bf16.mxu0 %vm1284_vm9, %v8451_v57  ;;  %v1610_v42 = vld [vmem:[#allocation2 + $0x68] sm:$0xff] }
 0x1aa   : > { %6614 = vmatprep.mubr.msk.bf16.mxu1 %vm1284_vm9, %v8367_v20  ;;  %v6412_v1 = vpop.f32.mrb[12].mxu1  ;;  %v6380_v45 = vpop.f32.mrb[16].mxu0 }
 0x1ab   : > { %v1822_v19 = vadd.f32 %v6412_v1, %v1611_v60  ;;  %v1500_v48 = vadd.f32 %v6380_v45, %v1258_v34  ;;  %v1729_v56 = vpop.f32.mrb[13].mxu1  ;;  %v1419_v35 = vpop.f32.mrb[17].mxu0 }
 0x1ac   : > { %v1820_v28 = vadd.f32 %v1729_v56, %v1609_v11  ;;  %v1498_v27 = vadd.f32 %v1419_v35, %v1256_v55  ;;  %v6413_v41 = vpop.f32.mrb[14].mxu1  ;;  %v6381_v40 = vpop.f32.mrb[18].mxu0  ;;  %v6877_v55 = vld [vmem:[%s7124_s17 + $0xc0] sm:$0xff]  }
 0x1ad   : > { %1854 = vst.msk [vmem:[#allocation2 + $0x70] sm:$0xff] %vm324_vm5, %v1822_v19  ;;  %1532 = vst.msk [vmem:[#allocation2 + $0x90] sm:$0xff] %vm324_vm5, %v1500_v48  ;;  %v1823_v20 = vadd.f32 %v6413_v41, %v1612_v36  ;;  %v1501_v21 = vadd.f32 %v6381_v40, %v1259_v4  ;;  %v1732_v16 = vpop.f32.mrb[15].mxu1  ;;  %v1422_v38 = vpop.f32.mrb[19].mxu0  ;;  %v1266_v4 = vld [vmem:[#allocation2 + $0xd0] sm:$0xff]  ;;  %v1264_v19 = vld [vmem:[#allocation2 + $0xc0] sm:$0xff] }
 0x1ae   : > { %1852 = vst.msk [vmem:[#allocation2 + $0x60] sm:$0xff] %vm324_vm5, %v1820_v28  ;;  %1530 = vst.msk [vmem:[#allocation2 + $0x80] sm:$0xff] %vm324_vm5, %v1498_v27  ;;  %v1821_v49 = vadd.f32 %v1732_v16, %v1610_v42  ;;  %v1499_v5 = vadd.f32 %v1422_v38, %v1257_v9  ;;  %v4051_v26 = vpop.permute.xlu0 %4050  ;;  %v4056_v34 = vpop.permute.xlu1 %4055  ;;  %v1267_v28 = vld [vmem:[#allocation2 + $0xd8] sm:$0xff] }
 0x1af   : > { %1855 = vst.msk [vmem:[#allocation2 + $0x78] sm:$0xff] %vm324_vm5, %v1823_v20  ;;  %1533 = vst.msk [vmem:[#allocation2 + $0x98] sm:$0xff] %vm324_vm5, %v1501_v21  ;;  %v4074_v60 = vsel %vm324_vm5, %v6877_v55, %v4051_v26  ;;  %v1265_v21 = vld [vmem:[#allocation2 + $0xc8] sm:$0xff] }
 0x1b0   : > { %1853 = vst.msk [vmem:[#allocation2 + $0x68] sm:$0xff] %vm324_vm5, %v1821_v49  ;;  %1531 = vst.msk [vmem:[#allocation2 + $0x88] sm:$0xff] %vm324_vm5, %v1499_v5  ;;  %6591 = vmatmul.mubr.msk.bf16.gmra.mrb[108].mxu0 %vm1284_vm9, %v8457_v31  ;;  %v4076_v1 = vsel %vm1141_vm6, %v4074_v60, %v4056_v34 }
 0x1b1   : > { %6594 = vmatprep.mubr.msk.bf16.mxu0 %vm1284_vm9, %v8474_v52  ;;  %6615 = vmatmul.mubr.msk.bf16.vlgmr.msra.gmra.mrb[96].mxu1 %vm1284_vm9, %v8399_v24 }
 0x1b2   : > { %6683 = vmatpush3.bf16.msra.mxu1 %v8383_v2  ;;  %6618 = vmatprep.mubr.msk.bf16.mxu1 %vm1284_vm9, %v8405_v12  ;;  %v4067_v45 = vpop.permute.xlu0 %4066  ;;  %v4072_v48 = vpop.permute.xlu1 %4071 }
 0x1b3   : > { %6727 = vmatprep.subr.msk.bf16.mxu1 %vm1317_vm4, %v6840_v14  ;;  %v4078_v9 = vsel %vm1174_vm7, %v4076_v1, %v4067_v45 }
 0x1b4   : > { %v1615_v2 = vld [vmem:[#allocation2 + $0x90] sm:$0xff] }
 0x1b5   : > { %v1613_v13 = vld [vmem:[#allocation2 + $0x80] sm:$0xff] }
 0x1b6   : > { %6685 = vmatpush3.bf16.msra.mxu1 %v5107_v46  ;;  %v1616_v32 = vld [vmem:[#allocation2 + $0x98] sm:$0xff]  ;;  %v8653_v46 = vsel %vm1207_vm8, %v4078_v9, %v4072_v48 }
 0x1b7   : > { %v1614_v33 = vld [vmem:[#allocation2 + $0x88] sm:$0xff] }
 0x1b8   : > { %6595 = vmatmul.mubr.msk.bf16.gmra.mrb[112].mxu0 %vm1284_vm9, %v8499_v6 }
 0x1b9   : > { %6598 = vmatprep.mubr.msk.bf16.mxu0 %vm1284_vm9, %v8495_v3  ;;  %6619 = vmatmul.mubr.msk.bf16.gmra.mrb[100].mxu1 %vm1284_vm9, %v8427_v17 }
 0x1ba   : > { %6622 = vmatprep.mubr.msk.bf16.mxu1 %vm1284_vm9, %v8431_v23  ;;  %v6416_v51 = vpop.f32.mrb[16].mxu1  ;;  %v6384_v53 = vpop.f32.mrb[20].mxu0 }
 0x1bb   : > { %v1826_v61 = vadd.f32 %v6416_v51, %v1615_v2  ;;  %v1504_v29 = vadd.f32 %v6384_v53, %v1262_v44  ;;  %v1745_v39 = vpop.f32.mrb[17].mxu1  ;;  %v1435_v58 = vpop.f32.mrb[21].mxu0 }
 0x1bc   : > { %v1824_v8 = vadd.f32 %v1745_v39, %v1613_v13  ;;  %v1502_v10 = vadd.f32 %v1435_v58, %v1260_v63  ;;  %v6417_v25 = vpop.f32.mrb[18].mxu1  ;;  %v6385_v18 = vpop.f32.mrb[22].mxu0 }
 0x1bd   : > { %1858 = vst.msk [vmem:[#allocation2 + $0x90] sm:$0xff] %vm324_vm5, %v1826_v61  ;;  %1536 = vst.msk [vmem:[#allocation2 + $0xb0] sm:$0xff] %vm324_vm5, %v1504_v29  ;;  %v1827_v22 = vadd.f32 %v6417_v25, %v1616_v32  ;;  %v1505_v47 = vadd.f32 %v6385_v18, %v1263_v15  ;;  %v1748_v30 = vpop.f32.mrb[19].mxu1  ;;  %v1438_v43 = vpop.f32.mrb[23].mxu0  ;;  %v1270_v61 = vld [vmem:[#allocation2 + $0xf0] sm:$0xff]  ;;  %v1268_v29 = vld [vmem:[#allocation2 + $0xe0] sm:$0xff] }
 0x1be   : > { %1856 = vst.msk [vmem:[#allocation2 + $0x80] sm:$0xff] %vm324_vm5, %v1824_v8  ;;  %1534 = vst.msk [vmem:[#allocation2 + $0xa0] sm:$0xff] %vm324_vm5, %v1502_v10  ;;  %v1825_v37 = vadd.f32 %v1748_v30, %v1614_v33  ;;  %v1503_v59 = vadd.f32 %v1438_v43, %v1261_v0  ;;  %v4377_v13 = vpop.permute.xlu0 %4376  ;;  %v4382_v39 = vpop.permute.xlu1 %4381  ;;  %v1271_v8 = vld [vmem:[#allocation2 + $0xf8] sm:$0xff] }
 0x1bf   : > { %1859 = vst.msk [vmem:[#allocation2 + $0x98] sm:$0xff] %vm324_vm5, %v1827_v22  ;;  %1537 = vst.msk [vmem:[#allocation2 + $0xb8] sm:$0xff] %vm324_vm5, %v1505_v47  ;;  %v1269_v47 = vld [vmem:[#allocation2 + $0xe8] sm:$0xff] }
 0x1c0   : > { %1857 = vst.msk [vmem:[#allocation2 + $0x88] sm:$0xff] %vm324_vm5, %v1825_v37  ;;  %1535 = vst.msk [vmem:[#allocation2 + $0xa8] sm:$0xff] %vm324_vm5, %v1503_v59  ;;  %6599 = vmatmul.mubr.msk.bf16.gmra.mrb[116].mxu0 %vm1284_vm9, %v8540_v50 }
 0x1c1   : > { %6602 = vmatprep.mubr.msk.bf16.mxu0 %vm1284_vm9, %v8537_v54  ;;  %6623 = vmatmul.mubr.msk.bf16.gmra.mrb[104].mxu1 %vm1284_vm9, %v8451_v57 }
 0x1c2   : > { %6626 = vmatprep.mubr.msk.bf16.mxu1 %vm1284_vm9, %v8457_v31 }
 0x1c4   : > { %v1619_v11 = vld [vmem:[#allocation2 + $0xb0] sm:$0xff] }
 0x1c5   : > { %v1617_v41 = vld [vmem:[#allocation2 + $0xa0] sm:$0xff] }
 0x1c6   : > { %v1620_v38 = vld [vmem:[#allocation2 + $0xb8] sm:$0xff] }
 0x1c7   : > { %v1618_v63 = vld [vmem:[#allocation2 + $0xa8] sm:$0xff] }
 0x1c8   : > { %6603 = vmatmul.mubr.msk.bf16.gmra.mrb[120].mxu0 %vm1284_vm9, %v8580_v62 }
 0x1c9   : > { %6606 = vmatprep.mubr.msk.bf16.mxu0 %vm1284_vm9, %v8577_v7  ;;  %6627 = vmatmul.mubr.msk.bf16.gmra.mrb[108].mxu1 %vm1284_vm9, %v8474_v52 }
 0x1ca   : > { %6630 = vmatprep.mubr.msk.bf16.mxu1 %vm1284_vm9, %v8499_v6  ;;  %v6420_v56 = vpop.f32.mrb[20].mxu1  ;;  %v6388_v35 = vpop.f32.mrb[24].mxu0 }
 0x1cb   : > { %v1830_v27 = vadd.f32 %v6420_v56, %v1619_v11  ;;  %v1508_v36 = vadd.f32 %v6388_v35, %v1266_v4  ;;  %v1761_v40 = vpop.f32.mrb[21].mxu1  ;;  %v1451_v20 = vpop.f32.mrb[25].mxu0 }
 0x1cc   : > { %v1828_v42 = vadd.f32 %v1761_v40, %v1617_v41  ;;  %v1506_v16 = vadd.f32 %v1451_v20, %v1264_v19  ;;  %v6421_v49 = vpop.f32.mrb[22].mxu1  ;;  %v6389_v5 = vpop.f32.mrb[26].mxu0  ;;  %v6878_v19 = vld [vmem:[%s7124_s17 + $0xcc] sm:$0xff]   ;;  %v1923_v40 = vld [vmem:[#allocation2] sm:$0xff] }
 0x1cd   : > { %1862 = vst.msk [vmem:[#allocation2 + $0xb0] sm:$0xff] %vm324_vm5, %v1830_v27  ;;  %1540 = vst.msk [vmem:[#allocation2 + $0xd0] sm:$0xff] %vm324_vm5, %v1508_v36  ;;  %v1831_v14 = vadd.f32 %v6421_v49, %v1620_v38  ;;  %v1509_v44 = vadd.f32 %v6389_v5, %v1267_v28  ;;  %v1764_v2 = vpop.f32.mrb[23].mxu1  ;;  %v1454_v51 = vpop.f32.mrb[27].mxu0  ;;  %v4400_v48 = vsel %vm324_vm5, %v6878_v19, %v4377_v13  ;;  %v1925_v28 = vld [vmem:[#allocation2 + $0x10] sm:$0xff]  ;;  %v1926_v38 = vld [vmem:[#allocation2 + $0x18] sm:$0xff] }
 0x1ce   : > { %1860 = vst.msk [vmem:[#allocation2 + $0xa0] sm:$0xff] %vm324_vm5, %v1828_v42  ;;  %1538 = vst.msk [vmem:[#allocation2 + $0xc0] sm:$0xff] %vm324_vm5, %v1506_v16  ;;  %v1829_v53 = vadd.f32 %v1764_v2, %v1618_v63  ;;  %v1507_v15 = vadd.f32 %v1454_v51, %v1265_v21  ;;  %v4393_v11 = vpop.permute.xlu0 %4392  ;;  %v4398_v56 = vpop.permute.xlu1 %4397  ;;  %v4402_v35 = vsel %vm1141_vm6, %v4400_v48, %v4382_v39  ;;  %v1924_v51 = vld [vmem:[#allocation2 + $0x8] sm:$0xff] }
 0x1cf   : > { %1863 = vst.msk [vmem:[#allocation2 + $0xb8] sm:$0xff] %vm324_vm5, %v1831_v14  ;;  %1541 = vst.msk [vmem:[#allocation2 + $0xd8] sm:$0xff] %vm324_vm5, %v1509_v44  ;;  %v4404_v14 = vsel %vm1174_vm7, %v4402_v35, %v4393_v11 }
 0x1d0   : > { %1861 = vst.msk [vmem:[#allocation2 + $0xa8] sm:$0xff] %vm324_vm5, %v1829_v53  ;;  %1539 = vst.msk [vmem:[#allocation2 + $0xc8] sm:$0xff] %vm324_vm5, %v1507_v15  ;;  %6607 = vmatmul.mubr.msk.bf16.gmra.mrb[124].mxu0 %vm1284_vm9, %v8653_v46 }
 0x1d1   : > { %6631 = vmatmul.mubr.msk.bf16.gmra.mrb[112].mxu1 %vm1284_vm9, %v8495_v3  ;;  %6650 = vmatprep.mubr.msk.bf16.mxu0 %vm1284_vm9, %v8399_v24 }
 0x1d2   : > { %6634 = vmatprep.mubr.msk.bf16.mxu1 %vm1284_vm9, %v8540_v50 }
 0x1d4   : > { %v1623_v24 = vld [vmem:[#allocation2 + $0xd0] sm:$0xff] }
 0x1d5   : > { %v1621_v25 = vld [vmem:[#allocation2 + $0xc0] sm:$0xff] }
 0x1d6   : > { %v1624_v43 = vld [vmem:[#allocation2 + $0xd8] sm:$0xff] }
 0x1d7   : > { %v1622_v55 = vld [vmem:[#allocation2 + $0xc8] sm:$0xff] }
 0x1d8   : > { %6651 = vmatmul.mubr.msk.bf16.vlgmr.msra.gmra.mrb[128].mxu0 %vm1284_vm9, %v8405_v12 }
 0x1d9   : > { %6635 = vmatmul.mubr.msk.bf16.gmra.mrb[116].mxu1 %vm1284_vm9, %v8537_v54  ;;  %6654 = vmatprep.mubr.msk.bf16.mxu0 %vm1284_vm9, %v8427_v17 }
 0x1da   : > { %6638 = vmatprep.mubr.msk.bf16.mxu1 %vm1284_vm9, %v8580_v62  ;;  %v6424_v58 = vpop.f32.mrb[24].mxu1  ;;  %v6392_v0 = vpop.f32.mrb[28].mxu0 }
 0x1db   : > { %v1834_v10 = vadd.f32 %v6424_v58, %v1623_v24  ;;  %v1512_v32 = vadd.f32 %v6392_v0, %v1270_v61  ;;  %v1777_v18 = vpop.f32.mrb[25].mxu1  ;;  %v1467_v22 = vpop.f32.mrb[29].mxu0  ;;  %v8702_v24 = vsel %vm1207_vm8, %v4404_v14, %v4398_v56  ;;  %v1929_v0 = vld [vmem:[#allocation2 + $0x30] sm:$0xff] }
 0x1dc   : > { %v1832_v33 = vadd.f32 %v1777_v18, %v1621_v25  ;;  %v1510_v30 = vadd.f32 %v1467_v22, %v1268_v29  ;;  %v6425_v37 = vpop.f32.mrb[26].mxu1  ;;  %v6393_v59 = vpop.f32.mrb[30].mxu0  ;;  %v1927_v25 = vld [vmem:[#allocation2 + $0x20] sm:$0xff]  ;;  %v1933_v56 = vld [vmem:[#allocation2 + $0x50] sm:$0xff] }
 0x1dd   : > { %1866 = vst.msk [vmem:[#allocation2 + $0xd0] sm:$0xff] %vm324_vm5, %v1834_v10  ;;  %1544 = vst.msk [vmem:[#allocation2 + $0xf0] sm:$0xff] %vm324_vm5, %v1512_v32  ;;  %v1835_v26 = vadd.f32 %v6425_v37, %v1624_v43  ;;  %v1513_v34 = vadd.f32 %v6393_v59, %v1271_v8  ;;  %v1780_v60 = vpop.f32.mrb[27].mxu1  ;;  %v1470_v1 = vpop.f32.mrb[31].mxu0 }
 0x1de   : > { %1864 = vst.msk [vmem:[#allocation2 + $0xc0] sm:$0xff] %vm324_vm5, %v1832_v33  ;;  %1542 = vst.msk [vmem:[#allocation2 + $0xe0] sm:$0xff] %vm324_vm5, %v1510_v30  ;;  %v1833_v45 = vadd.f32 %v1780_v60, %v1622_v55  ;;  %v1511_v4 = vadd.f32 %v1470_v1, %v1269_v47  ;;  %v1930_v30 = vld [vmem:[#allocation2 + $0x38] sm:$0xff]  ;;  %v1928_v55 = vld [vmem:[#allocation2 + $0x28] sm:$0xff] }
 0x1df   : > { %1867 = vst.msk [vmem:[#allocation2 + $0xd8] sm:$0xff] %vm324_vm5, %v1835_v26  ;;  %1545 = vst.msk [vmem:[#allocation2 + $0xf8] sm:$0xff] %vm324_vm5, %v1513_v34 }
 0x1e0   : > { %1865 = vst.msk [vmem:[#allocation2 + $0xc8] sm:$0xff] %vm324_vm5, %v1833_v45  ;;  %1543 = vst.msk [vmem:[#allocation2 + $0xe8] sm:$0xff] %vm324_vm5, %v1511_v4  ;;  %6655 = vmatmul.mubr.msk.bf16.gmra.mrb[132].mxu0 %vm1284_vm9, %v8431_v23 }
 0x1e1   : > { %6639 = vmatmul.mubr.msk.bf16.gmra.mrb[120].mxu1 %vm1284_vm9, %v8577_v7  ;;  %6658 = vmatprep.mubr.msk.bf16.mxu0 %vm1284_vm9, %v8451_v57 }
 0x1e2   : > { %6642 = vmatprep.mubr.msk.bf16.mxu1 %vm1284_vm9, %v8653_v46  ;;  %v6428_v9 = vpop.f32.mrb[28].mxu1  ;;  %v6436_v27 = vpop.f32.mrb[32].mxu0 }
 0x1e3   : > { %v2136_v36 = vadd.f32 %v6436_v27, %v1925_v28  ;;  %v1793_v41 = vpop.f32.mrb[29].mxu1  ;;  %v2007_v20 = vpop.f32.mrb[33].mxu0  ;;  %v1931_v27 = vld [vmem:[#allocation2 + $0x40] sm:$0xff] }
 0x1e4   : > { %v1627_v21 = vld [vmem:[#allocation2 + $0xf0] sm:$0xff]  ;;  %v2134_v42 = vadd.f32 %v2007_v20, %v1923_v40  ;;  %v6429_v16 = vpop.f32.mrb[30].mxu1  ;;  %v6437_v49 = vpop.f32.mrb[34].mxu0 }
 0x1e5   : > { %v1838_v5 = vadd.f32 %v6428_v9, %v1627_v21  ;;  %2168 = vst.msk [vmem:[#allocation2 + $0x10] sm:$0xff] %vm324_vm5, %v2136_v36  ;;  %v1625_v44 = vld [vmem:[#allocation2 + $0xe0] sm:$0xff]  ;;  %v2137_v63 = vadd.f32 %v6437_v49, %v1926_v38  ;;  %v1796_v2 = vpop.f32.mrb[31].mxu1  ;;  %v2010_v53 = vpop.f32.mrb[35].mxu0  ;;  %v1934_v21 = vld [vmem:[#allocation2 + $0x58] sm:$0xff] }
 0x1e6   : > { %v1836_v15 = vadd.f32 %v1793_v41, %v1625_v44  ;;  %2166 = vst.msk [vmem:[#allocation2] sm:$0xff] %vm324_vm5, %v2134_v42  ;;  %v1628_v61 = vld [vmem:[#allocation2 + $0xf8] sm:$0xff]  ;;  %v2135_v29 = vadd.f32 %v2010_v53, %v1924_v51 }
 0x1e7   : > { %1870 = vst.msk [vmem:[#allocation2 + $0xf0] sm:$0xff] %vm324_vm5, %v1838_v5  ;;  %v1839_v13 = vadd.f32 %v6429_v16, %v1628_v61  ;;  %2169 = vst.msk [vmem:[#allocation2 + $0x18] sm:$0xff] %vm324_vm5, %v2137_v63  ;;  %v1626_v39 = vld [vmem:[#allocation2 + $0xe8] sm:$0xff]  ;;  %v1937_v61 = vld [vmem:[#allocation2 + $0x70] sm:$0xff] }
 0x1e8   : > { %1868 = vst.msk [vmem:[#allocation2 + $0xe0] sm:$0xff] %vm324_vm5, %v1836_v15  ;;  %v1837_v58 = vadd.f32 %v1796_v2, %v1626_v39  ;;  %2167 = vst.msk [vmem:[#allocation2 + $0x8] sm:$0xff] %vm324_vm5, %v2135_v29  ;;  %6659 = vmatmul.mubr.msk.bf16.gmra.mrb[136].mxu0 %vm1284_vm9, %v8457_v31  ;;  %v1932_v5 = vld [vmem:[#allocation2 + $0x48] sm:$0xff] }
 0x1e9   : > { %1871 = vst.msk [vmem:[#allocation2 + $0xf8] sm:$0xff] %vm324_vm5, %v1839_v13  ;;  %6643 = vmatmul.mubr.msk.bf16.gmra.mrb[124].mxu1 %vm1284_vm9, %v8702_v24  ;;  %6662 = vmatprep.mubr.msk.bf16.mxu0 %vm1284_vm9, %v8474_v52 }
 0x1ea   : > { %1869 = vst.msk [vmem:[#allocation2 + $0xe8] sm:$0xff] %vm324_vm5, %v1837_v58  ;;  %6686 = vmatprep.mubr.msk.bf16.mxu1 %vm1284_vm9, %v8405_v12  ;;  %v6440_v8 = vpop.f32.mrb[36].mxu0  ;;  %v6472_v10 = vpop.f32.mrb[32].mxu1  ;;  %v1935_v58 = vld [vmem:[#allocation2 + $0x60] sm:$0xff] }
 0x1eb   : > { %v2140_v32 = vadd.f32 %v6440_v8, %v1929_v0  ;;  %v2023_v18 = vpop.f32.mrb[37].mxu0  ;;  %v2333_v22 = vpop.f32.mrb[33].mxu1 }
 0x1ec   : > { %v2251_v47 = vld [vmem:[#allocation2 + $0x10] sm:$0xff]  ;;  %v2138_v33 = vadd.f32 %v2023_v18, %v1927_v25  ;;  %v6441_v43 = vpop.f32.mrb[38].mxu0  ;;  %v6473_v37 = vpop.f32.mrb[34].mxu1  ;;  %v1938_v25 = vld [vmem:[#allocation2 + $0x78] sm:$0xff] }
 0x1ed   : > { %2172 = vst.msk [vmem:[#allocation2 + $0x30] sm:$0xff] %vm324_vm5, %v2140_v32  ;;  %v2462_v59 = vadd.f32 %v6472_v10, %v2251_v47  ;;  %v2249_v26 = vld [vmem:[#allocation2] sm:$0xff]  ;;  %v2141_v34 = vadd.f32 %v6441_v43, %v1930_v30  ;;  %v2026_v60 = vpop.f32.mrb[39].mxu0  ;;  %v2336_v12 = vpop.f32.mrb[35].mxu1  ;;  %v1936_v30 = vld [vmem:[#allocation2 + $0x68] sm:$0xff] }
 0x1ee   : > { %2170 = vst.msk [vmem:[#allocation2 + $0x20] sm:$0xff] %vm324_vm5, %v2138_v33  ;;  %v2460_v1 = vadd.f32 %v2333_v22, %v2249_v26  ;;  %v2252_v45 = vld [vmem:[#allocation2 + $0x18] sm:$0xff]  ;;  %v2139_v4 = vadd.f32 %v2026_v60, %v1928_v55 }
 0x1ef   : > { %2494 = vst.msk [vmem:[#allocation2 + $0x10] sm:$0xff] %vm324_vm5, %v2462_v59  ;;  %2173 = vst.msk [vmem:[#allocation2 + $0x38] sm:$0xff] %vm324_vm5, %v2141_v34  ;;  %v2463_v19 = vadd.f32 %v6473_v37, %v2252_v45  ;;  %v2250_v48 = vld [vmem:[#allocation2 + $0x8] sm:$0xff]  ;;  %v1941_v45 = vld [vmem:[#allocation2 + $0x90] sm:$0xff] }
 0x1f0   : > { %2492 = vst.msk [vmem:[#allocation2] sm:$0xff] %vm324_vm5, %v2460_v1  ;;  %2171 = vst.msk [vmem:[#allocation2 + $0x28] sm:$0xff] %vm324_vm5, %v2139_v4  ;;  %v2461_v11 = vadd.f32 %v2336_v12, %v2250_v48  ;;  %6663 = vmatmul.mubr.msk.bf16.gmra.mrb[140].mxu0 %vm1284_vm9, %v8499_v6  ;;  %v4703_v12 = vpop.permute.xlu0 %4702  ;;  %v4708_v1 = vpop.permute.xlu1 %4707 }
 0x1f1   : > { %2495 = vst.msk [vmem:[#allocation2 + $0x18] sm:$0xff] %vm324_vm5, %v2463_v19  ;;  %6666 = vmatprep.mubr.msk.bf16.mxu0 %vm1284_vm9, %v8495_v3  ;;  %6687 = vmatmul.mubr.msk.bf16.vlgmr.msra.gmra.mrb[128].mxu1 %vm1284_vm9, %v8427_v17 }
 0x1f2   : > { %2493 = vst.msk [vmem:[#allocation2 + $0x8] sm:$0xff] %vm324_vm5, %v2461_v11  ;;  %6690 = vmatprep.mubr.msk.bf16.mxu1 %vm1284_vm9, %v8431_v23  ;;  %v6444_v35 = vpop.f32.mrb[40].mxu0  ;;  %v6476_v9 = vpop.f32.mrb[36].mxu1  ;;  %v1939_v11 = vld [vmem:[#allocation2 + $0x80] sm:$0xff] }
 0x1f3   : > { %v2144_v28 = vadd.f32 %v6444_v35, %v1933_v56  ;;  %v2039_v36 = vpop.f32.mrb[41].mxu0  ;;  %v2349_v41 = vpop.f32.mrb[37].mxu1 }
 0x1f4   : > { %v2255_v40 = vld [vmem:[#allocation2 + $0x30] sm:$0xff]  ;;  %v2142_v20 = vadd.f32 %v2039_v36, %v1931_v27  ;;  %v6445_v42 = vpop.f32.mrb[42].mxu0  ;;  %v6477_v16 = vpop.f32.mrb[38].mxu1  ;;  %v1942_v27 = vld [vmem:[#allocation2 + $0x98] sm:$0xff] }
 0x1f5   : > { %2176 = vst.msk [vmem:[#allocation2 + $0x50] sm:$0xff] %vm324_vm5, %v2144_v28  ;;  %v2466_v17 = vadd.f32 %v6476_v9, %v2255_v40  ;;  %v2253_v38 = vld [vmem:[#allocation2 + $0x20] sm:$0xff]  ;;  %v2145_v49 = vadd.f32 %v6445_v42, %v1934_v21  ;;  %v2042_v14 = vpop.f32.mrb[43].mxu0  ;;  %v2352_v23 = vpop.f32.mrb[39].mxu1  ;;  %v1940_v42 = vld [vmem:[#allocation2 + $0x88] sm:$0xff] }
 0x1f6   : > { %2174 = vst.msk [vmem:[#allocation2 + $0x40] sm:$0xff] %vm324_vm5, %v2142_v20  ;;  %v2464_v44 = vadd.f32 %v2349_v41, %v2253_v38  ;;  %v2256_v63 = vld [vmem:[#allocation2 + $0x38] sm:$0xff]  ;;  %v2143_v2 = vadd.f32 %v2042_v14, %v1932_v5 }
 0x1f7   : > { %2498 = vst.msk [vmem:[#allocation2 + $0x30] sm:$0xff] %vm324_vm5, %v2466_v17  ;;  %2177 = vst.msk [vmem:[#allocation2 + $0x58] sm:$0xff] %vm324_vm5, %v2145_v49  ;;  %v2467_v51 = vadd.f32 %v6477_v16, %v2256_v63  ;;  %v2254_v53 = vld [vmem:[#allocation2 + $0x28] sm:$0xff]  ;;  %v6879_v41 = vld [vmem:[%s7124_s17 + $0xd8] sm:$0xff]   ;;  %v4719_v63 = vpop.permute.xlu0 %4718 }
 0x1f8   : > { %2496 = vst.msk [vmem:[#allocation2 + $0x20] sm:$0xff] %vm324_vm5, %v2464_v44  ;;  %2175 = vst.msk [vmem:[#allocation2 + $0x48] sm:$0xff] %vm324_vm5, %v2143_v2  ;;  %v2465_v15 = vadd.f32 %v2352_v23, %v2254_v53  ;;  %6667 = vmatmul.mubr.msk.bf16.gmra.mrb[144].mxu0 %vm1284_vm9, %v8540_v50  ;;  %v4726_v40 = vsel %vm324_vm5, %v6879_v41, %v4703_v12  ;;  %v1945_v53 = vld [vmem:[#allocation2 + $0xb0] sm:$0xff] }
 0x1f9   : > { %2499 = vst.msk [vmem:[#allocation2 + $0x38] sm:$0xff] %vm324_vm5, %v2467_v51  ;;  %6670 = vmatprep.mubr.msk.bf16.mxu0 %vm1284_vm9, %v8537_v54  ;;  %6691 = vmatmul.mubr.msk.bf16.gmra.mrb[132].mxu1 %vm1284_vm9, %v8451_v57  ;;  %v4728_v44 = vsel %vm1141_vm6, %v4726_v40, %v4708_v1  ;;  %v4724_v51 = vpop.permute.xlu1 %4723 }
 0x1fa   : > { %2497 = vst.msk [vmem:[#allocation2 + $0x28] sm:$0xff] %vm324_vm5, %v2465_v15  ;;  %6694 = vmatprep.mubr.msk.bf16.mxu1 %vm1284_vm9, %v8457_v31  ;;  %v6448_v29 = vpop.f32.mrb[44].mxu0  ;;  %v6480_v13 = vpop.f32.mrb[40].mxu1 }
 0x1fb   : > { %v2148_v39 = vadd.f32 %v6448_v29, %v1937_v61  ;;  %v2055_v0 = vpop.f32.mrb[45].mxu0  ;;  %v2365_v8 = vpop.f32.mrb[41].mxu1  ;;  %v4730_v29 = vsel %vm1174_vm7, %v4728_v44, %v4719_v63 }
 0x1fc   : > { %v2259_v10 = vld [vmem:[#allocation2 + $0x50] sm:$0xff]  ;;  %v2146_v32 = vadd.f32 %v2055_v0, %v1935_v58  ;;  %v6449_v18 = vpop.f32.mrb[46].mxu0  ;;  %v6481_v22 = vpop.f32.mrb[42].mxu1 }
 0x1fd   : > { %2180 = vst.msk [vmem:[#allocation2 + $0x70] sm:$0xff] %vm324_vm5, %v2148_v39  ;;  %v2470_v57 = vadd.f32 %v6480_v13, %v2259_v10  ;;  %v2257_v47 = vld [vmem:[#allocation2 + $0x40] sm:$0xff]  ;;  %v2149_v33 = vadd.f32 %v6449_v18, %v1938_v25  ;;  %v2058_v43 = vpop.f32.mrb[47].mxu0  ;;  %v2368_v31 = vpop.f32.mrb[43].mxu1 }
 0x1fe   : > { %2178 = vst.msk [vmem:[#allocation2 + $0x60] sm:$0xff] %vm324_vm5, %v2146_v32  ;;  %v2468_v37 = vadd.f32 %v2365_v8, %v2257_v47  ;;  %v2260_v59 = vld [vmem:[#allocation2 + $0x58] sm:$0xff]  ;;  %v2147_v26 = vadd.f32 %v2058_v43, %v1936_v30  ;;  %v1943_v39 = vld [vmem:[#allocation2 + $0xa0] sm:$0xff]  ;;  %v1944_v47 = vld [vmem:[#allocation2 + $0xa8] sm:$0xff] }
 0x1ff   : > { %2502 = vst.msk [vmem:[#allocation2 + $0x50] sm:$0xff] %vm324_vm5, %v2470_v57  ;;  %2181 = vst.msk [vmem:[#allocation2 + $0x78] sm:$0xff] %vm324_vm5, %v2149_v33  ;;  %v2471_v34 = vadd.f32 %v6481_v22, %v2260_v59  ;;  %v2258_v55 = vld [vmem:[#allocation2 + $0x48] sm:$0xff]  ;;  %v1946_v32 = vld [vmem:[#allocation2 + $0xb8] sm:$0xff] }
 0x200   : > { %2500 = vst.msk [vmem:[#allocation2 + $0x40] sm:$0xff] %vm324_vm5, %v2468_v37  ;;  %2179 = vst.msk [vmem:[#allocation2 + $0x68] sm:$0xff] %vm324_vm5, %v2147_v26  ;;  %v2469_v60 = vadd.f32 %v2368_v31, %v2258_v55  ;;  %6671 = vmatmul.mubr.msk.bf16.gmra.mrb[148].mxu0 %vm1284_vm9, %v8580_v62  ;;  %v1949_v55 = vld [vmem:[#allocation2 + $0xd0] sm:$0xff] }
 0x201   : > { %2503 = vst.msk [vmem:[#allocation2 + $0x58] sm:$0xff] %vm324_vm5, %v2471_v34  ;;  %6674 = vmatprep.mubr.msk.bf16.mxu0 %vm1284_vm9, %v8577_v7  ;;  %6695 = vmatmul.mubr.msk.bf16.gmra.mrb[136].mxu1 %vm1284_vm9, %v8474_v52 }
 0x202   : > { %2501 = vst.msk [vmem:[#allocation2 + $0x48] sm:$0xff] %vm324_vm5, %v2469_v60  ;;  %6698 = vmatprep.mubr.msk.bf16.mxu1 %vm1284_vm9, %v8499_v6  ;;  %v6452_v4 = vpop.f32.mrb[48].mxu0  ;;  %v6484_v19 = vpop.f32.mrb[44].mxu1 }
 0x203   : > { %v2152_v48 = vadd.f32 %v6452_v4, %v1941_v45  ;;  %v2071_v56 = vpop.f32.mrb[49].mxu0  ;;  %v2381_v35 = vpop.f32.mrb[45].mxu1  ;;  %v1947_v45 = vld [vmem:[#allocation2 + $0xc0] sm:$0xff] }
 0x204   : > { %v2263_v9 = vld [vmem:[#allocation2 + $0x70] sm:$0xff]  ;;  %v2150_v28 = vadd.f32 %v2071_v56, %v1939_v11  ;;  %v6453_v36 = vpop.f32.mrb[50].mxu0  ;;  %v6485_v52 = vpop.f32.mrb[46].mxu1  ;;  %v1950_v56 = vld [vmem:[#allocation2 + $0xd8] sm:$0xff] }
 0x205   : > { %2184 = vst.msk [vmem:[#allocation2 + $0x90] sm:$0xff] %vm324_vm5, %v2152_v48  ;;  %v2474_v20 = vadd.f32 %v6484_v19, %v2263_v9  ;;  %v2261_v21 = vld [vmem:[#allocation2 + $0x60] sm:$0xff]  ;;  %v2153_v6 = vadd.f32 %v6453_v36, %v1942_v27  ;;  %v2074_v16 = vpop.f32.mrb[51].mxu0  ;;  %v2384_v17 = vpop.f32.mrb[47].mxu1  ;;  %v1948_v36 = vld [vmem:[#allocation2 + $0xc8] sm:$0xff] }
 0x206   : > { %2182 = vst.msk [vmem:[#allocation2 + $0x80] sm:$0xff] %vm324_vm5, %v2150_v28  ;;  %v2472_v38 = vadd.f32 %v2381_v35, %v2261_v21  ;;  %v2264_v49 = vld [vmem:[#allocation2 + $0x78] sm:$0xff]  ;;  %v2151_v5 = vadd.f32 %v2074_v16, %v1940_v42  ;;  %v5029_v16 = vpop.permute.xlu0 %5028 }
 0x207   : > { %2506 = vst.msk [vmem:[#allocation2 + $0x70] sm:$0xff] %vm324_vm5, %v2474_v20  ;;  %2185 = vst.msk [vmem:[#allocation2 + $0x98] sm:$0xff] %vm324_vm5, %v2153_v6  ;;  %v2475_v14 = vadd.f32 %v6485_v52, %v2264_v49  ;;  %v2262_v23 = vld [vmem:[#allocation2 + $0x68] sm:$0xff] }
 0x208   : > { %2504 = vst.msk [vmem:[#allocation2 + $0x60] sm:$0xff] %vm324_vm5, %v2472_v38  ;;  %2183 = vst.msk [vmem:[#allocation2 + $0x88] sm:$0xff] %vm324_vm5, %v2151_v5  ;;  %v2473_v2 = vadd.f32 %v2384_v17, %v2262_v23  ;;  %6675 = vmatmul.mubr.msk.bf16.gmra.mrb[152].mxu0 %vm1284_vm9, %v8653_v46  ;;  %v5034_v17 = vpop.permute.xlu1 %5033  ;;  %v1953_v38 = vld [vmem:[#allocation2 + $0xf0] sm:$0xff]  ;;  %v1951_v23 = vld [vmem:[#allocation2 + $0xe0] sm:$0xff] }
 0x209   : > { %2507 = vst.msk [vmem:[#allocation2 + $0x78] sm:$0xff] %vm324_vm5, %v2475_v14  ;;  %6678 = vmatprep.mubr.msk.bf16.mxu0 %vm1284_vm9, %v8702_v24  ;;  %6699 = vmatmul.mubr.msk.bf16.gmra.mrb[140].mxu1 %vm1284_vm9, %v8495_v3 }
 0x20a   : > { %2505 = vst.msk [vmem:[#allocation2 + $0x68] sm:$0xff] %vm324_vm5, %v2473_v2  ;;  %6702 = vmatprep.mubr.msk.bf16.mxu1 %vm1284_vm9, %v8540_v50  ;;  %v6456_v15 = vpop.f32.mrb[52].mxu0  ;;  %v6488_v61 = vpop.f32.mrb[48].mxu1  ;;  %v8786_v50 = vsel %vm1207_vm8, %v4730_v29, %v4724_v51 }
 0x20b   : > { %v2156_v13 = vadd.f32 %v6456_v15, %v1945_v53  ;;  %v2087_v58 = vpop.f32.mrb[53].mxu0  ;;  %v2397_v0 = vpop.f32.mrb[49].mxu1  ;;  %v1954_v53 = vld [vmem:[#allocation2 + $0xf8] sm:$0xff] }
 0x20c   : > { %v2267_v8 = vld [vmem:[#allocation2 + $0x90] sm:$0xff]  ;;  %v2154_v10 = vadd.f32 %v2087_v58, %v1943_v39  ;;  %v6457_v25 = vpop.f32.mrb[54].mxu0  ;;  %v6489_v3 = vpop.f32.mrb[50].mxu1  ;;  %v1952_v39 = vld [vmem:[#allocation2 + $0xe8] sm:$0xff] }
 0x20d   : > { %2188 = vst.msk [vmem:[#allocation2 + $0xb0] sm:$0xff] %vm324_vm5, %v2156_v13  ;;  %v2478_v18 = vadd.f32 %v6488_v61, %v2267_v8  ;;  %v2265_v22 = vld [vmem:[#allocation2 + $0x80] sm:$0xff]  ;;  %v2157_v57 = vadd.f32 %v6457_v25, %v1946_v32  ;;  %v2090_v33 = vpop.f32.mrb[55].mxu0  ;;  %v2400_v30 = vpop.f32.mrb[51].mxu1 }
 0x20e   : > { %2186 = vst.msk [vmem:[#allocation2 + $0xa0] sm:$0xff] %vm324_vm5, %v2154_v10  ;;  %v2476_v43 = vadd.f32 %v2397_v0, %v2265_v22  ;;  %v2268_v31 = vld [vmem:[#allocation2 + $0x98] sm:$0xff]  ;;  %v2155_v37 = vadd.f32 %v2090_v33, %v1944_v47  ;;  %v5050_v47 = vpop.permute.xlu1 %5049 }
 0x20f   : > { %2510 = vst.msk [vmem:[#allocation2 + $0x90] sm:$0xff] %vm324_vm5, %v2478_v18  ;;  %2189 = vst.msk [vmem:[#allocation2 + $0xb8] sm:$0xff] %vm324_vm5, %v2157_v57  ;;  %v2479_v59 = vadd.f32 %v6489_v3, %v2268_v31  ;;  %v2266_v26 = vld [vmem:[#allocation2 + $0x88] sm:$0xff]  ;;  %v5045_v57 = vpop.permute.xlu0 %5044 }
 0x210   : > { %2508 = vst.msk [vmem:[#allocation2 + $0x80] sm:$0xff] %vm324_vm5, %v2476_v43  ;;  %2187 = vst.msk [vmem:[#allocation2 + $0xa8] sm:$0xff] %vm324_vm5, %v2155_v37  ;;  %v2477_v34 = vadd.f32 %v2400_v30, %v2266_v26  ;;  %6679 = vmatmul.mubr.msk.bf16.gmra.mrb[156].mxu0 %vm1284_vm9, %v8786_v50  ;;  %v6880_v3 = vld [vmem:[%s7124_s17 + $0xe4] sm:$0xff]   ;;  %v2577_v43 = vld [vmem:[#allocation2 + $0x10] sm:$0xff]  ;;  %s6145_s17 = sshll.u32 %s9181_s25, 7 }
 0x211   : > { %2511 = vst.msk [vmem:[#allocation2 + $0x98] sm:$0xff] %vm324_vm5, %v2479_v59  ;;  %6703 = vmatmul.mubr.msk.bf16.gmra.mrb[144].mxu1 %vm1284_vm9, %v8537_v54  ;;  %v5052_v18 = vsel %vm324_vm5, %v6880_v3, %v5029_v16  ;;  %v2575_v26 = vld [vmem:[#allocation2] sm:$0xff]  ;;  %s8987_s23 = scalar_lea.vmem %s9177_s5, %s6145_s17 }
 0x212   : > { %2509 = vst.msk [vmem:[#allocation2 + $0x88] sm:$0xff] %vm324_vm5, %v2477_v34  ;;  %6706 = vmatprep.mubr.msk.bf16.mxu1 %vm1284_vm9, %v8580_v62  ;;  %v6460_v60 = vpop.f32.mrb[56].mxu0  ;;  %v6492_v12 = vpop.f32.mrb[52].mxu1  ;;  %v5054_v33 = vsel %vm1141_vm6, %v5052_v18, %v5034_v17  ;;  %v2586_v18 = vld [vmem:[#allocation2 + $0x58] sm:$0xff] }
 0x213   : > { %v2160_v1 = vadd.f32 %v6460_v60, %v1949_v55  ;;  %v2103_v4 = vpop.f32.mrb[57].mxu0  ;;  %v2413_v19 = vpop.f32.mrb[53].mxu1 }
 0x214   : > { %v2271_v48 = vld [vmem:[#allocation2 + $0xb0] sm:$0xff]  ;;  %v2158_v11 = vadd.f32 %v2103_v4, %v1947_v45  ;;  %v6461_v35 = vpop.f32.mrb[58].mxu0  ;;  %v6493_v9 = vpop.f32.mrb[54].mxu1  ;;  %v5056_v4 = vsel %vm1174_vm7, %v5054_v33, %v5045_v57 }
 0x215   : > { %2192 = vst.msk [vmem:[#allocation2 + $0xd0] sm:$0xff] %vm324_vm5, %v2160_v1  ;;  %v2482_v54 = vadd.f32 %v6492_v12, %v2271_v48  ;;  %v2269_v28 = vld [vmem:[#allocation2 + $0xa0] sm:$0xff]  ;;  %v2161_v27 = vadd.f32 %v6461_v35, %v1950_v56  ;;  %v2106_v52 = vpop.f32.mrb[59].mxu0  ;;  %v2416_v62 = vpop.f32.mrb[55].mxu1 }
 0x216   : > { %2190 = vst.msk [vmem:[#allocation2 + $0xc0] sm:$0xff] %vm324_vm5, %v2158_v11  ;;  %v2480_v41 = vadd.f32 %v2413_v19, %v2269_v28  ;;  %v2272_v40 = vld [vmem:[#allocation2 + $0xb8] sm:$0xff]  ;;  %v2159_v20 = vadd.f32 %v2106_v52, %v1948_v36  ;;  %v2576_v11 = vld [vmem:[#allocation2 + $0x8] sm:$0xff]  ;;  %v5058_v36 = vsel %vm1207_vm8, %v5056_v4, %v5050_v47 }
 0x217   : > { %2514 = vst.msk [vmem:[#allocation2 + $0xb0] sm:$0xff] %vm324_vm5, %v2482_v54  ;;  %2193 = vst.msk [vmem:[#allocation2 + $0xd8] sm:$0xff] %vm324_vm5, %v2161_v27  ;;  %v2483_v21 = vadd.f32 %v6493_v9, %v2272_v40  ;;  %v2270_v6 = vld [vmem:[#allocation2 + $0xa8] sm:$0xff] }
 0x218   : > { %2512 = vst.msk [vmem:[#allocation2 + $0xa0] sm:$0xff] %vm324_vm5, %v2480_v41  ;;  %2191 = vst.msk [vmem:[#allocation2 + $0xc8] sm:$0xff] %vm324_vm5, %v2159_v20  ;;  %v2481_v42 = vadd.f32 %v2416_v62, %v2270_v6  ;;  %v2581_v62 = vld [vmem:[#allocation2 + $0x30] sm:$0xff] }
 0x219   : > { %2515 = vst.msk [vmem:[#allocation2 + $0xb8] sm:$0xff] %vm324_vm5, %v2483_v21  ;;  %6707 = vmatmul.mubr.msk.bf16.gmra.mrb[148].mxu1 %vm1284_vm9, %v8577_v7  ;;  %v2579_v21 = vld [vmem:[#allocation2 + $0x20] sm:$0xff] }
 0x21a   : > { %2513 = vst.msk [vmem:[#allocation2 + $0xa8] sm:$0xff] %vm324_vm5, %v2481_v42  ;;  %6710 = vmatprep.mubr.msk.bf16.mxu1 %vm1284_vm9, %v8653_v46  ;;  %v6464_v49 = vpop.f32.mrb[60].mxu0  ;;  %v6496_v5 = vpop.f32.mrb[56].mxu1 }
 0x21b   : > { %v2164_v14 = vadd.f32 %v6464_v49, %v1953_v38  ;;  %v2119_v44 = vpop.f32.mrb[61].mxu0  ;;  %v2429_v63 = vpop.f32.mrb[57].mxu1  ;;  %v2582_v38 = vld [vmem:[#allocation2 + $0x38] sm:$0xff] }
 0x21c   : > { %v2275_v2 = vld [vmem:[#allocation2 + $0xd0] sm:$0xff]  ;;  %v2162_v51 = vadd.f32 %v2119_v44, %v1951_v23  ;;  %v6465_v15 = vpop.f32.mrb[62].mxu0  ;;  %v6497_v61 = vpop.f32.mrb[58].mxu1 }
 0x21d   : > { %2196 = vst.msk [vmem:[#allocation2 + $0xf0] sm:$0xff] %vm324_vm5, %v2164_v14  ;;  %v2486_v7 = vadd.f32 %v6496_v5, %v2275_v2  ;;  %v2273_v29 = vld [vmem:[#allocation2 + $0xc0] sm:$0xff]  ;;  %v2165_v13 = vadd.f32 %v6465_v15, %v1954_v53  ;;  %v2122_v46 = vpop.f32.mrb[63].mxu0  ;;  %v2432_v58 = vpop.f32.mrb[59].mxu1 }
 0x21e   : > { %2194 = vst.msk [vmem:[#allocation2 + $0xe0] sm:$0xff] %vm324_vm5, %v2162_v51  ;;  %v2484_v0 = vadd.f32 %v2429_v63, %v2273_v29  ;;  %v2276_v8 = vld [vmem:[#allocation2 + $0xd8] sm:$0xff]  ;;  %v2163_v10 = vadd.f32 %v2122_v46, %v1952_v39  ;;  %v2580_v63 = vld [vmem:[#allocation2 + $0x28] sm:$0xff]  ;;  %v2585_v39 = vld [vmem:[#allocation2 + $0x50] sm:$0xff] }
 0x21f   : > { %2518 = vst.msk [vmem:[#allocation2 + $0xd0] sm:$0xff] %vm324_vm5, %v2486_v7  ;;  %2197 = vst.msk [vmem:[#allocation2 + $0xf8] sm:$0xff] %vm324_vm5, %v2165_v13  ;;  %v2487_v32 = vadd.f32 %v6497_v61, %v2276_v8  ;;  %v2274_v25 = vld [vmem:[#allocation2 + $0xc8] sm:$0xff]  ;;  %v2583_v8 = vld [vmem:[#allocation2 + $0x40] sm:$0xff] }
 0x220   : > { %2516 = vst.msk [vmem:[#allocation2 + $0xc0] sm:$0xff] %vm324_vm5, %v2484_v0  ;;  %2195 = vst.msk [vmem:[#allocation2 + $0xe8] sm:$0xff] %vm324_vm5, %v2163_v10  ;;  %v2485_v22 = vadd.f32 %v2432_v58, %v2274_v25 }
 0x221   : > { %2519 = vst.msk [vmem:[#allocation2 + $0xd8] sm:$0xff] %vm324_vm5, %v2487_v32  ;;  %6711 = vmatmul.mubr.msk.bf16.gmra.mrb[152].mxu1 %vm1284_vm9, %v8702_v24  ;;  %v2578_v24 = vld [vmem:[#allocation2 + $0x18] sm:$0xff] }
 0x222   : > { %2517 = vst.msk [vmem:[#allocation2 + $0xc8] sm:$0xff] %vm324_vm5, %v2485_v22  ;;  %6714 = vmatprep.mubr.msk.bf16.mxu1 %vm1284_vm9, %v8786_v50  ;;  %v6500_v30 = vpop.f32.mrb[60].mxu1  ;;  %v6508_v31 = vpop.f32.mrb[64].mxu0 }
 0x223   : > { %v2788_v37 = vadd.f32 %v6508_v31, %v2577_v43  ;;  %v2445_v59 = vpop.f32.mrb[61].mxu1  ;;  %v2659_v34 = vpop.f32.mrb[65].mxu0  ;;  %v2584_v43 = vld [vmem:[#allocation2 + $0x48] sm:$0xff] }
 0x224   : > { %v2279_v55 = vld [vmem:[#allocation2 + $0xf0] sm:$0xff]  ;;  %v2786_v60 = vadd.f32 %v2659_v34, %v2575_v26  ;;  %v6501_v12 = vpop.f32.mrb[62].mxu1  ;;  %v6509_v1 = vpop.f32.mrb[66].mxu0 }
 0x225   : > { %v2490_v45 = vadd.f32 %v6500_v30, %v2279_v55  ;;  %2820 = vst.msk [vmem:[#allocation2 + $0x10] sm:$0xff] %vm324_vm5, %v2788_v37  ;;  %v2277_v19 = vld [vmem:[#allocation2 + $0xe0] sm:$0xff]  ;;  %v2789_v48 = vadd.f32 %v6509_v1, %v2578_v24  ;;  %v2448_v50 = vpop.f32.mrb[63].mxu1  ;;  %v2662_v56 = vpop.f32.mrb[67].mxu0  ;;  %v2589_v24 = vld [vmem:[#allocation2 + $0x70] sm:$0xff] }
 0x226   : > { %v2488_v35 = vadd.f32 %v2445_v59, %v2277_v19  ;;  %2818 = vst.msk [vmem:[#allocation2] sm:$0xff] %vm324_vm5, %v2786_v60  ;;  %v2280_v9 = vld [vmem:[#allocation2 + $0xf8] sm:$0xff]  ;;  %v2787_v54 = vadd.f32 %v2662_v56, %v2576_v11  ;;  %v2587_v19 = vld [vmem:[#allocation2 + $0x60] sm:$0xff] }
 0x227   : > { %2522 = vst.msk [vmem:[#allocation2 + $0xf0] sm:$0xff] %vm324_vm5, %v2490_v45  ;;  %v2491_v28 = vadd.f32 %v6501_v12, %v2280_v9  ;;  %2821 = vst.msk [vmem:[#allocation2 + $0x18] sm:$0xff] %vm324_vm5, %v2789_v48  ;;  %v2278_v27 = vld [vmem:[#allocation2 + $0xe8] sm:$0xff] }
 0x228   : > { %2520 = vst.msk [vmem:[#allocation2 + $0xe0] sm:$0xff] %vm324_vm5, %v2488_v35  ;;  %v2489_v52 = vadd.f32 %v2448_v50, %v2278_v27  ;;  %2819 = vst.msk [vmem:[#allocation2 + $0x8] sm:$0xff] %vm324_vm5, %v2787_v54  ;;  %v2590_v35 = vld [vmem:[#allocation2 + $0x78] sm:$0xff] }
 0x229   : > { %2523 = vst.msk [vmem:[#allocation2 + $0xf8] sm:$0xff] %vm324_vm5, %v2491_v28  ;;  %6715 = vmatmul.mubr.msk.bf16.gmra.mrb[156].mxu1 %vm1284_vm9, %v5058_v36 }
 0x22a   : > { %2521 = vst.msk [vmem:[#allocation2 + $0xe8] sm:$0xff] %vm324_vm5, %v2489_v52  ;;  %v6512_v41 = vpop.f32.mrb[68].mxu0  ;;  %v6544_v40 = vpop.f32.mrb[64].mxu1  ;;  %v2588_v52 = vld [vmem:[#allocation2 + $0x68] sm:$0xff] }
 0x22b   : > { %v2792_v20 = vadd.f32 %v6512_v41, %v2581_v62  ;;  %v2675_v6 = vpop.f32.mrb[69].mxu0  ;;  %v3839_v42 = vpop.f32.mrb[65].mxu1 }
 0x22c   : > { %v3728_v16 = vld [vmem:[#allocation2 + $0x10] sm:$0xff]  ;;  %v2790_v17 = vadd.f32 %v2675_v6, %v2579_v21  ;;  %v6513_v49 = vpop.f32.mrb[70].mxu0  ;;  %v6545_v5 = vpop.f32.mrb[66].mxu1 }
 0x22d   : > { %2824 = vst.msk [vmem:[#allocation2 + $0x30] sm:$0xff] %vm324_vm5, %v2792_v20  ;;  %v3968_v14 = vadd.f32 %v6544_v40, %v3728_v16  ;;  %v3726_v23 = vld [vmem:[#allocation2] sm:$0xff]  ;;  %v2793_v44 = vadd.f32 %v6513_v49, %v2582_v38  ;;  %v2678_v2 = vpop.f32.mrb[71].mxu0  ;;  %v3842_v51 = vpop.f32.mrb[67].mxu1 }
 0x22e   : > { %2822 = vst.msk [vmem:[#allocation2 + $0x20] sm:$0xff] %vm324_vm5, %v2790_v17  ;;  %v3966_v53 = vadd.f32 %v3839_v42, %v3726_v23  ;;  %v3729_v15 = vld [vmem:[#allocation2 + $0x18] sm:$0xff]  ;;  %v2791_v61 = vadd.f32 %v2678_v2, %v2580_v63  ;;  %v2593_v17 = vld [vmem:[#allocation2 + $0x90] sm:$0xff] }
 0x22f   : > { %4000 = vst.msk [vmem:[#allocation2 + $0x10] sm:$0xff] %vm324_vm5, %v3968_v14  ;;  %2825 = vst.msk [vmem:[#allocation2 + $0x38] sm:$0xff] %vm324_vm5, %v2793_v44  ;;  %v3969_v7 = vadd.f32 %v6545_v5, %v3729_v15  ;;  %v3727_v29 = vld [vmem:[#allocation2 + $0x8] sm:$0xff]  ;;  %v2591_v14 = vld [vmem:[#allocation2 + $0x80] sm:$0xff] }
 0x230   : > { %3998 = vst.msk [vmem:[#allocation2] sm:$0xff] %vm324_vm5, %v3966_v53  ;;  %2823 = vst.msk [vmem:[#allocation2 + $0x28] sm:$0xff] %vm324_vm5, %v2791_v61  ;;  %v3967_v13 = vadd.f32 %v3842_v51, %v3727_v29  ;;  %v2594_v51 = vld [vmem:[#allocation2 + $0x98] sm:$0xff] }
 0x231   : > { %4001 = vst.msk [vmem:[#allocation2 + $0x18] sm:$0xff] %vm324_vm5, %v3969_v7 }
 0x232   : > { %3999 = vst.msk [vmem:[#allocation2 + $0x8] sm:$0xff] %vm324_vm5, %v3967_v13  ;;  %v6516_v46 = vpop.f32.mrb[72].mxu0  ;;  %v6548_v58 = vpop.f32.mrb[68].mxu1  ;;  %v2592_v13 = vld [vmem:[#allocation2 + $0x88] sm:$0xff] }
 0x233   : > { %v2796_v0 = vadd.f32 %v6516_v46, %v2585_v39  ;;  %v2691_v10 = vpop.f32.mrb[73].mxu0  ;;  %v3855_v32 = vpop.f32.mrb[69].mxu1 }
 0x234   : > { %v3732_v25 = vld [vmem:[#allocation2 + $0x30] sm:$0xff]  ;;  %v2794_v3 = vadd.f32 %v2691_v10, %v2583_v8  ;;  %v6517_v22 = vpop.f32.mrb[74].mxu0  ;;  %v6549_v57 = vpop.f32.mrb[70].mxu1 }
 0x235   : > { %2828 = vst.msk [vmem:[#allocation2 + $0x50] sm:$0xff] %vm324_vm5, %v2796_v0  ;;  %v3972_v47 = vadd.f32 %v6548_v58, %v3732_v25  ;;  %v3730_v33 = vld [vmem:[#allocation2 + $0x20] sm:$0xff]  ;;  %v2797_v30 = vadd.f32 %v6517_v22, %v2586_v18  ;;  %v2694_v31 = vpop.f32.mrb[75].mxu0  ;;  %v3858_v37 = vpop.f32.mrb[71].mxu1 }
 0x236   : > { %2826 = vst.msk [vmem:[#allocation2 + $0x40] sm:$0xff] %vm324_vm5, %v2794_v3  ;;  %v3970_v59 = vadd.f32 %v3855_v32, %v3730_v33  ;;  %v3733_v26 = vld [vmem:[#allocation2 + $0x38] sm:$0xff]  ;;  %v2795_v34 = vadd.f32 %v2694_v31, %v2584_v43  ;;  %v2597_v3 = vld [vmem:[#allocation2 + $0xb0] sm:$0xff] }
 0x237   : > { %4004 = vst.msk [vmem:[#allocation2 + $0x30] sm:$0xff] %vm324_vm5, %v3972_v47  ;;  %2829 = vst.msk [vmem:[#allocation2 + $0x58] sm:$0xff] %vm324_vm5, %v2797_v30  ;;  %v3973_v55 = vadd.f32 %v6549_v57, %v3733_v26  ;;  %v3731_v60 = vld [vmem:[#allocation2 + $0x28] sm:$0xff]  ;;  %v2595_v47 = vld [vmem:[#allocation2 + $0xa0] sm:$0xff] }
 0x238   : > { %4002 = vst.msk [vmem:[#allocation2 + $0x20] sm:$0xff] %vm324_vm5, %v3970_v59  ;;  %2827 = vst.msk [vmem:[#allocation2 + $0x48] sm:$0xff] %vm324_vm5, %v2795_v34  ;;  %v3971_v12 = vadd.f32 %v3858_v37, %v3731_v60  ;;  %v2598_v37 = vld [vmem:[#allocation2 + $0xb8] sm:$0xff] }
 0x239   : > { %4005 = vst.msk [vmem:[#allocation2 + $0x38] sm:$0xff] %vm324_vm5, %v3973_v55 }
 0x23a   : > { %4003 = vst.msk [vmem:[#allocation2 + $0x28] sm:$0xff] %vm324_vm5, %v3971_v12  ;;  %v6520_v1 = vpop.f32.mrb[76].mxu0  ;;  %v6552_v45 = vpop.f32.mrb[72].mxu1  ;;  %v2596_v12 = vld [vmem:[#allocation2 + $0xa8] sm:$0xff] }
 0x23b   : > { %v2800_v4 = vadd.f32 %v6520_v1, %v2589_v24  ;;  %v2707_v48 = vpop.f32.mrb[77].mxu0  ;;  %v3871_v50 = vpop.f32.mrb[73].mxu1 }
 0x23c   : > { %v3736_v11 = vld [vmem:[#allocation2 + $0x50] sm:$0xff]  ;;  %v2798_v56 = vadd.f32 %v2707_v48, %v2587_v19  ;;  %v6521_v9 = vpop.f32.mrb[78].mxu0  ;;  %v6553_v54 = vpop.f32.mrb[74].mxu1 }
 0x23d   : > { %2832 = vst.msk [vmem:[#allocation2 + $0x70] sm:$0xff] %vm324_vm5, %v2800_v4  ;;  %v3976_v28 = vadd.f32 %v6552_v45, %v3736_v11  ;;  %v3734_v27 = vld [vmem:[#allocation2 + $0x40] sm:$0xff]  ;;  %v2801_v36 = vadd.f32 %v6521_v9, %v2590_v35  ;;  %v2710_v62 = vpop.f32.mrb[79].mxu0  ;;  %v3874_v41 = vpop.f32.mrb[75].mxu1 }
 0x23e   : > { %2830 = vst.msk [vmem:[#allocation2 + $0x60] sm:$0xff] %vm324_vm5, %v2798_v56  ;;  %v3974_v40 = vadd.f32 %v3871_v50, %v3734_v27  ;;  %v3737_v20 = vld [vmem:[#allocation2 + $0x58] sm:$0xff]  ;;  %v2799_v21 = vadd.f32 %v2710_v62, %v2588_v52  ;;  %v2601_v56 = vld [vmem:[#allocation2 + $0xd0] sm:$0xff] }
 0x23f   : > { %4008 = vst.msk [vmem:[#allocation2 + $0x50] sm:$0xff] %vm324_vm5, %v3976_v28  ;;  %2833 = vst.msk [vmem:[#allocation2 + $0x78] sm:$0xff] %vm324_vm5, %v2801_v36  ;;  %v3977_v6 = vadd.f32 %v6553_v54, %v3737_v20  ;;  %v3735_v42 = vld [vmem:[#allocation2 + $0x48] sm:$0xff]  ;;  %v2599_v54 = vld [vmem:[#allocation2 + $0xc0] sm:$0xff] }
 0x240   : > { %4006 = vst.msk [vmem:[#allocation2 + $0x40] sm:$0xff] %vm324_vm5, %v3974_v40  ;;  %2831 = vst.msk [vmem:[#allocation2 + $0x68] sm:$0xff] %vm324_vm5, %v2799_v21  ;;  %v3975_v16 = vadd.f32 %v3874_v41, %v3735_v42  ;;  %v2602_v62 = vld [vmem:[#allocation2 + $0xd8] sm:$0xff]  ;;  %v2600_v42 = vld [vmem:[#allocation2 + $0xc8] sm:$0xff] }
 0x241   : > { %4009 = vst.msk [vmem:[#allocation2 + $0x58] sm:$0xff] %vm324_vm5, %v3977_v6 }
 0x242   : > { %4007 = vst.msk [vmem:[#allocation2 + $0x48] sm:$0xff] %vm324_vm5, %v3975_v16  ;;  %v6524_v38 = vpop.f32.mrb[80].mxu0  ;;  %v6556_v49 = vpop.f32.mrb[76].mxu1 }
 0x243   : > { %v2804_v5 = vadd.f32 %v6524_v38, %v2593_v17  ;;  %v2723_v23 = vpop.f32.mrb[81].mxu0  ;;  %v3887_v44 = vpop.f32.mrb[77].mxu1 }
 0x244   : > { %v3740_v63 = vld [vmem:[#allocation2 + $0x70] sm:$0xff]  ;;  %v2802_v2 = vadd.f32 %v2723_v23, %v2591_v14  ;;  %v6525_v53 = vpop.f32.mrb[82].mxu0  ;;  %v6557_v15 = vpop.f32.mrb[78].mxu1 }
 0x245   : > { %2836 = vst.msk [vmem:[#allocation2 + $0x90] sm:$0xff] %vm324_vm5, %v2804_v5  ;;  %v3980_v61 = vadd.f32 %v6556_v49, %v3740_v63  ;;  %v3738_v7 = vld [vmem:[#allocation2 + $0x60] sm:$0xff]  ;;  %v2805_v29 = vadd.f32 %v6525_v53, %v2594_v51  ;;  %v2726_v39 = vpop.f32.mrb[83].mxu0  ;;  %v3890_v46 = vpop.f32.mrb[79].mxu1 }
 0x246   : > { %2834 = vst.msk [vmem:[#allocation2 + $0x80] sm:$0xff] %vm324_vm5, %v2802_v2  ;;  %v3978_v58 = vadd.f32 %v3887_v44, %v3738_v7  ;;  %v3741_v0 = vld [vmem:[#allocation2 + $0x78] sm:$0xff]  ;;  %v2803_v8 = vadd.f32 %v2726_v39, %v2592_v13  ;;  %v2605_v2 = vld [vmem:[#allocation2 + $0xf0] sm:$0xff] }
 0x247   : > { %4012 = vst.msk [vmem:[#allocation2 + $0x70] sm:$0xff] %vm324_vm5, %v3980_v61  ;;  %2837 = vst.msk [vmem:[#allocation2 + $0x98] sm:$0xff] %vm324_vm5, %v2805_v29  ;;  %v3981_v10 = vadd.f32 %v6557_v15, %v3741_v0  ;;  %v3739_v32 = vld [vmem:[#allocation2 + $0x68] sm:$0xff]  ;;  %v2603_v15 = vld [vmem:[#allocation2 + $0xe0] sm:$0xff] }
 0x248   : > { %4010 = vst.msk [vmem:[#allocation2 + $0x60] sm:$0xff] %vm324_vm5, %v3978_v58  ;;  %2835 = vst.msk [vmem:[#allocation2 + $0x88] sm:$0xff] %vm324_vm5, %v2803_v8  ;;  %v3979_v25 = vadd.f32 %v3890_v46, %v3739_v32  ;;  %v2606_v29 = vld [vmem:[#allocation2 + $0xf8] sm:$0xff]  ;;  %v2604_v46 = vld [vmem:[#allocation2 + $0xe8] sm:$0xff] }
 0x249   : > { %4013 = vst.msk [vmem:[#allocation2 + $0x78] sm:$0xff] %vm324_vm5, %v3981_v10  ;;  %v4083_v8 = vld [vmem:[#allocation2 + $0x10] sm:$0xff] }
 0x24a   : > { %4011 = vst.msk [vmem:[#allocation2 + $0x68] sm:$0xff] %vm324_vm5, %v3979_v25  ;;  %v6528_v18 = vpop.f32.mrb[84].mxu0  ;;  %v6560_v22 = vpop.f32.mrb[80].mxu1 }
 0x24b   : > { %v2808_v57 = vadd.f32 %v6528_v18, %v2597_v3  ;;  %v2739_v33 = vpop.f32.mrb[85].mxu0  ;;  %v3903_v30 = vpop.f32.mrb[81].mxu1  ;;  %v4081_v18 = vld [vmem:[#allocation2] sm:$0xff] }
 0x24c   : > { %v3744_v43 = vld [vmem:[#allocation2 + $0x90] sm:$0xff]  ;;  %v2806_v31 = vadd.f32 %v2739_v33, %v2595_v47  ;;  %v6529_v59 = vpop.f32.mrb[86].mxu0  ;;  %v6561_v26 = vpop.f32.mrb[82].mxu1 }
 0x24d   : > { %2840 = vst.msk [vmem:[#allocation2 + $0xb0] sm:$0xff] %vm324_vm5, %v2808_v57  ;;  %v3984_v34 = vadd.f32 %v6560_v22, %v3744_v43  ;;  %v3742_v55 = vld [vmem:[#allocation2 + $0x80] sm:$0xff]  ;;  %v2809_v60 = vadd.f32 %v6529_v59, %v2598_v37  ;;  %v2742_v24 = vpop.f32.mrb[87].mxu0  ;;  %v3906_v1 = vpop.f32.mrb[83].mxu1  ;;  %v4084_v43 = vld [vmem:[#allocation2 + $0x18] sm:$0xff] }
 0x24e   : > { %2838 = vst.msk [vmem:[#allocation2 + $0xa0] sm:$0xff] %vm324_vm5, %v2806_v31  ;;  %v3982_v45 = vadd.f32 %v3903_v30, %v3742_v55  ;;  %v3745_v4 = vld [vmem:[#allocation2 + $0x98] sm:$0xff]  ;;  %v2807_v19 = vadd.f32 %v2742_v24, %v2596_v12  ;;  %v4082_v55 = vld [vmem:[#allocation2 + $0x8] sm:$0xff] }
 0x24f   : > { %4016 = vst.msk [vmem:[#allocation2 + $0x90] sm:$0xff] %vm324_vm5, %v3984_v34  ;;  %2841 = vst.msk [vmem:[#allocation2 + $0xb8] sm:$0xff] %vm324_vm5, %v2809_v60  ;;  %v3985_v48 = vadd.f32 %v6561_v26, %v3745_v4  ;;  %v3743_v50 = vld [vmem:[#allocation2 + $0x88] sm:$0xff] }
 0x250   : > { %4014 = vst.msk [vmem:[#allocation2 + $0x80] sm:$0xff] %vm324_vm5, %v3982_v45  ;;  %2839 = vst.msk [vmem:[#allocation2 + $0xa8] sm:$0xff] %vm324_vm5, %v2807_v19  ;;  %v3983_v11 = vadd.f32 %v3906_v1, %v3743_v50  ;;  %v4087_v19 = vld [vmem:[#allocation2 + $0x30] sm:$0xff] }
 0x251   : > { %4017 = vst.msk [vmem:[#allocation2 + $0x98] sm:$0xff] %vm324_vm5, %v3985_v48 }
 0x252   : > { %4015 = vst.msk [vmem:[#allocation2 + $0x88] sm:$0xff] %vm324_vm5, %v3983_v11  ;;  %v6532_v35 = vpop.f32.mrb[88].mxu0  ;;  %v4085_v11 = vld [vmem:[#allocation2 + $0x20] sm:$0xff] }
 0x253   : > { %v2812_v9 = vadd.f32 %v6532_v35, %v2601_v56  ;;  %v2755_v28 = vpop.f32.mrb[89].mxu0 }
 0x254   : > { %v3748_v27 = vld [vmem:[#allocation2 + $0xb0] sm:$0xff]  ;;  %v6564_v36 = vpop.f32.mrb[84].mxu1  ;;  %v2810_v52 = vadd.f32 %v2755_v28, %v2599_v54  ;;  %v6533_v41 = vpop.f32.mrb[90].mxu0 }
 0x255   : > { %2844 = vst.msk [vmem:[#allocation2 + $0xd0] sm:$0xff] %vm324_vm5, %v2812_v9  ;;  %v3988_v40 = vadd.f32 %v6564_v36, %v3748_v27  ;;  %v3746_v20 = vld [vmem:[#allocation2 + $0xa0] sm:$0xff]  ;;  %v3919_v21 = vpop.f32.mrb[85].mxu1  ;;  %v2813_v6 = vadd.f32 %v6533_v41, %v2602_v62  ;;  %v2758_v16 = vpop.f32.mrb[91].mxu0  ;;  %v4088_v9 = vld [vmem:[#allocation2 + $0x38] sm:$0xff]  ;;  %v4086_v27 = vld [vmem:[#allocation2 + $0x28] sm:$0xff] }
 0x256   : > { %2842 = vst.msk [vmem:[#allocation2 + $0xc0] sm:$0xff] %vm324_vm5, %v2810_v52  ;;  %v3986_v17 = vadd.f32 %v3919_v21, %v3746_v20  ;;  %v3749_v38 = vld [vmem:[#allocation2 + $0xb8] sm:$0xff]  ;;  %v6565_v49 = vpop.f32.mrb[86].mxu1  ;;  %v2811_v5 = vadd.f32 %v2758_v16, %v2600_v42  ;;  %v4091_v62 = vld [vmem:[#allocation2 + $0x50] sm:$0xff] }
 0x257   : > { %4020 = vst.msk [vmem:[#allocation2 + $0xb0] sm:$0xff] %vm324_vm5, %v3988_v40  ;;  %2845 = vst.msk [vmem:[#allocation2 + $0xd8] sm:$0xff] %vm324_vm5, %v2813_v6  ;;  %v3989_v14 = vadd.f32 %v6565_v49, %v3749_v38  ;;  %v3747_v23 = vld [vmem:[#allocation2 + $0xa8] sm:$0xff]  ;;  %v3922_v44 = vpop.f32.mrb[87].mxu1  ;;  %v4089_v6 = vld [vmem:[#allocation2 + $0x40] sm:$0xff] }
 0x258   : > { %4018 = vst.msk [vmem:[#allocation2 + $0xa0] sm:$0xff] %vm324_vm5, %v3986_v17  ;;  %2843 = vst.msk [vmem:[#allocation2 + $0xc8] sm:$0xff] %vm324_vm5, %v2811_v5  ;;  %v3987_v63 = vadd.f32 %v3922_v44, %v3747_v23  ;;  %v4092_v5 = vld [vmem:[#allocation2 + $0x58] sm:$0xff] }
 0x259   : > { %4021 = vst.msk [vmem:[#allocation2 + $0xb8] sm:$0xff] %vm324_vm5, %v3989_v14 }
 0x25a   : > { %4019 = vst.msk [vmem:[#allocation2 + $0xa8] sm:$0xff] %vm324_vm5, %v3987_v63 }
 0x25c   : > { %v3752_v25 = vld [vmem:[#allocation2 + $0xd0] sm:$0xff] }
 0x25d   : > { %v3750_v33 = vld [vmem:[#allocation2 + $0xc0] sm:$0xff] }
 0x25e   : > { %v3753_v26 = vld [vmem:[#allocation2 + $0xd8] sm:$0xff] }
 0x25f   : > { %v3751_v1 = vld [vmem:[#allocation2 + $0xc8] sm:$0xff] }
 0x263   : > { %v6536_v51 = vpop.f32.mrb[92].mxu0 }
 0x264   : > { %v2816_v53 = vadd.f32 %v6536_v51, %v2605_v2  ;;  %v2771_v61 = vpop.f32.mrb[93].mxu0  ;;  %v4090_v51 = vld [vmem:[#allocation2 + $0x48] sm:$0xff] }
 0x265   : > { %v2814_v7 = vadd.f32 %v2771_v61, %v2603_v15  ;;  %v6537_v13 = vpop.f32.mrb[94].mxu0 }
 0x266   : > { %2848 = vst.msk [vmem:[#allocation2 + $0xf0] sm:$0xff] %vm324_vm5, %v2816_v53  ;;  %v2817_v39 = vadd.f32 %v6537_v13, %v2606_v29  ;;  %v2774_v58 = vpop.f32.mrb[95].mxu0 }
 0x267   : > { %2846 = vst.msk [vmem:[#allocation2 + $0xe0] sm:$0xff] %vm324_vm5, %v2814_v7  ;;  %v2815_v0 = vadd.f32 %v2774_v58, %v2604_v46 }
 0x268   : > { %2849 = vst.msk [vmem:[#allocation2 + $0xf8] sm:$0xff] %vm324_vm5, %v2817_v39  ;;  %v4095_v39 = vld [vmem:[#allocation2 + $0x70] sm:$0xff] }
 0x269   : > { %2847 = vst.msk [vmem:[#allocation2 + $0xe8] sm:$0xff] %vm324_vm5, %v2815_v0  ;;  %v4093_v0 = vld [vmem:[#allocation2 + $0x60] sm:$0xff] }
 0x26b   : > { %v6580_v10 = vpop.f32.mrb[96].mxu0 }
 0x26c   : > { %v4294_v32 = vadd.f32 %v6580_v10, %v4083_v8  ;;  %v6568_v3 = vpop.f32.mrb[88].mxu1  ;;  %v4165_v22 = vpop.f32.mrb[97].mxu0 }
 0x26d   : > { %v3992_v57 = vadd.f32 %v6568_v3, %v3752_v25  ;;  %v4292_v47 = vadd.f32 %v4165_v22, %v4081_v18  ;;  %v3935_v30 = vpop.f32.mrb[89].mxu1  ;;  %v6581_v31 = vpop.f32.mrb[98].mxu0  ;;  %v3756_v20 = vld [vmem:[#allocation2 + $0xf0] sm:$0xff]  ;;  %v4096_v18 = vld [vmem:[#allocation2 + $0x78] sm:$0xff] }
 0x26e   : > { %4326 = vst.msk [vmem:[#allocation2 + $0x10] sm:$0xff] %vm324_vm5, %v4294_v32  ;;  %v3990_v37 = vadd.f32 %v3935_v30, %v3750_v33  ;;  %v4295_v59 = vadd.f32 %v6581_v31, %v4084_v43  ;;  %v6569_v34 = vpop.f32.mrb[90].mxu1  ;;  %v4168_v60 = vpop.f32.mrb[99].mxu0  ;;  %v3754_v38 = vld [vmem:[#allocation2 + $0xe0] sm:$0xff]  ;;  %v4094_v43 = vld [vmem:[#allocation2 + $0x68] sm:$0xff] }
 0x26f   : > { %4024 = vst.msk [vmem:[#allocation2 + $0xd0] sm:$0xff] %vm324_vm5, %v3992_v57  ;;  %4324 = vst.msk [vmem:[#allocation2] sm:$0xff] %vm324_vm5, %v4292_v47  ;;  %v3993_v12 = vadd.f32 %v6569_v34, %v3753_v26  ;;  %v4293_v24 = vadd.f32 %v4168_v60, %v4082_v55  ;;  %v3938_v45 = vpop.f32.mrb[91].mxu1  ;;  %v3757_v63 = vld [vmem:[#allocation2 + $0xf8] sm:$0xff] }
 0x270   : > { %4022 = vst.msk [vmem:[#allocation2 + $0xc0] sm:$0xff] %vm324_vm5, %v3990_v37  ;;  %4327 = vst.msk [vmem:[#allocation2 + $0x18] sm:$0xff] %vm324_vm5, %v4295_v59  ;;  %v3991_v4 = vadd.f32 %v3938_v45, %v3751_v1  ;;  %v3755_v7 = vld [vmem:[#allocation2 + $0xe8] sm:$0xff] }
 0x271   : > { %4025 = vst.msk [vmem:[#allocation2 + $0xd8] sm:$0xff] %vm324_vm5, %v3993_v12  ;;  %4325 = vst.msk [vmem:[#allocation2 + $0x8] sm:$0xff] %vm324_vm5, %v4293_v24  ;;  %v4099_v24 = vld [vmem:[#allocation2 + $0x90] sm:$0xff] }
 0x272   : > { %4023 = vst.msk [vmem:[#allocation2 + $0xc8] sm:$0xff] %vm324_vm5, %v3991_v4  ;;  %v4097_v4 = vld [vmem:[#allocation2 + $0x80] sm:$0xff] }
 0x273   : > { %v6584_v48 = vpop.f32.mrb[100].mxu0 }
 0x274   : > { %v4298_v50 = vadd.f32 %v6584_v48, %v4087_v19  ;;  %v4181_v56 = vpop.f32.mrb[101].mxu0 }
 0x275   : > { %v4296_v35 = vadd.f32 %v4181_v56, %v4085_v11  ;;  %v6585_v54 = vpop.f32.mrb[102].mxu0  ;;  %v4409_v10 = vld [vmem:[#allocation2 + $0x10] sm:$0xff] }
 0x276   : > { %4330 = vst.msk [vmem:[#allocation2 + $0x30] sm:$0xff] %vm324_vm5, %v4298_v50  ;;  %v4299_v28 = vadd.f32 %v6585_v54, %v4088_v9  ;;  %v4184_v36 = vpop.f32.mrb[103].mxu0  ;;  %v4407_v57 = vld [vmem:[#allocation2] sm:$0xff] }
 0x277   : > { %4328 = vst.msk [vmem:[#allocation2 + $0x20] sm:$0xff] %vm324_vm5, %v4296_v35  ;;  %v4297_v52 = vadd.f32 %v4184_v36, %v4086_v27  ;;  %v4410_v37 = vld [vmem:[#allocation2 + $0x18] sm:$0xff] }
 0x278   : > { %4331 = vst.msk [vmem:[#allocation2 + $0x38] sm:$0xff] %vm324_vm5, %v4299_v28  ;;  %v4408_v55 = vld [vmem:[#allocation2 + $0x8] sm:$0xff]  ;;  %v4100_v35 = vld [vmem:[#allocation2 + $0x98] sm:$0xff] }
 0x279   : > { %4329 = vst.msk [vmem:[#allocation2 + $0x28] sm:$0xff] %vm324_vm5, %v4297_v52  ;;  %v4098_v52 = vld [vmem:[#allocation2 + $0x88] sm:$0xff] }
 0x27b   : > { %v6588_v41 = vpop.f32.mrb[104].mxu0 }
 0x27c   : > { %v4302_v40 = vadd.f32 %v6588_v41, %v4091_v62  ;;  %v6572_v21 = vpop.f32.mrb[92].mxu1  ;;  %v4197_v42 = vpop.f32.mrb[105].mxu0 }
 0x27d   : > { %v3996_v16 = vadd.f32 %v6572_v21, %v3756_v20  ;;  %v4300_v17 = vadd.f32 %v4197_v42, %v4089_v6  ;;  %v3951_v49 = vpop.f32.mrb[93].mxu1  ;;  %v6589_v14 = vpop.f32.mrb[106].mxu0  ;;  %v4413_v48 = vld [vmem:[#allocation2 + $0x30] sm:$0xff] }
 0x27e   : > { %4334 = vst.msk [vmem:[#allocation2 + $0x50] sm:$0xff] %vm324_vm5, %v4302_v40  ;;  %v3994_v23 = vadd.f32 %v3951_v49, %v3754_v38  ;;  %v4303_v44 = vadd.f32 %v6589_v14, %v4092_v5  ;;  %v6573_v2 = vpop.f32.mrb[94].mxu1  ;;  %v4200_v53 = vpop.f32.mrb[107].mxu0  ;;  %v4411_v54 = vld [vmem:[#allocation2 + $0x20] sm:$0xff] }
 0x27f   : > { %4028 = vst.msk [vmem:[#allocation2 + $0xf0] sm:$0xff] %vm324_vm5, %v3996_v16  ;;  %4332 = vst.msk [vmem:[#allocation2 + $0x40] sm:$0xff] %vm324_vm5, %v4300_v17  ;;  %v3997_v15 = vadd.f32 %v6573_v2, %v3757_v63  ;;  %v4301_v61 = vadd.f32 %v4200_v53, %v4090_v51  ;;  %v3954_v29 = vpop.f32.mrb[95].mxu1  ;;  %v4414_v41 = vld [vmem:[#allocation2 + $0x38] sm:$0xff]  ;;  %v4103_v17 = vld [vmem:[#allocation2 + $0xb0] sm:$0xff] }
 0x280   : > { %4026 = vst.msk [vmem:[#allocation2 + $0xe0] sm:$0xff] %vm324_vm5, %v3994_v23  ;;  %4335 = vst.msk [vmem:[#allocation2 + $0x58] sm:$0xff] %vm324_vm5, %v4303_v44  ;;  %v3995_v13 = vadd.f32 %v3954_v29, %v3755_v7  ;;  %v4412_v6 = vld [vmem:[#allocation2 + $0x28] sm:$0xff]  ;;  %v4101_v5 = vld [vmem:[#allocation2 + $0xa0] sm:$0xff] }
 0x281   : > { %4029 = vst.msk [vmem:[#allocation2 + $0xf8] sm:$0xff] %vm324_vm5, %v3997_v15  ;;  %4333 = vst.msk [vmem:[#allocation2 + $0x48] sm:$0xff] %vm324_vm5, %v4301_v61  ;;  %v4104_v51 = vld [vmem:[#allocation2 + $0xb8] sm:$0xff] }
 0x282   : > { %4027 = vst.msk [vmem:[#allocation2 + $0xe8] sm:$0xff] %vm324_vm5, %v3995_v13  ;;  %v4102_v13 = vld [vmem:[#allocation2 + $0xa8] sm:$0xff] }
 0x283   : > { %v6592_v46 = vpop.f32.mrb[108].mxu0 }
 0x284   : > { %v4306_v58 = vadd.f32 %v6592_v46, %v4095_v39  ;;  %v4213_v8 = vpop.f32.mrb[109].mxu0  ;;  %v6616_v32 = vpop.f32.mrb[96].mxu1 }
 0x285   : > { %v4304_v25 = vadd.f32 %v4213_v8, %v4093_v0  ;;  %v4620_v3 = vadd.f32 %v6616_v32, %v4409_v10  ;;  %v6593_v22 = vpop.f32.mrb[110].mxu0  ;;  %v4491_v47 = vpop.f32.mrb[97].mxu1  ;;  %v4417_v23 = vld [vmem:[#allocation2 + $0x50] sm:$0xff] }
 0x286   : > { %4338 = vst.msk [vmem:[#allocation2 + $0x70] sm:$0xff] %vm324_vm5, %v4306_v58  ;;  %v4307_v33 = vadd.f32 %v6593_v22, %v4096_v18  ;;  %v4618_v30 = vadd.f32 %v4491_v47, %v4407_v57  ;;  %v4216_v31 = vpop.f32.mrb[111].mxu0  ;;  %v6617_v59 = vpop.f32.mrb[98].mxu1  ;;  %v4415_v15 = vld [vmem:[#allocation2 + $0x40] sm:$0xff] }
 0x287   : > { %4336 = vst.msk [vmem:[#allocation2 + $0x60] sm:$0xff] %vm324_vm5, %v4304_v25  ;;  %4652 = vst.msk [vmem:[#allocation2 + $0x10] sm:$0xff] %vm324_vm5, %v4620_v3  ;;  %v4305_v26 = vadd.f32 %v4216_v31, %v4094_v43  ;;  %v4621_v34 = vadd.f32 %v6617_v59, %v4410_v37  ;;  %v4494_v60 = vpop.f32.mrb[99].mxu1  ;;  %v4418_v46 = vld [vmem:[#allocation2 + $0x58] sm:$0xff]  ;;  %v4107_v3 = vld [vmem:[#allocation2 + $0xd0] sm:$0xff] }
 0x288   : > { %4339 = vst.msk [vmem:[#allocation2 + $0x78] sm:$0xff] %vm324_vm5, %v4307_v33  ;;  %4650 = vst.msk [vmem:[#allocation2] sm:$0xff] %vm324_vm5, %v4618_v30  ;;  %v4619_v12 = vadd.f32 %v4494_v60, %v4408_v55  ;;  %v4416_v10 = vld [vmem:[#allocation2 + $0x48] sm:$0xff]  ;;  %v4105_v57 = vld [vmem:[#allocation2 + $0xc0] sm:$0xff] }
 0x289   : > { %4337 = vst.msk [vmem:[#allocation2 + $0x68] sm:$0xff] %vm324_vm5, %v4305_v26  ;;  %4653 = vst.msk [vmem:[#allocation2 + $0x18] sm:$0xff] %vm324_vm5, %v4621_v34  ;;  %v4108_v37 = vld [vmem:[#allocation2 + $0xd8] sm:$0xff] }
 0x28a   : > { %4651 = vst.msk [vmem:[#allocation2 + $0x8] sm:$0xff] %vm324_vm5, %v4619_v12  ;;  %v4106_v12 = vld [vmem:[#allocation2 + $0xc8] sm:$0xff] }
 0x28b   : > { %v6596_v1 = vpop.f32.mrb[112].mxu0 }
 0x28c   : > { %v4310_v45 = vadd.f32 %v6596_v1, %v4099_v24  ;;  %v4229_v19 = vpop.f32.mrb[113].mxu0  ;;  %v6620_v50 = vpop.f32.mrb[100].mxu1 }
 0x28d   : > { %v4308_v11 = vadd.f32 %v4229_v19, %v4097_v4  ;;  %v4624_v56 = vadd.f32 %v6620_v50, %v4413_v48  ;;  %v6597_v9 = vpop.f32.mrb[114].mxu0  ;;  %v4507_v28 = vpop.f32.mrb[101].mxu1  ;;  %v4421_v33 = vld [vmem:[#allocation2 + $0x70] sm:$0xff] }
 0x28e   : > { %4342 = vst.msk [vmem:[#allocation2 + $0x90] sm:$0xff] %vm324_vm5, %v4310_v45  ;;  %v4311_v27 = vadd.f32 %v6597_v9, %v4100_v35  ;;  %v4622_v36 = vadd.f32 %v4507_v28, %v4411_v54  ;;  %v4232_v62 = vpop.f32.mrb[115].mxu0  ;;  %v6621_v40 = vpop.f32.mrb[102].mxu1  ;;  %v4419_v26 = vld [vmem:[#allocation2 + $0x60] sm:$0xff] }
 0x28f   : > { %4340 = vst.msk [vmem:[#allocation2 + $0x80] sm:$0xff] %vm324_vm5, %v4308_v11  ;;  %4656 = vst.msk [vmem:[#allocation2 + $0x30] sm:$0xff] %vm324_vm5, %v4624_v56  ;;  %v4309_v20 = vadd.f32 %v4232_v62, %v4098_v52  ;;  %v4625_v21 = vadd.f32 %v6621_v40, %v4414_v41  ;;  %v4510_v42 = vpop.f32.mrb[103].mxu1  ;;  %v4422_v1 = vld [vmem:[#allocation2 + $0x78] sm:$0xff]  ;;  %v4111_v56 = vld [vmem:[#allocation2 + $0xf0] sm:$0xff] }
 0x290   : > { %4343 = vst.msk [vmem:[#allocation2 + $0x98] sm:$0xff] %vm324_vm5, %v4311_v27  ;;  %4654 = vst.msk [vmem:[#allocation2 + $0x20] sm:$0xff] %vm324_vm5, %v4622_v36  ;;  %v4623_v16 = vadd.f32 %v4510_v42, %v4412_v6  ;;  %v4420_v48 = vld [vmem:[#allocation2 + $0x68] sm:$0xff]  ;;  %v4109_v54 = vld [vmem:[#allocation2 + $0xe0] sm:$0xff] }
 0x291   : > { %4341 = vst.msk [vmem:[#allocation2 + $0x88] sm:$0xff] %vm324_vm5, %v4309_v20  ;;  %4657 = vst.msk [vmem:[#allocation2 + $0x38] sm:$0xff] %vm324_vm5, %v4625_v21  ;;  %v4112_v41 = vld [vmem:[#allocation2 + $0xf8] sm:$0xff] }
 0x292   : > { %4655 = vst.msk [vmem:[#allocation2 + $0x28] sm:$0xff] %vm324_vm5, %v4623_v16  ;;  %v4110_v16 = vld [vmem:[#allocation2 + $0xe8] sm:$0xff] }
 0x293   : > { %v6600_v38 = vpop.f32.mrb[116].mxu0 }
 0x294   : > { %v4314_v49 = vadd.f32 %v6600_v38, %v4103_v17  ;;  %v4245_v14 = vpop.f32.mrb[117].mxu0  ;;  %v6624_v44 = vpop.f32.mrb[104].mxu1 }
 0x295   : > { %v4312_v63 = vadd.f32 %v4245_v14, %v4101_v5  ;;  %v4628_v2 = vadd.f32 %v6624_v44, %v4417_v23  ;;  %v6601_v53 = vpop.f32.mrb[118].mxu0  ;;  %v4523_v61 = vpop.f32.mrb[105].mxu1  ;;  %v4425_v27 = vld [vmem:[#allocation2 + $0x90] sm:$0xff] }
 0x296   : > { %4346 = vst.msk [vmem:[#allocation2 + $0xb0] sm:$0xff] %vm324_vm5, %v4314_v49  ;;  %v4315_v7 = vadd.f32 %v6601_v53, %v4104_v51  ;;  %v4626_v29 = vadd.f32 %v4523_v61, %v4415_v15  ;;  %v4248_v39 = vpop.f32.mrb[119].mxu0  ;;  %v6625_v58 = vpop.f32.mrb[106].mxu1  ;;  %v4423_v20 = vld [vmem:[#allocation2 + $0x80] sm:$0xff] }
 0x297   : > { %4344 = vst.msk [vmem:[#allocation2 + $0xa0] sm:$0xff] %vm324_vm5, %v4312_v63  ;;  %4660 = vst.msk [vmem:[#allocation2 + $0x50] sm:$0xff] %vm324_vm5, %v4628_v2  ;;  %v4313_v0 = vadd.f32 %v4248_v39, %v4102_v13  ;;  %v4629_v8 = vadd.f32 %v6625_v58, %v4418_v46  ;;  %v4526_v32 = vpop.f32.mrb[107].mxu1  ;;  %v4426_v38 = vld [vmem:[#allocation2 + $0x98] sm:$0xff]  ;;  %v4735_v2 = vld [vmem:[#allocation2 + $0x10] sm:$0xff] }
 0x298   : > { %4347 = vst.msk [vmem:[#allocation2 + $0xb8] sm:$0xff] %vm324_vm5, %v4315_v7  ;;  %4658 = vst.msk [vmem:[#allocation2 + $0x40] sm:$0xff] %vm324_vm5, %v4626_v29  ;;  %v4627_v25 = vadd.f32 %v4526_v32, %v4416_v10  ;;  %v4424_v23 = vld [vmem:[#allocation2 + $0x88] sm:$0xff]  ;;  %v4733_v7 = vld [vmem:[#allocation2] sm:$0xff] }
 0x299   : > { %4345 = vst.msk [vmem:[#allocation2 + $0xa8] sm:$0xff] %vm324_vm5, %v4313_v0  ;;  %4661 = vst.msk [vmem:[#allocation2 + $0x58] sm:$0xff] %vm324_vm5, %v4629_v8  ;;  %v4736_v0 = vld [vmem:[#allocation2 + $0x18] sm:$0xff] }
 0x29a   : > { %4659 = vst.msk [vmem:[#allocation2 + $0x48] sm:$0xff] %vm324_vm5, %v4627_v25 }
 0x29b   : > { %v6604_v18 = vpop.f32.mrb[120].mxu0 }
 0x29c   : > { %v4318_v22 = vadd.f32 %v6604_v18, %v4107_v3  ;;  %v4261_v47 = vpop.f32.mrb[121].mxu0  ;;  %v6628_v30 = vpop.f32.mrb[108].mxu1  ;;  %v4734_v18 = vld [vmem:[#allocation2 + $0x8] sm:$0xff] }
 0x29d   : > { %v4316_v43 = vadd.f32 %v4261_v47, %v4105_v57  ;;  %v4632_v31 = vadd.f32 %v6628_v30, %v4421_v33  ;;  %v6605_v59 = vpop.f32.mrb[122].mxu0  ;;  %v4539_v34 = vpop.f32.mrb[109].mxu1  ;;  %v4429_v15 = vld [vmem:[#allocation2 + $0xb0] sm:$0xff] }
 0x29e   : > { %4350 = vst.msk [vmem:[#allocation2 + $0xd0] sm:$0xff] %vm324_vm5, %v4318_v22  ;;  %v4319_v55 = vadd.f32 %v6605_v59, %v4108_v37  ;;  %v4630_v60 = vadd.f32 %v4539_v34, %v4419_v26  ;;  %v4264_v24 = vpop.f32.mrb[123].mxu0  ;;  %v6629_v45 = vpop.f32.mrb[110].mxu1  ;;  %v4427_v46 = vld [vmem:[#allocation2 + $0xa0] sm:$0xff] }
 0x29f   : > { %4348 = vst.msk [vmem:[#allocation2 + $0xc0] sm:$0xff] %vm324_vm5, %v4316_v43  ;;  %4664 = vst.msk [vmem:[#allocation2 + $0x70] sm:$0xff] %vm324_vm5, %v4632_v31  ;;  %v4317_v4 = vadd.f32 %v4264_v24, %v4106_v12  ;;  %v4633_v19 = vadd.f32 %v6629_v45, %v4422_v1  ;;  %v4542_v50 = vpop.f32.mrb[111].mxu1  ;;  %v4430_v25 = vld [vmem:[#allocation2 + $0xb8] sm:$0xff]  ;;  %v4739_v31 = vld [vmem:[#allocation2 + $0x30] sm:$0xff] }
 0x2a0   : > { %4351 = vst.msk [vmem:[#allocation2 + $0xd8] sm:$0xff] %vm324_vm5, %v4319_v55  ;;  %4662 = vst.msk [vmem:[#allocation2 + $0x60] sm:$0xff] %vm324_vm5, %v4630_v60  ;;  %v4631_v11 = vadd.f32 %v4542_v50, %v4420_v48  ;;  %v4428_v33 = vld [vmem:[#allocation2 + $0xa8] sm:$0xff]  ;;  %v4737_v55 = vld [vmem:[#allocation2 + $0x20] sm:$0xff] }
 0x2a1   : > { %4349 = vst.msk [vmem:[#allocation2 + $0xc8] sm:$0xff] %vm324_vm5, %v4317_v4  ;;  %4665 = vst.msk [vmem:[#allocation2 + $0x78] sm:$0xff] %vm324_vm5, %v4633_v19  ;;  %v4740_v4 = vld [vmem:[#allocation2 + $0x38] sm:$0xff] }
 0x2a2   : > { %4663 = vst.msk [vmem:[#allocation2 + $0x68] sm:$0xff] %vm324_vm5, %v4631_v11 }
 0x2a3   : > { %v6608_v35 = vpop.f32.mrb[124].mxu0 }
 0x2a4   : > { %v4322_v9 = vadd.f32 %v6608_v35, %v4111_v56  ;;  %v4277_v28 = vpop.f32.mrb[125].mxu0  ;;  %v6632_v36 = vpop.f32.mrb[112].mxu1  ;;  %v4738_v35 = vld [vmem:[#allocation2 + $0x28] sm:$0xff] }
 0x2a5   : > { %v4320_v52 = vadd.f32 %v4277_v28, %v4109_v54  ;;  %v4636_v62 = vadd.f32 %v6632_v36, %v4425_v27  ;;  %v6609_v40 = vpop.f32.mrb[126].mxu0  ;;  %v4555_v21 = vpop.f32.mrb[113].mxu1  ;;  %v4433_v26 = vld [vmem:[#allocation2 + $0xd0] sm:$0xff] }
 0x2a6   : > { %4354 = vst.msk [vmem:[#allocation2 + $0xf0] sm:$0xff] %vm324_vm5, %v4322_v9  ;;  %v4323_v6 = vadd.f32 %v6609_v40, %v4112_v41  ;;  %v4634_v42 = vadd.f32 %v4555_v21, %v4423_v20  ;;  %v4280_v17 = vpop.f32.mrb[127].mxu0  ;;  %v6633_v49 = vpop.f32.mrb[114].mxu1  ;;  %v4431_v1 = vld [vmem:[#allocation2 + $0xc0] sm:$0xff] }
 0x2a7   : > { %4352 = vst.msk [vmem:[#allocation2 + $0xe0] sm:$0xff] %vm324_vm5, %v4320_v52  ;;  %4668 = vst.msk [vmem:[#allocation2 + $0x90] sm:$0xff] %vm324_vm5, %v4636_v62  ;;  %v4321_v5 = vadd.f32 %v4280_v17, %v4110_v16  ;;  %v4637_v14 = vadd.f32 %v6633_v49, %v4426_v38  ;;  %v4558_v44 = vpop.f32.mrb[115].mxu1  ;;  %v4434_v11 = vld [vmem:[#allocation2 + $0xd8] sm:$0xff]  ;;  %v4743_v62 = vld [vmem:[#allocation2 + $0x50] sm:$0xff] }
 0x2a8   : > { %4355 = vst.msk [vmem:[#allocation2 + $0xf8] sm:$0xff] %vm324_vm5, %v4323_v6  ;;  %4666 = vst.msk [vmem:[#allocation2 + $0x80] sm:$0xff] %vm324_vm5, %v4634_v42  ;;  %v4635_v63 = vadd.f32 %v4558_v44, %v4424_v23  ;;  %v4432_v27 = vld [vmem:[#allocation2 + $0xc8] sm:$0xff]  ;;  %v4741_v6 = vld [vmem:[#allocation2 + $0x40] sm:$0xff] }
 0x2a9   : > { %4353 = vst.msk [vmem:[#allocation2 + $0xe8] sm:$0xff] %vm324_vm5, %v4321_v5  ;;  %4669 = vst.msk [vmem:[#allocation2 + $0x98] sm:$0xff] %vm324_vm5, %v4637_v14  ;;  %v4744_v5 = vld [vmem:[#allocation2 + $0x58] sm:$0xff] }
 0x2aa   : > { %4667 = vst.msk [vmem:[#allocation2 + $0x88] sm:$0xff] %vm324_vm5, %v4635_v63 }
 0x2ab   : > { %v6652_v51 = vpop.f32.mrb[128].mxu0 }
 0x2ac   : > { %v4946_v53 = vadd.f32 %v6652_v51, %v4735_v2  ;;  %v6636_v61 = vpop.f32.mrb[116].mxu1  ;;  %v4817_v29 = vpop.f32.mrb[129].mxu0  ;;  %v4742_v51 = vld [vmem:[#allocation2 + $0x48] sm:$0xff] }
 0x2ad   : > { %v4640_v13 = vadd.f32 %v6636_v61, %v4429_v15  ;;  %v4944_v39 = vadd.f32 %v4817_v29, %v4733_v7  ;;  %v4571_v58 = vpop.f32.mrb[117].mxu1  ;;  %v6653_v8 = vpop.f32.mrb[130].mxu0  ;;  %v4437_v20 = vld [vmem:[#allocation2 + $0xf0] sm:$0xff] }
 0x2ae   : > { %4978 = vst.msk [vmem:[#allocation2 + $0x10] sm:$0xff] %vm324_vm5, %v4946_v53  ;;  %v4638_v10 = vadd.f32 %v4571_v58, %v4427_v46  ;;  %v4947_v32 = vadd.f32 %v6653_v8, %v4736_v0  ;;  %v6637_v3 = vpop.f32.mrb[118].mxu1  ;;  %v4820_v22 = vpop.f32.mrb[131].mxu0  ;;  %v4435_v38 = vld [vmem:[#allocation2 + $0xe0] sm:$0xff] }
 0x2af   : > { %4672 = vst.msk [vmem:[#allocation2 + $0xb0] sm:$0xff] %vm324_vm5, %v4640_v13  ;;  %4976 = vst.msk [vmem:[#allocation2] sm:$0xff] %vm324_vm5, %v4944_v39  ;;  %v4641_v57 = vadd.f32 %v6637_v3, %v4430_v25  ;;  %v4945_v47 = vadd.f32 %v4820_v22, %v4734_v18  ;;  %v4574_v30 = vpop.f32.mrb[119].mxu1  ;;  %v4438_v63 = vld [vmem:[#allocation2 + $0xf8] sm:$0xff]  ;;  %v4747_v39 = vld [vmem:[#allocation2 + $0x70] sm:$0xff] }
 0x2b0   : > { %4670 = vst.msk [vmem:[#allocation2 + $0xa0] sm:$0xff] %vm324_vm5, %v4638_v10  ;;  %4979 = vst.msk [vmem:[#allocation2 + $0x18] sm:$0xff] %vm324_vm5, %v4947_v32  ;;  %v4639_v43 = vadd.f32 %v4574_v30, %v4428_v33  ;;  %v4436_v7 = vld [vmem:[#allocation2 + $0xe8] sm:$0xff]  ;;  %v4745_v0 = vld [vmem:[#allocation2 + $0x60] sm:$0xff] }
 0x2b1   : > { %4673 = vst.msk [vmem:[#allocation2 + $0xb8] sm:$0xff] %vm324_vm5, %v4641_v57  ;;  %4977 = vst.msk [vmem:[#allocation2 + $0x8] sm:$0xff] %vm324_vm5, %v4945_v47  ;;  %v4748_v18 = vld [vmem:[#allocation2 + $0x78] sm:$0xff] }
 0x2b2   : > { %4671 = vst.msk [vmem:[#allocation2 + $0xa8] sm:$0xff] %vm324_vm5, %v4639_v43  ;;  %v4746_v43 = vld [vmem:[#allocation2 + $0x68] sm:$0xff] }
 0x2b3   : > { %v6656_v37 = vpop.f32.mrb[132].mxu0 }
 0x2b4   : > { %v4950_v59 = vadd.f32 %v6656_v37, %v4739_v31  ;;  %v6640_v34 = vpop.f32.mrb[120].mxu1  ;;  %v4833_v60 = vpop.f32.mrb[133].mxu0 }
 0x2b5   : > { %v4644_v12 = vadd.f32 %v6640_v34, %v4433_v26  ;;  %v4948_v24 = vadd.f32 %v4833_v60, %v4737_v55  ;;  %v4587_v45 = vpop.f32.mrb[121].mxu1  ;;  %v6657_v19 = vpop.f32.mrb[134].mxu0  ;;  %v5061_v10 = vld [vmem:[#allocation2 + $0x10] sm:$0xff] }
 0x2b6   : > { %4982 = vst.msk [vmem:[#allocation2 + $0x30] sm:$0xff] %vm324_vm5, %v4950_v59  ;;  %v4642_v48 = vadd.f32 %v4587_v45, %v4431_v1  ;;  %v4951_v50 = vadd.f32 %v6657_v19, %v4740_v4  ;;  %v6641_v56 = vpop.f32.mrb[122].mxu1  ;;  %v4836_v9 = vpop.f32.mrb[135].mxu0  ;;  %v5059_v57 = vld [vmem:[#allocation2] sm:$0xff] }
 0x2b7   : > { %4676 = vst.msk [vmem:[#allocation2 + $0xd0] sm:$0xff] %vm324_vm5, %v4644_v12  ;;  %4980 = vst.msk [vmem:[#allocation2 + $0x20] sm:$0xff] %vm324_vm5, %v4948_v24  ;;  %v4645_v54 = vadd.f32 %v6641_v56, %v4434_v11  ;;  %v4949_v28 = vadd.f32 %v4836_v9, %v4738_v35  ;;  %v4590_v36 = vpop.f32.mrb[123].mxu1  ;;  %v5062_v37 = vld [vmem:[#allocation2 + $0x18] sm:$0xff]  ;;  %v4751_v24 = vld [vmem:[#allocation2 + $0x90] sm:$0xff] }
 0x2b8   : > { %4674 = vst.msk [vmem:[#allocation2 + $0xc0] sm:$0xff] %vm324_vm5, %v4642_v48  ;;  %4983 = vst.msk [vmem:[#allocation2 + $0x38] sm:$0xff] %vm324_vm5, %v4951_v50  ;;  %v4643_v52 = vadd.f32 %v4590_v36, %v4432_v27  ;;  %v5060_v55 = vld [vmem:[#allocation2 + $0x8] sm:$0xff]  ;;  %v4749_v4 = vld [vmem:[#allocation2 + $0x80] sm:$0xff] }
 0x2b9   : > { %4677 = vst.msk [vmem:[#allocation2 + $0xd8] sm:$0xff] %vm324_vm5, %v4645_v54  ;;  %4981 = vst.msk [vmem:[#allocation2 + $0x28] sm:$0xff] %vm324_vm5, %v4949_v28  ;;  %v4752_v35 = vld [vmem:[#allocation2 + $0x98] sm:$0xff] }
 0x2ba   : > { %4675 = vst.msk [vmem:[#allocation2 + $0xc8] sm:$0xff] %vm324_vm5, %v4643_v52 }
 0x2bb   : > { %v6660_v41 = vpop.f32.mrb[136].mxu0 }
 0x2bc   : > { %v4954_v40 = vadd.f32 %v6660_v41, %v4743_v62  ;;  %v6644_v21 = vpop.f32.mrb[124].mxu1  ;;  %v4849_v42 = vpop.f32.mrb[137].mxu0  ;;  %v4750_v62 = vld [vmem:[#allocation2 + $0x88] sm:$0xff] }
 0x2bd   : > { %v4648_v16 = vadd.f32 %v6644_v21, %v4437_v20  ;;  %v4952_v17 = vadd.f32 %v4849_v42, %v4741_v6  ;;  %v4603_v49 = vpop.f32.mrb[125].mxu1  ;;  %v6661_v14 = vpop.f32.mrb[138].mxu0  ;;  %v5065_v48 = vld [vmem:[#allocation2 + $0x30] sm:$0xff] }
 0x2be   : > { %4986 = vst.msk [vmem:[#allocation2 + $0x50] sm:$0xff] %vm324_vm5, %v4954_v40  ;;  %v4646_v23 = vadd.f32 %v4603_v49, %v4435_v38  ;;  %v4955_v44 = vadd.f32 %v6661_v14, %v4744_v5  ;;  %v6645_v2 = vpop.f32.mrb[126].mxu1  ;;  %v4852_v53 = vpop.f32.mrb[139].mxu0  ;;  %v5063_v54 = vld [vmem:[#allocation2 + $0x20] sm:$0xff] }
 0x2bf   : > { %4680 = vst.msk [vmem:[#allocation2 + $0xf0] sm:$0xff] %vm324_vm5, %v4648_v16  ;;  %4984 = vst.msk [vmem:[#allocation2 + $0x40] sm:$0xff] %vm324_vm5, %v4952_v17  ;;  %v4649_v15 = vadd.f32 %v6645_v2, %v4438_v63  ;;  %v4953_v61 = vadd.f32 %v4852_v53, %v4742_v51  ;;  %v4606_v29 = vpop.f32.mrb[127].mxu1  ;;  %v5066_v42 = vld [vmem:[#allocation2 + $0x38] sm:$0xff] }
 0x2c0   : > { %4678 = vst.msk [vmem:[#allocation2 + $0xe0] sm:$0xff] %vm324_vm5, %v4646_v23  ;;  %4987 = vst.msk [vmem:[#allocation2 + $0x58] sm:$0xff] %vm324_vm5, %v4955_v44  ;;  %v4647_v13 = vadd.f32 %v4606_v29, %v4436_v7 }
 0x2c1   : > { %4681 = vst.msk [vmem:[#allocation2 + $0xf8] sm:$0xff] %vm324_vm5, %v4649_v15  ;;  %4985 = vst.msk [vmem:[#allocation2 + $0x48] sm:$0xff] %vm324_vm5, %v4953_v61  ;;  %v5064_v15 = vld [vmem:[#allocation2 + $0x28] sm:$0xff] }
 0x2c2   : > { %4679 = vst.msk [vmem:[#allocation2 + $0xe8] sm:$0xff] %vm324_vm5, %v4647_v13  ;;  %v4755_v13 = vld [vmem:[#allocation2 + $0xb0] sm:$0xff] }
 0x2c3   : > { %v6664_v46 = vpop.f32.mrb[140].mxu0 }
 0x2c4   : > { %v4958_v58 = vadd.f32 %v6664_v46, %v4747_v39  ;;  %v4865_v8 = vpop.f32.mrb[141].mxu0  ;;  %v6688_v32 = vpop.f32.mrb[128].mxu1  ;;  %v4753_v46 = vld [vmem:[#allocation2 + $0xa0] sm:$0xff] }
 0x2c5   : > { %v4956_v25 = vadd.f32 %v4865_v8, %v4745_v0  ;;  %v5272_v3 = vadd.f32 %v6688_v32, %v5061_v10  ;;  %v6665_v22 = vpop.f32.mrb[142].mxu0  ;;  %v5143_v47 = vpop.f32.mrb[129].mxu1 }
 0x2c6   : > { %4990 = vst.msk [vmem:[#allocation2 + $0x70] sm:$0xff] %vm324_vm5, %v4958_v58  ;;  %v4959_v33 = vadd.f32 %v6665_v22, %v4748_v18  ;;  %v5270_v30 = vadd.f32 %v5143_v47, %v5059_v57  ;;  %v4868_v31 = vpop.f32.mrb[143].mxu0  ;;  %v6689_v59 = vpop.f32.mrb[130].mxu1 }
 0x2c7   : > { %4988 = vst.msk [vmem:[#allocation2 + $0x60] sm:$0xff] %vm324_vm5, %v4956_v25  ;;  %5304 = vst.msk [vmem:[#allocation2 + $0x10] sm:$0xff] %vm324_vm5, %v5272_v3  ;;  %v4957_v26 = vadd.f32 %v4868_v31, %v4746_v43  ;;  %v5273_v34 = vadd.f32 %v6689_v59, %v5062_v37  ;;  %v5146_v60 = vpop.f32.mrb[131].mxu1  ;;  %v5069_v25 = vld [vmem:[#allocation2 + $0x50] sm:$0xff]  ;;  %v5067_v43 = vld [vmem:[#allocation2 + $0x40] sm:$0xff] }
 0x2c8   : > { %4991 = vst.msk [vmem:[#allocation2 + $0x78] sm:$0xff] %vm324_vm5, %v4959_v33  ;;  %5302 = vst.msk [vmem:[#allocation2] sm:$0xff] %vm324_vm5, %v5270_v30  ;;  %v5271_v12 = vadd.f32 %v5146_v60, %v5060_v55  ;;  %v4756_v33 = vld [vmem:[#allocation2 + $0xb8] sm:$0xff] }
 0x2c9   : > { %4989 = vst.msk [vmem:[#allocation2 + $0x68] sm:$0xff] %vm324_vm5, %v4957_v26  ;;  %5305 = vst.msk [vmem:[#allocation2 + $0x18] sm:$0xff] %vm324_vm5, %v5273_v34 }
 0x2ca   : > { %5303 = vst.msk [vmem:[#allocation2 + $0x8] sm:$0xff] %vm324_vm5, %v5271_v12 }
 0x2cb   : > { %v6668_v1 = vpop.f32.mrb[144].mxu0 }
 0x2cc   : > { %v4962_v45 = vadd.f32 %v6668_v1, %v4751_v24  ;;  %v4881_v19 = vpop.f32.mrb[145].mxu0  ;;  %v6692_v50 = vpop.f32.mrb[132].mxu1 }
 0x2cd   : > { %v4960_v11 = vadd.f32 %v4881_v19, %v4749_v4  ;;  %v5276_v56 = vadd.f32 %v6692_v50, %v5065_v48  ;;  %v6669_v9 = vpop.f32.mrb[146].mxu0  ;;  %v5159_v28 = vpop.f32.mrb[133].mxu1 }
 0x2ce   : > { %v5336_v27 = vld [vmem:[#allocation2 + $0x10] sm:$0xff]  ;;  %4994 = vst.msk [vmem:[#allocation2 + $0x90] sm:$0xff] %vm324_vm5, %v4962_v45  ;;  %v4963_v36 = vadd.f32 %v6669_v9, %v4752_v35  ;;  %v5274_v52 = vadd.f32 %v5159_v28, %v5063_v54  ;;  %v4884_v41 = vpop.f32.mrb[147].mxu0  ;;  %v6693_v40 = vpop.f32.mrb[134].mxu1  ;;  %v4754_v35 = vld [vmem:[#allocation2 + $0xa8] sm:$0xff]  ;;  %v5070_v9 = vld [vmem:[#allocation2 + $0x58] sm:$0xff] }
 0x2cf   : > { %v6148_v20 = vpack.c.bf16 %v5336_v27, %v5336_v27  ;;  %v5334_v21 = vld [vmem:[#allocation2] sm:$0xff]  ;;  %4992 = vst.msk [vmem:[#allocation2 + $0x80] sm:$0xff] %vm324_vm5, %v4960_v11  ;;  %5308 = vst.msk [vmem:[#allocation2 + $0x30] sm:$0xff] %vm324_vm5, %v5276_v56  ;;  %v4961_v6 = vadd.f32 %v4884_v41, %v4750_v62  ;;  %v5162_v16 = vpop.f32.mrb[135].mxu1  ;;  %v5277_v5 = vadd.f32 %v6693_v40, %v5066_v42  ;;  %v5530_v58 = vsel %vm324_vm5, %v5336_v27, 0.0  ;;  %v5068_v40 = vld [vmem:[#allocation2 + $0x48] sm:$0xff] }
 0x2d0   : > { %v6146_v17 = vpack.c.bf16 %v5334_v21, %v5334_v21  ;;  %v5598_v38 = vmul.f32 %v5334_v21, %v5334_v21  ;;  %v5337_v49 = vld [vmem:[#allocation2 + $0x18] sm:$0xff]  ;;  %4995 = vst.msk [vmem:[#allocation2 + $0x98] sm:$0xff] %vm324_vm5, %v4963_v36  ;;  %5306 = vst.msk [vmem:[#allocation2 + $0x20] sm:$0xff] %vm324_vm5, %v5274_v52  ;;  %v5600_v14 = vmul.f32 %v5336_v27, %v5336_v27  ;;  %v5527_v63 = vsel %vm324_vm5, %v5334_v21, 0.0 }
 0x2d1   : > { %5497 = vst.msk [vmem:[%s8987_s23 + $0x8] sm:$0xf] %vm5494_vm10, %v6148_v20  ;;  %v6149_v23 = vpack.c.bf16 %v5337_v49, %v5337_v49  ;;  %v5335_v44 = vld [vmem:[#allocation2 + $0x8] sm:$0xff]  ;;  %v5601_v61 = vmul.f32 %v5337_v49, %v5337_v49  ;;  %v5275_v29 = vadd.f32 %v5162_v16, %v5064_v15  ;;  %v5532_v12 = vsel %vm324_vm5, %v5337_v49, 0.0  ;;  %v4757_v49 = vld [vmem:[#allocation2 + $0xc0] sm:$0xff] }
 0x2d2   : > { %4993 = vst.msk [vmem:[#allocation2 + $0x88] sm:$0xff] %vm324_vm5, %v4961_v6  ;;  %v6147_v2 = vpack.c.bf16 %v5335_v44, %v5335_v44  ;;  %v5528_v51 = vsel %vm324_vm5, %v5335_v44, 0.0  ;;  %v5599_v53 = vmul.f32 %v5335_v44, %v5335_v44  ;;  %5309 = vst.msk [vmem:[#allocation2 + $0x38] sm:$0xff] %vm324_vm5, %v5277_v5  ;;  %v5630_v0 = vsel %vm324_vm5, %v5598_v38, 0.0  ;;  %v4759_v6 = vld [vmem:[#allocation2 + $0xd0] sm:$0xff] }
 0x2d3   : > { %5495 = vst.msk [vmem:[%s8987_s23] sm:$0xf] %vm5494_vm10, %v6146_v17  ;;  %5498 = vst.msk [vmem:[%s8987_s23 + $0xc] sm:$0xf] %vm5494_vm10, %v6149_v23  ;;  %v5529_v7 = vadd.f32 %v5528_v51, %v5527_v63  ;;  %v6672_v39 = vpop.f32.mrb[148].mxu0  ;;  %v5633_v37 = vsel %vm324_vm5, %v5600_v14, 0.0 }
 0x2d4   : > { %5496 = vst.msk [vmem:[%s8987_s23 + $0x4] sm:$0xf] %vm5494_vm10, %v6147_v2  ;;  %v5631_v8 = vsel %vm324_vm5, %v5599_v53, 0.0  ;;  %v4966_v10 = vadd.f32 %v6672_v39, %v4755_v13  ;;  %v4897_v32 = vpop.f32.mrb[149].mxu0  ;;  %v6696_v3 = vpop.f32.mrb[136].mxu1  ;;  %v5635_v24 = vsel %vm324_vm5, %v5601_v61, 0.0 }
 0x2d5   : > { %v5531_v18 = vadd.f32 %v5530_v58, %v5529_v7  ;;  %v5632_v22 = vadd.f32 %v5631_v8, %v5630_v0  ;;  %5307 = vst.msk [vmem:[#allocation2 + $0x28] sm:$0xff] %vm324_vm5, %v5275_v29  ;;  %v4964_v57 = vadd.f32 %v4897_v32, %v4753_v46  ;;  %v5280_v47 = vadd.f32 %v6696_v3, %v5069_v25  ;;  %v6673_v30 = vpop.f32.mrb[150].mxu0  ;;  %v5175_v31 = vpop.f32.mrb[137].mxu1  ;;  %v5073_v51 = vld [vmem:[#allocation2 + $0x70] sm:$0xff]  ;;  %v4760_v53 = vld [vmem:[#allocation2 + $0xd8] sm:$0xff] }
 0x2d6   : > { %v5340_v59 = vld [vmem:[#allocation2 + $0x30] sm:$0xff]  ;;  %4998 = vst.msk [vmem:[#allocation2 + $0xb0] sm:$0xff] %vm324_vm5, %v4966_v10  ;;  %v4967_v26 = vadd.f32 %v6673_v30, %v4756_v33  ;;  %v5278_v34 = vadd.f32 %v5175_v31, %v5067_v43  ;;  %v4900_v55 = vpop.f32.mrb[151].mxu0  ;;  %v6697_v60 = vpop.f32.mrb[138].mxu1  ;;  %v5071_v30 = vld [vmem:[#allocation2 + $0x60] sm:$0xff]  ;;  %v4758_v43 = vld [vmem:[#allocation2 + $0xc8] sm:$0xff] }
 0x2d7   : > { %v5634_v1 = vadd.f32 %v5633_v37, %v5632_v22  ;;  %v6152_v45 = vpack.c.bf16 %v5340_v59, %v5340_v59  ;;  %v5338_v4 = vld [vmem:[#allocation2 + $0x20] sm:$0xff]  ;;  %4996 = vst.msk [vmem:[#allocation2 + $0xa0] sm:$0xff] %vm324_vm5, %v4964_v57  ;;  %5312 = vst.msk [vmem:[#allocation2 + $0x50] sm:$0xff] %vm324_vm5, %v5280_v47  ;;  %v5178_v19 = vpop.f32.mrb[139].mxu1  ;;  %v5533_v50 = vadd.f32 %v5532_v12, %v5531_v18  ;;  %v5538_v23 = vsel %vm324_vm5, %v5340_v59, 0.0 }
 0x2d8   : > { %v6150_v48 = vpack.c.bf16 %v5338_v4, %v5338_v4  ;;  %v5534_v11 = vsel %vm324_vm5, %v5338_v4, 0.0  ;;  %v5602_v56 = vmul.f32 %v5338_v4, %v5338_v4  ;;  %4999 = vst.msk [vmem:[#allocation2 + $0xb8] sm:$0xff] %vm324_vm5, %v4967_v26  ;;  %5310 = vst.msk [vmem:[#allocation2 + $0x40] sm:$0xff] %vm324_vm5, %v5278_v34  ;;  %v4965_v27 = vadd.f32 %v4900_v55, %v4754_v35  ;;  %v5074_v34 = vld [vmem:[#allocation2 + $0x78] sm:$0xff]  ;;  %v5072_v55 = vld [vmem:[#allocation2 + $0x68] sm:$0xff] }
 0x2d9   : > { %5501 = vst.msk [vmem:[%s8987_s23 + $0x18] sm:$0xf] %vm5494_vm10, %v6152_v45  ;;  %v5636_v54 = vadd.f32 %v5635_v24, %v5634_v1  ;;  %v5341_v28 = vld [vmem:[#allocation2 + $0x38] sm:$0xff]  ;;  %v5281_v36 = vadd.f32 %v6697_v60, %v5070_v9  ;;  %v5535_v52 = vadd.f32 %v5534_v11, %v5533_v50  ;;  %v5604_v20 = vmul.f32 %v5340_v59, %v5340_v59  ;;  %v4763_v11 = vld [vmem:[#allocation2 + $0xf0] sm:$0xff] }
 0x2da   : > { %5499 = vst.msk [vmem:[%s8987_s23 + $0x10] sm:$0xf] %vm5494_vm10, %v6150_v48  ;;  %v5637_v62 = vsel %vm324_vm5, %v5602_v56, 0.0  ;;  %v6153_v41 = vpack.c.bf16 %v5341_v28, %v5341_v28  ;;  %v5279_v21 = vadd.f32 %v5178_v19, %v5068_v40  ;;  %v5605_v10 = vmul.f32 %v5341_v28, %v5341_v28 }
 0x2db   : > { %4997 = vst.msk [vmem:[#allocation2 + $0xa8] sm:$0xff] %vm324_vm5, %v4965_v27  ;;  %5313 = vst.msk [vmem:[#allocation2 + $0x58] sm:$0xff] %vm324_vm5, %v5281_v36  ;;  %v6676_v42 = vpop.f32.mrb[152].mxu0  ;;  %v5638_v16 = vadd.f32 %v5637_v62, %v5636_v54  ;;  %v5641_v8 = vsel %vm324_vm5, %v5604_v20, 0.0  ;;  %v5540_v22 = vsel %vm324_vm5, %v5341_v28, 0.0 }
 0x2dc   : > { %5502 = vst.msk [vmem:[%s8987_s23 + $0x1c] sm:$0xf] %vm5494_vm10, %v6153_v41  ;;  %v5339_v17 = vld [vmem:[#allocation2 + $0x28] sm:$0xff]  ;;  %v4970_v38 = vadd.f32 %v6676_v42, %v4759_v6  ;;  %v4913_v5 = vpop.f32.mrb[153].mxu0  ;;  %v6700_v14 = vpop.f32.mrb[140].mxu1  ;;  %v5643_v4 = vsel %vm324_vm5, %v5605_v10, 0.0 }
 0x2dd   : > { %v6151_v44 = vpack.c.bf16 %v5339_v17, %v5339_v17  ;;  %v5536_v63 = vsel %vm324_vm5, %v5339_v17, 0.0  ;;  %v5603_v2 = vmul.f32 %v5339_v17, %v5339_v17  ;;  %5311 = vst.msk [vmem:[#allocation2 + $0x48] sm:$0xff] %vm324_vm5, %v5279_v21  ;;  %v6677_v15 = vpop.f32.mrb[154].mxu0  ;;  %v5191_v61 = vpop.f32.mrb[141].mxu1  ;;  %v4968_v13 = vadd.f32 %v4913_v5, %v4757_v49  ;;  %v4761_v21 = vld [vmem:[#allocation2 + $0xe0] sm:$0xff]  ;;  %v5077_v6 = vld [vmem:[#allocation2 + $0x90] sm:$0xff] }
 0x2de   : > { %v5537_v7 = vadd.f32 %v5536_v63, %v5535_v52  ;;  %v5344_v29 = vld [vmem:[#allocation2 + $0x50] sm:$0xff]  ;;  %5002 = vst.msk [vmem:[#allocation2 + $0xd0] sm:$0xff] %vm324_vm5, %v4970_v38  ;;  %v5284_v39 = vadd.f32 %v6700_v14, %v5073_v51  ;;  %v4971_v46 = vadd.f32 %v6677_v15, %v4760_v53  ;;  %v4916_v58 = vpop.f32.mrb[155].mxu0  ;;  %v6701_v0 = vpop.f32.mrb[142].mxu1  ;;  %v5282_v59 = vadd.f32 %v5191_v61, %v5071_v30  ;;  %v4764_v14 = vld [vmem:[#allocation2 + $0xf8] sm:$0xff] }
 0x2df   : > { %5500 = vst.msk [vmem:[%s8987_s23 + $0x14] sm:$0xf] %vm5494_vm10, %v6151_v44  ;;  %v5639_v32 = vsel %vm324_vm5, %v5603_v2, 0.0  ;;  %v6156_v25 = vpack.c.bf16 %v5344_v29, %v5344_v29  ;;  %v5342_v3 = vld [vmem:[#allocation2 + $0x40] sm:$0xff]  ;;  %v5194_v18 = vpop.f32.mrb[143].mxu1  ;;  %v4969_v26 = vadd.f32 %v4916_v58, %v4758_v43  ;;  %v5285_v1 = vadd.f32 %v6701_v0, %v5074_v34  ;;  %v4762_v44 = vld [vmem:[#allocation2 + $0xe8] sm:$0xff] }
 0x2e0   : > { %v5539_v57 = vadd.f32 %v5538_v23, %v5537_v7  ;;  %v5640_v47 = vadd.f32 %v5639_v32, %v5638_v16  ;;  %v6154_v33 = vpack.c.bf16 %v5342_v3, %v5342_v3  ;;  %5000 = vst.msk [vmem:[#allocation2 + $0xc0] sm:$0xff] %vm324_vm5, %v4968_v13  ;;  %5316 = vst.msk [vmem:[#allocation2 + $0x70] sm:$0xff] %vm324_vm5, %v5284_v39  ;;  %v5542_v31 = vsel %vm324_vm5, %v5342_v3, 0.0  ;;  %v5075_v23 = vld [vmem:[#allocation2 + $0x80] sm:$0xff]  ;;  %v5078_v58 = vld [vmem:[#allocation2 + $0x98] sm:$0xff] }
 0x2e1   : > { %5003 = vst.msk [vmem:[#allocation2 + $0xd8] sm:$0xff] %vm324_vm5, %v4971_v46  ;;  %v5606_v37 = vmul.f32 %v5342_v3, %v5342_v3  ;;  %v5283_v45 = vadd.f32 %v5194_v18, %v5072_v55  ;;  %v5546_v19 = vsel %vm324_vm5, %v5344_v29, 0.0  ;;  %5314 = vst.msk [vmem:[#allocation2 + $0x60] sm:$0xff] %vm324_vm5, %v5282_v59  ;;  %v5608_v35 = vmul.f32 %v5344_v29, %v5344_v29  ;;  %v5076_v0 = vld [vmem:[#allocation2 + $0x88] sm:$0xff] }
 0x2e2   : > { %5505 = vst.msk [vmem:[%s8987_s23 + $0x28] sm:$0xf] %vm5494_vm10, %v6156_v25  ;;  %v5642_v60 = vadd.f32 %v5641_v8, %v5640_v47  ;;  %5503 = vst.msk [vmem:[%s8987_s23 + $0x20] sm:$0xf] %vm5494_vm10, %v6154_v33  ;;  %v5541_v12 = vadd.f32 %v5540_v22, %v5539_v57  ;;  %v5345_v24 = vld [vmem:[#allocation2 + $0x58] sm:$0xff] }
 0x2e3   : > { %v5645_v48 = vsel %vm324_vm5, %v5606_v37, 0.0  ;;  %v6157_v50 = vpack.c.bf16 %v5345_v24, %v5345_v24  ;;  %5001 = vst.msk [vmem:[#allocation2 + $0xc8] sm:$0xff] %vm324_vm5, %v4969_v26  ;;  %v6680_v56 = vpop.f32.mrb[156].mxu0  ;;  %5317 = vst.msk [vmem:[#allocation2 + $0x78] sm:$0xff] %vm324_vm5, %v5285_v1  ;;  %v5609_v62 = vmul.f32 %v5345_v24, %v5345_v24  ;;  %v5649_v8 = vsel %vm324_vm5, %v5608_v35, 0.0  ;;  %v5081_v1 = vld [vmem:[#allocation2 + $0xb0] sm:$0xff] }
 0x2e4   : > { %v5543_v9 = vadd.f32 %v5542_v31, %v5541_v12  ;;  %v5644_v54 = vadd.f32 %v5643_v4, %v5642_v60  ;;  %v5343_v28 = vld [vmem:[#allocation2 + $0x48] sm:$0xff]  ;;  %5315 = vst.msk [vmem:[#allocation2 + $0x68] sm:$0xff] %vm324_vm5, %v5283_v45  ;;  %v4974_v27 = vadd.f32 %v6680_v56, %v4763_v11  ;;  %v4929_v36 = vpop.f32.mrb[157].mxu0  ;;  %v6704_v52 = vpop.f32.mrb[144].mxu1  ;;  %v5548_v10 = vsel %vm324_vm5, %v5345_v24, 0.0  ;;  %v5079_v11 = vld [vmem:[#allocation2 + $0xa0] sm:$0xff] }
 0x2e5   : > { %5506 = vst.msk [vmem:[%s8987_s23 + $0x2c] sm:$0xf] %vm5494_vm10, %v6157_v50  ;;  %v6155_v41 = vpack.c.bf16 %v5343_v28, %v5343_v28  ;;  %v5544_v40 = vsel %vm324_vm5, %v5343_v28, 0.0  ;;  %v5607_v20 = vmul.f32 %v5343_v28, %v5343_v28  ;;  %v6681_v42 = vpop.f32.mrb[158].mxu0  ;;  %v5207_v16 = vpop.f32.mrb[145].mxu1  ;;  %v4972_v49 = vadd.f32 %v4929_v36, %v4761_v21  ;;  %v5082_v56 = vld [vmem:[#allocation2 + $0xb8] sm:$0xff] }
 0x2e6   : > { %v5646_v17 = vadd.f32 %v5645_v48, %v5644_v54  ;;  %v5545_v38 = vadd.f32 %v5544_v40, %v5543_v9  ;;  %5006 = vst.msk [vmem:[#allocation2 + $0xf0] sm:$0xff] %vm324_vm5, %v4974_v27  ;;  %v5288_v5 = vadd.f32 %v6704_v52, %v5077_v6  ;;  %v4932_v63 = vpop.f32.mrb[159].mxu0  ;;  %v6705_v2 = vpop.f32.mrb[146].mxu1  ;;  %v4975_v15 = vadd.f32 %v6681_v42, %v4764_v14 }
 0x2e7   : > { %5504 = vst.msk [vmem:[%s8987_s23 + $0x24] sm:$0xf] %vm5494_vm10, %v6155_v41  ;;  %v5647_v51 = vsel %vm324_vm5, %v5607_v20, 0.0  ;;  %v5348_v53 = vld [vmem:[#allocation2 + $0x70] sm:$0xff]  ;;  %v5286_v61 = vadd.f32 %v5207_v16, %v5075_v23  ;;  %v4973_v7 = vadd.f32 %v4932_v63, %v4762_v44  ;;  %v5210_v29 = vpop.f32.mrb[147].mxu1  ;;  %v5289_v32 = vadd.f32 %v6705_v2, %v5078_v58 }
 0x2e8   : > { %v5547_v13 = vadd.f32 %v5546_v19, %v5545_v38  ;;  %v5648_v39 = vadd.f32 %v5647_v51, %v5646_v17  ;;  %v6160_v46 = vpack.c.bf16 %v5348_v53, %v5348_v53  ;;  %5004 = vst.msk [vmem:[#allocation2 + $0xe0] sm:$0xff] %vm324_vm5, %v4972_v49  ;;  %5320 = vst.msk [vmem:[#allocation2 + $0x90] sm:$0xff] %vm324_vm5, %v5288_v5  ;;  %v5346_v18 = vld [vmem:[#allocation2 + $0x60] sm:$0xff]  ;;  %v5651_v57 = vsel %vm324_vm5, %v5609_v62, 0.0  ;;  %v5080_v17 = vld [vmem:[#allocation2 + $0xa8] sm:$0xff] }
 0x2e9   : > { %5007 = vst.msk [vmem:[#allocation2 + $0xf8] sm:$0xff] %vm324_vm5, %v4975_v15  ;;  %5318 = vst.msk [vmem:[#allocation2 + $0x80] sm:$0xff] %vm324_vm5, %v5286_v61  ;;  %v5287_v25 = vadd.f32 %v5210_v29, %v5076_v0  ;;  %v6158_v47 = vpack.c.bf16 %v5346_v18, %v5346_v18  ;;  %v5550_v33 = vsel %vm324_vm5, %v5346_v18, 0.0  ;;  %v5610_v30 = vmul.f32 %v5346_v18, %v5346_v18  ;;  %v5083_v0 = vld [vmem:[#allocation2 + $0xc0] sm:$0xff]  ;;  %v5086_v18 = vld [vmem:[#allocation2 + $0xd8] sm:$0xff] }
 0x2ea   : > { %5005 = vst.msk [vmem:[#allocation2 + $0xe8] sm:$0xff] %vm324_vm5, %v4973_v7  ;;  %v5650_v3 = vadd.f32 %v5649_v8, %v5648_v39  ;;  %v5549_v22 = vadd.f32 %v5548_v10, %v5547_v13  ;;  %v5349_v43 = vld [vmem:[#allocation2 + $0x78] sm:$0xff]  ;;  %5321 = vst.msk [vmem:[#allocation2 + $0x98] sm:$0xff] %vm324_vm5, %v5289_v32  ;;  %v5612_v55 = vmul.f32 %v5348_v53, %v5348_v53  ;;  %v5554_v9 = vsel %vm324_vm5, %v5348_v53, 0.0  ;;  %v5085_v7 = vld [vmem:[#allocation2 + $0xd0] sm:$0xff] }
 0x2eb   : > { %5509 = vst.msk [vmem:[%s8987_s23 + $0x38] sm:$0xf] %vm5494_vm10, %v6160_v46  ;;  %v5347_v31 = vld [vmem:[#allocation2 + $0x68] sm:$0xff]  ;;  %v6161_v26 = vpack.c.bf16 %v5349_v43, %v5349_v43  ;;  %5507 = vst.msk [vmem:[%s8987_s23 + $0x30] sm:$0xf] %vm5494_vm10, %v6158_v47  ;;  %v5653_v60 = vsel %vm324_vm5, %v5610_v30, 0.0  ;;  %v5613_v52 = vmul.f32 %v5349_v43, %v5349_v43 }
 0x2ec   : > { %5319 = vst.msk [vmem:[#allocation2 + $0x88] sm:$0xff] %vm324_vm5, %v5287_v25  ;;  %v5551_v37 = vadd.f32 %v5550_v33, %v5549_v22  ;;  %v5652_v59 = vadd.f32 %v5651_v57, %v5650_v3  ;;  %v6708_v34 = vpop.f32.mrb[148].mxu1  ;;  %v6159_v12 = vpack.c.bf16 %v5347_v31, %v5347_v31  ;;  %v5552_v24 = vsel %vm324_vm5, %v5347_v31, 0.0 }
 0x2ed   : > { %v5223_v45 = vpop.f32.mrb[149].mxu1  ;;  %5510 = vst.msk [vmem:[%s8987_s23 + $0x3c] sm:$0xf] %vm5494_vm10, %v6161_v26  ;;  %v5611_v48 = vmul.f32 %v5347_v31, %v5347_v31  ;;  %v5292_v50 = vadd.f32 %v6708_v34, %v5081_v1  ;;  %v5556_v21 = vsel %vm324_vm5, %v5349_v43, 0.0  ;;  %v5657_v38 = vsel %vm324_vm5, %v5612_v55, 0.0 }
 0x2ee   : > { %v5654_v4 = vadd.f32 %v5653_v60, %v5652_v59  ;;  %v5553_v19 = vadd.f32 %v5552_v24, %v5551_v37  ;;  %v6709_v35 = vpop.f32.mrb[150].mxu1  ;;  %5508 = vst.msk [vmem:[%s8987_s23 + $0x34] sm:$0xf] %vm5494_vm10, %v6159_v12  ;;  %v5290_v28 = vadd.f32 %v5223_v45, %v5079_v11  ;;  %v5659_v51 = vsel %vm324_vm5, %v5613_v52, 0.0  ;;  %v5089_v52 = vld [vmem:[#allocation2 + $0xf0] sm:$0xff] }
 0x2ef   : > { %v5352_v54 = vld [vmem:[#allocation2 + $0x90] sm:$0xff]  ;;  %v5293_v27 = vadd.f32 %v6709_v35, %v5082_v56  ;;  %v5226_v36 = vpop.f32.mrb[151].mxu1  ;;  %v5655_v41 = vsel %vm324_vm5, %v5611_v48, 0.0  ;;  %5324 = vst.msk [vmem:[#allocation2 + $0xb0] sm:$0xff] %vm324_vm5, %v5292_v50  ;;  %v5084_v48 = vld [vmem:[#allocation2 + $0xc8] sm:$0xff] }
 0x2f0   : > { %v5555_v62 = vadd.f32 %v5554_v9, %v5553_v19  ;;  %v6164_v40 = vpack.c.bf16 %v5352_v54, %v5352_v54  ;;  %v5350_v20 = vld [vmem:[#allocation2 + $0x80] sm:$0xff]  ;;  %v5656_v6 = vadd.f32 %v5655_v41, %v5654_v4  ;;  %5322 = vst.msk [vmem:[#allocation2 + $0xa0] sm:$0xff] %vm324_vm5, %v5290_v28  ;;  %v5291_v44 = vadd.f32 %v5226_v36, %v5080_v17 }
 0x2f1   : > { %v6162_v42 = vpack.c.bf16 %v5350_v20, %v5350_v20  ;;  %v5558_v16 = vsel %vm324_vm5, %v5350_v20, 0.0  ;;  %5325 = vst.msk [vmem:[#allocation2 + $0xb8] sm:$0xff] %vm324_vm5, %v5293_v27  ;;  %v5614_v5 = vmul.f32 %v5350_v20, %v5350_v20  ;;  %v5353_v14 = vld [vmem:[#allocation2 + $0x98] sm:$0xff]  ;;  %v5562_v10 = vsel %vm324_vm5, %v5352_v54, 0.0  ;;  %v5087_v20 = vld [vmem:[#allocation2 + $0xe0] sm:$0xff] }
 0x2f2   : > { %5513 = vst.msk [vmem:[%s8987_s23 + $0x48] sm:$0xf] %vm5494_vm10, %v6164_v40  ;;  %v5557_v49 = vadd.f32 %v5556_v21, %v5555_v62  ;;  %v5658_v63 = vadd.f32 %v5657_v38, %v5656_v6  ;;  %v6165_v2 = vpack.c.bf16 %v5353_v14, %v5353_v14  ;;  %v5616_v32 = vmul.f32 %v5352_v54, %v5352_v54 }
 0x2f3   : > { %v5351_v23 = vld [vmem:[#allocation2 + $0x88] sm:$0xff]  ;;  %5511 = vst.msk [vmem:[%s8987_s23 + $0x40] sm:$0xf] %vm5494_vm10, %v6162_v42  ;;  %v5661_v15 = vsel %vm324_vm5, %v5614_v5, 0.0  ;;  %v5617_v47 = vmul.f32 %v5353_v14, %v5353_v14  ;;  %v5564_v37 = vsel %vm324_vm5, %v5353_v14, 0.0 }
 0x2f4   : > { %v5559_v53 = vadd.f32 %v5558_v16, %v5557_v49  ;;  %v6163_v61 = vpack.c.bf16 %v5351_v23, %v5351_v23  ;;  %5323 = vst.msk [vmem:[#allocation2 + $0xa8] sm:$0xff] %vm324_vm5, %v5291_v44  ;;  %v6712_v29 = vpop.f32.mrb[152].mxu1  ;;  %v5660_v13 = vadd.f32 %v5659_v51, %v5658_v63  ;;  %v5560_v39 = vsel %vm324_vm5, %v5351_v23, 0.0 }
 0x2f5   : > { %5514 = vst.msk [vmem:[%s8987_s23 + $0x4c] sm:$0xf] %vm5494_vm10, %v6165_v2  ;;  %v5615_v46 = vmul.f32 %v5351_v23, %v5351_v23  ;;  %v5296_v58 = vadd.f32 %v6712_v29, %v5085_v7  ;;  %v5239_v8 = vpop.f32.mrb[153].mxu1  ;;  %v5665_v45 = vsel %vm324_vm5, %v5616_v32, 0.0  ;;  %v5667_v50 = vsel %vm324_vm5, %v5617_v47, 0.0 }
 0x2f6   : > { %5512 = vst.msk [vmem:[%s8987_s23 + $0x44] sm:$0xf] %vm5494_vm10, %v6163_v61  ;;  %v5561_v25 = vadd.f32 %v5560_v39, %v5559_v53  ;;  %v5294_v3 = vadd.f32 %v5239_v8, %v5083_v0  ;;  %v6713_v22 = vpop.f32.mrb[154].mxu1  ;;  %v5662_v57 = vadd.f32 %v5661_v15, %v5660_v13  ;;  %v5356_v30 = vld [vmem:[#allocation2 + $0xb0] sm:$0xff] }
 0x2f7   : > { %v5663_v33 = vsel %vm324_vm5, %v5615_v46, 0.0  ;;  %5328 = vst.msk [vmem:[#allocation2 + $0xd0] sm:$0xff] %vm324_vm5, %v5296_v58  ;;  %v5297_v43 = vadd.f32 %v6713_v22, %v5086_v18  ;;  %v5242_v31 = vpop.f32.mrb[155].mxu1  ;;  %v6168_v26 = vpack.c.bf16 %v5356_v30, %v5356_v30  ;;  %v5354_v34 = vld [vmem:[#allocation2 + $0xa0] sm:$0xff]  ;;  %v5620_v6 = vmul.f32 %v5356_v30, %v5356_v30  ;;  %v5090_v46 = vld [vmem:[#allocation2 + $0xf8] sm:$0xff] }
 0x2f8   : > { %v5563_v59 = vadd.f32 %v5562_v10, %v5561_v25  ;;  %v5357_v55 = vld [vmem:[#allocation2 + $0xb8] sm:$0xff]  ;;  %5326 = vst.msk [vmem:[#allocation2 + $0xc0] sm:$0xff] %vm324_vm5, %v5294_v3  ;;  %v5664_v60 = vadd.f32 %v5663_v33, %v5662_v57  ;;  %v6166_v12 = vpack.c.bf16 %v5354_v34, %v5354_v34  ;;  %v5566_v24 = vsel %vm324_vm5, %v5354_v34, 0.0  ;;  %v5088_v10 = vld [vmem:[#allocation2 + $0xe8] sm:$0xff] }
 0x2f9   : > { %v5618_v1 = vmul.f32 %v5354_v34, %v5354_v34  ;;  %5329 = vst.msk [vmem:[#allocation2 + $0xd8] sm:$0xff] %vm324_vm5, %v5297_v43  ;;  %v6169_v19 = vpack.c.bf16 %v5357_v55, %v5357_v55  ;;  %v5295_v9 = vadd.f32 %v5242_v31, %v5084_v48  ;;  %v5570_v5 = vsel %vm324_vm5, %v5356_v30, 0.0 }
 0x2fa   : > { %5517 = vst.msk [vmem:[%s8987_s23 + $0x58] sm:$0xf] %vm5494_vm10, %v6168_v26  ;;  %v5565_v4 = vadd.f32 %v5564_v37, %v5563_v59  ;;  %v5666_v11 = vadd.f32 %v5665_v45, %v5664_v60  ;;  %5515 = vst.msk [vmem:[%s8987_s23 + $0x50] sm:$0xf] %vm5494_vm10, %v6166_v12  ;;  %v5621_v2 = vmul.f32 %v5357_v55, %v5357_v55  ;;  %v5572_v7 = vsel %vm324_vm5, %v5357_v55, 0.0 }
 0x2fb   : > { %v5669_v56 = vsel %vm324_vm5, %v5618_v1, 0.0  ;;  %v5355_v35 = vld [vmem:[#allocation2 + $0xa8] sm:$0xff]  ;;  %5518 = vst.msk [vmem:[%s8987_s23 + $0x5c] sm:$0xf] %vm5494_vm10, %v6169_v19  ;;  %v5673_v58 = vsel %vm324_vm5, %v5620_v6, 0.0 }
 0x2fc   : > { %v5567_v54 = vadd.f32 %v5566_v24, %v5565_v4  ;;  %v6167_v28 = vpack.c.bf16 %v5355_v35, %v5355_v35  ;;  %v5568_v27 = vsel %vm324_vm5, %v5355_v35, 0.0  ;;  %v5619_v36 = vmul.f32 %v5355_v35, %v5355_v35  ;;  %v6716_v62 = vpop.f32.mrb[156].mxu1  ;;  %5327 = vst.msk [vmem:[#allocation2 + $0xc8] sm:$0xff] %vm324_vm5, %v5295_v9 }
 0x2fd   : > { %v5668_v41 = vadd.f32 %v5667_v50, %v5666_v11  ;;  %v5300_v40 = vadd.f32 %v6716_v62, %v5089_v52  ;;  %v5255_v21 = vpop.f32.mrb[157].mxu1  ;;  %v5675_v3 = vsel %vm324_vm5, %v5621_v2, 0.0 }
 0x2fe   : > { %5516 = vst.msk [vmem:[%s8987_s23 + $0x54] sm:$0xf] %vm5494_vm10, %v6167_v28  ;;  %v5569_v42 = vadd.f32 %v5568_v27, %v5567_v54  ;;  %v5671_v16 = vsel %vm324_vm5, %v5619_v36, 0.0  ;;  %v5360_v17 = vld [vmem:[#allocation2 + $0xd0] sm:$0xff]  ;;  %v5298_v38 = vadd.f32 %v5255_v21, %v5087_v20  ;;  %v6717_v49 = vpop.f32.mrb[158].mxu1 }
 0x2ff   : > { %v5670_v14 = vadd.f32 %v5669_v56, %v5668_v41  ;;  %v6172_v23 = vpack.c.bf16 %v5360_v17, %v5360_v17  ;;  %v5358_v44 = vld [vmem:[#allocation2 + $0xc0] sm:$0xff]  ;;  %5332 = vst.msk [vmem:[#allocation2 + $0xf0] sm:$0xff] %vm324_vm5, %v5300_v40  ;;  %v5258_v63 = vpop.f32.mrb[159].mxu1  ;;  %v5301_v8 = vadd.f32 %v6717_v49, %v5090_v46  ;;  %v5624_v31 = vmul.f32 %v5360_v17, %v5360_v17 }
 0x300   : > { %v5571_v51 = vadd.f32 %v5570_v5, %v5569_v42  ;;  %v6170_v53 = vpack.c.bf16 %v5358_v44, %v5358_v44  ;;  %v5622_v15 = vmul.f32 %v5358_v44, %v5358_v44  ;;  %v5361_v61 = vld [vmem:[#allocation2 + $0xd8] sm:$0xff]  ;;  %5330 = vst.msk [vmem:[#allocation2 + $0xe0] sm:$0xff] %vm324_vm5, %v5298_v38  ;;  %v5574_v13 = vsel %vm324_vm5, %v5358_v44, 0.0 }
 0x301   : > { %v5672_v29 = vadd.f32 %v5671_v16, %v5670_v14  ;;  %5521 = vst.msk [vmem:[%s8987_s23 + $0x68] sm:$0xf] %vm5494_vm10, %v6172_v23  ;;  %v6173_v39 = vpack.c.bf16 %v5361_v61, %v5361_v61  ;;  %v5299_v25 = vadd.f32 %v5258_v63, %v5088_v10  ;;  %v5578_v26 = vsel %vm324_vm5, %v5360_v17, 0.0 }
 0x302   : > { %5519 = vst.msk [vmem:[%s8987_s23 + $0x60] sm:$0xf] %vm5494_vm10, %v6170_v53  ;;  %v5573_v0 = vadd.f32 %v5572_v7, %v5571_v51  ;;  %v5677_v22 = vsel %vm324_vm5, %v5622_v15, 0.0  ;;  %v5625_v24 = vmul.f32 %v5361_v61, %v5361_v61  ;;  %v5580_v4 = vsel %vm324_vm5, %v5361_v61, 0.0 }
 0x303   : > { %v5674_v32 = vadd.f32 %v5673_v58, %v5672_v29  ;;  %5522 = vst.msk [vmem:[%s8987_s23 + $0x6c] sm:$0xf] %vm5494_vm10, %v6173_v39  ;;  %v5359_v57 = vld [vmem:[#allocation2 + $0xc8] sm:$0xff]  ;;  %v5681_v11 = vsel %vm324_vm5, %v5624_v31, 0.0 }
 0x304   : > { %v5575_v18 = vadd.f32 %v5574_v13, %v5573_v0  ;;  %5333 = vst.msk [vmem:[#allocation2 + $0xf8] sm:$0xff] %vm324_vm5, %v5301_v8  ;;  %v6171_v33 = vpack.c.bf16 %v5359_v57, %v5359_v57  ;;  %v5576_v30 = vsel %vm324_vm5, %v5359_v57, 0.0  ;;  %v5623_v43 = vmul.f32 %v5359_v57, %v5359_v57  ;;  %5331 = vst.msk [vmem:[#allocation2 + $0xe8] sm:$0xff] %vm324_vm5, %v5299_v25 }
 0x305   : > { %v5676_v47 = vadd.f32 %v5675_v3, %v5674_v32  ;;  %v5683_v54 = vsel %vm324_vm5, %v5625_v24, 0.0 }
 0x306   : > { %v5577_v37 = vadd.f32 %v5576_v30, %v5575_v18  ;;  %v5364_v59 = vld [vmem:[#allocation2 + $0xf0] sm:$0xff]  ;;  %5520 = vst.msk [vmem:[%s8987_s23 + $0x64] sm:$0xf] %vm5494_vm10, %v6171_v33  ;;  %v5679_v55 = vsel %vm324_vm5, %v5623_v43, 0.0 }
 0x307   : > { %v5678_v34 = vadd.f32 %v5677_v22, %v5676_v47  ;;  %v6176_v60 = vpack.c.bf16 %v5364_v59, %v5364_v59  ;;  %v5362_v12 = vld [vmem:[#allocation2 + $0xe0] sm:$0xff]  ;;  %v5628_v21 = vmul.f32 %v5364_v59, %v5364_v59  ;;  %v5586_v42 = vsel %vm324_vm5, %v5364_v59, 0.0 }
 0x308   : > { %v5579_v1 = vadd.f32 %v5578_v26, %v5577_v37  ;;  %v6174_v45 = vpack.c.bf16 %v5362_v12, %v5362_v12  ;;  %v5582_v48 = vsel %vm324_vm5, %v5362_v12, 0.0  ;;  %v5626_v50 = vmul.f32 %v5362_v12, %v5362_v12 }
 0x309   : > { %v5680_v19 = vadd.f32 %v5679_v55, %v5678_v34  ;;  %5525 = vst.msk [vmem:[%s8987_s23 + $0x78] sm:$0xf] %vm5494_vm10, %v6176_v60  ;;  %v5689_v23 = vsel %vm324_vm5, %v5628_v21, 0.0 }
 0x30a   : > { %5523 = vst.msk [vmem:[%s8987_s23 + $0x70] sm:$0xf] %vm5494_vm10, %v6174_v45  ;;  %v5581_v56 = vadd.f32 %v5580_v4, %v5579_v1  ;;  %v5685_v27 = vsel %vm324_vm5, %v5626_v50, 0.0 }
 0x30b   : > { %v5682_v35 = vadd.f32 %v5681_v11, %v5680_v19  ;;  %v5365_v9 = vld [vmem:[#allocation2 + $0xf8] sm:$0xff]  ;;  %v5363_v52 = vld [vmem:[#allocation2 + $0xe8] sm:$0xff] }
 0x30c   : > { %v5583_v28 = vadd.f32 %v5582_v48, %v5581_v56  ;;  %v6177_v36 = vpack.c.bf16 %v5365_v9, %v5365_v9  ;;  %v6175_v41 = vpack.c.bf16 %v5363_v52, %v5363_v52  ;;  %v5584_v40 = vsel %vm324_vm5, %v5363_v52, 0.0 }
 0x30d   : > { %v5684_v62 = vadd.f32 %v5683_v54, %v5682_v35  ;;  %v5627_v20 = vmul.f32 %v5363_v52, %v5363_v52  ;;  %v5629_v38 = vmul.f32 %v5365_v9, %v5365_v9  ;;  %v5588_v5 = vsel %vm324_vm5, %v5365_v9, 0.0 }
 0x30e   : > { %5526 = vst.msk [vmem:[%s8987_s23 + $0x7c] sm:$0xf] %vm5494_vm10, %v6177_v36  ;;  %v5585_v6 = vadd.f32 %v5584_v40, %v5583_v28  ;;  %5524 = vst.msk [vmem:[%s8987_s23 + $0x74] sm:$0xf] %vm5494_vm10, %v6175_v41 }
 0x30f   : > { %v5686_v16 = vadd.f32 %v5685_v27, %v5684_v62  ;;  %v5687_v17 = vsel %vm324_vm5, %v5627_v20, 0.0  ;;  %v5691_v2 = vsel %vm324_vm5, %v5629_v38, 0.0 }
 0x310   : > { %v5587_v49 = vadd.f32 %v5586_v42, %v5585_v6 }
 0x311   : > { %v5688_v14 = vadd.f32 %v5687_v17, %v5686_v16 }
 0x312   : > { %v5589_v44 = vadd.f32 %v5588_v5, %v5587_v49 }
 0x313   : > { %v5690_v63 = vadd.f32 %v5689_v23, %v5688_v14 }
 0x314   : > { %v5590_v51 = vrot.slane %v5589_v44, 4 }
 0x315   : > { %v5692_v53 = vadd.f32 %v5691_v2, %v5690_v63 }
 0x316   : > { %v5591_v15 = vadd.f32 %v5590_v51, %v5589_v44 }
 0x317   : > { %v5693_v61 = vrot.slane %v5692_v53, 4 }
 0x318   : > { %v5592_v7 = vrot.slane %v5591_v15, 2 }
 0x319   : > { %v5694_v29 = vadd.f32 %v5693_v61, %v5692_v53 }
 0x31a   : > { %v5593_v13 = vadd.f32 %v5592_v7, %v5591_v15 }
 0x31b   : > { %v5695_v39 = vrot.slane %v5694_v29, 2 }
 0x31c   : > { %v5594_v46 = vrot.slane %v5593_v13, 1 }
 0x31d   : > { %v5696_v58 = vadd.f32 %v5695_v39, %v5694_v29 }
 0x31e   : > { %v5595_v0 = vadd.f32 %v5594_v46, %v5593_v13 }
 0x31f   : > { %v5697_v8 = vrot.slane %v5696_v58, 1 }
 0x320   : > { %5597 = vst.msk [vmem:[%s312_s28] sm:$0x1] %vm5596_vm11, %v5595_v0 }
 0x321   : > { %v5698_v10 = vadd.f32 %v5697_v8, %v5696_v58 }
 0x323   : > { %5699 = vst.msk [vmem:[%s315_s13] sm:$0x1] %vm5596_vm11, %v5698_v10 }
 0x324 PF: > { %s18_s24 = sadd.s32 1, %s6887_s24  }
 0x325   : > { %p15_p4 = scmp.ge.s32.totalorder %s18_s24, 4  }
 0x327   :  { %17 = sbr.rel (!%p15_p4) target bundleno = 1 (0x1), region = 105 }

</bundles_post_ra>
